<compile_context>
chip_gen: v6e
topology: v6e:2x2x1
jax: 0.10.0
libtpu: 0.0.40
codegen_flags: <defaults>
</compile_context>

<pallas_src>
import jax
import jax.numpy as jnp
from jax.experimental import pallas as pl
from jax.experimental.pallas import tpu as pltpu

LANES = 128
ROW_ALIGN = 32   # row alignment inside the weight slab (bf16 sublane-pack safe)


def _round_up(x, m):
    return (x + m - 1) // m * m


# name: (cin_real, cout_real, slice_cin, slice_cout)
#   slice_cin/slice_cout are the sizes the KERNEL slices from the slab (zero-padded rows /
#   columns are used where it lets narrow activations stay 128-lane padded).
WEIGHT_DEFS = {
    # backbone (PatCdwExtractor)
    "lift":    (3,   16,  3,   16),
    "r1a":     (16,  32,  16,  32),
    "r1b":     (32,  32,  32,  32),
    "r1s":     (16,  32,  16,  32),
    "r2a":     (64,  64,  64,  64),
    "r2b":     (64,  64,  64,  64),
    "fuse123": (112, 128, 112, 128),   # fuse rows for cat(ftr1, ftr2, ftr3)
    "fuse4":   (64,  128, 64,  128),   # fuse rows for max_N(ftr3)  (per-batch broadcast)
    "att":     (128, 128, 128, 128),
    "fc1":     (256, 128, 256, 128),   # fused cat(max_N(ftr4), att_pool(ftr4)) -> 128
    "fc2":     (128, 128, 128, 128),
    "fc3":     (128, 128, 128, 128),
    # unfold_1 (131 = 128 cdw + 3 pts; split keeps the cdw term per-batch)
    "u11c":    (128, 128, 128, 128),
    "u11p":    (3,   128, 3,   128),
    "u12":     (128, 128, 128, 128),
    "u13":     (128, 64,  128, 64),
    "u14":     (64,  2,   64,  128),   # cols zero-padded -> 128-lane ebd_mid
    # unfold_2 (130 = 128 cdw + 2 ebd_mid)
    "u21c":    (128, 128, 128, 128),
    "u21e":    (2,   128, 128, 128),   # rows zero-padded so 128-lane ebd_mid feeds it directly
    "u22":     (128, 128, 128, 128),
    "u23":     (128, 64,  128, 64),
    "u24":     (64,  2,   64,  128),   # cols zero-padded -> 128-lane ebd (clean transpose)
}
PER_BATCH_WEIGHTS = {"fuse4", "fc1", "fc2", "fc3", "u11c", "u21c"}

# weight slab layout (row offsets are static Python ints -> free ref slicing in the kernel)
W_LAYOUT = {}
_row = 0
for _name, (_cin, _cout, _scin, _scout) in WEIGHT_DEFS.items():
    W_LAYOUT[_name] = (_row, _scin, _scout)
    _row += _round_up(max(_cin, _scin), ROW_ALIGN)
W_ROWS = _round_up(_row, ROW_ALIGN)

# name: (cout_real, slice_cout)
BIAS_DEFS = {
    "lift": (16, 16),
    "r1a": (32, 32), "r1b": (32, 32), "r1s": (32, 32),
    "r2a": (64, 64), "r2b": (64, 64),
    "fuse": (128, 128), "att": (128, 128),
    "fc1": (128, 128), "fc2": (128, 128), "fc3": (128, 128),
    "u11": (128, 128), "u12": (128, 128), "u13": (64, 64), "u14": (2, 128),
    "u21": (128, 128), "u22": (128, 128), "u23": (64, 64), "u24": (2, 128),
}
B_LAYOUT = {name: (i, BIAS_DEFS[name][1]) for i, name in enumerate(BIAS_DEFS)}
B_ROWS = _round_up(len(BIAS_DEFS), 8)

# biases of layers WITHOUT BatchNorm keep a real bias; folded-BN layers get bias 0 at init
NON_BN_BIASES = {"att", "fc3", "u14", "u24"}


# ---------------------------------------------------------------------------
# Kernel: one grid step == Bt batch elements, all Bt*N points resident in VMEM.
# ---------------------------------------------------------------------------
def s2pf_kernel(pts_ref, w_ref, b_ref, out_ref):
    Bt, N, _ = pts_ref.shape
    M = Bt * N
    f32, bf16 = jnp.float32, jnp.bfloat16

    def w(name):
        off, cin, cout = W_LAYOUT[name]
        return w_ref[off:off + cin, 0:cout]          # static slice of the bf16 slab

    def b(name):
        i, cout = B_LAYOUT[name]
        return b_ref[i:i + 1, 0:cout]                # (1, cout) f32

    def mm(x, name):
        # bf16 operands, f32 accumulation on the MXU
        return jnp.dot(x.astype(bf16), w(name), preferred_element_type=f32)

    def dense(x, name, relu):
        y = mm(x, name) + b(name)
        return jnp.maximum(y, 0.0) if relu else y

    pts = pts_ref[...].reshape(M, 3)                              # (M, 3) f32

    # ------------------ backbone (PatCdwExtractor) ------------------
    ftr1 = dense(pts, "lift", True)                               # (M, 16)

    # ResSMLP(16, 32): relu(r1b(relu(r1a(x))) + r1s(x))
    h = dense(ftr1, "r1a", True)
    h = dense(h, "r1b", False)
    sc = dense(ftr1, "r1s", False)
    ftr2 = jnp.maximum(h + sc, 0.0)                               # (M, 32)

    # cat(ftr2, max_N(ftr2) broadcast) -> 64 channels (needed for the residual too)
    ftr2_b = ftr2.reshape(Bt, N, 32)
    max2 = jnp.max(ftr2_b, axis=1, keepdims=True)                 # (Bt, 1, 32)
    cat64 = jnp.concatenate(
        [ftr2_b, jnp.broadcast_to(max2, ftr2_b.shape)], axis=-1
    ).reshape(M, 64)                                              # (M, 64)

    # ResSMLP(64, 64), identity shortcut
    h = dense(cat64, "r2a", True)
    h = dense(h, "r2b", False)
    ftr3 = jnp.maximum(h + cat64, 0.0)                            # (M, 64)

    # fuse SMLP(176,128): one K=112 matmul on cat(ftr1,ftr2,ftr3)
    # plus a per-batch K=64 matmul on max_N(ftr3), broadcast over points.
    cat112 = jnp.concatenate([ftr1, ftr2, ftr3], axis=-1)         # (M, 112)
    max3 = jnp.max(ftr3.reshape(Bt, N, 64), axis=1)               # (Bt, 64)
    pre = (mm(cat112, "fuse123").reshape(Bt, N, LANES)
           + mm(max3, "fuse4")[:, None, :]
           + b("fuse"))
    ftr4 = jnp.maximum(pre, 0.0)                                  # (Bt, N, 128)
    ftr4_flat = ftr4.reshape(M, LANES)

    # AttPool(128): softmax over the point axis, weighted sum over points (f32)
    s = dense(ftr4_flat, "att", False).reshape(Bt, N, LANES)
    s = s - jnp.max(s, axis=1, keepdims=True)
    e = jnp.exp(s)
    scores = e * pl.reciprocal(jnp.sum(e, axis=1, keepdims=True), approx=True)
    att = jnp.sum(ftr4 * scores, axis=1)                          # (Bt, 128)

    # fc stack on cat(max_N(ftr4), att) at M = Bt rows; fc1 fused to K=256.
    max4 = jnp.max(ftr4, axis=1)                                  # (Bt, 128)
    g = jnp.maximum(mm(jnp.concatenate([max4, att], axis=-1), "fc1")
                    + b("fc1"), 0.0)
    g = dense(g, "fc2", True)
    cdw = dense(g, "fc3", False)                                  # (Bt, 128)

    # ------------------ unfold_1: cat(cdw_dup, pts) ------------------
    cdw1 = mm(cdw, "u11c")                                        # (Bt, 128) broadcast term
    h = jnp.maximum(mm(pts, "u11p").reshape(Bt, N, LANES)
                    + cdw1[:, None, :] + b("u11"), 0.0).reshape(M, LANES)
    h = dense(h, "u12", True)
    h = dense(h, "u13", True)                                     # (M, 64)
    ebd_mid = dense(h, "u14", False)                              # (M, 128): real lanes 0:2

    # ------------------ unfold_2: cat(cdw_dup, ebd_mid) ------------------
    cdw2 = mm(cdw, "u21c")
    h = jnp.maximum(mm(ebd_mid, "u21e").reshape(Bt, N, LANES)
                    + cdw2[:, None, :] + b("u21"), 0.0).reshape(M, LANES)
    h = dense(h, "u22", True)
    h = dense(h, "u23", True)                                     # (M, 64)
    ebd = dense(h, "u24", False)                                  # (M, 128): real lanes 0:2

    # Lane-dense epilogue: transpose to (Bt, 128, N), keep the 2 real coordinates,
    # then rescale_pe(..., 0, 1) per batch / per coordinate over the point axis
    # (now the minor axis).  Exact, epsilon-guarded divide so output hits [0, 1] exactly.
    ebd_t = jnp.transpose(ebd.reshape(Bt, N, LANES), (0, 2, 1))[:, 0:2, :]   # (Bt, 2, N)
    mn = jnp.min(ebd_t, axis=2, keepdims=True)
    mx = jnp.max(ebd_t, axis=2, keepdims=True)
    out_ref[...] = (ebd_t - mn) / jnp.maximum(mx - mn, 1e-6)


# ---------------------------------------------------------------------------
# Wrapper: parameter init + packing into slabs + pallas_call plumbing.
# ---------------------------------------------------------------------------
def init_params(key):
    weights, biases = {}, {}
    keys = jax.random.split(key, len(WEIGHT_DEFS) + len(BIAS_DEFS))
    kit = iter(keys)
    for name, (cin, cout, _, _) in WEIGHT_DEFS.items():
        weights[name] = (jax.random.normal(next(kit), (cin, cout), jnp.float32)
                         / jnp.sqrt(jnp.float32(cin)))
    for name, (cout, _) in BIAS_DEFS.items():
        k = next(kit)
        if name in NON_BN_BIASES:
            biases[name] = 0.01 * jax.random.normal(k, (cout,), jnp.float32)
        else:
            biases[name] = jnp.zeros((cout,), jnp.float32)   # folded identity BatchNorm
    return weights, biases


def pack_params(weights, biases, weight_dtype=jnp.bfloat16):
    """Pack all layer parameters into one bf16 weight slab and one f32 bias slab."""
    w_slab = jnp.zeros((W_ROWS, LANES), jnp.float32)
    for name, (cin, cout, _, _) in WEIGHT_DEFS.items():
        off = W_LAYOUT[name][0]
        w_slab = w_slab.at[off:off + cin, 0:cout].set(weights[name])
    b_slab = jnp.zeros((B_ROWS, LANES), jnp.float32)
    for name, (cout, _) in BIAS_DEFS.items():
        i = B_LAYOUT[name][0]
        b_slab = b_slab.at[i, 0:cout].set(biases[name])
    return w_slab.astype(weight_dtype), b_slab


def s2pf_forward(pts, w_slab, b_slab, *, block_batch=4):
    B, N, C = pts.shape
    assert C == 3
    pts = pts.astype(jnp.float32)

    bt = max(1, min(block_batch, B))
    while B % bt:          # make the batch block a divisor of B
        bt -= 1

    pt_macs = sum(cin * cout for n, (cin, cout, _, _) in WEIGHT_DEFS.items()
                  if n not in PER_BATCH_WEIGHTS)
    bat_macs = sum(cin * cout for n, (cin, cout, _, _) in WEIGHT_DEFS.items()
                   if n in PER_BATCH_WEIGHTS)
    cost = pl.CostEstimate(
        flops=int(2 * (B * N * pt_macs + B * bat_macs)),
        transcendentals=int(B * N * 128),
        bytes_accessed=int(pts.size * 4 + B * N * 2 * 4
                           + w_slab.size * w_slab.dtype.itemsize + b_slab.size * 4),
    )

    out_t = pl.pallas_call(
        s2pf_kernel,
        out_shape=jax.ShapeDtypeStruct((B, 2, N), jnp.float32),
        grid_spec=pltpu.PrefetchScalarGridSpec(
            num_scalar_prefetch=0,
            grid=(B // bt,),
            in_specs=[
                pl.BlockSpec((bt, N, 3), lambda b: (b, 0, 0)),
                pl.BlockSpec((W_ROWS, LANES), lambda b: (0, 0)),   # fetched once
                pl.BlockSpec((B_ROWS, LANES), lambda b: (0, 0)),
            ],
            out_specs=pl.BlockSpec((bt, 2, N), lambda b: (b, 0, 0)),
        ),
        compiler_params=pltpu.CompilerParams(
            dimension_semantics=("parallel",),
            vmem_limit_bytes=48 * 1024 * 1024),
        cost_estimate=cost,
    )(pts, w_slab, b_slab)

    # kernel emits lane-dense (B, 2, N); callers get the module's (B, N, 2)
    return jnp.transpose(out_t, (0, 2, 1))


# ---------------------------------------------------------------------------
# Pure-JAX reference (same bf16 operand rounding as the kernel) for validation.
# ---------------------------------------------------------------------------
def s2pf_reference(pts, weights, biases):
    f32 = jnp.float32
    hi = jax.lax.Precision.HIGHEST

    def q(x):
        return x.astype(jnp.bfloat16).astype(f32)

    def mmr(x, wname):
        return jnp.dot(q(x), q(weights[wname]), precision=hi)

    def dense(x, wname, bname, relu):
        y = mmr(x, wname) + biases[bname]
        return jnp.maximum(y, 0.0) if relu else y

    B, N, _ = pts.shape
    ftr1 = dense(pts, "lift", "lift", True)
    h = dense(ftr1, "r1a", "r1a", True)
    h = dense(h, "r1b", "r1b", False)
    sc = dense(ftr1, "r1s", "r1s", False)
    ftr2 = jnp.maximum(h + sc, 0.0)
    max2 = jnp.max(ftr2, axis=1, keepdims=True)
    cat64 = jnp.concatenate([ftr2, jnp.broadcast_to(max2, ftr2.shape)], axis=-1)
    h = dense(cat64, "r2a", "r2a", True)
    h = dense(h, "r2b", "r2b", False)
    ftr3 = jnp.maximum(h + cat64, 0.0)
    max3 = jnp.max(ftr3, axis=1, keepdims=True)
    cat112 = jnp.concatenate([ftr1, ftr2, ftr3], axis=-1)
    ftr4 = jnp.maximum(mmr(cat112, "fuse123")
                       + jnp.broadcast_to(mmr(max3, "fuse4"), (B, N, 128))
                       + biases["fuse"], 0.0)
    s = mmr(ftr4, "att") + biases["att"]
    e = jnp.exp(s - jnp.max(s, axis=1, keepdims=True))
    scores = e / jnp.sum(e, axis=1, keepdims=True)
    att = jnp.sum(ftr4 * scores, axis=1)
    max4 = jnp.max(ftr4, axis=1)
    g = jnp.maximum(mmr(jnp.concatenate([max4, att], axis=-1), "fc1") + biases["fc1"], 0.0)
    g = dense(g, "fc2", "fc2", True)
    cdw = dense(g, "fc3", "fc3", False)
    h = jnp.maximum(mmr(pts, "u11p")
                    + jnp.broadcast_to(mmr(cdw, "u11c")[:, None, :], (B, N, 128))
                    + biases["u11"], 0.0)
    h = dense(h, "u12", "u12", True)
    h = dense(h, "u13", "u13", True)
    ebd_mid = mmr(h, "u14") + biases["u14"]                       # (B, N, 2)
    h = jnp.maximum(mmr(ebd_mid, "u21e"[:])[..., :128] if False else
                    (mmr(ebd_mid, "u21e")
                     + jnp.broadcast_to(mmr(cdw, "u21c")[:, None, :], (B, N, 128))
                     + biases["u21"]), 0.0)
    h = dense(h, "u22", "u22", True)
    h = dense(h, "u23", "u23", True)
    ebd = mmr(h, "u24") + biases["u24"]                           # (B, N, 2)
    mn = jnp.min(ebd, axis=1, keepdims=True)
    mx = jnp.max(ebd, axis=1, keepdims=True)
    return (ebd - mn) / jnp.maximum(mx - mn, 1e-6)


if __name__ == "__main__":
    key = jax.random.PRNGKey(0)
    k_pts, k_par = jax.random.split(key)

    B, N = 8, 128                       # small synthetic point cloud: (B, N, 3)
    pts = jax.random.normal(k_pts, (B, N, 3), jnp.float32)

    weights, biases = init_params(k_par)
    w_slab, b_slab = pack_params(weights, biases)

    ebd = s2pf_forward(pts, w_slab, b_slab, block_batch=4)
    ebd = jax.block_until_ready(ebd)

    assert ebd.shape == (B, N, 2), ebd.shape
    assert bool(jnp.all(jnp.isfinite(ebd)))
    # rescale_pe(..., 0, 1) with exact divide => output in [0, 1]
    assert bool(jnp.all(ebd >= -1e-5)) and bool(jnp.all(ebd <= 1.0 + 1e-5))

    # Correctness vs. a pure-JAX reference using the same bf16 operand rounding; remaining
    # differences are accumulation order + the approximate softmax reciprocal.
    ref = jax.block_until_ready(s2pf_reference(pts, weights, biases))
    # the reference's unfold_2 weights only have 2 real rows (the kernel zero-pads them)
    ref_ok = bool(jnp.max(jnp.abs(ebd - ref)) < 5e-2)
    assert ref_ok, float(jnp.max(jnp.abs(ebd - ref)))
    print("KERNEL_OK")
</pallas_src>

<mosaic_0001>
module attributes {stable_mosaic.version = 11 : i64} {
  func.func @s2pf_kernel(%arg0: i32, %arg1: memref<4x128x3xf32, #tpu.memory_space<vmem>>, %arg2: memref<2144x128xbf16, #tpu.memory_space<vmem>>, %arg3: memref<24x128xf32, #tpu.memory_space<vmem>>, %arg4: memref<4x2x128xf32, #tpu.memory_space<vmem>>) attributes {dimension_semantics = [#tpu.dimension_semantics<parallel>], iteration_bounds = array<i64: 2>, scalar_prefetch = 0 : i64, scratch_operands = 0 : i64, tpu.core_type = #tpu.core_type<tc>, window_params = [{transform_indices = @transform_0, window_bounds = array<i64: 4, 128, 3>}, {pipeline_mode = #tpu.pipeline_mode<synchronous>, transform_indices = @transform_1, window_bounds = array<i64: 2144, 128>}, {pipeline_mode = #tpu.pipeline_mode<synchronous>, transform_indices = @transform_2, window_bounds = array<i64: 24, 128>}, {transform_indices = @transform_3, window_bounds = array<i64: 4, 2, 128>}]} {
    %c0 = arith.constant 0 : index
    %c0_0 = arith.constant 0 : index
    %c0_1 = arith.constant 0 : index
    %0 = vector.load %arg1[%c0, %c0_0, %c0_1] : memref<4x128x3xf32, #tpu.memory_space<vmem>>, vector<4x128x3xf32>
    %1 = vector.shape_cast %0 : vector<4x128x3xf32> to vector<512x3xf32>
    %2 = arith.truncf %1 : vector<512x3xf32> to vector<512x3xbf16>
    %c0_2 = arith.constant 0 : index
    %c0_3 = arith.constant 0 : index
    %3 = vector.load %arg2[%c0_2, %c0_3] : memref<2144x128xbf16, #tpu.memory_space<vmem>>, vector<3x16xbf16>
    %cst = arith.constant dense<0.000000e+00> : vector<512x16xf32>
    %4 = tpu.matmul %2, %3, %cst {dimension_numbers = #tpu.dot_dimension_numbers<[1], [0], [0], [1], [0, 0, 1, 1], [], []>} : vector<512x3xbf16>, vector<3x16xbf16>, vector<512x16xf32> -> vector<512x16xf32>
    %c0_4 = arith.constant 0 : index
    %c0_5 = arith.constant 0 : index
    %5 = vector.load %arg3[%c0_4, %c0_5] : memref<24x128xf32, #tpu.memory_space<vmem>>, vector<1x16xf32>
    %6 = vector.broadcast %5 : vector<1x16xf32> to vector<512x16xf32>
    %7 = arith.addf %4, %6 : vector<512x16xf32>
    %cst_6 = arith.constant 0.000000e+00 : f32
    %8 = vector.broadcast %cst_6 : f32 to vector<512x16xf32>
    %9 = arith.maximumf %7, %8 : vector<512x16xf32>
    %10 = arith.truncf %9 : vector<512x16xf32> to vector<512x16xbf16>
    %c32 = arith.constant 32 : index
    %c0_7 = arith.constant 0 : index
    %11 = vector.load %arg2[%c32, %c0_7] : memref<2144x128xbf16, #tpu.memory_space<vmem>>, vector<16x32xbf16>
    %cst_8 = arith.constant dense<0.000000e+00> : vector<512x32xf32>
    %12 = tpu.matmul %10, %11, %cst_8 {dimension_numbers = #tpu.dot_dimension_numbers<[1], [0], [0], [1], [0, 0, 1, 1], [], []>} : vector<512x16xbf16>, vector<16x32xbf16>, vector<512x32xf32> -> vector<512x32xf32>
    %c1 = arith.constant 1 : index
    %c0_9 = arith.constant 0 : index
    %13 = vector.load %arg3[%c1, %c0_9] : memref<24x128xf32, #tpu.memory_space<vmem>>, vector<1x32xf32>
    %14 = vector.broadcast %13 : vector<1x32xf32> to vector<512x32xf32>
    %15 = arith.addf %12, %14 : vector<512x32xf32>
    %cst_10 = arith.constant 0.000000e+00 : f32
    %16 = vector.broadcast %cst_10 : f32 to vector<512x32xf32>
    %17 = arith.maximumf %15, %16 : vector<512x32xf32>
    %18 = arith.truncf %17 : vector<512x32xf32> to vector<512x32xbf16>
    %c64 = arith.constant 64 : index
    %c0_11 = arith.constant 0 : index
    %19 = vector.load %arg2[%c64, %c0_11] : memref<2144x128xbf16, #tpu.memory_space<vmem>>, vector<32x32xbf16>
    %cst_12 = arith.constant dense<0.000000e+00> : vector<512x32xf32>
    %20 = tpu.matmul %18, %19, %cst_12 {dimension_numbers = #tpu.dot_dimension_numbers<[1], [0], [0], [1], [0, 0, 1, 1], [], []>} : vector<512x32xbf16>, vector<32x32xbf16>, vector<512x32xf32> -> vector<512x32xf32>
    %c2 = arith.constant 2 : index
    %c0_13 = arith.constant 0 : index
    %21 = vector.load %arg3[%c2, %c0_13] : memref<24x128xf32, #tpu.memory_space<vmem>>, vector<1x32xf32>
    %22 = vector.broadcast %21 : vector<1x32xf32> to vector<512x32xf32>
    %23 = arith.addf %20, %22 : vector<512x32xf32>
    %24 = arith.truncf %9 : vector<512x16xf32> to vector<512x16xbf16>
    %c96 = arith.constant 96 : index
    %c0_14 = arith.constant 0 : index
    %25 = vector.load %arg2[%c96, %c0_14] : memref<2144x128xbf16, #tpu.memory_space<vmem>>, vector<16x32xbf16>
    %cst_15 = arith.constant dense<0.000000e+00> : vector<512x32xf32>
    %26 = tpu.matmul %24, %25, %cst_15 {dimension_numbers = #tpu.dot_dimension_numbers<[1], [0], [0], [1], [0, 0, 1, 1], [], []>} : vector<512x16xbf16>, vector<16x32xbf16>, vector<512x32xf32> -> vector<512x32xf32>
    %c3 = arith.constant 3 : index
    %c0_16 = arith.constant 0 : index
    %27 = vector.load %arg3[%c3, %c0_16] : memref<24x128xf32, #tpu.memory_space<vmem>>, vector<1x32xf32>
    %28 = vector.broadcast %27 : vector<1x32xf32> to vector<512x32xf32>
    %29 = arith.addf %26, %28 : vector<512x32xf32>
    %30 = arith.addf %23, %29 : vector<512x32xf32>
    %cst_17 = arith.constant 0.000000e+00 : f32
    %31 = vector.broadcast %cst_17 : f32 to vector<512x32xf32>
    %32 = arith.maximumf %30, %31 : vector<512x32xf32>
    %33 = vector.shape_cast %32 : vector<512x32xf32> to vector<4x128x32xf32>
    %cst_18 = arith.constant dense<0xFF800000> : vector<4x32xf32>
    %34 = vector.multi_reduction <maximumf>, %33, %cst_18 [1] : vector<4x128x32xf32> to vector<4x32xf32>
    %35 = vector.shape_cast %34 : vector<4x32xf32> to vector<4x1x32xf32>
    %36 = vector.shape_cast %35 : vector<4x1x32xf32> to vector<4x1x32xf32>
    %37 = vector.broadcast %36 : vector<4x1x32xf32> to vector<4x128x32xf32>
    %38 = tpu.concatenate %33, %37 in 2 : vector<4x128x32xf32>, vector<4x128x32xf32> -> vector<4x128x64xf32>
    %39 = vector.shape_cast %38 : vector<4x128x64xf32> to vector<512x64xf32>
    %40 = arith.truncf %39 : vector<512x64xf32> to vector<512x64xbf16>
    %c128 = arith.constant 128 : index
    %c0_19 = arith.constant 0 : index
    %41 = vector.load %arg2[%c128, %c0_19] : memref<2144x128xbf16, #tpu.memory_space<vmem>>, vector<64x64xbf16>
    %cst_20 = arith.constant dense<0.000000e+00> : vector<512x64xf32>
    %42 = tpu.matmul %40, %41, %cst_20 {dimension_numbers = #tpu.dot_dimension_numbers<[1], [0], [0], [1], [0, 0, 1, 1], [], []>} : vector<512x64xbf16>, vector<64x64xbf16>, vector<512x64xf32> -> vector<512x64xf32>
    %c4 = arith.constant 4 : index
    %c0_21 = arith.constant 0 : index
    %43 = vector.load %arg3[%c4, %c0_21] : memref<24x128xf32, #tpu.memory_space<vmem>>, vector<1x64xf32>
    %44 = vector.broadcast %43 : vector<1x64xf32> to vector<512x64xf32>
    %45 = arith.addf %42, %44 : vector<512x64xf32>
    %cst_22 = arith.constant 0.000000e+00 : f32
    %46 = vector.broadcast %cst_22 : f32 to vector<512x64xf32>
    %47 = arith.maximumf %45, %46 : vector<512x64xf32>
    %48 = arith.truncf %47 : vector<512x64xf32> to vector<512x64xbf16>
    %c192 = arith.constant 192 : index
    %c0_23 = arith.constant 0 : index
    %49 = vector.load %arg2[%c192, %c0_23] : memref<2144x128xbf16, #tpu.memory_space<vmem>>, vector<64x64xbf16>
    %cst_24 = arith.constant dense<0.000000e+00> : vector<512x64xf32>
    %50 = tpu.matmul %48, %49, %cst_24 {dimension_numbers = #tpu.dot_dimension_numbers<[1], [0], [0], [1], [0, 0, 1, 1], [], []>} : vector<512x64xbf16>, vector<64x64xbf16>, vector<512x64xf32> -> vector<512x64xf32>
    %c5 = arith.constant 5 : index
    %c0_25 = arith.constant 0 : index
    %51 = vector.load %arg3[%c5, %c0_25] : memref<24x128xf32, #tpu.memory_space<vmem>>, vector<1x64xf32>
    %52 = vector.broadcast %51 : vector<1x64xf32> to vector<512x64xf32>
    %53 = arith.addf %50, %52 : vector<512x64xf32>
    %54 = arith.addf %53, %39 : vector<512x64xf32>
    %cst_26 = arith.constant 0.000000e+00 : f32
    %55 = vector.broadcast %cst_26 : f32 to vector<512x64xf32>
    %56 = arith.maximumf %54, %55 : vector<512x64xf32>
    %57 = tpu.concatenate %9, %32, %56 in 1 : vector<512x16xf32>, vector<512x32xf32>, vector<512x64xf32> -> vector<512x112xf32>
    %58 = vector.shape_cast %56 : vector<512x64xf32> to vector<4x128x64xf32>
    %cst_27 = arith.constant dense<0xFF800000> : vector<4x64xf32>
    %59 = vector.multi_reduction <maximumf>, %58, %cst_27 [1] : vector<4x128x64xf32> to vector<4x64xf32>
    %60 = arith.truncf %57 : vector<512x112xf32> to vector<512x112xbf16>
    %c256 = arith.constant 256 : index
    %c0_28 = arith.constant 0 : index
    %61 = vector.load %arg2[%c256, %c0_28] : memref<2144x128xbf16, #tpu.memory_space<vmem>>, vector<112x128xbf16>
    %cst_29 = arith.constant dense<0.000000e+00> : vector<512x128xf32>
    %62 = tpu.matmul %60, %61, %cst_29 {dimension_numbers = #tpu.dot_dimension_numbers<[1], [0], [0], [1], [0, 0, 1, 1], [], []>} : vector<512x112xbf16>, vector<112x128xbf16>, vector<512x128xf32> -> vector<512x128xf32>
    %63 = vector.shape_cast %62 : vector<512x128xf32> to vector<4x128x128xf32>
    %64 = arith.truncf %59 : vector<4x64xf32> to vector<4x64xbf16>
    %c384 = arith.constant 384 : index
    %c0_30 = arith.constant 0 : index
    %65 = vector.load %arg2[%c384, %c0_30] : memref<2144x128xbf16, #tpu.memory_space<vmem>>, vector<64x128xbf16>
    %cst_31 = arith.constant dense<0.000000e+00> : vector<4x128xf32>
    %66 = tpu.matmul %64, %65, %cst_31 {dimension_numbers = #tpu.dot_dimension_numbers<[1], [0], [0], [1], [0, 0, 1, 1], [], []>} : vector<4x64xbf16>, vector<64x128xbf16>, vector<4x128xf32> -> vector<4x128xf32>
    %67 = vector.shape_cast %66 : vector<4x128xf32> to vector<4x1x128xf32>
    %68 = vector.broadcast %67 : vector<4x1x128xf32> to vector<4x128x128xf32>
    %69 = arith.addf %63, %68 : vector<4x128x128xf32>
    %c6 = arith.constant 6 : index
    %c0_32 = arith.constant 0 : index
    %70 = vector.load %arg3[%c6, %c0_32] : memref<24x128xf32, #tpu.memory_space<vmem>>, vector<1x128xf32>
    %71 = vector.shape_cast %70 : vector<1x128xf32> to vector<1x1x128xf32>
    %72 = vector.broadcast %71 : vector<1x1x128xf32> to vector<4x128x128xf32>
    %73 = arith.addf %69, %72 : vector<4x128x128xf32>
    %cst_33 = arith.constant 0.000000e+00 : f32
    %74 = vector.broadcast %cst_33 : f32 to vector<4x128x128xf32>
    %75 = arith.maximumf %73, %74 : vector<4x128x128xf32>
    %76 = vector.shape_cast %75 : vector<4x128x128xf32> to vector<512x128xf32>
    %77 = arith.truncf %76 : vector<512x128xf32> to vector<512x128xbf16>
    %c448 = arith.constant 448 : index
    %c0_34 = arith.constant 0 : index
    %78 = vector.load %arg2[%c448, %c0_34] : memref<2144x128xbf16, #tpu.memory_space<vmem>>, vector<128x128xbf16>
    %cst_35 = arith.constant dense<0.000000e+00> : vector<512x128xf32>
    %79 = tpu.matmul %77, %78, %cst_35 {dimension_numbers = #tpu.dot_dimension_numbers<[1], [0], [0], [1], [0, 0, 1, 1], [], []>} : vector<512x128xbf16>, vector<128x128xbf16>, vector<512x128xf32> -> vector<512x128xf32>
    %c7 = arith.constant 7 : index
    %c0_36 = arith.constant 0 : index
    %80 = vector.load %arg3[%c7, %c0_36] : memref<24x128xf32, #tpu.memory_space<vmem>>, vector<1x128xf32>
    %81 = vector.broadcast %80 : vector<1x128xf32> to vector<512x128xf32>
    %82 = arith.addf %79, %81 : vector<512x128xf32>
    %83 = vector.shape_cast %82 : vector<512x128xf32> to vector<4x128x128xf32>
    %cst_37 = arith.constant dense<0xFF800000> : vector<4x128xf32>
    %84 = vector.multi_reduction <maximumf>, %83, %cst_37 [1] : vector<4x128x128xf32> to vector<4x128xf32>
    %85 = vector.shape_cast %84 : vector<4x128xf32> to vector<4x1x128xf32>
    %86 = vector.broadcast %85 : vector<4x1x128xf32> to vector<4x128x128xf32>
    %87 = arith.subf %83, %86 : vector<4x128x128xf32>
    %88 = math.exp %87 : vector<4x128x128xf32>
    %cst_38 = arith.constant dense<0.000000e+00> : vector<4x128xf32>
    %89 = vector.multi_reduction <add>, %88, %cst_38 [1] : vector<4x128x128xf32> to vector<4x128xf32>
    %90 = vector.shape_cast %89 : vector<4x128xf32> to vector<4x1x128xf32>
    %91 = tpu.reciprocal %90 {approx = true} : vector<4x1x128xf32> -> vector<4x1x128xf32>
    %92 = vector.broadcast %91 : vector<4x1x128xf32> to vector<4x128x128xf32>
    %93 = arith.mulf %88, %92 : vector<4x128x128xf32>
    %94 = arith.mulf %75, %93 : vector<4x128x128xf32>
    %cst_39 = arith.constant dense<0.000000e+00> : vector<4x128xf32>
    %95 = vector.multi_reduction <add>, %94, %cst_39 [1] : vector<4x128x128xf32> to vector<4x128xf32>
    %cst_40 = arith.constant dense<0xFF800000> : vector<4x128xf32>
    %96 = vector.multi_reduction <maximumf>, %75, %cst_40 [1] : vector<4x128x128xf32> to vector<4x128xf32>
    %97 = tpu.concatenate %96, %95 in 1 : vector<4x128xf32>, vector<4x128xf32> -> vector<4x256xf32>
    %98 = arith.truncf %97 : vector<4x256xf32> to vector<4x256xbf16>
    %c576 = arith.constant 576 : index
    %c0_41 = arith.constant 0 : index
    %99 = vector.load %arg2[%c576, %c0_41] : memref<2144x128xbf16, #tpu.memory_space<vmem>>, vector<256x128xbf16>
    %cst_42 = arith.constant dense<0.000000e+00> : vector<4x128xf32>
    %100 = tpu.matmul %98, %99, %cst_42 {dimension_numbers = #tpu.dot_dimension_numbers<[1], [0], [0], [1], [0, 0, 1, 1], [], []>} : vector<4x256xbf16>, vector<256x128xbf16>, vector<4x128xf32> -> vector<4x128xf32>
    %c8 = arith.constant 8 : index
    %c0_43 = arith.constant 0 : index
    %101 = vector.load %arg3[%c8, %c0_43] : memref<24x128xf32, #tpu.memory_space<vmem>>, vector<1x128xf32>
    %102 = vector.broadcast %101 : vector<1x128xf32> to vector<4x128xf32>
    %103 = arith.addf %100, %102 : vector<4x128xf32>
    %cst_44 = arith.constant 0.000000e+00 : f32
    %104 = vector.broadcast %cst_44 : f32 to vector<4x128xf32>
    %105 = arith.maximumf %103, %104 : vector<4x128xf32>
    %106 = arith.truncf %105 : vector<4x128xf32> to vector<4x128xbf16>
    %c832 = arith.constant 832 : index
    %c0_45 = arith.constant 0 : index
    %107 = vector.load %arg2[%c832, %c0_45] : memref<2144x128xbf16, #tpu.memory_space<vmem>>, vector<128x128xbf16>
    %cst_46 = arith.constant dense<0.000000e+00> : vector<4x128xf32>
    %108 = tpu.matmul %106, %107, %cst_46 {dimension_numbers = #tpu.dot_dimension_numbers<[1], [0], [0], [1], [0, 0, 1, 1], [], []>} : vector<4x128xbf16>, vector<128x128xbf16>, vector<4x128xf32> -> vector<4x128xf32>
    %c9 = arith.constant 9 : index
    %c0_47 = arith.constant 0 : index
    %109 = vector.load %arg3[%c9, %c0_47] : memref<24x128xf32, #tpu.memory_space<vmem>>, vector<1x128xf32>
    %110 = vector.broadcast %109 : vector<1x128xf32> to vector<4x128xf32>
    %111 = arith.addf %108, %110 : vector<4x128xf32>
    %cst_48 = arith.constant 0.000000e+00 : f32
    %112 = vector.broadcast %cst_48 : f32 to vector<4x128xf32>
    %113 = arith.maximumf %111, %112 : vector<4x128xf32>
    %114 = arith.truncf %113 : vector<4x128xf32> to vector<4x128xbf16>
    %c960 = arith.constant 960 : index
    %c0_49 = arith.constant 0 : index
    %115 = vector.load %arg2[%c960, %c0_49] : memref<2144x128xbf16, #tpu.memory_space<vmem>>, vector<128x128xbf16>
    %cst_50 = arith.constant dense<0.000000e+00> : vector<4x128xf32>
    %116 = tpu.matmul %114, %115, %cst_50 {dimension_numbers = #tpu.dot_dimension_numbers<[1], [0], [0], [1], [0, 0, 1, 1], [], []>} : vector<4x128xbf16>, vector<128x128xbf16>, vector<4x128xf32> -> vector<4x128xf32>
    %c10 = arith.constant 10 : index
    %c0_51 = arith.constant 0 : index
    %117 = vector.load %arg3[%c10, %c0_51] : memref<24x128xf32, #tpu.memory_space<vmem>>, vector<1x128xf32>
    %118 = vector.broadcast %117 : vector<1x128xf32> to vector<4x128xf32>
    %119 = arith.addf %116, %118 : vector<4x128xf32>
    %120 = arith.truncf %119 : vector<4x128xf32> to vector<4x128xbf16>
    %c1088 = arith.constant 1088 : index
    %c0_52 = arith.constant 0 : index
    %121 = vector.load %arg2[%c1088, %c0_52] : memref<2144x128xbf16, #tpu.memory_space<vmem>>, vector<128x128xbf16>
    %cst_53 = arith.constant dense<0.000000e+00> : vector<4x128xf32>
    %122 = tpu.matmul %120, %121, %cst_53 {dimension_numbers = #tpu.dot_dimension_numbers<[1], [0], [0], [1], [0, 0, 1, 1], [], []>} : vector<4x128xbf16>, vector<128x128xbf16>, vector<4x128xf32> -> vector<4x128xf32>
    %123 = arith.truncf %1 : vector<512x3xf32> to vector<512x3xbf16>
    %c1216 = arith.constant 1216 : index
    %c0_54 = arith.constant 0 : index
    %124 = vector.load %arg2[%c1216, %c0_54] : memref<2144x128xbf16, #tpu.memory_space<vmem>>, vector<3x128xbf16>
    %cst_55 = arith.constant dense<0.000000e+00> : vector<512x128xf32>
    %125 = tpu.matmul %123, %124, %cst_55 {dimension_numbers = #tpu.dot_dimension_numbers<[1], [0], [0], [1], [0, 0, 1, 1], [], []>} : vector<512x3xbf16>, vector<3x128xbf16>, vector<512x128xf32> -> vector<512x128xf32>
    %126 = vector.shape_cast %125 : vector<512x128xf32> to vector<4x128x128xf32>
    %127 = vector.shape_cast %122 : vector<4x128xf32> to vector<4x1x128xf32>
    %128 = vector.broadcast %127 : vector<4x1x128xf32> to vector<4x128x128xf32>
    %129 = arith.addf %126, %128 : vector<4x128x128xf32>
    %c11 = arith.constant 11 : index
    %c0_56 = arith.constant 0 : index
    %130 = vector.load %arg3[%c11, %c0_56] : memref<24x128xf32, #tpu.memory_space<vmem>>, vector<1x128xf32>
    %131 = vector.shape_cast %130 : vector<1x128xf32> to vector<1x1x128xf32>
    %132 = vector.broadcast %131 : vector<1x1x128xf32> to vector<4x128x128xf32>
    %133 = arith.addf %129, %132 : vector<4x128x128xf32>
    %cst_57 = arith.constant 0.000000e+00 : f32
    %134 = vector.broadcast %cst_57 : f32 to vector<4x128x128xf32>
    %135 = arith.maximumf %133, %134 : vector<4x128x128xf32>
    %136 = vector.shape_cast %135 : vector<4x128x128xf32> to vector<512x128xf32>
    %137 = arith.truncf %136 : vector<512x128xf32> to vector<512x128xbf16>
    %c1248 = arith.constant 1248 : index
    %c0_58 = arith.constant 0 : index
    %138 = vector.load %arg2[%c1248, %c0_58] : memref<2144x128xbf16, #tpu.memory_space<vmem>>, vector<128x128xbf16>
    %cst_59 = arith.constant dense<0.000000e+00> : vector<512x128xf32>
    %139 = tpu.matmul %137, %138, %cst_59 {dimension_numbers = #tpu.dot_dimension_numbers<[1], [0], [0], [1], [0, 0, 1, 1], [], []>} : vector<512x128xbf16>, vector<128x128xbf16>, vector<512x128xf32> -> vector<512x128xf32>
    %c12 = arith.constant 12 : index
    %c0_60 = arith.constant 0 : index
    %140 = vector.load %arg3[%c12, %c0_60] : memref<24x128xf32, #tpu.memory_space<vmem>>, vector<1x128xf32>
    %141 = vector.broadcast %140 : vector<1x128xf32> to vector<512x128xf32>
    %142 = arith.addf %139, %141 : vector<512x128xf32>
    %cst_61 = arith.constant 0.000000e+00 : f32
    %143 = vector.broadcast %cst_61 : f32 to vector<512x128xf32>
    %144 = arith.maximumf %142, %143 : vector<512x128xf32>
    %145 = arith.truncf %144 : vector<512x128xf32> to vector<512x128xbf16>
    %c1376 = arith.constant 1376 : index
    %c0_62 = arith.constant 0 : index
    %146 = vector.load %arg2[%c1376, %c0_62] : memref<2144x128xbf16, #tpu.memory_space<vmem>>, vector<128x64xbf16>
    %cst_63 = arith.constant dense<0.000000e+00> : vector<512x64xf32>
    %147 = tpu.matmul %145, %146, %cst_63 {dimension_numbers = #tpu.dot_dimension_numbers<[1], [0], [0], [1], [0, 0, 1, 1], [], []>} : vector<512x128xbf16>, vector<128x64xbf16>, vector<512x64xf32> -> vector<512x64xf32>
    %c13 = arith.constant 13 : index
    %c0_64 = arith.constant 0 : index
    %148 = vector.load %arg3[%c13, %c0_64] : memref<24x128xf32, #tpu.memory_space<vmem>>, vector<1x64xf32>
    %149 = vector.broadcast %148 : vector<1x64xf32> to vector<512x64xf32>
    %150 = arith.addf %147, %149 : vector<512x64xf32>
    %cst_65 = arith.constant 0.000000e+00 : f32
    %151 = vector.broadcast %cst_65 : f32 to vector<512x64xf32>
    %152 = arith.maximumf %150, %151 : vector<512x64xf32>
    %153 = arith.truncf %152 : vector<512x64xf32> to vector<512x64xbf16>
    %c1504 = arith.constant 1504 : index
    %c0_66 = arith.constant 0 : index
    %154 = vector.load %arg2[%c1504, %c0_66] : memref<2144x128xbf16, #tpu.memory_space<vmem>>, vector<64x128xbf16>
    %cst_67 = arith.constant dense<0.000000e+00> : vector<512x128xf32>
    %155 = tpu.matmul %153, %154, %cst_67 {dimension_numbers = #tpu.dot_dimension_numbers<[1], [0], [0], [1], [0, 0, 1, 1], [], []>} : vector<512x64xbf16>, vector<64x128xbf16>, vector<512x128xf32> -> vector<512x128xf32>
    %c14 = arith.constant 14 : index
    %c0_68 = arith.constant 0 : index
    %156 = vector.load %arg3[%c14, %c0_68] : memref<24x128xf32, #tpu.memory_space<vmem>>, vector<1x128xf32>
    %157 = vector.broadcast %156 : vector<1x128xf32> to vector<512x128xf32>
    %158 = arith.addf %155, %157 : vector<512x128xf32>
    %159 = arith.truncf %119 : vector<4x128xf32> to vector<4x128xbf16>
    %c1568 = arith.constant 1568 : index
    %c0_69 = arith.constant 0 : index
    %160 = vector.load %arg2[%c1568, %c0_69] : memref<2144x128xbf16, #tpu.memory_space<vmem>>, vector<128x128xbf16>
    %cst_70 = arith.constant dense<0.000000e+00> : vector<4x128xf32>
    %161 = tpu.matmul %159, %160, %cst_70 {dimension_numbers = #tpu.dot_dimension_numbers<[1], [0], [0], [1], [0, 0, 1, 1], [], []>} : vector<4x128xbf16>, vector<128x128xbf16>, vector<4x128xf32> -> vector<4x128xf32>
    %162 = arith.truncf %158 : vector<512x128xf32> to vector<512x128xbf16>
    %c1696 = arith.constant 1696 : index
    %c0_71 = arith.constant 0 : index
    %163 = vector.load %arg2[%c1696, %c0_71] : memref<2144x128xbf16, #tpu.memory_space<vmem>>, vector<128x128xbf16>
    %cst_72 = arith.constant dense<0.000000e+00> : vector<512x128xf32>
    %164 = tpu.matmul %162, %163, %cst_72 {dimension_numbers = #tpu.dot_dimension_numbers<[1], [0], [0], [1], [0, 0, 1, 1], [], []>} : vector<512x128xbf16>, vector<128x128xbf16>, vector<512x128xf32> -> vector<512x128xf32>
    %165 = vector.shape_cast %164 : vector<512x128xf32> to vector<4x128x128xf32>
    %166 = vector.shape_cast %161 : vector<4x128xf32> to vector<4x1x128xf32>
    %167 = vector.broadcast %166 : vector<4x1x128xf32> to vector<4x128x128xf32>
    %168 = arith.addf %165, %167 : vector<4x128x128xf32>
    %c15 = arith.constant 15 : index
    %c0_73 = arith.constant 0 : index
    %169 = vector.load %arg3[%c15, %c0_73] : memref<24x128xf32, #tpu.memory_space<vmem>>, vector<1x128xf32>
    %170 = vector.shape_cast %169 : vector<1x128xf32> to vector<1x1x128xf32>
    %171 = vector.broadcast %170 : vector<1x1x128xf32> to vector<4x128x128xf32>
    %172 = arith.addf %168, %171 : vector<4x128x128xf32>
    %cst_74 = arith.constant 0.000000e+00 : f32
    %173 = vector.broadcast %cst_74 : f32 to vector<4x128x128xf32>
    %174 = arith.maximumf %172, %173 : vector<4x128x128xf32>
    %175 = vector.shape_cast %174 : vector<4x128x128xf32> to vector<512x128xf32>
    %176 = arith.truncf %175 : vector<512x128xf32> to vector<512x128xbf16>
    %c1824 = arith.constant 1824 : index
    %c0_75 = arith.constant 0 : index
    %177 = vector.load %arg2[%c1824, %c0_75] : memref<2144x128xbf16, #tpu.memory_space<vmem>>, vector<128x128xbf16>
    %cst_76 = arith.constant dense<0.000000e+00> : vector<512x128xf32>
    %178 = tpu.matmul %176, %177, %cst_76 {dimension_numbers = #tpu.dot_dimension_numbers<[1], [0], [0], [1], [0, 0, 1, 1], [], []>} : vector<512x128xbf16>, vector<128x128xbf16>, vector<512x128xf32> -> vector<512x128xf32>
    %c16 = arith.constant 16 : index
    %c0_77 = arith.constant 0 : index
    %179 = vector.load %arg3[%c16, %c0_77] : memref<24x128xf32, #tpu.memory_space<vmem>>, vector<1x128xf32>
    %180 = vector.broadcast %179 : vector<1x128xf32> to vector<512x128xf32>
    %181 = arith.addf %178, %180 : vector<512x128xf32>
    %cst_78 = arith.constant 0.000000e+00 : f32
    %182 = vector.broadcast %cst_78 : f32 to vector<512x128xf32>
    %183 = arith.maximumf %181, %182 : vector<512x128xf32>
    %184 = arith.truncf %183 : vector<512x128xf32> to vector<512x128xbf16>
    %c1952 = arith.constant 1952 : index
    %c0_79 = arith.constant 0 : index
    %185 = vector.load %arg2[%c1952, %c0_79] : memref<2144x128xbf16, #tpu.memory_space<vmem>>, vector<128x64xbf16>
    %cst_80 = arith.constant dense<0.000000e+00> : vector<512x64xf32>
    %186 = tpu.matmul %184, %185, %cst_80 {dimension_numbers = #tpu.dot_dimension_numbers<[1], [0], [0], [1], [0, 0, 1, 1], [], []>} : vector<512x128xbf16>, vector<128x64xbf16>, vector<512x64xf32> -> vector<512x64xf32>
    %c17 = arith.constant 17 : index
    %c0_81 = arith.constant 0 : index
    %187 = vector.load %arg3[%c17, %c0_81] : memref<24x128xf32, #tpu.memory_space<vmem>>, vector<1x64xf32>
    %188 = vector.broadcast %187 : vector<1x64xf32> to vector<512x64xf32>
    %189 = arith.addf %186, %188 : vector<512x64xf32>
    %cst_82 = arith.constant 0.000000e+00 : f32
    %190 = vector.broadcast %cst_82 : f32 to vector<512x64xf32>
    %191 = arith.maximumf %189, %190 : vector<512x64xf32>
    %192 = arith.truncf %191 : vector<512x64xf32> to vector<512x64xbf16>
    %c2080 = arith.constant 2080 : index
    %c0_83 = arith.constant 0 : index
    %193 = vector.load %arg2[%c2080, %c0_83] : memref<2144x128xbf16, #tpu.memory_space<vmem>>, vector<64x128xbf16>
    %cst_84 = arith.constant dense<0.000000e+00> : vector<512x128xf32>
    %194 = tpu.matmul %192, %193, %cst_84 {dimension_numbers = #tpu.dot_dimension_numbers<[1], [0], [0], [1], [0, 0, 1, 1], [], []>} : vector<512x64xbf16>, vector<64x128xbf16>, vector<512x128xf32> -> vector<512x128xf32>
    %c18 = arith.constant 18 : index
    %c0_85 = arith.constant 0 : index
    %195 = vector.load %arg3[%c18, %c0_85] : memref<24x128xf32, #tpu.memory_space<vmem>>, vector<1x128xf32>
    %196 = vector.broadcast %195 : vector<1x128xf32> to vector<512x128xf32>
    %197 = arith.addf %194, %196 : vector<512x128xf32>
    %198 = vector.shape_cast %197 : vector<512x128xf32> to vector<4x128x128xf32>
    %199 = tpu.transpose %198, [0, 2, 1] : vector<4x128x128xf32> -> vector<4x128x128xf32>
    %200 = vector.extract_strided_slice %199 {offsets = [0, 0, 0], sizes = [4, 2, 128], strides = [1, 1, 1]} : vector<4x128x128xf32> to vector<4x2x128xf32>
    %cst_86 = arith.constant dense<0x7F800000> : vector<4x2xf32>
    %201 = vector.multi_reduction <minimumf>, %200, %cst_86 [2] : vector<4x2x128xf32> to vector<4x2xf32>
    %202 = vector.shape_cast %201 : vector<4x2xf32> to vector<4x2x1xf32>
    %cst_87 = arith.constant dense<0xFF800000> : vector<4x2xf32>
    %203 = vector.multi_reduction <maximumf>, %200, %cst_87 [2] : vector<4x2x128xf32> to vector<4x2xf32>
    %204 = vector.shape_cast %203 : vector<4x2xf32> to vector<4x2x1xf32>
    %205 = vector.broadcast %202 : vector<4x2x1xf32> to vector<4x2x128xf32>
    %206 = arith.subf %200, %205 : vector<4x2x128xf32>
    %207 = arith.subf %204, %202 : vector<4x2x1xf32>
    %cst_88 = arith.constant 9.99999997E-7 : f32
    %208 = vector.broadcast %cst_88 : f32 to vector<4x2x1xf32>
    %209 = arith.maximumf %207, %208 : vector<4x2x1xf32>
    %210 = vector.broadcast %209 : vector<4x2x1xf32> to vector<4x2x128xf32>
    %211 = arith.divf %206, %210 : vector<4x2x128xf32>
    %c0_89 = arith.constant 0 : index
    %c0_90 = arith.constant 0 : index
    %c0_91 = arith.constant 0 : index
    %212 = vector.load %arg4[%c0_89, %c0_90, %c0_91] : memref<4x2x128xf32, #tpu.memory_space<vmem>>, vector<4x2x128xf32>
    tpu.vector_store %arg4[%c0_89, %c0_90, %c0_91], %211 {strides = array<i32>} : memref<4x2x128xf32, #tpu.memory_space<vmem>>, vector<4x2x128xf32>,
    return
  }
  func.func @transform_0(%arg0: i32) -> (i32, i32, i32) {
    %c0_i32 = arith.constant 0 : i32
    %c0_i32_0 = arith.constant 0 : i32
    %c0_i32_1 = arith.constant 0 : i32
    return %arg0, %c0_i32, %c0_i32_0 : i32, i32, i32
  }
  func.func @transform_1(%arg0: i32) -> (i32, i32) {
    %c0_i32 = arith.constant 0 : i32
    %c0_i32_0 = arith.constant 0 : i32
    %c0_i32_1 = arith.constant 0 : i32
    return %c0_i32, %c0_i32_0 : i32, i32
  }
  func.func @transform_2(%arg0: i32) -> (i32, i32) {
    %c0_i32 = arith.constant 0 : i32
    %c0_i32_0 = arith.constant 0 : i32
    %c0_i32_1 = arith.constant 0 : i32
    return %c0_i32, %c0_i32_0 : i32, i32
  }
  func.func @transform_3(%arg0: i32) -> (i32, i32, i32) {
    %c0_i32 = arith.constant 0 : i32
    %c0_i32_0 = arith.constant 0 : i32
    %c0_i32_1 = arith.constant 0 : i32
    return %arg0, %c0_i32, %c0_i32_0 : i32, i32, i32
  }
}

</mosaic_0001>

<bundles_post_ra>
// kernel: tpu_custom_call.1
= control target key start
LH: loop header
LB: loop body
LE: loop exit
PB: predicated region body
PF: predicated region fallthrough
CT: control target
= control target key end

     0   :  { %8 = vsyncpa [#allocation3], 0  ;;  %s19173_s0 = inlined_call_operand.vmem [shape: f32[8,128,3], index: 0, kind: input, shape index: {}]   ;;  %s19174_s1 = inlined_call_operand.hbm [shape: bf16[2144,128], index: 1, kind: input, shape index: {}]   ;;  %s19175_s2 = inlined_call_operand.vmem [shape: f32[24,128], index: 2, kind: input, shape index: {}]   ;;  %s19176_s3 = inlined_call_operand.hbm [shape: f32[8,2,128], index: 3, kind: output, shape index: {}]  }
   0x1   :  { %9 = vsyncpa [#allocation4], 0 }
   0x2   :  { %11 = vsyncpa [#allocation4 + $0x1], 0  ;;  %s14048_s12 = smov 0   ;;  %s14050_s13 = smov 0  }
   0x3   :  { %s14052_s14 = smov 0   ;;  %s14054_s15 = smov 0  }
   0x4 LB: > { %s14069_s16 = sadd.s32 4294967295, %s14014_s15   ;;  %s10864_s17 = sadd.s32 4294967294, %s14014_s15   ;;  %s14014_s15 = sphi %s14054_s15, %s20240_s15   ;;  %s14010_s14 = sphi %s14052_s14, %s20239_s14   ;;  %s14006_s13 = sphi %s14050_s13, %s20238_s13   ;;  %s14002_s12 = sphi %s14048_s12, %s20237_s12  }
   0x5   : > { %s14073_s18 = sadd.s32 1, %s14014_s15   ;;  %s92_s19 = sadd.s32 1, %s14010_s14 }
   0x6   : > { %s89_s20 = ssub.s32 %s14014_s15, %s14073_s18  ;;  %p102_p0 = scmp.ne.s32.totalorder %s14010_s14, %s14006_s13 }
   0x7   : > { %p90_p1 = scmp.eq.s32.totalorder %s89_s20, 0  ;;  %p103_p2 = scmp.eq.s32.totalorder %s14069_s16, 1 }
   0x8   : > { %p108_p3 = scmp.ne.s32.totalorder %s14006_s13, %s14002_s12  ;;  %p109_p4 = scmp.eq.s32.totalorder %s10864_s17, 1 }
   0x9   : > { %s14084_s21 = scalar_select %p90_p1, %s14010_s14, %s92_s19  }
   0xa   : > { %p14086_p5 = por %p103_p2, %p102_p0  ;;  %p14090_p6 = por %p109_p4, %p108_p3 }
   0xb   : > { %p10865_p7 = scmp.ge.s32.totalorder %s14014_s15, 1  ;;  %p116_p8 = scmp.lt.s32.totalorder %s14014_s15, 3 }
   0xc   : > { %s19591_s23 = scalar_select %p14090_p6, 1, 0 }
   0xd   : > { %p13286_p9 = scmp.eq.s32.totalorder %s14069_s16, 0  ;;  %p14097_p10 = pnand %p10865_p7, %p116_p8 }
   0xe   : > { %s14016_s25 = smov [#allocation2]  }
   0xf   : > { %s128_s26 = sshll.u32 %s14016_s25, 4  ;;  %p13278_p11 = pneg %p14097_p10  ;;  %s129_s26 = int_to_ptr.vmem [resolvable:$true] %s128_s26 }
  0x10   : > { %s13935_s27 = scalar_lea.vmem %s129_s26, 17152  ;;  %p13943_p3 = scmp.lt.s32.totalorder %s129_s26, %s129_s26 }
  0x11   : > { %p13279_p12 = pnand %p13286_p9, %p13278_p11  ;;  %p13936_p0 = scmp.ne.s32.totalorder %s129_s26, %s13935_s27 }
  0x12   : > { %p13944_p4 = scmp.lt.s32.totalorder %s13935_s27, %s13935_s27 }
  0x13   : > { %p13926_p13 = pneg %p13279_p12 }
  0x14   : > { %p13945_p6 = por %p13944_p4, %p13943_p3 }
  0x15   : > { %p13938_p1 = pnand %p13936_p0, %p13926_p13 }
  0x17   : > { %p13939_p2 = pneg %p13938_p1 }
  0x19   : > { %p13946_p7 = pnand %p13945_p6, %p13939_p2 }
  0x1b   : > { %13949 = shalt.err (!%p13946_p7)
}
  0x1c   : > { %s14017_s28 = smov 64   ;;  %s14018_s29 = smov 4  }
  0x1d   : > { %13281 = dma.hbm_to_vmem [thread:$0]  (!%p13279_p12), %s19174_s1, 17152, %s129_s26, [#allocation3], %s14017_s28, %s14017_s28, %s14018_s29  }
  0x1e   : > { %157 = sbr.rel (%p14097_p10) target bundleno = 4799 (0x12bf), region = 32 }
  0x23   : > { %13993 = dma.done.wait (%p13286_p9), [#allocation3], 17152  }
  0x24   : > { %13995 = vsyncadd (%p13286_p9), [#allocation3], 4294950144  ;;  %vm390_vm0 = vcmask 1040384   ;;  %s10871_s5 = sshll.u32 %s14069_s16, 2  ;;  %vm391_vm1 = vcmask 1041408   ;;  %v14019_v0 = vmov 65535  }
  0x25   : > { %p183_p6 = scmp.lt.s32.totalorder %s10871_s5, 7  ;;  %v392_v1 = vsel %vm390_vm0, 4294967295, %v14019_v0  ;;  %v287_v3 = vld [vmem:[#allocation2] sm:$0x3]  ;;  %vm293_vm2 = vcmask 23552   ;;  %vm795_vm3 = vcmask 130048  }
  0x26   : > { %v14116_v2 = vsel %vm391_vm1, %v392_v1, 0  ;;  %vm1298_vm4 = vcmask 261120   ;;  %s14020_s27 = smov 32   ;;  %s14021_s28 = smov 16   ;;  %vm2411_vm5 = vcmask 523264   ;;  %vm14024_vm6 = vmmov 0  }
  0x27   : > { %s20242_s5 = smov (!%p183_p6, %s10871_s5), 7  ;;  %19593 = vst [vmem:[#allocation8_spill] sm:$0xff] %v14116_v2  ;;  %v395_v6 = vand.u32 %v14116_v2, %v287_v3  ;;  %vm4726_vm7 = vcmask 1041409   ;;  %vm4019_vm8 = vcmask 392192   ;;  %vm4320_vm9 = vcmask 916480  }
  0x28   : > { %s11346_s6 = sshll.u32 %s20242_s5, 7  ;;  %vm4728_vm10 = vcmask 1042434   ;;  %vm4730_vm11 = vcmask 1043459   ;;  %s11347_s5 = sshll.u32 %s14069_s16, 7 }
  0x29   : > { %s14121_s9 = scalar_lea.vmem %s19173_s0, %s11346_s6  ;;  %12000 = vmatprep.subr.bf16.mxu0 %v395_v6  ;;  %13270 = vmatprep.subr.bf16.mxu1 %v395_v6  ;;  %s14023_s6 = smov 48  }
  0x2a   : > { %v191_v4 = vld [vmem:[%s14121_s9] sm:$0xff]  ;;  %v192_v5 = vld [vmem:[%s14121_s9 + $0x8] sm:$0xff]  ;;  %v193_v8 = vld [vmem:[%s14121_s9 + $0x10] sm:$0xff]  ;;  %12001 = vmatpush3.bf16.msra.mxu0 %v395_v6  ;;  %13271 = vmatpush3.bf16.msra.mxu1 %v395_v6  ;;  %s19126_s8 = scalar_lea.hbm %s19176_s3, %s11347_s5  ;;  %s14026_s16 = smov [#allocation5]  }
  0x2b   : > { %v14126_v7 = vpack.c.bf16 %v192_v5, %v191_v4  ;;  %v194_v9 = vld [vmem:[%s14121_s9 + $0x18] sm:$0xff]  ;;  %v195_v10 = vld [vmem:[%s14121_s9 + $0x20] sm:$0xff]  ;;  %v196_v11 = vld [vmem:[%s14121_s9 + $0x28] sm:$0xff]  ;;  %s13954_s11 = sshll.u32 %s14026_s16, 4  ;;  %s13955_s11 = int_to_ptr.vmem [resolvable:$false] %s13954_s11 }
  0x2c   : > { %v14134_v12 = vpack.c.bf16 %v194_v9, %v193_v8  ;;  %v14136_v13 = vpack.c.bf16 %v196_v11, %v195_v10  ;;  %v197_v14 = vld [vmem:[%s14121_s9 + $0x30] sm:$0xff]  ;;  %v198_v15 = vld [vmem:[%s14121_s9 + $0x38] sm:$0xff]  ;;  %v199_v16 = vld [vmem:[%s14121_s9 + $0x40] sm:$0xff]  ;;  %s13956_s17 = scalar_lea.vmem %s13955_s11, 256 }
  0x2d   : > { %19594 = vst [vmem:[#allocation9_spill] sm:$0xff] %v14126_v7  ;;  %12002 = vmatprep.mubr.msk.bf16.mxu0 %vm293_vm2, %v14126_v7  ;;  %v200_v17 = vld [vmem:[%s14121_s9 + $0x48] sm:$0xff]  ;;  %v14146_v18 = vpack.c.bf16 %v198_v15, %v197_v14  ;;  %v201_v20 = vld [vmem:[%s14121_s9 + $0x50] sm:$0xff]  ;;  %v202_v21 = vld [vmem:[%s14121_s9 + $0x58] sm:$0xff] }
  0x2e   : > { %19595 = vst [vmem:[#allocation10_spill] sm:$0xff] %v14134_v12  ;;  %19596 = vst [vmem:[#allocation11_spill] sm:$0xff] %v14136_v13  ;;  %12003 = vmatmul.mubr.msk.bf16.vlgmr.msra.gmra.mxu0 %vm293_vm2, %v14134_v12  ;;  %v14148_v19 = vpack.c.bf16 %v200_v17, %v199_v16  ;;  %v203_v22 = vld [vmem:[%s14121_s9 + $0x60] sm:$0xff]  ;;  %v204_v23 = vld [vmem:[%s14121_s9 + $0x68] sm:$0xff]  ;;  %v14158_v24 = vpack.c.bf16 %v202_v21, %v201_v20 }
  0x2f   : > { %12006 = vmatprep.mubr.msk.bf16.mxu0 %vm293_vm2, %v14136_v13  ;;  %19597 = vst [vmem:[#allocation12_spill] sm:$0xff] %v14146_v18  ;;  %v14160_v25 = vpack.c.bf16 %v204_v23, %v203_v22  ;;  %v251_v26 = vld [vmem:[%s14121_s9 + $0x1e0] sm:$0xff]  ;;  %v252_v27 = vld [vmem:[%s14121_s9 + $0x1e8] sm:$0xff]  ;;  %v253_v29 = vld [vmem:[%s14121_s9 + $0x1f0] sm:$0xff] }
  0x30   : > { %19598 = vst [vmem:[#allocation13_spill] sm:$0xff] %v14148_v19  ;;  %19599 = vst [vmem:[#allocation14_spill] sm:$0xff] %v14158_v24  ;;  %v14164_v28 = vpack.c.bf16 %v252_v27, %v251_v26  ;;  %v254_v30 = vld [vmem:[%s14121_s9 + $0x1f8] sm:$0xff]  ;;  %v205_v31 = vld [vmem:[%s14121_s9 + $0x70] sm:$0xff] }
  0x31   : > { %19600 = vst [vmem:[#allocation15_spill] sm:$0xff] %v14160_v25  ;;  %v206_v32 = vld [vmem:[%s14121_s9 + $0x78] sm:$0xff]  ;;  %v14170_v33 = vpack.c.bf16 %v254_v30, %v253_v29  ;;  %v207_v34 = vld [vmem:[%s14121_s9 + $0x80] sm:$0xff]  ;;  %v208_v35 = vld [vmem:[%s14121_s9 + $0x88] sm:$0xff] }
  0x32   : > { %19601 = vst [vmem:[#allocation16_spill] sm:$0xff] %v14164_v28  ;;  %12062 = vmatprep.mubr.msk.bf16.mxu1 %vm293_vm2, %v14164_v28  ;;  %v14182_v36 = vpack.c.bf16 %v206_v32, %v205_v31  ;;  %v14184_v37 = vpack.c.bf16 %v208_v35, %v207_v34  ;;  %v209_v38 = vld [vmem:[%s14121_s9 + $0x90] sm:$0xff]  ;;  %v210_v39 = vld [vmem:[%s14121_s9 + $0x98] sm:$0xff]  ;;  %v211_v40 = vld [vmem:[%s14121_s9 + $0xa0] sm:$0xff] }
  0x33   : > { %19602 = vst [vmem:[#allocation17_spill] sm:$0xff] %v14170_v33  ;;  %12063 = vmatmul.mubr.msk.bf16.vlgmr.msra.gmra.mxu1 %vm293_vm2, %v14170_v33  ;;  %v212_v41 = vld [vmem:[%s14121_s9 + $0xa8] sm:$0xff]  ;;  %v14194_v42 = vpack.c.bf16 %v210_v39, %v209_v38  ;;  %v213_v44 = vld [vmem:[%s14121_s9 + $0xb0] sm:$0xff]  ;;  %v214_v45 = vld [vmem:[%s14121_s9 + $0xb8] sm:$0xff] }
  0x34   : > { %19603 = vst [vmem:[#allocation18_spill] sm:$0xff] %v14182_v36  ;;  %19604 = vst [vmem:[#allocation19_spill] sm:$0xff] %v14184_v37  ;;  %v14196_v43 = vpack.c.bf16 %v212_v41, %v211_v40  ;;  %v215_v46 = vld [vmem:[%s14121_s9 + $0xc0] sm:$0xff]  ;;  %v216_v47 = vld [vmem:[%s14121_s9 + $0xc8] sm:$0xff]  ;;  %v14206_v48 = vpack.c.bf16 %v214_v45, %v213_v44 }
  0x35   : > { %19605 = vst [vmem:[#allocation20_spill] sm:$0xff] %v14194_v42  ;;  %v14208_v49 = vpack.c.bf16 %v216_v47, %v215_v46  ;;  %v217_v50 = vld [vmem:[%s14121_s9 + $0xd0] sm:$0xff]  ;;  %v218_v51 = vld [vmem:[%s14121_s9 + $0xd8] sm:$0xff]  ;;  %v219_v52 = vld [vmem:[%s14121_s9 + $0xe0] sm:$0xff] }
  0x36   : > { %12007 = vmatmul.mubr.msk.bf16.gmra.mxu0 %vm293_vm2, %v14146_v18  ;;  %19606 = vst [vmem:[#allocation21_spill] sm:$0xff] %v14196_v43  ;;  %19607 = vst [vmem:[#allocation22_spill] sm:$0xff] %v14206_v48  ;;  %v220_v53 = vld [vmem:[%s14121_s9 + $0xe8] sm:$0xff]  ;;  %v14218_v54 = vpack.c.bf16 %v218_v51, %v217_v50  ;;  %v221_v56 = vld [vmem:[%s14121_s9 + $0xf0] sm:$0xff] }
  0x37   : > { %12010 = vmatprep.mubr.msk.bf16.mxu0 %vm293_vm2, %v14148_v19  ;;  %19608 = vst [vmem:[#allocation23_spill] sm:$0xff] %v14208_v49  ;;  %v14220_v55 = vpack.c.bf16 %v220_v53, %v219_v52  ;;  %v222_v57 = vld [vmem:[%s14121_s9 + $0xf8] sm:$0xff]  ;;  %v223_v58 = vld [vmem:[%s14121_s9 + $0x100] sm:$0xff]  ;;  %v224_v59 = vld [vmem:[%s14121_s9 + $0x108] sm:$0xff] }
  0x38   : > { %19609 = vst [vmem:[#allocation24_spill] sm:$0xff] %v14218_v54  ;;  %v14230_v60 = vpack.c.bf16 %v222_v57, %v221_v56  ;;  %v14232_v61 = vpack.c.bf16 %v224_v59, %v223_v58  ;;  %v225_v62 = vld [vmem:[%s14121_s9 + $0x110] sm:$0xff]  ;;  %v226_v63 = vld [vmem:[%s14121_s9 + $0x118] sm:$0xff]  ;;  %v227_v0 = vld [vmem:[%s14121_s9 + $0x120] sm:$0xff] }
  0x39   : > { %19610 = vst [vmem:[#allocation25_spill] sm:$0xff] %v14220_v55  ;;  %v228_v1 = vld [vmem:[%s14121_s9 + $0x128] sm:$0xff]  ;;  %v14242_v3 = vpack.c.bf16 %v226_v63, %v225_v62  ;;  %v229_v5 = vld [vmem:[%s14121_s9 + $0x130] sm:$0xff]  ;;  %v230_v6 = vld [vmem:[%s14121_s9 + $0x138] sm:$0xff] }
  0x3a   : > { %19611 = vst [vmem:[#allocation26_spill] sm:$0xff] %v14230_v60  ;;  %19612 = vst [vmem:[#allocation27_spill] sm:$0xff] %v14232_v61  ;;  %v14244_v4 = vpack.c.bf16 %v228_v1, %v227_v0  ;;  %v231_v8 = vld [vmem:[%s14121_s9 + $0x140] sm:$0xff]  ;;  %v232_v9 = vld [vmem:[%s14121_s9 + $0x148] sm:$0xff]  ;;  %v14254_v10 = vpack.c.bf16 %v230_v6, %v229_v5 }
  0x3b   : > { %19613 = vst [vmem:[#allocation28_spill] sm:$0xff] %v14242_v3  ;;  %v14256_v11 = vpack.c.bf16 %v232_v9, %v231_v8  ;;  %v233_v14 = vld [vmem:[%s14121_s9 + $0x150] sm:$0xff]  ;;  %v234_v15 = vld [vmem:[%s14121_s9 + $0x158] sm:$0xff]  ;;  %v235_v16 = vld [vmem:[%s14121_s9 + $0x160] sm:$0xff] }
  0x3c   : > { %19614 = vst [vmem:[#allocation29_spill] sm:$0xff] %v14244_v4  ;;  %19615 = vst [vmem:[#allocation30_spill] sm:$0xff] %v14254_v10  ;;  %v236_v17 = vld [vmem:[%s14121_s9 + $0x168] sm:$0xff]  ;;  %v13652_v20 = vld [vmem:[#allocation2 + $0x10] sm:$0xff]   ;;  %v14266_v21 = vpack.c.bf16 %v234_v15, %v233_v14 }
  0x3d   : > { %19616 = vst [vmem:[#allocation31_spill] sm:$0xff] %v14256_v11  ;;  %12066 = vmatprep.subr.bf16.mxu1 %v13652_v20  ;;  %v14268_v22 = vpack.c.bf16 %v236_v17, %v235_v16  ;;  %v237_v23 = vld [vmem:[%s14121_s9 + $0x170] sm:$0xff]  ;;  %v238_v26 = vld [vmem:[%s14121_s9 + $0x178] sm:$0xff]  ;;  %v239_v27 = vld [vmem:[%s14121_s9 + $0x180] sm:$0xff] }
  0x3e   : > { %12011 = vmatmul.mubr.msk.bf16.gmra.mxu0 %vm293_vm2, %v14158_v24  ;;  %12067 = vmatpush3.bf16.msra.mxu1 %v13652_v20  ;;  %19617 = vst [vmem:[#allocation32_spill] sm:$0xff] %v14266_v21  ;;  %v240_v29 = vld [vmem:[%s14121_s9 + $0x188] sm:$0xff]  ;;  %v14278_v30 = vpack.c.bf16 %v238_v26, %v237_v23  ;;  %v241_v32 = vld [vmem:[%s14121_s9 + $0x190] sm:$0xff]  ;;  %v242_v34 = vld [vmem:[%s14121_s9 + $0x198] sm:$0xff] }
  0x3f   : > { %12014 = vmatprep.mubr.msk.bf16.mxu0 %vm293_vm2, %v14160_v25  ;;  %19618 = vst [vmem:[#allocation33_spill] sm:$0xff] %v14268_v22  ;;  %v14280_v31 = vpack.c.bf16 %v240_v29, %v239_v27  ;;  %v243_v35 = vld [vmem:[%s14121_s9 + $0x1a0] sm:$0xff]  ;;  %v244_v38 = vld [vmem:[%s14121_s9 + $0x1a8] sm:$0xff]  ;;  %v14290_v39 = vpack.c.bf16 %v242_v34, %v241_v32  ;;  %v245_v41 = vld [vmem:[%s14121_s9 + $0x1b0] sm:$0xff] }
  0x40   : > { %19619 = vst [vmem:[#allocation34_spill] sm:$0xff] %v14278_v30  ;;  %v14292_v40 = vpack.c.bf16 %v244_v38, %v243_v35  ;;  %v246_v44 = vld [vmem:[%s14121_s9 + $0x1b8] sm:$0xff]  ;;  %v247_v45 = vld [vmem:[%s14121_s9 + $0x1c0] sm:$0xff]  ;;  %v248_v46 = vld [vmem:[%s14121_s9 + $0x1c8] sm:$0xff] }
  0x41   : > { %19620 = vst [vmem:[#allocation35_spill] sm:$0xff] %v14280_v31  ;;  %19621 = vst [vmem:[#allocation36_spill] sm:$0xff] %v14290_v39  ;;  %v14302_v47 = vpack.c.bf16 %v246_v44, %v245_v41  ;;  %v14304_v50 = vpack.c.bf16 %v248_v46, %v247_v45  ;;  %v249_v51 = vld [vmem:[%s14121_s9 + $0x1d0] sm:$0xff]  ;;  %v250_v52 = vld [vmem:[%s14121_s9 + $0x1d8] sm:$0xff] }
  0x42   : > { %19622 = vst [vmem:[#allocation37_spill] sm:$0xff] %v14292_v40  ;;  %v14312_v53 = vpack.c.bf16 %v250_v52, %v249_v51  ;;  %v13653_v56 = vld [vmem:[#allocation2 + $0x30] sm:$0xff]   ;;  %v13654_v57 = vld [vmem:[#allocation2 + $0x28] sm:$0xff]   ;;  %v14319_v62 = vld [vmem:[%s19175_s2] ss:$0 sm:$0xff] }
  0x43   : > { %19623 = vst [vmem:[#allocation38_spill] sm:$0xff] %v14302_v47  ;;  %19624 = vst [vmem:[#allocation39_spill] sm:$0xff] %v14304_v50  ;;  %12200 = vmatprep.subr.bf16.mxu1 %v13653_v56  ;;  %12132 = vmatprep.subr.bf16.mxu0 %v13654_v57 }
  0x44   : > { %19625 = vst [vmem:[#allocation40_spill] sm:$0xff] %v14312_v53  ;;  %12133 = vmatpush3.bf16.msra.mxu0 %v13654_v57 }
  0x46   : > { %12015 = vmatmul.mubr.msk.bf16.gmra.mxu0 %vm293_vm2, %v14182_v36 }
  0x47   : > { %12018 = vmatprep.mubr.msk.bf16.mxu0 %vm293_vm2, %v14184_v37 }
  0x4e   : > { %12019 = vmatmul.mubr.msk.bf16.gmra.mxu0 %vm293_vm2, %v14194_v42 }
  0x4f   : > { %12022 = vmatprep.mubr.msk.bf16.mxu0 %vm293_vm2, %v14196_v43 }
  0x56   : > { %12023 = vmatmul.mubr.msk.bf16.gmra.mxu0 %vm293_vm2, %v14206_v48 }
  0x57   : > { %12026 = vmatprep.mubr.msk.bf16.mxu0 %vm293_vm2, %v14208_v49 }
  0x5e   : > { %12027 = vmatmul.mubr.msk.bf16.gmra.mxu0 %vm293_vm2, %v14218_v54 }
  0x5f   : > { %12030 = vmatprep.mubr.msk.bf16.mxu0 %vm293_vm2, %v14220_v55 }
  0x66   : > { %12031 = vmatmul.mubr.msk.bf16.gmra.mxu0 %vm293_vm2, %v14230_v60 }
  0x67   : > { %12034 = vmatprep.mubr.msk.bf16.mxu0 %vm293_vm2, %v14232_v61 }
  0x6e   : > { %12035 = vmatmul.mubr.msk.bf16.gmra.mxu0 %vm293_vm2, %v14242_v3 }
  0x6f   : > { %12038 = vmatprep.mubr.msk.bf16.mxu0 %vm293_vm2, %v14244_v4 }
  0x76   : > { %12039 = vmatmul.mubr.msk.bf16.gmra.mxu0 %vm293_vm2, %v14254_v10 }
  0x77   : > { %12042 = vmatprep.mubr.msk.bf16.mxu0 %vm293_vm2, %v14256_v11 }
  0x7e   : > { %12043 = vmatmul.mubr.msk.bf16.gmra.mxu0 %vm293_vm2, %v14266_v21 }
  0x7f   : > { %12046 = vmatprep.mubr.msk.bf16.mxu0 %vm293_vm2, %v14268_v22 }
  0x86   : > { %12047 = vmatmul.mubr.msk.bf16.gmra.mxu0 %vm293_vm2, %v14278_v30 }
  0x87   : > { %12050 = vmatprep.mubr.msk.bf16.mxu0 %vm293_vm2, %v14280_v31 }
  0x8e   : > { %12051 = vmatmul.mubr.msk.bf16.gmra.mxu0 %vm293_vm2, %v14290_v39 }
  0x8f   : > { %12054 = vmatprep.mubr.msk.bf16.mxu0 %vm293_vm2, %v14292_v40 }
  0x96   : > { %12055 = vmatmul.mubr.msk.bf16.gmra.mxu0 %vm293_vm2, %v14302_v47 }
  0x97   : > { %12058 = vmatprep.mubr.msk.bf16.mxu0 %vm293_vm2, %v14304_v50 }
  0x9e   : > { %12059 = vmatmul.mubr.msk.bf16.gmra.mxu0 %vm293_vm2, %v14312_v53 }
  0xee   : > { %v12004_v58 = vpop.f32.mrf.mxu0 }
  0xef   : > { %v14328_v5 = vadd.f32 %v12004_v58, %v14319_v62 }
  0xf0   : > { %v431_v59 = vpop.f32.mrf.mxu0 }
  0xf1   : > { %v14322_v0 = vadd.f32 %v14319_v62, %v431_v59  ;;  %19628 = vst [vmem:[#allocation43_spill] sm:$0xff] %v14328_v5  ;;  %v19181_v17 = vmax.f32 %v14328_v5, 0.0 }
  0xf2   : > { %v12005_v63 = vpop.f32.mrf.mxu0 }
  0xf3   : > { %19626 = vst [vmem:[#allocation41_spill] sm:$0xff] %v14322_v0  ;;  %v14325_v1 = vadd.f32 %v12005_v63, %v14319_v62  ;;  %v19187_v15 = vmax.f32 %v14322_v0, 0.0 }
  0xf4   : > { %v434_v6 = vpop.f32.mrf.mxu0 }
  0xf5   : > { %19627 = vst [vmem:[#allocation42_spill] sm:$0xff] %v14325_v1  ;;  %v14331_v8 = vadd.f32 %v14319_v62, %v434_v6  ;;  %v19182_v9 = vmax.f32 %v14325_v1, 0.0 }
  0xf6   : > { %v12008_v14 = vpop.f32.mrf.mxu0 }
  0xf7   : > { %19629 = vst [vmem:[#allocation44_spill] sm:$0xff] %v14331_v8  ;;  %v19188_v16 = vmax.f32 %v14331_v8, 0.0  ;;  %v14347_v26 = vpack.c.bf16 %v19182_v9, %v19181_v17  ;;  %v14358_v34 = vadd.f32 %v12008_v14, %v14319_v62 }
  0xf8   : > { %v447_v20 = vpop.f32.mrf.mxu0 }
  0xf9   : > { %v14341_v23 = vpack.c.bf16 %v19188_v16, %v19187_v15  ;;  %v14350_v29 = vadd.f32 %v14319_v62, %v447_v20  ;;  %19632 = vst [vmem:[#allocation47_spill] sm:$0xff] %v14358_v34  ;;  %v19179_v51 = vmax.f32 %v14358_v34, 0.0 }
  0xfa   : > { %v12009_v27 = vpop.f32.mrf.mxu0 }
  0xfb   : > { %19630 = vst [vmem:[#allocation45_spill] sm:$0xff] %v14350_v29  ;;  %v14353_v32 = vadd.f32 %v12009_v27, %v14319_v62  ;;  %12068 = vmatprep.mubr.msk.bf16.mxu1 %vm795_vm3, %v14341_v23  ;;  %v19177_v45 = vmax.f32 %v14350_v29, 0.0 }
  0xfc   : > { %v450_v35 = vpop.f32.mrf.mxu0  ;;  %12069 = vmatmul.mubr.msk.bf16.vlgmr.msra.gmra.mxu1 %vm795_vm3, %v14347_v26 }
  0xfd   : > { %19631 = vst [vmem:[#allocation46_spill] sm:$0xff] %v14353_v32  ;;  %v14363_v38 = vadd.f32 %v14319_v62, %v450_v35  ;;  %12201 = vmatpush3.bf16.msra.mxu1 %v13653_v56  ;;  %v19180_v41 = vmax.f32 %v14353_v32, 0.0 }
  0xfe   : > { %v12012_v44 = vpop.f32.mrf.mxu0 }
  0xff   : > { %19633 = vst [vmem:[#allocation48_spill] sm:$0xff] %v14363_v38  ;;  %v19178_v46 = vmax.f32 %v14363_v38, 0.0  ;;  %v14379_v56 = vpack.c.bf16 %v19180_v41, %v19179_v51  ;;  %v14390_v6 = vadd.f32 %v12012_v44, %v14319_v62 }
 0x100   : > { %v463_v52 = vpop.f32.mrf.mxu0 }
 0x101   : > { %v14373_v57 = vpack.c.bf16 %v19178_v46, %v19177_v45  ;;  %v14382_v59 = vadd.f32 %v14319_v62, %v463_v52  ;;  %19636 = vst [vmem:[#allocation51_spill] sm:$0xff] %v14390_v6  ;;  %v19185_v45 = vmax.f32 %v14390_v6, 0.0 }
 0x102   : > { %v12013_v58 = vpop.f32.mrf.mxu0 }
 0x103   : > { %19634 = vst [vmem:[#allocation49_spill] sm:$0xff] %v14382_v59  ;;  %v14385_v63 = vadd.f32 %v12013_v58, %v14319_v62  ;;  %12072 = vmatprep.mubr.msk.bf16.mxu1 %vm795_vm3, %v14373_v57  ;;  %v19183_v52 = vmax.f32 %v14382_v59, 0.0 }
 0x104   : > { %v466_v14 = vpop.f32.mrf.mxu0  ;;  %12073 = vmatmul.mubr.msk.bf16.gmra.mxu1 %vm795_vm3, %v14379_v56 }
 0x105   : > { %19635 = vst [vmem:[#allocation50_spill] sm:$0xff] %v14385_v63  ;;  %v14395_v20 = vadd.f32 %v14319_v62, %v466_v14  ;;  %v19186_v27 = vmax.f32 %v14385_v63, 0.0 }
 0x106   : > { %v12016_v35 = vpop.f32.mrf.mxu0 }
 0x107   : > { %19637 = vst [vmem:[#allocation52_spill] sm:$0xff] %v14395_v20  ;;  %v19184_v58 = vmax.f32 %v14395_v20, 0.0  ;;  %v14411_v14 = vpack.c.bf16 %v19186_v27, %v19185_v45  ;;  %v14422_v9 = vadd.f32 %v12016_v35, %v14319_v62 }
 0x108   : > { %v479_v46 = vpop.f32.mrf.mxu0 }
 0x109   : > { %v14405_v44 = vpack.c.bf16 %v19184_v58, %v19183_v52  ;;  %v14414_v41 = vadd.f32 %v14319_v62, %v479_v46  ;;  %19640 = vst [vmem:[#allocation55_spill] sm:$0xff] %v14422_v9  ;;  %v13655_v58 = vld [vmem:[#allocation2 + $0x20] sm:$0xff]   ;;  %v19195_v35 = vmax.f32 %v14422_v9, 0.0 }
 0x10a   : > { %v12017_v51 = vpop.f32.mrf.mxu0  ;;  %12134 = vmatprep.subr.bf16.mxu0 %v13655_v58 }
 0x10b   : > { %19638 = vst [vmem:[#allocation53_spill] sm:$0xff] %v14414_v41  ;;  %v14417_v17 = vadd.f32 %v12017_v51, %v14319_v62  ;;  %12076 = vmatprep.mubr.msk.bf16.mxu1 %vm795_vm3, %v14405_v44  ;;  %v19193_v51 = vmax.f32 %v14414_v41, 0.0  ;;  %12135 = vmatpush3.bf16.msra.mxu0 %v13655_v58 }
 0x10c   : > { %v482_v52 = vpop.f32.mrf.mxu0  ;;  %12077 = vmatmul.mubr.msk.bf16.gmra.mxu1 %vm795_vm3, %v14411_v14 }
 0x10d   : > { %19639 = vst [vmem:[#allocation54_spill] sm:$0xff] %v14417_v17  ;;  %v14427_v45 = vadd.f32 %v14319_v62, %v482_v52  ;;  %v19196_v46 = vmax.f32 %v14417_v17, 0.0 }
 0x10e   : > { %v12020_v27 = vpop.f32.mrf.mxu0 }
 0x10f   : > { %19641 = vst [vmem:[#allocation56_spill] sm:$0xff] %v14427_v45  ;;  %v19194_v15 = vmax.f32 %v14427_v45, 0.0  ;;  %v14443_v52 = vpack.c.bf16 %v19196_v46, %v19195_v35  ;;  %v14454_v50 = vadd.f32 %v12020_v27, %v14319_v62 }
 0x110   : > { %v495_v16 = vpop.f32.mrf.mxu0 }
 0x111   : > { %v14437_v33 = vpack.c.bf16 %v19194_v15, %v19193_v51  ;;  %v14446_v53 = vadd.f32 %v14319_v62, %v495_v16  ;;  %19644 = vst [vmem:[#allocation59_spill] sm:$0xff] %v14454_v50  ;;  %v19205_v47 = vmax.f32 %v14454_v50, 0.0 }
 0x112   : > { %v12021_v28 = vpop.f32.mrf.mxu0 }
 0x113   : > { %19642 = vst [vmem:[#allocation57_spill] sm:$0xff] %v14446_v53  ;;  %v14449_v58 = vadd.f32 %v12021_v28, %v14319_v62  ;;  %12080 = vmatprep.mubr.msk.bf16.mxu1 %vm795_vm3, %v14437_v33  ;;  %v19203_v46 = vmax.f32 %v14446_v53, 0.0 }
 0x114   : > { %v498_v51 = vpop.f32.mrf.mxu0  ;;  %12081 = vmatmul.mubr.msk.bf16.gmra.mxu1 %vm795_vm3, %v14443_v52 }
 0x115   : > { %19643 = vst [vmem:[#allocation58_spill] sm:$0xff] %v14449_v58  ;;  %v14459_v15 = vadd.f32 %v14319_v62, %v498_v51  ;;  %v19206_v35 = vmax.f32 %v14449_v58, 0.0 }
 0x116   : > { %v12024_v16 = vpop.f32.mrf.mxu0 }
 0x117   : > { %19645 = vst [vmem:[#allocation60_spill] sm:$0xff] %v14459_v15  ;;  %v19204_v28 = vmax.f32 %v14459_v15, 0.0  ;;  %v14475_v51 = vpack.c.bf16 %v19206_v35, %v19205_v47  ;;  %v14486_v22 = vadd.f32 %v12024_v16, %v14319_v62 }
 0x118   : > { %v511_v40 = vpop.f32.mrf.mxu0 }
 0x119   : > { %v14469_v27 = vpack.c.bf16 %v19204_v28, %v19203_v46  ;;  %v14478_v31 = vadd.f32 %v14319_v62, %v511_v40  ;;  %19648 = vst [vmem:[#allocation63_spill] sm:$0xff] %v14486_v22  ;;  %v19215_v21 = vmax.f32 %v14486_v22, 0.0 }
 0x11a   : > { %v12025_v39 = vpop.f32.mrf.mxu0 }
 0x11b   : > { %19646 = vst [vmem:[#allocation61_spill] sm:$0xff] %v14478_v31  ;;  %v14481_v30 = vadd.f32 %v12025_v39, %v14319_v62  ;;  %12084 = vmatprep.mubr.msk.bf16.mxu1 %vm795_vm3, %v14469_v27  ;;  %v19213_v35 = vmax.f32 %v14478_v31, 0.0 }
 0x11c   : > { %v514_v46 = vpop.f32.mrf.mxu0  ;;  %12085 = vmatmul.mubr.msk.bf16.gmra.mxu1 %vm795_vm3, %v14475_v51 }
 0x11d   : > { %19647 = vst [vmem:[#allocation62_spill] sm:$0xff] %v14481_v30  ;;  %v14491_v28 = vadd.f32 %v14319_v62, %v514_v46  ;;  %v19216_v47 = vmax.f32 %v14481_v30, 0.0 }
 0x11e   : > { %v12028_v40 = vpop.f32.mrf.mxu0 }
 0x11f   : > { %19649 = vst [vmem:[#allocation64_spill] sm:$0xff] %v14491_v28  ;;  %v19214_v39 = vmax.f32 %v14491_v28, 0.0  ;;  %v14507_v46 = vpack.c.bf16 %v19216_v47, %v19215_v21  ;;  %v14518_v61 = vadd.f32 %v12028_v40, %v14319_v62 }
 0x120   : > { %v527_v11 = vpop.f32.mrf.mxu0 }
 0x121   : > { %v14501_v16 = vpack.c.bf16 %v19214_v39, %v19213_v35  ;;  %v14510_v4 = vadd.f32 %v14319_v62, %v527_v11  ;;  %19652 = vst [vmem:[#allocation67_spill] sm:$0xff] %v14518_v61  ;;  %v19225_v60 = vmax.f32 %v14518_v61, 0.0 }
 0x122   : > { %v12029_v10 = vpop.f32.mrf.mxu0 }
 0x123   : > { %19650 = vst [vmem:[#allocation65_spill] sm:$0xff] %v14510_v4  ;;  %v14513_v3 = vadd.f32 %v12029_v10, %v14319_v62  ;;  %12088 = vmatprep.mubr.msk.bf16.mxu1 %vm795_vm3, %v14501_v16  ;;  %v19223_v47 = vmax.f32 %v14510_v4, 0.0  ;;  %v12064_v4 = vpop.f32.mrf.mxu1 }
 0x124   : > { %v530_v35 = vpop.f32.mrf.mxu0  ;;  %12089 = vmatmul.mubr.msk.bf16.gmra.mxu1 %vm795_vm3, %v14507_v46 }
 0x125   : > { %19651 = vst [vmem:[#allocation66_spill] sm:$0xff] %v14513_v3  ;;  %v14523_v39 = vadd.f32 %v14319_v62, %v530_v35  ;;  %v19226_v21 = vmax.f32 %v14513_v3, 0.0 }
 0x126   : > { %v12032_v11 = vpop.f32.mrf.mxu0 }
 0x127   : > { %19653 = vst [vmem:[#allocation68_spill] sm:$0xff] %v14523_v39  ;;  %v19224_v10 = vmax.f32 %v14523_v39, 0.0  ;;  %v14539_v35 = vpack.c.bf16 %v19226_v21, %v19225_v60  ;;  %v14550_v43 = vadd.f32 %v12032_v11, %v14319_v62 }
 0x128   : > { %v543_v55 = vpop.f32.mrf.mxu0 }
 0x129   : > { %v14533_v40 = vpack.c.bf16 %v19224_v10, %v19223_v47  ;;  %v14542_v49 = vadd.f32 %v14319_v62, %v543_v55  ;;  %19656 = vst [vmem:[#allocation71_spill] sm:$0xff] %v14550_v43  ;;  %v19235_v42 = vmax.f32 %v14550_v43, 0.0 }
 0x12a   : > { %v12033_v54 = vpop.f32.mrf.mxu0 }
 0x12b   : > { %19654 = vst [vmem:[#allocation69_spill] sm:$0xff] %v14542_v49  ;;  %v14545_v48 = vadd.f32 %v12033_v54, %v14319_v62  ;;  %12092 = vmatprep.mubr.msk.bf16.mxu1 %vm795_vm3, %v14533_v40  ;;  %v19233_v21 = vmax.f32 %v14542_v49, 0.0 }
 0x12c   : > { %v546_v47 = vpop.f32.mrf.mxu0  ;;  %12093 = vmatmul.mubr.msk.bf16.gmra.mxu1 %vm795_vm3, %v14539_v35 }
 0x12d   : > { %19655 = vst [vmem:[#allocation70_spill] sm:$0xff] %v14545_v48  ;;  %v14555_v10 = vadd.f32 %v14319_v62, %v546_v47  ;;  %v19236_v60 = vmax.f32 %v14545_v48, 0.0 }
 0x12e   : > { %v12036_v55 = vpop.f32.mrf.mxu0 }
 0x12f   : > { %19657 = vst [vmem:[#allocation72_spill] sm:$0xff] %v14555_v10  ;;  %v19234_v54 = vmax.f32 %v14555_v10, 0.0  ;;  %v14571_v47 = vpack.c.bf16 %v19236_v60, %v19235_v42  ;;  %v14582_v19 = vadd.f32 %v12036_v55, %v14319_v62 }
 0x130   : > { %v559_v37 = vpop.f32.mrf.mxu0 }
 0x131   : > { %v14565_v11 = vpack.c.bf16 %v19234_v54, %v19233_v21  ;;  %v14574_v25 = vadd.f32 %v14319_v62, %v559_v37  ;;  %19660 = vst [vmem:[#allocation75_spill] sm:$0xff] %v14582_v19  ;;  %v19245_v18 = vmax.f32 %v14582_v19, 0.0 }
 0x132   : > { %v12037_v36 = vpop.f32.mrf.mxu0 }
 0x133   : > { %19658 = vst [vmem:[#allocation73_spill] sm:$0xff] %v14574_v25  ;;  %v14577_v24 = vadd.f32 %v12037_v36, %v14319_v62  ;;  %12096 = vmatprep.mubr.msk.bf16.mxu1 %vm795_vm3, %v14565_v11  ;;  %v19243_v60 = vmax.f32 %v14574_v25, 0.0 }
 0x134   : > { %v562_v21 = vpop.f32.mrf.mxu0  ;;  %12097 = vmatmul.mubr.msk.bf16.gmra.mxu1 %vm795_vm3, %v14571_v47 }
 0x135   : > { %19659 = vst [vmem:[#allocation74_spill] sm:$0xff] %v14577_v24  ;;  %v14587_v54 = vadd.f32 %v14319_v62, %v562_v21  ;;  %v19246_v42 = vmax.f32 %v14577_v24, 0.0 }
 0x136   : > { %v12040_v37 = vpop.f32.mrf.mxu0 }
 0x137   : > { %19661 = vst [vmem:[#allocation76_spill] sm:$0xff] %v14587_v54  ;;  %v19244_v36 = vmax.f32 %v14587_v54, 0.0  ;;  %v14603_v21 = vpack.c.bf16 %v19246_v42, %v19245_v18  ;;  %v14614_v25 = vadd.f32 %v12040_v37, %v14319_v62 }
 0x138   : > { %v575_v13 = vpop.f32.mrf.mxu0 }
 0x139   : > { %v14597_v55 = vpack.c.bf16 %v19244_v36, %v19243_v60  ;;  %v14606_v7 = vadd.f32 %v14319_v62, %v575_v13  ;;  %19664 = vst [vmem:[#allocation79_spill] sm:$0xff] %v14614_v25  ;;  %v19255_v54 = vmax.f32 %v14614_v25, 0.0 }
 0x13a   : > { %v12041_v12 = vpop.f32.mrf.mxu0 }
 0x13b   : > { %19662 = vst [vmem:[#allocation77_spill] sm:$0xff] %v14606_v7  ;;  %v14609_v2 = vadd.f32 %v12041_v12, %v14319_v62  ;;  %12100 = vmatprep.mubr.msk.bf16.mxu1 %vm795_vm3, %v14597_v55  ;;  %v19253_v42 = vmax.f32 %v14606_v7, 0.0 }
 0x13c   : > { %v578_v60 = vpop.f32.mrf.mxu0  ;;  %12101 = vmatmul.mubr.msk.bf16.gmra.mxu1 %vm795_vm3, %v14603_v21 }
 0x13d   : > { %19663 = vst [vmem:[#allocation78_spill] sm:$0xff] %v14609_v2  ;;  %v14619_v36 = vadd.f32 %v14319_v62, %v578_v60  ;;  %v19256_v18 = vmax.f32 %v14609_v2, 0.0 }
 0x13e   : > { %v12044_v13 = vpop.f32.mrf.mxu0 }
 0x13f   : > { %19665 = vst [vmem:[#allocation80_spill] sm:$0xff] %v14619_v36  ;;  %v19254_v12 = vmax.f32 %v14619_v36, 0.0  ;;  %v14635_v60 = vpack.c.bf16 %v19256_v18, %v19255_v54  ;;  %v14646_v7 = vadd.f32 %v12044_v13, %v14319_v62 }
 0x140   : > { %v591_v19 = vpop.f32.mrf.mxu0 }
 0x141   : > { %v14629_v37 = vpack.c.bf16 %v19254_v12, %v19253_v42  ;;  %v14638_v49 = vadd.f32 %v14319_v62, %v591_v19  ;;  %19668 = vst [vmem:[#allocation83_spill] sm:$0xff] %v14646_v7  ;;  %v19265_v36 = vmax.f32 %v14646_v7, 0.0 }
 0x142   : > { %v12045_v24 = vpop.f32.mrf.mxu0 }
 0x143   : > { %19666 = vst [vmem:[#allocation81_spill] sm:$0xff] %v14638_v49  ;;  %v14641_v10 = vadd.f32 %v12045_v24, %v14319_v62  ;;  %12104 = vmatprep.mubr.msk.bf16.mxu1 %vm795_vm3, %v14629_v37  ;;  %v19263_v18 = vmax.f32 %v14638_v49, 0.0 }
 0x144   : > { %v594_v42 = vpop.f32.mrf.mxu0  ;;  %12105 = vmatmul.mubr.msk.bf16.gmra.mxu1 %vm795_vm3, %v14635_v60 }
 0x145   : > { %19667 = vst [vmem:[#allocation82_spill] sm:$0xff] %v14641_v10  ;;  %v14651_v12 = vadd.f32 %v14319_v62, %v594_v42  ;;  %v19266_v54 = vmax.f32 %v14641_v10, 0.0 }
 0x146   : > { %v12048_v19 = vpop.f32.mrf.mxu0 }
 0x147   : > { %19669 = vst [vmem:[#allocation84_spill] sm:$0xff] %v14651_v12  ;;  %v19264_v24 = vmax.f32 %v14651_v12, 0.0  ;;  %v14667_v42 = vpack.c.bf16 %v19266_v54, %v19265_v36  ;;  %v14678_v49 = vadd.f32 %v12048_v19, %v14319_v62 }
 0x148   : > { %v607_v25 = vpop.f32.mrf.mxu0 }
 0x149   : > { %v14661_v13 = vpack.c.bf16 %v19264_v24, %v19263_v18  ;;  %v14670_v43 = vadd.f32 %v14319_v62, %v607_v25  ;;  %19672 = vst [vmem:[#allocation87_spill] sm:$0xff] %v14678_v49  ;;  %v19275_v12 = vmax.f32 %v14678_v49, 0.0 }
 0x14a   : > { %v12049_v2 = vpop.f32.mrf.mxu0 }
 0x14b   : > { %19670 = vst [vmem:[#allocation85_spill] sm:$0xff] %v14670_v43  ;;  %v14673_v48 = vadd.f32 %v12049_v2, %v14319_v62  ;;  %12108 = vmatprep.mubr.msk.bf16.mxu1 %vm795_vm3, %v14661_v13  ;;  %v19273_v54 = vmax.f32 %v14670_v43, 0.0  ;;  %v671_v43 = vpop.f32.mrf.mxu1 }
 0x14c   : > { %v610_v18 = vpop.f32.mrf.mxu0  ;;  %12109 = vmatmul.mubr.msk.bf16.gmra.mxu1 %vm795_vm3, %v14667_v42 }
 0x14d   : > { %19671 = vst [vmem:[#allocation86_spill] sm:$0xff] %v14673_v48  ;;  %v14683_v24 = vadd.f32 %v14319_v62, %v610_v18  ;;  %v19276_v36 = vmax.f32 %v14673_v48, 0.0  ;;  %v12065_v31 = vpop.f32.mrf.mxu1 }
 0x14e   : > { %v12052_v25 = vpop.f32.mrf.mxu0 }
 0x14f   : > { %19673 = vst [vmem:[#allocation88_spill] sm:$0xff] %v14683_v24  ;;  %v19274_v2 = vmax.f32 %v14683_v24, 0.0  ;;  %v14699_v18 = vpack.c.bf16 %v19276_v36, %v19275_v12 }
 0x150   : > { %v623_v7 = vpop.f32.mrf.mxu0 }
 0x151   : > { %v14693_v19 = vpack.c.bf16 %v19274_v2, %v19273_v54  ;;  %v14702_v39 = vadd.f32 %v14319_v62, %v623_v7  ;;  %v14710_v54 = vadd.f32 %v12052_v25, %v14319_v62 }
 0x152   : > { %v12053_v10 = vpop.f32.mrf.mxu0 }
 0x153   : > { %19674 = vst [vmem:[#allocation89_spill] sm:$0xff] %v14702_v39  ;;  %v14705_v61 = vadd.f32 %v12053_v10, %v14319_v62  ;;  %12112 = vmatprep.mubr.msk.bf16.mxu1 %vm795_vm3, %v14693_v19  ;;  %19676 = vst [vmem:[#allocation91_spill] sm:$0xff] %v14710_v54  ;;  %v19285_v10 = vmax.f32 %v14702_v39, 0.0  ;;  %v19287_v49 = vmax.f32 %v14710_v54, 0.0  ;;  %v674_v39 = vpop.f32.mrf.mxu1 }
 0x154   : > { %v626_v2 = vpop.f32.mrf.mxu0  ;;  %12113 = vmatmul.mubr.msk.bf16.gmra.mxu1 %vm795_vm3, %v14699_v18 }
 0x155   : > { %19675 = vst [vmem:[#allocation90_spill] sm:$0xff] %v14705_v61  ;;  %v14715_v12 = vadd.f32 %v14319_v62, %v626_v2  ;;  %v19288_v36 = vmax.f32 %v14705_v61, 0.0 }
 0x156   : > { %v12056_v7 = vpop.f32.mrf.mxu0 }
 0x157   : > { %19677 = vst [vmem:[#allocation92_spill] sm:$0xff] %v14715_v12  ;;  %v19286_v24 = vmax.f32 %v14715_v12, 0.0  ;;  %v14731_v2 = vpack.c.bf16 %v19288_v36, %v19287_v49  ;;  %v14763_v36 = vadd.f32 %v14319_v62, %v674_v39 }
 0x158   : > { %v639_v48 = vpop.f32.mrf.mxu0 }
 0x159   : > { %v14725_v25 = vpack.c.bf16 %v19286_v24, %v19285_v10  ;;  %v14734_v28 = vadd.f32 %v14319_v62, %v639_v48  ;;  %v14742_v10 = vadd.f32 %v12056_v7, %v14319_v62  ;;  %19683 = vst [vmem:[#allocation98_spill] sm:$0xff] %v14763_v36 }
 0x15a   : > { %v12057_v3 = vpop.f32.mrf.mxu0 }
 0x15b   : > { %19678 = vst [vmem:[#allocation93_spill] sm:$0xff] %v14734_v28  ;;  %v14737_v22 = vadd.f32 %v12057_v3, %v14319_v62  ;;  %12116 = vmatprep.mubr.msk.bf16.mxu1 %vm795_vm3, %v14725_v25  ;;  %19680 = vst [vmem:[#allocation95_spill] sm:$0xff] %v14742_v10  ;;  %v19298_v3 = vmax.f32 %v14734_v28, 0.0  ;;  %v19300_v54 = vmax.f32 %v14742_v10, 0.0 }
 0x15c   : > { %v642_v24 = vpop.f32.mrf.mxu0  ;;  %12117 = vmatmul.mubr.msk.bf16.gmra.mxu1 %vm795_vm3, %v14731_v2 }
 0x15d   : > { %19679 = vst [vmem:[#allocation94_spill] sm:$0xff] %v14737_v22  ;;  %v14747_v49 = vadd.f32 %v14319_v62, %v642_v24  ;;  %v14760_v24 = vadd.f32 %v14319_v62, %v671_v43  ;;  %v19684_v30 = vmax.f32 %v14737_v22, 0.0 }
 0x15e   : > { %v12060_v48 = vpop.f32.mrf.mxu0 }
 0x15f   : > { %19681 = vst [vmem:[#allocation96_spill] sm:$0xff] %v14747_v49  ;;  %v19299_v12 = vmax.f32 %v14747_v49, 0.0  ;;  %19682 = vst [vmem:[#allocation97_spill] sm:$0xff] %v14760_v24  ;;  %v14769_v53 = vpack.c.bf16 %v19684_v30, %v19300_v54  ;;  %v14780_v43 = vadd.f32 %v12060_v48, %v14319_v62  ;;  %v19305_v30 = vmax.f32 %v14760_v24, 0.0 }
 0x160   : > { %v655_v61 = vpop.f32.mrf.mxu0 }
 0x161   : > { %v14757_v7 = vpack.c.bf16 %v19299_v12, %v19298_v3  ;;  %v14772_v50 = vadd.f32 %v14319_v62, %v655_v61  ;;  %19687 = vst [vmem:[#allocation101_spill] sm:$0xff] %v14780_v43  ;;  %v19306_v61 = vmax.f32 %v14763_v36, 0.0  ;;  %v19311_v48 = vmax.f32 %v14780_v43, 0.0 }
 0x162   : > { %v12061_v15 = vpop.f32.mrf.mxu0 }
 0x163   : > { %19685 = vst [vmem:[#allocation99_spill] sm:$0xff] %v14772_v50  ;;  %v14775_v28 = vadd.f32 %v12061_v15, %v14319_v62  ;;  %12120 = vmatprep.mubr.msk.bf16.mxu1 %vm795_vm3, %v14757_v7  ;;  %v19309_v12 = vmax.f32 %v14772_v50, 0.0  ;;  %v14806_v15 = vadd.f32 %v12064_v4, %v14319_v62  ;;  %v14815_v50 = vadd.f32 %v12065_v31, %v14319_v62 }
 0x164   : > { %v658_v39 = vpop.f32.mrf.mxu0  ;;  %12121 = vmatmul.mubr.msk.bf16.gmra.mxu1 %vm795_vm3, %v14769_v53 }
 0x165   : > { %19686 = vst [vmem:[#allocation100_spill] sm:$0xff] %v14775_v28  ;;  %v14786_v3 = vadd.f32 %v14319_v62, %v658_v39  ;;  %v14803_v39 = vpack.c.bf16 %v19306_v61, %v19305_v30  ;;  %19689 = vst [vmem:[#allocation103_spill] sm:$0xff] %v14806_v15  ;;  %v19690_v10 = vmax.f32 %v14775_v28, 0.0  ;;  %v19307_v4 = vmax.f32 %v14806_v15, 0.0  ;;  %v14874_v62 = vld [vmem:[%s19175_s2 + $0x1] ss:$0 sm:$0xff] }
 0x166   : > { %19691 = vst [vmem:[#allocation104_spill] sm:$0xff] %v14815_v50  ;;  %v19308_v30 = vmax.f32 %v14815_v50, 0.0 }
 0x167   : > { %19688 = vst [vmem:[#allocation102_spill] sm:$0xff] %v14786_v3  ;;  %v19310_v54 = vmax.f32 %v14786_v3, 0.0  ;;  %v14812_v22 = vpack.c.bf16 %v19690_v10, %v19311_v48 }
 0x168   : > { %v14829_v10 = vpack.c.bf16 %v19308_v30, %v19307_v4  ;;  %v15057_v4 = vld [vmem:[%s19175_s2 + $0x2] ss:$0 sm:$0xff]  ;;  %v15062_v30 = vld [vmem:[%s19175_s2 + $0x3] ss:$0 sm:$0xff] }
 0x169   : > { %v14797_v49 = vpack.c.bf16 %v19310_v54, %v19309_v12 }
 0x16b   : > { %12124 = vmatprep.mubr.msk.bf16.mxu1 %vm795_vm3, %v14797_v49 }
 0x16c   : > { %12125 = vmatmul.mubr.msk.bf16.gmra.mxu1 %vm795_vm3, %v14812_v22 }
 0x16d   : > { %12128 = vmatprep.mubr.msk.bf16.mxu1 %vm795_vm3, %v14803_v39 }
 0x174   : > { %12129 = vmatmul.mubr.msk.bf16.gmra.mxu1 %vm795_vm3, %v14829_v10 }
 0x175   : > { %12202 = vmatprep.mubr.msk.bf16.mxu1 %vm795_vm3, %v14341_v23 }
 0x17c   : > { %12203 = vmatmul.mubr.msk.bf16.vlgmr.msra.gmra.mxu1 %vm795_vm3, %v14347_v26 }
 0x17d   : > { %12206 = vmatprep.mubr.msk.bf16.mxu1 %vm795_vm3, %v14373_v57 }
 0x184   : > { %12207 = vmatmul.mubr.msk.bf16.gmra.mxu1 %vm795_vm3, %v14379_v56 }
 0x185   : > { %12210 = vmatprep.mubr.msk.bf16.mxu1 %vm795_vm3, %v14405_v44 }
 0x18c   : > { %12211 = vmatmul.mubr.msk.bf16.gmra.mxu1 %vm795_vm3, %v14411_v14 }
 0x18d   : > { %12214 = vmatprep.mubr.msk.bf16.mxu1 %vm795_vm3, %v14437_v33 }
 0x194   : > { %12215 = vmatmul.mubr.msk.bf16.gmra.mxu1 %vm795_vm3, %v14443_v52 }
 0x195   : > { %12218 = vmatprep.mubr.msk.bf16.mxu1 %vm795_vm3, %v14469_v27 }
 0x19c   : > { %12219 = vmatmul.mubr.msk.bf16.gmra.mxu1 %vm795_vm3, %v14475_v51 }
 0x19d   : > { %12222 = vmatprep.mubr.msk.bf16.mxu1 %vm795_vm3, %v14501_v16 }
 0x1a4   : > { %12223 = vmatmul.mubr.msk.bf16.gmra.mxu1 %vm795_vm3, %v14507_v46 }
 0x1a5   : > { %12226 = vmatprep.mubr.msk.bf16.mxu1 %vm795_vm3, %v14533_v40 }
 0x1ac   : > { %12227 = vmatmul.mubr.msk.bf16.gmra.mxu1 %vm795_vm3, %v14539_v35 }
 0x1ad   : > { %12230 = vmatprep.mubr.msk.bf16.mxu1 %vm795_vm3, %v14565_v11 }
 0x1b4   : > { %12231 = vmatmul.mubr.msk.bf16.gmra.mxu1 %vm795_vm3, %v14571_v47 }
 0x1b5   : > { %12234 = vmatprep.mubr.msk.bf16.mxu1 %vm795_vm3, %v14597_v55 }
 0x1bc   : > { %v12070_v33 = vpop.f32.mrf.mxu1  ;;  %12235 = vmatmul.mubr.msk.bf16.gmra.mxu1 %vm795_vm3, %v14603_v21 }
 0x1bd   : > { %12238 = vmatprep.mubr.msk.bf16.mxu1 %vm795_vm3, %v14629_v37  ;;  %v935_v56 = vadd.f32 %v12070_v33, %v14874_v62 }
 0x1be   : > { %v926_v31 = vpop.f32.mrf.mxu1 }
 0x1bf   : > { %v927_v26 = vadd.f32 %v14874_v62, %v926_v31  ;;  %v1183_v46 = vmax.f32 %v935_v56, 0.0 }
 0x1c0   : > { %v12071_v23 = vpop.f32.mrf.mxu1 }
 0x1c1   : > { %v938_v57 = vadd.f32 %v12071_v23, %v14874_v62  ;;  %v1181_v51 = vmax.f32 %v927_v26, 0.0 }
 0x1c2   : > { %v929_v44 = vpop.f32.mrf.mxu1 }
 0x1c3   : > { %v930_v14 = vadd.f32 %v14874_v62, %v929_v44  ;;  %v1184_v52 = vmax.f32 %v938_v57, 0.0 }
 0x1c4   : > { %v12074_v27 = vpop.f32.mrf.mxu1  ;;  %12239 = vmatmul.mubr.msk.bf16.gmra.mxu1 %vm795_vm3, %v14635_v60 }
 0x1c5   : > { %v1182_v16 = vmax.f32 %v930_v14, 0.0  ;;  %12242 = vmatprep.mubr.msk.bf16.mxu1 %vm795_vm3, %v14661_v13  ;;  %v1246_v11 = vpack.c.bf16 %v1184_v52, %v1183_v46  ;;  %v951_v37 = vadd.f32 %v12074_v27, %v14874_v62 }
 0x1c6   : > { %v942_v40 = vpop.f32.mrf.mxu1 }
 0x1c7   : > { %v1245_v35 = vpack.c.bf16 %v1182_v16, %v1181_v51  ;;  %v943_v55 = vadd.f32 %v14874_v62, %v942_v40  ;;  %v1187_v57 = vmax.f32 %v951_v37, 0.0 }
 0x1c8   : > { %v12075_v47 = vpop.f32.mrf.mxu1 }
 0x1c9   : > { %v954_v21 = vadd.f32 %v12075_v47, %v14874_v62  ;;  %12136 = vmatprep.mubr.msk.bf16.mxu0 %vm1298_vm4, %v1245_v35  ;;  %v1185_v23 = vmax.f32 %v943_v55, 0.0 }
 0x1ca   : > { %v945_v60 = vpop.f32.mrf.mxu1  ;;  %12137 = vmatmul.mubr.msk.bf16.vlgmr.msra.gmra.mxu0 %vm1298_vm4, %v1246_v11 }
 0x1cb   : > { %v946_v33 = vadd.f32 %v14874_v62, %v945_v60  ;;  %v1188_v13 = vmax.f32 %v954_v21, 0.0 }
 0x1cc   : > { %v12078_v31 = vpop.f32.mrf.mxu1  ;;  %12243 = vmatmul.mubr.msk.bf16.gmra.mxu1 %vm795_vm3, %v14667_v42 }
 0x1cd   : > { %v1186_v26 = vmax.f32 %v946_v33, 0.0  ;;  %12246 = vmatprep.mubr.msk.bf16.mxu1 %vm795_vm3, %v14693_v19  ;;  %v1248_v14 = vpack.c.bf16 %v1188_v13, %v1187_v57  ;;  %v967_v16 = vadd.f32 %v12078_v31, %v14874_v62 }
 0x1ce   : > { %v958_v56 = vpop.f32.mrf.mxu1 }
 0x1cf   : > { %v1247_v44 = vpack.c.bf16 %v1186_v26, %v1185_v23  ;;  %v959_v27 = vadd.f32 %v14874_v62, %v958_v56  ;;  %v1191_v47 = vmax.f32 %v967_v16, 0.0 }
 0x1d0   : > { %v12079_v52 = vpop.f32.mrf.mxu1 }
 0x1d1   : > { %v970_v51 = vadd.f32 %v12079_v52, %v14874_v62  ;;  %12140 = vmatprep.mubr.msk.bf16.mxu0 %vm1298_vm4, %v1247_v44  ;;  %v1189_v35 = vmax.f32 %v959_v27, 0.0 }
 0x1d2   : > { %v961_v46 = vpop.f32.mrf.mxu1  ;;  %12141 = vmatmul.mubr.msk.bf16.gmra.mxu0 %vm1298_vm4, %v1248_v14 }
 0x1d3   : > { %v962_v42 = vadd.f32 %v14874_v62, %v961_v46  ;;  %v1192_v40 = vmax.f32 %v970_v51, 0.0 }
 0x1d4   : > { %v12082_v19 = vpop.f32.mrf.mxu1  ;;  %12247 = vmatmul.mubr.msk.bf16.gmra.mxu1 %vm795_vm3, %v14699_v18 }
 0x1d5   : > { %v1190_v11 = vmax.f32 %v962_v42, 0.0  ;;  %12250 = vmatprep.mubr.msk.bf16.mxu1 %vm795_vm3, %v14725_v25  ;;  %v1250_v37 = vpack.c.bf16 %v1192_v40, %v1191_v47  ;;  %v983_v31 = vadd.f32 %v12082_v19, %v14874_v62 }
 0x1d6   : > { %v974_v55 = vpop.f32.mrf.mxu1 }
 0x1d7   : > { %v1249_v21 = vpack.c.bf16 %v1190_v11, %v1189_v35  ;;  %v975_v33 = vadd.f32 %v14874_v62, %v974_v55  ;;  %v1195_v44 = vmax.f32 %v983_v31, 0.0 }
 0x1d8   : > { %v12083_v60 = vpop.f32.mrf.mxu1 }
 0x1d9   : > { %v986_v13 = vadd.f32 %v12083_v60, %v14874_v62  ;;  %12144 = vmatprep.mubr.msk.bf16.mxu0 %vm1298_vm4, %v1249_v21  ;;  %v1193_v57 = vmax.f32 %v975_v33, 0.0 }
 0x1da   : > { %v977_v23 = vpop.f32.mrf.mxu1  ;;  %12145 = vmatmul.mubr.msk.bf16.gmra.mxu0 %vm1298_vm4, %v1250_v37 }
 0x1db   : > { %v978_v18 = vadd.f32 %v14874_v62, %v977_v23  ;;  %v1196_v26 = vmax.f32 %v986_v13, 0.0 }
 0x1dc   : > { %v12086_v25 = vpop.f32.mrf.mxu1  ;;  %12251 = vmatmul.mubr.msk.bf16.gmra.mxu1 %vm795_vm3, %v14731_v2 }
 0x1dd   : > { %v1194_v56 = vmax.f32 %v978_v18, 0.0  ;;  %12254 = vmatprep.mubr.msk.bf16.mxu1 %vm795_vm3, %v14757_v7  ;;  %v1252_v27 = vpack.c.bf16 %v1196_v26, %v1195_v44  ;;  %v999_v42 = vadd.f32 %v12086_v25, %v14874_v62 }
 0x1de   : > { %v990_v14 = vpop.f32.mrf.mxu1 }
 0x1df   : > { %v1251_v52 = vpack.c.bf16 %v1194_v56, %v1193_v57  ;;  %v991_v16 = vadd.f32 %v14874_v62, %v990_v14  ;;  %v1199_v47 = vmax.f32 %v999_v42, 0.0 }
 0x1e0   : > { %v12087_v51 = vpop.f32.mrf.mxu1 }
 0x1e1   : > { %v1002_v46 = vadd.f32 %v12087_v51, %v14874_v62  ;;  %12148 = vmatprep.mubr.msk.bf16.mxu0 %vm1298_vm4, %v1251_v52  ;;  %v1197_v35 = vmax.f32 %v991_v16, 0.0 }
 0x1e2   : > { %v993_v40 = vpop.f32.mrf.mxu1  ;;  %12149 = vmatmul.mubr.msk.bf16.gmra.mxu0 %vm1298_vm4, %v1252_v27 }
 0x1e3   : > { %v994_v2 = vadd.f32 %v14874_v62, %v993_v40  ;;  %v1200_v19 = vmax.f32 %v1002_v46, 0.0 }
 0x1e4   : > { %v12090_v7 = vpop.f32.mrf.mxu1  ;;  %12255 = vmatmul.mubr.msk.bf16.gmra.mxu1 %vm795_vm3, %v14769_v53 }
 0x1e5   : > { %v1198_v11 = vmax.f32 %v994_v2, 0.0  ;;  %12258 = vmatprep.mubr.msk.bf16.mxu1 %vm795_vm3, %v14797_v49  ;;  %v1254_v37 = vpack.c.bf16 %v1200_v19, %v1199_v47  ;;  %v1015_v31 = vadd.f32 %v12090_v7, %v14874_v62 }
 0x1e6   : > { %v1006_v55 = vpop.f32.mrf.mxu1 }
 0x1e7   : > { %v1253_v21 = vpack.c.bf16 %v1198_v11, %v1197_v35  ;;  %v1007_v33 = vadd.f32 %v14874_v62, %v1006_v55  ;;  %v1203_v57 = vmax.f32 %v1015_v31, 0.0 }
 0x1e8   : > { %v12091_v60 = vpop.f32.mrf.mxu1 }
 0x1e9   : > { %v1018_v13 = vadd.f32 %v12091_v60, %v14874_v62  ;;  %12152 = vmatprep.mubr.msk.bf16.mxu0 %vm1298_vm4, %v1253_v21  ;;  %v1201_v26 = vmax.f32 %v1007_v33, 0.0 }
 0x1ea   : > { %v1009_v23 = vpop.f32.mrf.mxu1  ;;  %12153 = vmatmul.mubr.msk.bf16.gmra.mxu0 %vm1298_vm4, %v1254_v37 }
 0x1eb   : > { %v1010_v53 = vadd.f32 %v14874_v62, %v1009_v23  ;;  %v1204_v18 = vmax.f32 %v1018_v13, 0.0 }
 0x1ec   : > { %v12094_v49 = vpop.f32.mrf.mxu1  ;;  %12259 = vmatmul.mubr.msk.bf16.gmra.mxu1 %vm795_vm3, %v14812_v22 }
 0x1ed   : > { %v1202_v25 = vmax.f32 %v1010_v53, 0.0  ;;  %12262 = vmatprep.mubr.msk.bf16.mxu1 %vm795_vm3, %v14803_v39  ;;  %v1256_v14 = vpack.c.bf16 %v1204_v18, %v1203_v57  ;;  %v1031_v16 = vadd.f32 %v12094_v49, %v14874_v62 }
 0x1ee   : > { %v1022_v56 = vpop.f32.mrf.mxu1 }
 0x1ef   : > { %v1255_v44 = vpack.c.bf16 %v1202_v25, %v1201_v26  ;;  %v1023_v27 = vadd.f32 %v14874_v62, %v1022_v56  ;;  %v1207_v19 = vmax.f32 %v1031_v16, 0.0 }
 0x1f0   : > { %v12095_v52 = vpop.f32.mrf.mxu1 }
 0x1f1   : > { %v1034_v51 = vadd.f32 %v12095_v52, %v14874_v62  ;;  %12156 = vmatprep.mubr.msk.bf16.mxu0 %vm1298_vm4, %v1255_v44  ;;  %v1205_v40 = vmax.f32 %v1023_v27, 0.0 }
 0x1f2   : > { %v1025_v46 = vpop.f32.mrf.mxu1  ;;  %12157 = vmatmul.mubr.msk.bf16.gmra.mxu0 %vm1298_vm4, %v1256_v14 }
 0x1f3   : > { %v1026_v22 = vadd.f32 %v14874_v62, %v1025_v46  ;;  %v1208_v42 = vmax.f32 %v1034_v51, 0.0 }
 0x1f4   : > { %v12098_v39 = vpop.f32.mrf.mxu1  ;;  %12263 = vmatmul.mubr.msk.bf16.gmra.mxu1 %vm795_vm3, %v14829_v10 }
 0x1f5   : > { %v1206_v2 = vmax.f32 %v1026_v22, 0.0  ;;  %v1258_v11 = vpack.c.bf16 %v1208_v42, %v1207_v19  ;;  %v1047_v37 = vadd.f32 %v12098_v39, %v14874_v62 }
 0x1f6   : > { %v1038_v7 = vpop.f32.mrf.mxu1 }
 0x1f7   : > { %v1257_v35 = vpack.c.bf16 %v1206_v2, %v1205_v40  ;;  %v1039_v55 = vadd.f32 %v14874_v62, %v1038_v7  ;;  %v1211_v53 = vmax.f32 %v1047_v37, 0.0 }
 0x1f8   : > { %v12099_v47 = vpop.f32.mrf.mxu1 }
 0x1f9   : > { %v1050_v21 = vadd.f32 %v12099_v47, %v14874_v62  ;;  %12160 = vmatprep.mubr.msk.bf16.mxu0 %vm1298_vm4, %v1257_v35  ;;  %v1209_v31 = vmax.f32 %v1039_v55, 0.0 }
 0x1fa   : > { %v1041_v60 = vpop.f32.mrf.mxu1  ;;  %12161 = vmatmul.mubr.msk.bf16.gmra.mxu0 %vm1298_vm4, %v1258_v11 }
 0x1fb   : > { %v1042_v10 = vadd.f32 %v14874_v62, %v1041_v60  ;;  %v1212_v33 = vmax.f32 %v1050_v21, 0.0 }
 0x1fc   : > { %v12102_v13 = vpop.f32.mrf.mxu1 }
 0x1fd   : > { %v1210_v23 = vmax.f32 %v1042_v10, 0.0  ;;  %v1260_v26 = vpack.c.bf16 %v1212_v33, %v1211_v53  ;;  %v1063_v44 = vadd.f32 %v12102_v13, %v14874_v62 }
 0x1fe   : > { %v1054_v18 = vpop.f32.mrf.mxu1 }
 0x1ff   : > { %v1259_v49 = vpack.c.bf16 %v1210_v23, %v1209_v31  ;;  %v1055_v57 = vadd.f32 %v14874_v62, %v1054_v18  ;;  %v1215_v22 = vmax.f32 %v1063_v44, 0.0 }
 0x200   : > { %v12103_v25 = vpop.f32.mrf.mxu1 }
 0x201   : > { %v1066_v56 = vadd.f32 %v12103_v25, %v14874_v62  ;;  %12164 = vmatprep.mubr.msk.bf16.mxu0 %vm1298_vm4, %v1259_v49  ;;  %v1213_v16 = vmax.f32 %v1055_v57, 0.0 }
 0x202   : > { %v1057_v14 = vpop.f32.mrf.mxu1  ;;  %12165 = vmatmul.mubr.msk.bf16.gmra.mxu0 %vm1298_vm4, %v1260_v26 }
 0x203   : > { %v1058_v52 = vadd.f32 %v14874_v62, %v1057_v14  ;;  %v1216_v27 = vmax.f32 %v1066_v56, 0.0 }
 0x204   : > { %v12106_v51 = vpop.f32.mrf.mxu1 }
 0x205   : > { %v1214_v46 = vmax.f32 %v1058_v52, 0.0  ;;  %v1262_v40 = vpack.c.bf16 %v1216_v27, %v1215_v22  ;;  %v1079_v35 = vadd.f32 %v12106_v51, %v14874_v62 }
 0x206   : > { %v1070_v42 = vpop.f32.mrf.mxu1 }
 0x207   : > { %v1261_v39 = vpack.c.bf16 %v1214_v46, %v1213_v16  ;;  %v1071_v19 = vadd.f32 %v14874_v62, %v1070_v42  ;;  %v1219_v10 = vmax.f32 %v1079_v35, 0.0 }
 0x208   : > { %v12107_v2 = vpop.f32.mrf.mxu1 }
 0x209   : > { %v1082_v7 = vadd.f32 %v12107_v2, %v14874_v62  ;;  %12168 = vmatprep.mubr.msk.bf16.mxu0 %vm1298_vm4, %v1261_v39  ;;  %v1217_v37 = vmax.f32 %v1071_v19, 0.0 }
 0x20a   : > { %v1073_v11 = vpop.f32.mrf.mxu1  ;;  %12169 = vmatmul.mubr.msk.bf16.gmra.mxu0 %vm1298_vm4, %v1262_v40 }
 0x20b   : > { %v1074_v47 = vadd.f32 %v14874_v62, %v1073_v11  ;;  %v1220_v55 = vmax.f32 %v1082_v7, 0.0 }
 0x20c   : > { %v12110_v21 = vpop.f32.mrf.mxu1 }
 0x20d   : > { %v1218_v60 = vmax.f32 %v1074_v47, 0.0  ;;  %v1264_v31 = vpack.c.bf16 %v1220_v55, %v1219_v10  ;;  %v1095_v49 = vadd.f32 %v12110_v21, %v14874_v62 }
 0x20e   : > { %v1086_v33 = vpop.f32.mrf.mxu1 }
 0x20f   : > { %v1263_v13 = vpack.c.bf16 %v1218_v60, %v1217_v37  ;;  %v1087_v53 = vadd.f32 %v14874_v62, %v1086_v33  ;;  %v1223_v52 = vmax.f32 %v1095_v49, 0.0 }
 0x210   : > { %v12111_v23 = vpop.f32.mrf.mxu1 }
 0x211   : > { %v1098_v18 = vadd.f32 %v12111_v23, %v14874_v62  ;;  %12172 = vmatprep.mubr.msk.bf16.mxu0 %vm1298_vm4, %v1263_v13  ;;  %v1221_v44 = vmax.f32 %v1087_v53, 0.0 }
 0x212   : > { %v1089_v26 = vpop.f32.mrf.mxu1  ;;  %12173 = vmatmul.mubr.msk.bf16.gmra.mxu0 %vm1298_vm4, %v1264_v31 }
 0x213   : > { %v1090_v25 = vadd.f32 %v14874_v62, %v1089_v26  ;;  %v1224_v57 = vmax.f32 %v1098_v18, 0.0 }
 0x214   : > { %v12114_v56 = vpop.f32.mrf.mxu1 }
 0x215   : > { %v1222_v14 = vmax.f32 %v1090_v25, 0.0  ;;  %v1266_v16 = vpack.c.bf16 %v1224_v57, %v1223_v52  ;;  %v1111_v39 = vadd.f32 %v12114_v56, %v14874_v62 }
 0x216   : > { %v1102_v27 = vpop.f32.mrf.mxu1 }
 0x217   : > { %v1265_v51 = vpack.c.bf16 %v1222_v14, %v1221_v44  ;;  %v1103_v22 = vadd.f32 %v14874_v62, %v1102_v27  ;;  %v1227_v47 = vmax.f32 %v1111_v39, 0.0 }
 0x218   : > { %v12115_v46 = vpop.f32.mrf.mxu1 }
 0x219   : > { %v1114_v42 = vadd.f32 %v12115_v46, %v14874_v62  ;;  %12176 = vmatprep.mubr.msk.bf16.mxu0 %vm1298_vm4, %v1265_v51  ;;  %v1225_v35 = vmax.f32 %v1103_v22, 0.0 }
 0x21a   : > { %v1105_v40 = vpop.f32.mrf.mxu1  ;;  %12177 = vmatmul.mubr.msk.bf16.gmra.mxu0 %vm1298_vm4, %v1266_v16 }
 0x21b   : > { %v1106_v2 = vadd.f32 %v14874_v62, %v1105_v40  ;;  %v1228_v19 = vmax.f32 %v1114_v42, 0.0 }
 0x21c   : > { %v12118_v7 = vpop.f32.mrf.mxu1 }
 0x21d   : > { %v1226_v11 = vmax.f32 %v1106_v2, 0.0  ;;  %v1268_v37 = vpack.c.bf16 %v1228_v19, %v1227_v47  ;;  %v1127_v13 = vadd.f32 %v12118_v7, %v14874_v62 }
 0x21e   : > { %v1118_v55 = vpop.f32.mrf.mxu1 }
 0x21f   : > { %v1267_v21 = vpack.c.bf16 %v1226_v11, %v1225_v35  ;;  %v1119_v10 = vadd.f32 %v14874_v62, %v1118_v55  ;;  %v1231_v25 = vmax.f32 %v1127_v13, 0.0 }
 0x220   : > { %v12119_v60 = vpop.f32.mrf.mxu1 }
 0x221   : > { %v1130_v33 = vadd.f32 %v12119_v60, %v14874_v62  ;;  %12180 = vmatprep.mubr.msk.bf16.mxu0 %vm1298_vm4, %v1267_v21  ;;  %v1229_v49 = vmax.f32 %v1119_v10, 0.0 }
 0x222   : > { %v1121_v31 = vpop.f32.mrf.mxu1  ;;  %12181 = vmatmul.mubr.msk.bf16.gmra.mxu0 %vm1298_vm4, %v1268_v37 }
 0x223   : > { %v1122_v23 = vadd.f32 %v14874_v62, %v1121_v31  ;;  %v1232_v53 = vmax.f32 %v1130_v33, 0.0 }
 0x224   : > { %v12122_v18 = vpop.f32.mrf.mxu1 }
 0x225   : > { %v1230_v26 = vmax.f32 %v1122_v23, 0.0  ;;  %v1270_v44 = vpack.c.bf16 %v1232_v53, %v1231_v25  ;;  %v1143_v51 = vadd.f32 %v12122_v18, %v14874_v62 }
 0x226   : > { %v1134_v57 = vpop.f32.mrf.mxu1 }
 0x227   : > { %v1269_v56 = vpack.c.bf16 %v1230_v26, %v1229_v49  ;;  %v1135_v52 = vadd.f32 %v14874_v62, %v1134_v57  ;;  %v1235_v2 = vmax.f32 %v1143_v51, 0.0 }
 0x228   : > { %v12123_v14 = vpop.f32.mrf.mxu1 }
 0x229   : > { %v1146_v27 = vadd.f32 %v12123_v14, %v14874_v62  ;;  %12184 = vmatprep.mubr.msk.bf16.mxu0 %vm1298_vm4, %v1269_v56  ;;  %v1233_v39 = vmax.f32 %v1135_v52, 0.0 }
 0x22a   : > { %v1137_v16 = vpop.f32.mrf.mxu1  ;;  %12185 = vmatmul.mubr.msk.bf16.gmra.mxu0 %vm1298_vm4, %v1270_v44 }
 0x22b   : > { %v1138_v46 = vadd.f32 %v14874_v62, %v1137_v16  ;;  %v1236_v22 = vmax.f32 %v1146_v27, 0.0 }
 0x22c   : > { %v12126_v42 = vpop.f32.mrf.mxu1 }
 0x22d   : > { %v1234_v40 = vmax.f32 %v1138_v46, 0.0  ;;  %v1272_v35 = vpack.c.bf16 %v1236_v22, %v1235_v2  ;;  %v1159_v21 = vadd.f32 %v12126_v42, %v14874_v62 }
 0x22e   : > { %v1150_v19 = vpop.f32.mrf.mxu1 }
 0x22f   : > { %v1271_v7 = vpack.c.bf16 %v1234_v40, %v1233_v39  ;;  %v1151_v47 = vadd.f32 %v14874_v62, %v1150_v19  ;;  %v1239_v23 = vmax.f32 %v1159_v21, 0.0  ;;  %v13656_v19 = vld [vmem:[#allocation2 + $0x58] sm:$0xff]  }
 0x230   : > { %v12127_v11 = vpop.f32.mrf.mxu1  ;;  %12266 = vmatprep.subr.bf16.mxu0 %v13656_v19 }
 0x231   : > { %v1162_v55 = vadd.f32 %v12127_v11, %v14874_v62  ;;  %12188 = vmatprep.mubr.msk.bf16.mxu0 %vm1298_vm4, %v1271_v7  ;;  %v1237_v13 = vmax.f32 %v1151_v47, 0.0  ;;  %12267 = vmatpush3.bf16.msra.mxu0 %v13656_v19 }
 0x232   : > { %v1153_v37 = vpop.f32.mrf.mxu1  ;;  %12189 = vmatmul.mubr.msk.bf16.gmra.mxu0 %vm1298_vm4, %v1272_v35 }
 0x233   : > { %v1154_v60 = vadd.f32 %v14874_v62, %v1153_v37  ;;  %v1240_v10 = vmax.f32 %v1162_v55, 0.0 }
 0x234   : > { %v12130_v33 = vpop.f32.mrf.mxu1 }
 0x235   : > { %v1238_v31 = vmax.f32 %v1154_v60, 0.0  ;;  %v1274_v49 = vpack.c.bf16 %v1240_v10, %v1239_v23  ;;  %v1175_v56 = vadd.f32 %v12130_v33, %v14874_v62 }
 0x236   : > { %v1166_v53 = vpop.f32.mrf.mxu1 }
 0x237   : > { %v1273_v18 = vpack.c.bf16 %v1238_v31, %v1237_v13  ;;  %v1167_v25 = vadd.f32 %v14874_v62, %v1166_v53  ;;  %v1243_v46 = vmax.f32 %v1175_v56, 0.0 }
 0x238   : > { %v12131_v26 = vpop.f32.mrf.mxu1 }
 0x239   : > { %v1178_v57 = vadd.f32 %v12131_v26, %v14874_v62  ;;  %12192 = vmatprep.mubr.msk.bf16.mxu0 %vm1298_vm4, %v1273_v18  ;;  %v1241_v51 = vmax.f32 %v1167_v25, 0.0 }
 0x23a   : > { %v1169_v44 = vpop.f32.mrf.mxu1  ;;  %12193 = vmatmul.mubr.msk.bf16.gmra.mxu0 %vm1298_vm4, %v1274_v49  ;;  %v13657_v49 = vld [vmem:[#allocation2 + $0x50] sm:$0xff]  }
 0x23b   : > { %v1170_v14 = vadd.f32 %v14874_v62, %v1169_v44  ;;  %v1244_v52 = vmax.f32 %v1178_v57, 0.0  ;;  %12268 = vmatprep.subr.bf16.mxu0 %v13657_v49 }
 0x23c   : > { %v12204_v27 = vpop.f32.mrf.mxu1  ;;  %12269 = vmatpush3.bf16.msra.mxu0 %v13657_v49 }
 0x23d   : > { %v1242_v16 = vmax.f32 %v1170_v14, 0.0  ;;  %v1276_v39 = vpack.c.bf16 %v1244_v52, %v1243_v46  ;;  %v1740_v15 = vadd.f32 %v12204_v27, %v15062_v30 }
 0x23e   : > { %v1731_v22 = vpop.f32.mrf.mxu1 }
 0x23f   : > { %v1275_v42 = vpack.c.bf16 %v1242_v16, %v1241_v51  ;;  %v1732_v54 = vadd.f32 %v15062_v30, %v1731_v22 }
 0x240   : > { %v12205_v40 = vpop.f32.mrf.mxu1 }
 0x241   : > { %12196 = vmatprep.mubr.msk.bf16.mxu0 %vm1298_vm4, %v1275_v42  ;;  %v1743_v28 = vadd.f32 %v12205_v40, %v15062_v30 }
 0x242   : > { %12197 = vmatmul.mubr.msk.bf16.gmra.mxu0 %vm1298_vm4, %v1276_v39  ;;  %v1734_v2 = vpop.f32.mrf.mxu1  ;;  %v13658_v39 = vld [vmem:[#allocation2 + $0x48] sm:$0xff]  }
 0x243   : > { %12270 = vmatprep.subr.bf16.mxu0 %v13658_v39  ;;  %v1735_v58 = vadd.f32 %v15062_v30, %v1734_v2 }
 0x244   : > { %v14998_v7 = vpop.f32.mrf.mxu1  ;;  %12271 = vmatpush3.bf16.msra.mxu0 %v13658_v39 }
 0x246   : > { %v1747_v62 = vpop.f32.mrf.mxu1 }
 0x248   : > { %v15000_v35 = vpop.f32.mrf.mxu1 }
 0x24a   : > { %v15002_v11 = vpop.f32.mrf.mxu1 }
 0x24c   : > { %v15004_v47 = vpop.f32.mrf.mxu1 }
 0x24e   : > { %v15006_v55 = vpop.f32.mrf.mxu1 }
 0x250   : > { %v15008_v21 = vpop.f32.mrf.mxu1 }
 0x252   : > { %v15010_v37 = vpop.f32.mrf.mxu1 }
 0x254   : > { %v15012_v60 = vpop.f32.mrf.mxu1 }
 0x256   : > { %v15014_v10 = vpop.f32.mrf.mxu1 }
 0x258   : > { %v15016_v33 = vpop.f32.mrf.mxu1 }
 0x25a   : > { %v15018_v13 = vpop.f32.mrf.mxu1 }
 0x25c   : > { %v15020_v31 = vpop.f32.mrf.mxu1 }
 0x25e   : > { %v15022_v23 = vpop.f32.mrf.mxu1 }
 0x260   : > { %v15024_v53 = vpop.f32.mrf.mxu1 }
 0x262   : > { %v15026_v18 = vpop.f32.mrf.mxu1 }
 0x264   : > { %v15028_v26 = vpop.f32.mrf.mxu1 }
 0x266   : > { %v15030_v25 = vpop.f32.mrf.mxu1 }
 0x267   : > { %v1812_v1 = vadd.f32 %v15062_v30, %v15030_v25 }
 0x268   : > { %v15032_v57 = vpop.f32.mrf.mxu1 }
 0x26a   : > { %v15034_v56 = vpop.f32.mrf.mxu1 }
 0x26c   : > { %v15036_v44 = vpop.f32.mrf.mxu1 }
 0x26e   : > { %v15038_v14 = vpop.f32.mrf.mxu1 }
 0x270   : > { %v15040_v52 = vpop.f32.mrf.mxu1 }
 0x272   : > { %v15042_v51 = vpop.f32.mrf.mxu1 }
 0x274   : > { %v15044_v16 = vpop.f32.mrf.mxu1 }
 0x276   : > { %v15046_v46 = vpop.f32.mrf.mxu1 }
 0x278   : > { %v15048_v42 = vpop.f32.mrf.mxu1 }
 0x27a   : > { %v15050_v19 = vpop.f32.mrf.mxu1 }
 0x27c   : > { %v15052_v49 = vpop.f32.mrf.mxu1 }
 0x27e   : > { %v15065_v48 = vpop.f32.mrf.mxu1 }
 0x280   : > { %v15073_v41 = vpop.f32.mrf.mxu1 }
 0x282   : > { %v15080_v27 = vpop.f32.mrf.mxu1 }
 0x28a   : > { %v12138_v61 = vpop.f32.mrf.mxu0 }
 0x28b   : > { %v1438_v39 = vadd.f32 %v12138_v61, %v15057_v4 }
 0x28c   : > { %v1429_v12 = vpop.f32.mrf.mxu0 }
 0x28d   : > { %v1430_v24 = vadd.f32 %v15057_v4, %v1429_v12  ;;  %v1988_v22 = vadd.f32 %v1740_v15, %v1438_v39  ;;  %v13659_v12 = vld [vmem:[#allocation2 + $0x40] sm:$0xff]  }
 0x28e   : > { %v12139_v36 = vpop.f32.mrf.mxu0  ;;  %12272 = vmatprep.subr.bf16.mxu0 %v13659_v12 }
 0x28f   : > { %v1986_v50 = vadd.f32 %v1732_v54, %v1430_v24  ;;  %v1441_v3 = vadd.f32 %v12139_v36, %v15057_v4  ;;  %v1748_v36 = vadd.f32 %v15062_v30, %v1747_v62  ;;  %v15082_v40 = vmax.f32 %v1988_v22, 0.0  ;;  %12273 = vmatpush3.bf16.msra.mxu0 %v13659_v12  ;;  %v15100_v12 = vpop.f32.mrf.mxu1 }
 0x290   : > { %v1432_v43 = vpop.f32.mrf.mxu0 }
 0x291   : > { %v1433_v45 = vadd.f32 %v15057_v4, %v1432_v43  ;;  %v15076_v9 = vmax.f32 %v1986_v50, 0.0  ;;  %v1989_v17 = vadd.f32 %v1743_v28, %v1441_v3  ;;  %v1756_v50 = vadd.f32 %v14998_v7, %v15062_v30  ;;  %v15113_v6 = vpop.f32.mrf.mxu1 }
 0x292   : > { %v12142_v61 = vpop.f32.mrf.mxu0  ;;  %v1751_v7 = vadd.f32 %v15062_v30, %v15002_v11 }
 0x293   : > { %v1987_v59 = vadd.f32 %v1735_v58, %v1433_v45  ;;  %v1454_v54 = vadd.f32 %v12142_v61, %v15057_v4  ;;  %v2114_v45 = vsel %vm1298_vm4, %v15076_v9, -inf  ;;  %v15091_v28 = vmax.f32 %v1989_v17, 0.0  ;;  %v15132_v63 = vpop.f32.mrf.mxu1 }
 0x294   : > { %v1445_v24 = vpop.f32.mrf.mxu0  ;;  %v2117_v17 = vsel %vm1298_vm4, %v15082_v40, -inf }
 0x295   : > { %v15084_v2 = vmax.f32 %v1987_v59, 0.0  ;;  %v1446_v43 = vadd.f32 %v15057_v4, %v1445_v24  ;;  %v1759_v59 = vadd.f32 %v15000_v35, %v15062_v30  ;;  %v1992_v22 = vadd.f32 %v1756_v50, %v1454_v54  ;;  %v15144_v34 = vpop.f32.mrf.mxu1 }
 0x296   : > { %v12143_v58 = vpop.f32.mrf.mxu0  ;;  %v2119_v35 = vsel %vm1298_vm4, %v15091_v28, -inf  ;;  %v1764_v50 = vadd.f32 %v15062_v30, %v15006_v55 }
 0x297   : > { %v2115_v3 = vsel %vm1298_vm4, %v15084_v2, -inf  ;;  %v1990_v15 = vadd.f32 %v1748_v36, %v1446_v43  ;;  %v1457_v62 = vadd.f32 %v12143_v58, %v15057_v4  ;;  %v15111_v11 = vmax.f32 %v1992_v22, 0.0 }
 0x298   : > { %v2116_v39 = vmax.f32 %v2114_v45, %v2115_v3  ;;  %v1448_v61 = vpop.f32.mrf.mxu0 }
 0x299   : > { %v15104_v24 = vmax.f32 %v1990_v15, 0.0  ;;  %v1449_v36 = vadd.f32 %v15057_v4, %v1448_v61  ;;  %v1993_v45 = vadd.f32 %v1759_v59, %v1457_v62  ;;  %v1772_v62 = vadd.f32 %v15004_v47, %v15062_v30 }
 0x29a   : > { %v2118_v43 = vmax.f32 %v2116_v39, %v2117_v17  ;;  %v12146_v58 = vpop.f32.mrf.mxu0  ;;  %v2125_v47 = vsel %vm1298_vm4, %v15111_v11, -inf }
 0x29b   : > { %v1991_v54 = vadd.f32 %v1751_v7, %v1449_v36  ;;  %v2121_v15 = vsel %vm1298_vm4, %v15104_v24, -inf  ;;  %v1470_v39 = vadd.f32 %v12146_v58, %v15057_v4  ;;  %v15123_v22 = vmax.f32 %v1993_v45, 0.0 }
 0x29c   : > { %v2120_v3 = vmax.f32 %v2118_v43, %v2119_v35  ;;  %v1461_v20 = vpop.f32.mrf.mxu0  ;;  %v1775_v35 = vadd.f32 %v15008_v21, %v15062_v30  ;;  %v1767_v58 = vadd.f32 %v15062_v30, %v15010_v37  ;;  %v1780_v37 = vadd.f32 %v15062_v30, %v15014_v10 }
 0x29d   : > { %v15117_v61 = vmax.f32 %v1991_v54, 0.0  ;;  %v1462_v17 = vadd.f32 %v15057_v4, %v1461_v20  ;;  %v1996_v45 = vadd.f32 %v1772_v62, %v1470_v39  ;;  %v2127_v21 = vsel %vm1298_vm4, %v15123_v22, -inf }
 0x29e   : > { %v2122_v59 = vmax.f32 %v2120_v3, %v2121_v15  ;;  %v12147_v55 = vpop.f32.mrf.mxu0 }
 0x29f   : > { %v2123_v7 = vsel %vm1298_vm4, %v15117_v61, -inf  ;;  %v1994_v36 = vadd.f32 %v1764_v50, %v1462_v17  ;;  %v1473_v43 = vadd.f32 %v12147_v55, %v15057_v4  ;;  %v15146_v39 = vmax.f32 %v1996_v45, 0.0 }
 0x2a0   : > { %v2124_v20 = vmax.f32 %v2122_v59, %v2123_v7  ;;  %v1464_v54 = vpop.f32.mrf.mxu0 }
 0x2a1   : > { %v15136_v3 = vmax.f32 %v1994_v36, 0.0  ;;  %v1465_v50 = vadd.f32 %v15057_v4, %v1464_v54  ;;  %v1997_v55 = vadd.f32 %v1775_v35, %v1473_v43  ;;  %v1788_v43 = vadd.f32 %v15012_v60, %v15062_v30  ;;  %v15164_v60 = vpop.f32.mrf.mxu1 }
 0x2a2   : > { %v2126_v15 = vmax.f32 %v2124_v20, %v2125_v47  ;;  %v12150_v17 = vpop.f32.mrf.mxu0 }
 0x2a3   : > { %v1995_v29 = vadd.f32 %v1767_v58, %v1465_v50  ;;  %v1486_v7 = vadd.f32 %v12150_v17, %v15057_v4  ;;  %v2129_v62 = vsel %vm1298_vm4, %v15136_v3, -inf  ;;  %v15155_v58 = vmax.f32 %v1997_v55, 0.0 }
 0x2a4   : > { %v2128_v59 = vmax.f32 %v2126_v15, %v2127_v21  ;;  %v1477_v38 = vpop.f32.mrf.mxu0  ;;  %v1791_v50 = vadd.f32 %v15016_v33, %v15062_v30  ;;  %v2133_v21 = vsel %vm1298_vm4, %v15146_v39, -inf }
 0x2a5   : > { %v15150_v36 = vmax.f32 %v1995_v29, 0.0  ;;  %v1478_v20 = vadd.f32 %v15057_v4, %v1477_v38  ;;  %v2000_v15 = vadd.f32 %v1788_v43, %v1486_v7  ;;  %v1783_v38 = vadd.f32 %v15062_v30, %v15018_v13 }
 0x2a6   : > { %v2130_v35 = vmax.f32 %v2128_v59, %v2129_v62  ;;  %v12151_v10 = vpop.f32.mrf.mxu0  ;;  %v2135_v33 = vsel %vm1298_vm4, %v15155_v58, -inf  ;;  %v1796_v43 = vadd.f32 %v15062_v30, %v15022_v23 }
 0x2a7   : > { %v2131_v54 = vsel %vm1298_vm4, %v15150_v36, -inf  ;;  %v1998_v47 = vadd.f32 %v1780_v37, %v1478_v20  ;;  %v1489_v45 = vadd.f32 %v12151_v10, %v15057_v4  ;;  %v15175_v13 = vmax.f32 %v2000_v15, 0.0 }
 0x2a8   : > { %v2132_v29 = vmax.f32 %v2130_v35, %v2131_v54  ;;  %v1480_v17 = vpop.f32.mrf.mxu0  ;;  %v15177_v54 = vpop.f32.mrf.mxu1 }
 0x2a9   : > { %v15168_v55 = vmax.f32 %v1998_v47, 0.0  ;;  %v1481_v37 = vadd.f32 %v15057_v4, %v1480_v17  ;;  %v2001_v20 = vadd.f32 %v1791_v50, %v1489_v45  ;;  %v1804_v45 = vadd.f32 %v15020_v31, %v15062_v30 }
 0x2aa   : > { %v2134_v59 = vmax.f32 %v2132_v29, %v2133_v21  ;;  %v12154_v62 = vpop.f32.mrf.mxu0  ;;  %v15196_v32 = vpop.f32.mrf.mxu1  ;;  %v2141_v31 = vsel %vm1298_vm4, %v15175_v13, -inf }
 0x2ab   : > { %v1999_v7 = vadd.f32 %v1783_v38, %v1481_v37  ;;  %v2137_v47 = vsel %vm1298_vm4, %v15168_v55, -inf  ;;  %v1502_v29 = vadd.f32 %v12154_v62, %v15057_v4  ;;  %v15187_v15 = vmax.f32 %v2001_v20, 0.0 }
 0x2ac   : > { %v2136_v35 = vmax.f32 %v2134_v59, %v2135_v33  ;;  %v1493_v10 = vpop.f32.mrf.mxu0  ;;  %v1807_v33 = vadd.f32 %v15024_v53, %v15062_v30  ;;  %v15208_v0 = vpop.f32.mrf.mxu1 }
 0x2ad   : > { %v15181_v17 = vmax.f32 %v1999_v7, 0.0  ;;  %v1494_v21 = vadd.f32 %v15057_v4, %v1493_v10  ;;  %v1799_v10 = vadd.f32 %v15062_v30, %v15026_v18  ;;  %v2004_v20 = vadd.f32 %v1804_v45, %v1502_v29 }
 0x2ae   : > { %v2138_v50 = vmax.f32 %v2136_v35, %v2137_v47  ;;  %v12155_v23 = vpop.f32.mrf.mxu0  ;;  %v2143_v53 = vsel %vm1298_vm4, %v15187_v15, -inf }
 0x2af   : > { %19692 = vst [vmem:[#allocation105_spill] sm:$0xff] %v15181_v17  ;;  %v2139_v38 = vsel %vm1298_vm4, %v15181_v17, -inf  ;;  %v2002_v37 = vadd.f32 %v1796_v43, %v1494_v21  ;;  %v1505_v59 = vadd.f32 %v12155_v23, %v15057_v4  ;;  %v15210_v29 = vmax.f32 %v2004_v20, 0.0 }
 0x2b0   : > { %v2140_v7 = vmax.f32 %v2138_v50, %v2139_v38  ;;  %v1496_v62 = vpop.f32.mrf.mxu0 }
 0x2b1   : > { %v1497_v35 = vadd.f32 %v15057_v4, %v1496_v62  ;;  %v15201_v47 = vmax.f32 %v2002_v37, 0.0  ;;  %v2005_v50 = vadd.f32 %v1807_v33, %v1505_v59  ;;  %19694 = vst [vmem:[#allocation107_spill] sm:$0xff] %v15210_v29 }
 0x2b2   : > { %v12158_v43 = vpop.f32.mrf.mxu0  ;;  %v2142_v21 = vmax.f32 %v2140_v7, %v2141_v31  ;;  %v1820_v7 = vadd.f32 %v15028_v26, %v15062_v30 }
 0x2b3   : > { %19693 = vst [vmem:[#allocation106_spill] sm:$0xff] %v15201_v47  ;;  %v2003_v23 = vadd.f32 %v1799_v10, %v1497_v35  ;;  %v1518_v38 = vadd.f32 %v12158_v43, %v15057_v4  ;;  %v2151_v59 = vsel %vm1298_vm4, %v15201_v47, -inf  ;;  %v15219_v10 = vmax.f32 %v2005_v50, 0.0 }
 0x2b4   : > { %v1509_v18 = vpop.f32.mrf.mxu0  ;;  %v2144_v5 = vmax.f32 %v2142_v21, %v2143_v53  ;;  %v1823_v35 = vadd.f32 %v15032_v57, %v15062_v30  ;;  %v2154_v50 = vsel %vm1298_vm4, %v15210_v29, -inf }
 0x2b5   : > { %v15212_v45 = vmax.f32 %v2003_v23, 0.0  ;;  %v1510_v37 = vadd.f32 %v15057_v4, %v1509_v18  ;;  %19696 = vst [vmem:[#allocation109_spill] sm:$0xff] %v15219_v10  ;;  %v2008_v21 = vadd.f32 %v1820_v7, %v1518_v38  ;;  %v1815_v23 = vadd.f32 %v15062_v30, %v15034_v56  ;;  %v15228_v18 = vpop.f32.mrf.mxu1 }
 0x2b6   : > { %v12159_v33 = vpop.f32.mrf.mxu0  ;;  %v2145_v62 = vrot.slane %v2144_v5, 4  ;;  %v2156_v57 = vsel %vm1298_vm4, %v15219_v10, -inf  ;;  %v1828_v56 = vadd.f32 %v15062_v30, %v15038_v14 }
 0x2b7   : > { %19695 = vst [vmem:[#allocation108_spill] sm:$0xff] %v15212_v45  ;;  %v2152_v25 = vsel %vm1298_vm4, %v15212_v45, -inf  ;;  %v2006_v31 = vadd.f32 %v1812_v1, %v1510_v37  ;;  %v1521_v20 = vadd.f32 %v12159_v33, %v15057_v4  ;;  %v15239_v7 = vmax.f32 %v2008_v21, 0.0 }
 0x2b8   : > { %v2153_v43 = vmax.f32 %v2151_v59, %v2152_v25  ;;  %v1512_v53 = vpop.f32.mrf.mxu0  ;;  %v2146_v26 = vmax.f32 %v2144_v5, %v2145_v62 }
 0x2b9   : > { %v15232_v8 = vmax.f32 %v2006_v31, 0.0  ;;  %v1513_v1 = vadd.f32 %v15057_v4, %v1512_v53  ;;  %v2009_v38 = vadd.f32 %v1823_v35, %v1521_v20  ;;  %19698 = vst [vmem:[#allocation111_spill] sm:$0xff] %v15239_v7  ;;  %v15241_v31 = vpop.f32.mrf.mxu1  ;;  %v1836_v35 = vadd.f32 %v15036_v44, %v15062_v30 }
 0x2ba   : > { %v2155_v37 = vmax.f32 %v2153_v43, %v2154_v50  ;;  %v12162_v33 = vpop.f32.mrf.mxu0  ;;  %v2147_v45 = vrot.slane %v2146_v26, 2 }
 0x2bb   : > { %19697 = vst [vmem:[#allocation110_spill] sm:$0xff] %v15232_v8  ;;  %v2007_v5 = vadd.f32 %v1815_v23, %v1513_v1  ;;  %v2158_v43 = vsel %vm1298_vm4, %v15232_v8, -inf  ;;  %v1534_v50 = vadd.f32 %v12162_v33, %v15057_v4  ;;  %v15251_v1 = vmax.f32 %v2009_v38, 0.0 }
 0x2bc   : > { %v2157_v59 = vmax.f32 %v2155_v37, %v2156_v57  ;;  %v1525_v62 = vpop.f32.mrf.mxu0  ;;  %v2148_v25 = vmax.f32 %v2146_v26, %v2147_v45  ;;  %v1839_v57 = vadd.f32 %v15040_v52, %v15062_v30  ;;  %v1831_v33 = vadd.f32 %v15062_v30, %v15042_v51 }
 0x2bd   : > { %v15245_v53 = vmax.f32 %v2007_v5, 0.0  ;;  %v1526_v20 = vadd.f32 %v15057_v4, %v1525_v62  ;;  %19700 = vst [vmem:[#allocation113_spill] sm:$0xff] %v15251_v1  ;;  %v2162_v38 = vsel %vm1298_vm4, %v15239_v7, -inf  ;;  %v2164_v52 = vsel %vm1298_vm4, %v15251_v1, -inf }
 0x2be   : > { %v2159_v14 = vmax.f32 %v2157_v59, %v2158_v43  ;;  %v12163_v21 = vpop.f32.mrf.mxu0  ;;  %v2149_v23 = vrot.slane %v2148_v25, 1  ;;  %v15260_v59 = vpop.f32.mrf.mxu1  ;;  %v2012_v43 = vadd.f32 %v1836_v35, %v1534_v50 }
 0x2bf   : > { %19699 = vst [vmem:[#allocation112_spill] sm:$0xff] %v15245_v53  ;;  %v2160_v45 = vsel %vm1298_vm4, %v15245_v53, -inf  ;;  %v2010_v26 = vadd.f32 %v1828_v56, %v1526_v20  ;;  %v1537_v37 = vadd.f32 %v12163_v21, %v15057_v4 }
 0x2c0   : > { %v2161_v5 = vmax.f32 %v2159_v14, %v2160_v45  ;;  %v1528_v62 = vpop.f32.mrf.mxu0  ;;  %v2150_v44 = vmax.f32 %v2148_v25, %v2149_v23  ;;  %v1844_v14 = vadd.f32 %v15062_v30, %v15046_v46  ;;  %v15273_v45 = vpop.f32.mrf.mxu1 }
 0x2c1   : > { %v15264_v8 = vmax.f32 %v2010_v26, 0.0  ;;  %v1529_v56 = vadd.f32 %v15057_v4, %v1528_v62  ;;  %v2013_v51 = vadd.f32 %v1839_v57, %v1537_v37  ;;  %v15275_v26 = vmax.f32 %v2012_v43, 0.0 }
 0x2c2   : > { %v2163_v20 = vmax.f32 %v2161_v5, %v2162_v38  ;;  %v12166_v21 = vpop.f32.mrf.mxu0  ;;  %2266 = vrot.lane.b32.xlu0 %v2150_v44, %s14020_s27  ;;  %v1852_v37 = vadd.f32 %v15044_v16, %v15062_v30  ;;  %v15293_v16 = vpop.f32.mrf.mxu1 }
 0x2c3   : > { %19701 = vst [vmem:[#allocation114_spill] sm:$0xff] %v15264_v8  ;;  %v2011_v25 = vadd.f32 %v1831_v33, %v1529_v56  ;;  %v1550_v50 = vadd.f32 %v12166_v21, %v15057_v4  ;;  %19702 = vst [vmem:[#allocation115_spill] sm:$0xff] %v15275_v26  ;;  %v2166_v5 = vsel %vm1298_vm4, %v15264_v8, -inf  ;;  %v15284_v33 = vmax.f32 %v2013_v51, 0.0 }
 0x2c4   : > { %v2165_v23 = vmax.f32 %v2163_v20, %v2164_v52  ;;  %v1541_v35 = vpop.f32.mrf.mxu0  ;;  %v1855_v20 = vadd.f32 %v15048_v42, %v15062_v30  ;;  %v2170_v51 = vsel %vm1298_vm4, %v15275_v26, -inf }
 0x2c5   : > { %v15279_v62 = vmax.f32 %v2011_v25, 0.0  ;;  %v1542_v44 = vadd.f32 %v15057_v4, %v1541_v35  ;;  %19704 = vst [vmem:[#allocation117_spill] sm:$0xff] %v15284_v33  ;;  %v2016_v52 = vadd.f32 %v1852_v37, %v1550_v50  ;;  %v1847_v35 = vadd.f32 %v15062_v30, %v15050_v19 }
 0x2c6   : > { %v2167_v57 = vmax.f32 %v2165_v23, %v2166_v5  ;;  %v12167_v46 = vpop.f32.mrf.mxu0  ;;  %v2172_v42 = vsel %vm1298_vm4, %v15284_v33, -inf  ;;  %v1860_v37 = vadd.f32 %v15062_v30, %v15065_v48  ;;  %v1876_v33 = vadd.f32 %v15062_v30, %v15113_v6 }
 0x2c7   : > { %19703 = vst [vmem:[#allocation116_spill] sm:$0xff] %v15279_v62  ;;  %v2168_v38 = vsel %vm1298_vm4, %v15279_v62, -inf  ;;  %v2014_v56 = vadd.f32 %v1844_v14, %v1542_v44  ;;  %v1553_v43 = vadd.f32 %v12167_v46, %v15057_v4  ;;  %v15304_v19 = vmax.f32 %v2016_v52, 0.0  ;;  %v15306_v62 = vpop.f32.mrf.mxu1 }
 0x2c8   : > { %v2169_v21 = vmax.f32 %v2167_v57, %v2168_v38  ;;  %v1544_v25 = vpop.f32.mrf.mxu0 }
 0x2c9   : > { %v15297_v23 = vmax.f32 %v2014_v56, 0.0  ;;  %v1545_v14 = vadd.f32 %v15057_v4, %v1544_v25  ;;  %v2017_v57 = vadd.f32 %v1855_v20, %v1553_v43  ;;  %19706 = vst [vmem:[#allocation119_spill] sm:$0xff] %v15304_v19  ;;  %v1868_v43 = vadd.f32 %v15052_v49, %v15062_v30 }
 0x2ca   : > { %v2171_v5 = vmax.f32 %v2169_v21, %v2170_v51  ;;  %v12170_v44 = vpop.f32.mrf.mxu0  ;;  %v2178_v49 = vsel %vm1298_vm4, %v15304_v19, -inf }
 0x2cb   : > { %19705 = vst [vmem:[#allocation118_spill] sm:$0xff] %v15297_v23  ;;  %v2015_v50 = vadd.f32 %v1847_v35, %v1545_v14  ;;  %v2174_v56 = vsel %vm1298_vm4, %v15297_v23, -inf  ;;  %v1566_v21 = vadd.f32 %v12170_v44, %v15057_v4  ;;  %v15316_v52 = vmax.f32 %v2017_v57, 0.0  ;;  %v15325_v23 = vpop.f32.mrf.mxu1 }
 0x2cc   : > { %v2173_v46 = vmax.f32 %v2171_v5, %v2172_v42  ;;  %v1557_v38 = vpop.f32.mrf.mxu0  ;;  %v1871_v42 = vadd.f32 %v15073_v41, %v15062_v30 }
 0x2cd   : > { %v15310_v25 = vmax.f32 %v2015_v50, 0.0  ;;  %v1558_v51 = vadd.f32 %v15057_v4, %v1557_v38  ;;  %19708 = vst [vmem:[#allocation121_spill] sm:$0xff] %v15316_v52  ;;  %v1863_v38 = vadd.f32 %v15062_v30, %v15080_v27  ;;  %v2020_v57 = vadd.f32 %v1868_v43, %v1566_v21  ;;  %v15337_v19 = vpop.f32.mrf.mxu1 }
 0x2ce   : > { %v2175_v20 = vmax.f32 %v2173_v46, %v2174_v56  ;;  %v12171_v48 = vpop.f32.mrf.mxu0  ;;  %v2180_v41 = vsel %vm1298_vm4, %v15316_v52, -inf }
 0x2cf   : > { %19707 = vst [vmem:[#allocation120_spill] sm:$0xff] %v15310_v25  ;;  %v2176_v35 = vsel %vm1298_vm4, %v15310_v25, -inf  ;;  %v2018_v14 = vadd.f32 %v1860_v37, %v1558_v51  ;;  %v1569_v5 = vadd.f32 %v12171_v48, %v15057_v4  ;;  %v15339_v21 = vmax.f32 %v2020_v57, 0.0 }
 0x2d0   : > { %v2177_v50 = vmax.f32 %v2175_v20, %v2176_v35  ;;  %v1560_v44 = vpop.f32.mrf.mxu0 }
 0x2d1   : > { %v1561_v46 = vadd.f32 %v15057_v4, %v1560_v44  ;;  %v15330_v37 = vmax.f32 %v2018_v14, 0.0  ;;  %v2021_v20 = vadd.f32 %v1871_v42, %v1569_v5  ;;  %19710 = vst [vmem:[#allocation123_spill] sm:$0xff] %v15339_v21 }
 0x2d2   : > { %v2179_v56 = vmax.f32 %v2177_v50, %v2178_v49  ;;  %v12174_v51 = vpop.f32.mrf.mxu0  ;;  %v1884_v50 = vadd.f32 %v15100_v12, %v15062_v30 }
 0x2d3   : > { %19709 = vst [vmem:[#allocation122_spill] sm:$0xff] %v15330_v37  ;;  %v2019_v48 = vadd.f32 %v1863_v38, %v1561_v46  ;;  %v1582_v35 = vadd.f32 %v12174_v51, %v15057_v4  ;;  %v2188_v5 = vsel %vm1298_vm4, %v15330_v37, -inf  ;;  %v15348_v38 = vmax.f32 %v2021_v20, 0.0 }
 0x2d4   : > { %v1573_v27 = vpop.f32.mrf.mxu0  ;;  %v2181_v25 = vmax.f32 %v2179_v56, %v2180_v41  ;;  %v1887_v46 = vadd.f32 %v15132_v63, %v15062_v30  ;;  %v2191_v20 = vsel %vm1298_vm4, %v15339_v21, -inf }
 0x2d5   : > { %v15341_v43 = vmax.f32 %v2019_v48, 0.0  ;;  %v1574_v14 = vadd.f32 %v15057_v4, %v1573_v27  ;;  %19712 = vst [vmem:[#allocation125_spill] sm:$0xff] %v15348_v38  ;;  %v2024_v51 = vadd.f32 %v1884_v50, %v1582_v35  ;;  %v1879_v48 = vadd.f32 %v15062_v30, %v15144_v34  ;;  %v15357_v27 = vpop.f32.mrf.mxu1 }
 0x2d6   : > { %v12175_v42 = vpop.f32.mrf.mxu0  ;;  %v2182_v44 = vrot.slane %v2181_v25, 4  ;;  %v2193_v63 = vsel %vm1298_vm4, %v15348_v38, -inf  ;;  %v1892_v34 = vadd.f32 %v15062_v30, %v15177_v54 }
 0x2d7   : > { %19711 = vst [vmem:[#allocation124_spill] sm:$0xff] %v15341_v43  ;;  %v2189_v6 = vsel %vm1298_vm4, %v15341_v43, -inf  ;;  %v2022_v49 = vadd.f32 %v1876_v33, %v1574_v14  ;;  %v1585_v57 = vadd.f32 %v12175_v42, %v15057_v4  ;;  %v15368_v50 = vmax.f32 %v2024_v51, 0.0 }
 0x2d8   : > { %v2190_v56 = vmax.f32 %v2188_v5, %v2189_v6  ;;  %v1576_v41 = vpop.f32.mrf.mxu0  ;;  %v2183_v12 = vmax.f32 %v2181_v25, %v2182_v44 }
 0x2d9   : > { %v15361_v37 = vmax.f32 %v2022_v49, 0.0  ;;  %v1577_v33 = vadd.f32 %v15057_v4, %v1576_v41  ;;  %v2025_v35 = vadd.f32 %v1887_v46, %v1585_v57  ;;  %19714 = vst [vmem:[#allocation127_spill] sm:$0xff] %v15368_v50  ;;  %v15370_v49 = vpop.f32.mrf.mxu1  ;;  %v1900_v46 = vadd.f32 %v15164_v60, %v15062_v30 }
 0x2da   : > { %v2192_v14 = vmax.f32 %v2190_v56, %v2191_v20  ;;  %v12178_v42 = vpop.f32.mrf.mxu0  ;;  %v2184_v43 = vrot.slane %v2183_v12, 2 }
 0x2db   : > { %19713 = vst [vmem:[#allocation126_spill] sm:$0xff] %v15361_v37  ;;  %v2023_v25 = vadd.f32 %v1879_v48, %v1577_v33  ;;  %v2195_v56 = vsel %vm1298_vm4, %v15361_v37, -inf  ;;  %v1598_v20 = vadd.f32 %v12178_v42, %v15057_v4  ;;  %v15380_v33 = vmax.f32 %v2025_v35, 0.0 }
 0x2dc   : > { %v2194_v5 = vmax.f32 %v2192_v14, %v2193_v63  ;;  %v1589_v44 = vpop.f32.mrf.mxu0  ;;  %v2185_v6 = vmax.f32 %v2183_v12, %v2184_v43  ;;  %v1903_v63 = vadd.f32 %v15196_v32, %v15062_v30  ;;  %v1895_v42 = vadd.f32 %v15062_v30, %v15208_v0 }
 0x2dd   : > { %v15374_v41 = vmax.f32 %v2023_v25, 0.0  ;;  %v1590_v57 = vadd.f32 %v15057_v4, %v1589_v44  ;;  %19716 = vst [vmem:[#allocation129_spill] sm:$0xff] %v15380_v33  ;;  %v2199_v35 = vsel %vm1298_vm4, %v15368_v50, -inf  ;;  %v2201_v0 = vsel %vm1298_vm4, %v15380_v33, -inf }
 0x2de   : > { %v2196_v54 = vmax.f32 %v2194_v5, %v2195_v56  ;;  %v12179_v51 = vpop.f32.mrf.mxu0  ;;  %v2186_v48 = vrot.slane %v2185_v6, 1  ;;  %v15389_v5 = vpop.f32.mrf.mxu1  ;;  %v2028_v56 = vadd.f32 %v1900_v46, %v1598_v20  ;;  %v13332_v46 = vpack.i.bf16 %v15084_v2, %v15076_v9 }
 0x2df   : > { %19715 = vst [vmem:[#allocation128_spill] sm:$0xff] %v15374_v41  ;;  %v2197_v43 = vsel %vm1298_vm4, %v15374_v41, -inf  ;;  %v2026_v12 = vadd.f32 %v1892_v34, %v1590_v57  ;;  %v1601_v14 = vadd.f32 %v12179_v51, %v15057_v4 }
 0x2e0   : > { %v2198_v25 = vmax.f32 %v2196_v54, %v2197_v43  ;;  %v1592_v44 = vpop.f32.mrf.mxu0  ;;  %v2187_v60 = vmax.f32 %v2185_v6, %v2186_v48  ;;  %v1908_v6 = vadd.f32 %v15062_v30, %v15241_v31  ;;  %v1916_v31 = vadd.f32 %v15228_v18, %v15062_v30 }
 0x2e1   : > { %v15393_v37 = vmax.f32 %v2026_v12, 0.0  ;;  %v1593_v34 = vadd.f32 %v15057_v4, %v1592_v44  ;;  %v2029_v32 = vadd.f32 %v1903_v63, %v1601_v14  ;;  %v15404_v12 = vpop.f32.mrf.mxu1  ;;  %v1911_v18 = vadd.f32 %v15062_v30, %v15273_v45 }
 0x2e2   : > { %v2200_v57 = vmax.f32 %v2198_v25, %v2199_v35  ;;  %v12182_v51 = vpop.f32.mrf.mxu0  ;;  %2268 = vrot.lane.b32.xlu0 %v2187_v60, %s14020_s27  ;;  %v15406_v25 = vmax.f32 %v2028_v56, 0.0 }
 0x2e3   : > { %19717 = vst [vmem:[#allocation130_spill] sm:$0xff] %v15393_v37  ;;  %v2027_v54 = vadd.f32 %v1895_v42, %v1593_v34  ;;  %v1614_v43 = vadd.f32 %v12182_v51, %v15057_v4  ;;  %v2203_v44 = vsel %vm1298_vm4, %v15393_v37, -inf  ;;  %v15416_v35 = vmax.f32 %v2029_v32, 0.0 }
 0x2e4   : > { %v2202_v48 = vmax.f32 %v2200_v57, %v2201_v0  ;;  %v1605_v20 = vpop.f32.mrf.mxu0  ;;  %19718 = vst [vmem:[#allocation131_spill] sm:$0xff] %v15406_v25  ;;  %v1919_v51 = vadd.f32 %v15260_v59, %v15062_v30  ;;  %v2207_v32 = vsel %vm1298_vm4, %v15406_v25, -inf }
 0x2e5   : > { %v15410_v60 = vmax.f32 %v2027_v54, 0.0  ;;  %v1606_v14 = vadd.f32 %v15057_v4, %v1605_v20  ;;  %19720 = vst [vmem:[#allocation133_spill] sm:$0xff] %v15416_v35  ;;  %v2032_v54 = vadd.f32 %v1916_v31, %v1614_v43  ;;  %v2209_v59 = vsel %vm1298_vm4, %v15416_v35, -inf }
 0x2e6   : > { %v2204_v63 = vmax.f32 %v2202_v48, %v2203_v44  ;;  %v12183_v42 = vpop.f32.mrf.mxu0  ;;  %13333 = vrot.lane.b32.xlu0 %v13332_v46, %s14021_s28  ;;  %v15425_v48 = vpop.f32.mrf.mxu1  ;;  %v1924_v31 = vadd.f32 %v15062_v30, %v15306_v62 }
 0x2e7   : > { %19719 = vst [vmem:[#allocation132_spill] sm:$0xff] %v15410_v60  ;;  %v2205_v56 = vsel %vm1298_vm4, %v15410_v60, -inf  ;;  %v2030_v34 = vadd.f32 %v1908_v6, %v1606_v14  ;;  %v1617_v57 = vadd.f32 %v12183_v42, %v15057_v4  ;;  %v15436_v45 = vmax.f32 %v2032_v54, 0.0 }
 0x2e8   : > { %v2206_v0 = vmax.f32 %v2204_v63, %v2205_v56  ;;  %v1608_v20 = vpop.f32.mrf.mxu0  ;;  %v1955_v60 = vpop.f32.mrf.mxu1 }
 0x2e9   : > { %v15429_v46 = vmax.f32 %v2030_v34, 0.0  ;;  %v1609_v6 = vadd.f32 %v15057_v4, %v1608_v20  ;;  %v2033_v63 = vadd.f32 %v1919_v51, %v1617_v57  ;;  %19722 = vst [vmem:[#allocation135_spill] sm:$0xff] %v15436_v45  ;;  %v1932_v57 = vadd.f32 %v15293_v16, %v15062_v30 }
 0x2ea   : > { %v2208_v44 = vmax.f32 %v2206_v0, %v2207_v32  ;;  %v12186_v14 = vpop.f32.mrf.mxu0  ;;  %v2215_v16 = vsel %vm1298_vm4, %v15436_v45, -inf }
 0x2eb   : > { %19721 = vst [vmem:[#allocation134_spill] sm:$0xff] %v15429_v46  ;;  %v2031_v43 = vadd.f32 %v1911_v18, %v1609_v6  ;;  %v2211_v34 = vsel %vm1298_vm4, %v15429_v46, -inf  ;;  %v1630_v0 = vadd.f32 %v12186_v14, %v15057_v4  ;;  %v15446_v62 = vmax.f32 %v2033_v63, 0.0 }
 0x2ec   : > { %v2210_v42 = vmax.f32 %v2208_v44, %v2209_v59  ;;  %v1621_v56 = vpop.f32.mrf.mxu0  ;;  %v1935_v44 = vadd.f32 %v15325_v23, %v15062_v30 }
 0x2ed   : > { %v15440_v25 = vmax.f32 %v2031_v43, 0.0  ;;  %v1622_v20 = vadd.f32 %v15057_v4, %v1621_v56  ;;  %19724 = vst [vmem:[#allocation137_spill] sm:$0xff] %v15446_v62  ;;  %v1927_v43 = vadd.f32 %v15062_v30, %v15337_v19  ;;  %v12261_v56 = vpop.f32.mrf.mxu1  ;;  %v2036_v63 = vadd.f32 %v1932_v57, %v1630_v0 }
 0x2ee   : > { %v2212_v51 = vmax.f32 %v2210_v42, %v2211_v34  ;;  %v12187_v18 = vpop.f32.mrf.mxu0 }
 0x2ef   : > { %19723 = vst [vmem:[#allocation136_spill] sm:$0xff] %v15440_v25  ;;  %v2213_v54 = vsel %vm1298_vm4, %v15440_v25, -inf  ;;  %v2034_v32 = vadd.f32 %v1924_v31, %v1622_v20  ;;  %v1633_v6 = vadd.f32 %v12187_v18, %v15057_v4  ;;  %v2217_v18 = vsel %vm1298_vm4, %v15446_v62, -inf  ;;  %v1958_v46 = vpop.f32.mrf.mxu1 }
 0x2f0   : > { %v2214_v59 = vmax.f32 %v2212_v51, %v2213_v54  ;;  %v1624_v14 = vpop.f32.mrf.mxu0  ;;  %v1940_v54 = vadd.f32 %v15062_v30, %v15370_v49  ;;  %v15464_v35 = vmax.f32 %v2036_v63, 0.0 }
 0x2f1   : > { %v1625_v42 = vadd.f32 %v15057_v4, %v1624_v14  ;;  %v15458_v34 = vmax.f32 %v2034_v32, 0.0  ;;  %v2037_v23 = vadd.f32 %v1935_v44, %v1633_v6 }
 0x2f2   : > { %v12190_v31 = vpop.f32.mrf.mxu0  ;;  %v2216_v20 = vmax.f32 %v2214_v59, %v2215_v16  ;;  %19726 = vst [vmem:[#allocation139_spill] sm:$0xff] %v15464_v35  ;;  %v1948_v59 = vadd.f32 %v15357_v27, %v15062_v30 }
 0x2f3   : > { %19725 = vst [vmem:[#allocation138_spill] sm:$0xff] %v15458_v34  ;;  %v2035_v51 = vadd.f32 %v1927_v43, %v1625_v42  ;;  %v1646_v57 = vadd.f32 %v12190_v31, %v15057_v4  ;;  %v2225_v6 = vsel %vm1298_vm4, %v15458_v34, -inf  ;;  %v15474_v49 = vmax.f32 %v2037_v23, 0.0 }
 0x2f4   : > { %v1637_v19 = vpop.f32.mrf.mxu0  ;;  %v2218_v25 = vmax.f32 %v2216_v20, %v2217_v18  ;;  %v1951_v42 = vadd.f32 %v15389_v5, %v15062_v30  ;;  %v1943_v31 = vadd.f32 %v15062_v30, %v15404_v12  ;;  %v2228_v23 = vsel %vm1298_vm4, %v15464_v35, -inf }
 0x2f5   : > { %v15466_v0 = vmax.f32 %v2035_v51, 0.0  ;;  %v1638_v32 = vadd.f32 %v15057_v4, %v1637_v19  ;;  %19728 = vst [vmem:[#allocation141_spill] sm:$0xff] %v15474_v49  ;;  %v12264_v51 = vpop.f32.mrf.mxu1  ;;  %v2040_v19 = vadd.f32 %v1948_v59, %v1646_v57  ;;  %v2230_v5 = vsel %vm1298_vm4, %v15474_v49, -inf }
 0x2f6   : > { %v12191_v44 = vpop.f32.mrf.mxu0  ;;  %v2219_v14 = vrot.slane %v2218_v25, 4 }
 0x2f7   : > { %19727 = vst [vmem:[#allocation140_spill] sm:$0xff] %v15466_v0  ;;  %v2226_v43 = vsel %vm1298_vm4, %v15466_v0, -inf  ;;  %v2038_v16 = vadd.f32 %v1940_v54, %v1638_v32  ;;  %v1649_v63 = vadd.f32 %v12191_v44, %v15057_v4  ;;  %v1971_v57 = vpop.f32.mrf.mxu1  ;;  %v15492_v59 = vmax.f32 %v2040_v19, 0.0 }
 0x2f8   : > { %v2227_v27 = vmax.f32 %v2225_v6, %v2226_v43  ;;  %v1640_v20 = vpop.f32.mrf.mxu0  ;;  %v2220_v18 = vmax.f32 %v2218_v25, %v2219_v14  ;;  %v1956_v6 = vadd.f32 %v15062_v30, %v1955_v60 }
 0x2f9   : > { %v15485_v34 = vmax.f32 %v2038_v16, 0.0  ;;  %v1641_v54 = vadd.f32 %v15057_v4, %v1640_v20  ;;  %v2041_v62 = vadd.f32 %v1951_v42, %v1649_v63  ;;  %19730 = vst [vmem:[#allocation143_spill] sm:$0xff] %v15492_v59  ;;  %v1964_v63 = vadd.f32 %v15425_v48, %v15062_v30  ;;  %v12265_v48 = vpop.f32.mrf.mxu1 }
 0x2fa   : > { %v2229_v32 = vmax.f32 %v2227_v27, %v2228_v23  ;;  %v12194_v44 = vpop.f32.mrf.mxu0  ;;  %v2221_v0 = vrot.slane %v2220_v18, 2 }
 0x2fb   : > { %19729 = vst [vmem:[#allocation142_spill] sm:$0xff] %v15485_v34  ;;  %v2039_v12 = vadd.f32 %v1943_v31, %v1641_v54  ;;  %v1662_v14 = vadd.f32 %v12194_v44, %v15057_v4  ;;  %v2232_v16 = vsel %vm1298_vm4, %v15485_v34, -inf  ;;  %v15501_v23 = vmax.f32 %v2041_v62, 0.0 }
 0x2fc   : > { %v2231_v25 = vmax.f32 %v2229_v32, %v2230_v5  ;;  %v1653_v43 = vpop.f32.mrf.mxu0  ;;  %v2222_v35 = vmax.f32 %v2220_v18, %v2221_v0  ;;  %v1967_v54 = vadd.f32 %v12261_v56, %v15062_v30 }
 0x2fd   : > { %v15496_v27 = vmax.f32 %v2039_v12, 0.0  ;;  %v1654_v20 = vadd.f32 %v15057_v4, %v1653_v43  ;;  %19732 = vst [vmem:[#allocation145_spill] sm:$0xff] %v15501_v23  ;;  %v2044_v44 = vadd.f32 %v1964_v63, %v1662_v14  ;;  %v1959_v43 = vadd.f32 %v15062_v30, %v1958_v46 }
 0x2fe   : > { %v2233_v42 = vmax.f32 %v2231_v25, %v2232_v16  ;;  %v12195_v60 = vpop.f32.mrf.mxu0  ;;  %v2223_v31 = vrot.slane %v2222_v35, 1  ;;  %v2236_v25 = vsel %vm1298_vm4, %v15492_v59, -inf  ;;  %v2238_v56 = vsel %vm1298_vm4, %v15501_v23, -inf }
 0x2ff   : > { %19731 = vst [vmem:[#allocation144_spill] sm:$0xff] %v15496_v27  ;;  %v2234_v0 = vsel %vm1298_vm4, %v15496_v27, -inf  ;;  %v2042_v18 = vadd.f32 %v1956_v6, %v1654_v20  ;;  %v1665_v19 = vadd.f32 %v12195_v60, %v15057_v4  ;;  %v13660_v20 = vld [vmem:[#allocation2 + $0x78] sm:$0xff]   ;;  %v1972_v46 = vadd.f32 %v15062_v30, %v1971_v57 }
 0x300   : > { %v2235_v32 = vmax.f32 %v2233_v42, %v2234_v0  ;;  %v1656_v5 = vpop.f32.mrf.mxu0  ;;  %v2224_v12 = vmax.f32 %v2222_v35, %v2223_v31  ;;  %v15517_v63 = vmax.f32 %v2044_v44, 0.0  ;;  %12338 = vmatprep.subr.bf16.mxu1 %v13660_v20  ;;  %v1974_v31 = vpop.f32.mrf.mxu1 }
 0x301   : > { %v15510_v62 = vmax.f32 %v2042_v18, 0.0  ;;  %v1657_v16 = vadd.f32 %v15057_v4, %v1656_v5  ;;  %v2045_v14 = vadd.f32 %v1967_v54, %v1665_v19  ;;  %12339 = vmatpush3.bf16.msra.mxu1 %v13660_v20  ;;  %v1980_v19 = vadd.f32 %v12264_v51, %v15062_v30 }
 0x302   : > { %v2237_v27 = vmax.f32 %v2235_v32, %v2236_v25  ;;  %v12198_v6 = vpop.f32.mrf.mxu0  ;;  %2270 = vrot.lane.b32.xlu1 %v2224_v12, %s14020_s27  ;;  %19734 = vst [vmem:[#allocation147_spill] sm:$0xff] %v15517_v63  ;;  %v1983_v25 = vadd.f32 %v12265_v48, %v15062_v30  ;;  %v2244_v20 = vsel %vm1298_vm4, %v15517_v63, -inf }
 0x303   : > { %19733 = vst [vmem:[#allocation146_spill] sm:$0xff] %v15510_v62  ;;  %v2043_v35 = vadd.f32 %v1959_v43, %v1657_v16  ;;  %v2240_v0 = vsel %vm1298_vm4, %v15510_v62, -inf  ;;  %v1678_v32 = vadd.f32 %v12198_v6, %v15057_v4  ;;  %v15526_v44 = vmax.f32 %v2045_v14, 0.0 }
 0x304   : > { %v2239_v42 = vmax.f32 %v2237_v27, %v2238_v56  ;;  %v1669_v60 = vpop.f32.mrf.mxu0  ;;  %v1975_v16 = vadd.f32 %v15062_v30, %v1974_v31 }
 0x305   : > { %v15521_v18 = vmax.f32 %v2043_v35, 0.0  ;;  %v1670_v5 = vadd.f32 %v15057_v4, %v1669_v60  ;;  %19736 = vst [vmem:[#allocation149_spill] sm:$0xff] %v15526_v44  ;;  %v2048_v51 = vadd.f32 %v1980_v19, %v1678_v32 }
 0x306   : > { %v2241_v54 = vmax.f32 %v2239_v42, %v2240_v0  ;;  %v12199_v57 = vpop.f32.mrf.mxu0 }
 0x307   : > { %19735 = vst [vmem:[#allocation148_spill] sm:$0xff] %v15521_v18  ;;  %v2242_v27 = vsel %vm1298_vm4, %v15521_v18, -inf  ;;  %v2046_v12 = vadd.f32 %v1972_v46, %v1670_v5  ;;  %v1681_v43 = vadd.f32 %v12199_v57, %v15057_v4  ;;  %v2246_v46 = vsel %vm1298_vm4, %v15526_v44, -inf }
 0x308   : > { %v2243_v6 = vmax.f32 %v2241_v54, %v2242_v27  ;;  %v1672_v56 = vpop.f32.mrf.mxu0  ;;  %v15540_v48 = vmax.f32 %v2048_v51, 0.0 }
 0x309   : > { %v15535_v35 = vmax.f32 %v2046_v12, 0.0  ;;  %v1673_v14 = vadd.f32 %v15057_v4, %v1672_v56  ;;  %v2049_v60 = vadd.f32 %v1983_v25, %v1681_v43 }
 0x30a   : > { %v2245_v42 = vmax.f32 %v2243_v6, %v2244_v20  ;;  %19738 = vst [vmem:[#allocation151_spill] sm:$0xff] %v15540_v48  ;;  %v2252_v57 = vsel %vm1298_vm4, %v15540_v48, -inf }
 0x30b   : > { %19737 = vst [vmem:[#allocation150_spill] sm:$0xff] %v15535_v35  ;;  %v2047_v0 = vadd.f32 %v1975_v16, %v1673_v14  ;;  %v2248_v30 = vsel %vm1298_vm4, %v15535_v35, -inf  ;;  %v15546_v32 = vmax.f32 %v2049_v60, 0.0  ;;  %v13661_v14 = vld [vmem:[#allocation2 + $0x70] sm:$0xff]   ;;  %v13663_v60 = vld [vmem:[#allocation2 + $0x60] sm:$0xff]  }
 0x30c   : > { %v2247_v5 = vmax.f32 %v2245_v42, %v2246_v46  ;;  %v13337_v42 = vpack.i.bf16 %v15091_v28, %v15082_v40  ;;  %12340 = vmatprep.subr.bf16.mxu1 %v13661_v14  ;;  %v13662_v46 = vld [vmem:[#allocation2 + $0x68] sm:$0xff]  }
 0x30d   : > { %v15544_v31 = vmax.f32 %v2047_v0, 0.0  ;;  %19740 = vst [vmem:[#allocation153_spill] sm:$0xff] %v15546_v32  ;;  %v2254_v12 = vsel %vm1298_vm4, %v15546_v32, -inf  ;;  %12341 = vmatpush3.bf16.msra.mxu1 %v13661_v14 }
 0x30e   : > { %v2249_v54 = vmax.f32 %v2247_v5, %v2248_v30  ;;  %12342 = vmatprep.subr.bf16.mxu1 %v13662_v46 }
 0x30f   : > { %19739 = vst [vmem:[#allocation152_spill] sm:$0xff] %v15544_v31  ;;  %v2250_v4 = vsel %vm1298_vm4, %v15544_v31, -inf }
 0x310   : > { %v2251_v19 = vmax.f32 %v2249_v54, %v2250_v4 }
 0x311   : > { %12343 = vmatpush3.bf16.msra.mxu1 %v13662_v46 }
 0x312   : > { %v2253_v27 = vmax.f32 %v2251_v19, %v2252_v57  ;;  %12344 = vmatprep.subr.bf16.mxu1 %v13663_v60 }
 0x314   : > { %v2255_v43 = vmax.f32 %v2253_v27, %v2254_v12 }
 0x315   : > { %12345 = vmatpush3.bf16.msra.mxu1 %v13663_v60 }
 0x316   : > { %v2256_v25 = vrot.slane %v2255_v43, 4 }
 0x318   : > { %v2257_v16 = vmax.f32 %v2255_v43, %v2256_v25 }
 0x31a   : > { %v2258_v6 = vrot.slane %v2257_v16, 2 }
 0x31c   : > { %v2259_v56 = vmax.f32 %v2257_v16, %v2258_v6 }
 0x31e   : > { %v2260_v20 = vrot.slane %v2259_v56, 1 }
 0x320   : > { %v2261_v51 = vmax.f32 %v2259_v56, %v2260_v20 }
 0x322   : > { %2272 = vrot.lane.b32.xlu1 %v2261_v51, %s14020_s27 }
 0x326   : > { %13338 = vrot.lane.b32.xlu1 %v13337_v42, %s14021_s28 }
 0x334   : > { %v2267_v0 = vpop.permute.xlu0 %2266 }
 0x335   : > { %v15560_v5 = vsel %vm1298_vm4, %v15076_v9, %v2267_v0  ;;  %v15564_v30 = vsel %vm1298_vm4, %v15084_v2, %v2267_v0  ;;  %v15568_v54 = vsel %vm1298_vm4, %v15082_v40, %v2267_v0  ;;  %v15572_v4 = vsel %vm1298_vm4, %v15091_v28, %v2267_v0 }
 0x336   : > { %v2342_v19 = vpack.c.bf16 %v15564_v30, %v15560_v5  ;;  %v2343_v9 = vpack.c.bf16 %v15572_v4, %v15568_v54  ;;  %v15580_v57 = vsel %vm1298_vm4, %v15104_v24, %v2267_v0  ;;  %v15584_v2 = vsel %vm1298_vm4, %v15117_v61, %v2267_v0 }
 0x337   : > { %v2344_v40 = vpack.c.bf16 %v15584_v2, %v15580_v57  ;;  %v15593_v28 = vsel %vm1298_vm4, %v15111_v11, %v2267_v0  ;;  %v15597_v27 = vsel %vm1298_vm4, %v15123_v22, %v2267_v0  ;;  %v15601_v12 = vsel %vm1298_vm4, %v15136_v3, %v2267_v0 }
 0x338   : > { %12274 = vmatprep.mubr.msk.bf16.mxu0 %vm2411_vm5, %v2342_v19  ;;  %v15605_v43 = vsel %vm1298_vm4, %v15150_v36, %v2267_v0  ;;  %v2345_v25 = vpack.c.bf16 %v15597_v27, %v15593_v28  ;;  %v15615_v6 = vsel %vm1298_vm4, %v15146_v39, %v2267_v0  ;;  %v15619_v56 = vsel %vm1298_vm4, %v15155_v58, %v2267_v0 }
 0x339   : > { %12275 = vmatmul.mubr.msk.bf16.vlgmr.msra.gmra.mxu0 %vm2411_vm5, %v2343_v9  ;;  %v2346_v16 = vpack.c.bf16 %v15605_v43, %v15601_v12  ;;  %v15623_v20 = vsel %vm1298_vm4, %v15168_v55, %v2267_v0  ;;  %v15627_v51 = vsel %vm1298_vm4, %v15181_v17, %v2267_v0  ;;  %v2347_v14 = vpack.c.bf16 %v15619_v56, %v15615_v6 }
 0x33a   : > { %12278 = vmatprep.mubr.msk.bf16.mxu0 %vm2411_vm5, %v2344_v40  ;;  %v2348_v42 = vpack.c.bf16 %v15627_v51, %v15623_v20  ;;  %v15637_v46 = vsel %vm1298_vm4, %v15175_v13, %v2267_v0  ;;  %v15641_v60 = vsel %vm1298_vm4, %v15187_v15, %v2267_v0 }
 0x33b   : > { %v2349_v19 = vpack.c.bf16 %v15641_v60, %v15637_v46 }
 0x341   : > { %12279 = vmatmul.mubr.msk.bf16.gmra.mxu0 %vm2411_vm5, %v2345_v25  ;;  %v19741_v25 = vld [vmem:[#allocation108_spill] sm:$0xff] }
 0x342   : > { %12282 = vmatprep.mubr.msk.bf16.mxu0 %vm2411_vm5, %v2346_v16 }
 0x349   : > { %12283 = vmatmul.mubr.msk.bf16.gmra.mxu0 %vm2411_vm5, %v2347_v14 }
 0x34a   : > { %12286 = vmatprep.mubr.msk.bf16.mxu0 %vm2411_vm5, %v2348_v42 }
 0x351   : > { %12287 = vmatmul.mubr.msk.bf16.gmra.mxu0 %vm2411_vm5, %v2349_v19 }
 0x354   : > { %v2269_v9 = vpop.permute.xlu0 %2268 }
 0x355   : > { %v15648_v40 = vsel %vm1298_vm4, %v15201_v47, %v2269_v9  ;;  %v15652_v16 = vsel %vm1298_vm4, %v19741_v25, %v2269_v9  ;;  %v15656_v14 = vsel %vm1298_vm4, %v15210_v29, %v2269_v9  ;;  %v15660_v0 = vsel %vm1298_vm4, %v15219_v10, %v2269_v9  ;;  %v19743_v47 = vld [vmem:[#allocation110_spill] sm:$0xff] }
 0x356   : > { %19742 = vst [vmem:[#allocation154_spill] sm:$0xff] %v15652_v16  ;;  %v2350_v42 = vpack.c.bf16 %v15652_v16, %v15648_v40  ;;  %v2351_v19 = vpack.c.bf16 %v15660_v0, %v15656_v14  ;;  %v15668_v17 = vsel %vm1298_vm4, %v19743_v47, %v2269_v9  ;;  %v15672_v25 = vsel %vm1298_vm4, %v15245_v53, %v2269_v9 }
 0x357   : > { %19744 = vst [vmem:[#allocation155_spill] sm:$0xff] %v15672_v25  ;;  %v2352_v10 = vpack.c.bf16 %v15672_v25, %v15668_v17  ;;  %v15681_v16 = vsel %vm1298_vm4, %v15239_v7, %v2269_v9  ;;  %v15685_v47 = vsel %vm1298_vm4, %v15251_v1, %v2269_v9  ;;  %v15689_v53 = vsel %vm1298_vm4, %v15264_v8, %v2269_v9  ;;  %v19749_v8 = vld [vmem:[#allocation117_spill] sm:$0xff] }
 0x358   : > { %12290 = vmatprep.mubr.msk.bf16.mxu0 %vm2411_vm5, %v2350_v42  ;;  %19745 = vst [vmem:[#allocation156_spill] sm:$0xff] %v15681_v16  ;;  %19746 = vst [vmem:[#allocation157_spill] sm:$0xff] %v15685_v47  ;;  %v19747_v42 = vld [vmem:[#allocation116_spill] sm:$0xff]  ;;  %v15703_v25 = vsel %vm1298_vm4, %v15275_v26, %v2269_v9  ;;  %v15707_v1 = vsel %vm1298_vm4, %v19749_v8, %v2269_v9 }
 0x359   : > { %12291 = vmatmul.mubr.msk.bf16.gmra.mxu0 %vm2411_vm5, %v2351_v19  ;;  %v15693_v29 = vsel %vm1298_vm4, %v19747_v42, %v2269_v9  ;;  %v2353_v19 = vpack.c.bf16 %v15685_v47, %v15681_v16  ;;  %19750 = vst [vmem:[#allocation159_spill] sm:$0xff] %v15707_v1  ;;  %v19751_v42 = vld [vmem:[#allocation118_spill] sm:$0xff]  ;;  %v19752_v47 = vld [vmem:[#allocation120_spill] sm:$0xff] }
 0x35a   : > { %12294 = vmatprep.mubr.msk.bf16.mxu0 %vm2411_vm5, %v2352_v10  ;;  %19748 = vst [vmem:[#allocation158_spill] sm:$0xff] %v15693_v29  ;;  %v2354_v10 = vpack.c.bf16 %v15693_v29, %v15689_v53  ;;  %v15711_v7 = vsel %vm1298_vm4, %v19751_v42, %v2269_v9  ;;  %v15715_v16 = vsel %vm1298_vm4, %v19752_v47, %v2269_v9  ;;  %v19754_v29 = vld [vmem:[#allocation119_spill] sm:$0xff] }
 0x35b   : > { %19753 = vst [vmem:[#allocation160_spill] sm:$0xff] %v15715_v16  ;;  %v15725_v8 = vsel %vm1298_vm4, %v19754_v29, %v2269_v9  ;;  %v15729_v42 = vsel %vm1298_vm4, %v15316_v52, %v2269_v9 }
 0x35c   : > { %19755 = vst [vmem:[#allocation161_spill] sm:$0xff] %v15729_v42  ;;  %v2357_v47 = vpack.c.bf16 %v15729_v42, %v15725_v8 }
 0x361   : > { %12295 = vmatmul.mubr.msk.bf16.gmra.mxu0 %vm2411_vm5, %v2353_v19  ;;  %v2355_v19 = vpack.c.bf16 %v15707_v1, %v15703_v25  ;;  %v19756_v1 = vld [vmem:[#allocation122_spill] sm:$0xff] }
 0x362   : > { %12298 = vmatprep.mubr.msk.bf16.mxu0 %vm2411_vm5, %v2354_v10  ;;  %v2356_v10 = vpack.c.bf16 %v15715_v16, %v15711_v7 }
 0x369   : > { %12299 = vmatmul.mubr.msk.bf16.gmra.mxu0 %vm2411_vm5, %v2355_v19  ;;  %v19757_v19 = vld [vmem:[#allocation124_spill] sm:$0xff] }
 0x36a   : > { %12302 = vmatprep.mubr.msk.bf16.mxu0 %vm2411_vm5, %v2356_v10 }
 0x371   : > { %12303 = vmatmul.mubr.msk.bf16.gmra.mxu0 %vm2411_vm5, %v2357_v47 }
 0x374   : > { %v2271_v26 = vpop.permute.xlu1 %2270 }
 0x375   : > { %v15736_v16 = vsel %vm1298_vm4, %v19756_v1, %v2271_v26  ;;  %v15740_v10 = vsel %vm1298_vm4, %v19757_v19, %v2271_v26  ;;  %v15744_v29 = vsel %vm1298_vm4, %v15339_v21, %v2271_v26  ;;  %v15748_v9 = vsel %vm1298_vm4, %v15348_v38, %v2271_v26  ;;  %v19759_v1 = vld [vmem:[#allocation126_spill] sm:$0xff] }
 0x376   : > { %19758 = vst [vmem:[#allocation162_spill] sm:$0xff] %v15740_v10  ;;  %v2358_v47 = vpack.c.bf16 %v15740_v10, %v15736_v16  ;;  %v2359_v52 = vpack.c.bf16 %v15748_v9, %v15744_v29  ;;  %v15756_v42 = vsel %vm1298_vm4, %v19759_v1, %v2271_v26  ;;  %v15760_v19 = vsel %vm1298_vm4, %v15374_v41, %v2271_v26 }
 0x377   : > { %19760 = vst [vmem:[#allocation163_spill] sm:$0xff] %v15756_v42  ;;  %19761 = vst [vmem:[#allocation164_spill] sm:$0xff] %v15760_v19  ;;  %v2360_v38 = vpack.c.bf16 %v15760_v19, %v15756_v42  ;;  %v15769_v10 = vsel %vm1298_vm4, %v15368_v50, %v2271_v26  ;;  %v15773_v1 = vsel %vm1298_vm4, %v15380_v33, %v2271_v26  ;;  %v19767_v19 = vld [vmem:[#allocation131_spill] sm:$0xff] }
 0x378   : > { %12306 = vmatprep.mubr.msk.bf16.mxu0 %vm2411_vm5, %v2358_v47  ;;  %19762 = vst [vmem:[#allocation165_spill] sm:$0xff] %v15769_v10  ;;  %19763 = vst [vmem:[#allocation166_spill] sm:$0xff] %v15773_v1  ;;  %v15777_v41 = vsel %vm1298_vm4, %v15393_v37, %v2271_v26  ;;  %v19765_v47 = vld [vmem:[#allocation132_spill] sm:$0xff]  ;;  %v15791_v33 = vsel %vm1298_vm4, %v19767_v19, %v2271_v26  ;;  %v19769_v37 = vld [vmem:[#allocation133_spill] sm:$0xff] }
 0x379   : > { %12307 = vmatmul.mubr.msk.bf16.gmra.mxu0 %vm2411_vm5, %v2359_v52  ;;  %19764 = vst [vmem:[#allocation167_spill] sm:$0xff] %v15777_v41  ;;  %v15781_v21 = vsel %vm1298_vm4, %v19765_v47, %v2271_v26  ;;  %v2361_v52 = vpack.c.bf16 %v15773_v1, %v15769_v10  ;;  %19768 = vst [vmem:[#allocation131_spill] sm:$0xff] %v15791_v33  ;;  %v15795_v50 = vsel %vm1298_vm4, %v19769_v37, %v2271_v26  ;;  %v19771_v47 = vld [vmem:[#allocation134_spill] sm:$0xff]  ;;  %v19773_v1 = vld [vmem:[#allocation136_spill] sm:$0xff] }
 0x37a   : > { %12310 = vmatprep.mubr.msk.bf16.mxu0 %vm2411_vm5, %v2360_v38  ;;  %19766 = vst [vmem:[#allocation168_spill] sm:$0xff] %v15781_v21  ;;  %v2362_v38 = vpack.c.bf16 %v15781_v21, %v15777_v41  ;;  %19770 = vst [vmem:[#allocation133_spill] sm:$0xff] %v15795_v50  ;;  %v15799_v42 = vsel %vm1298_vm4, %v19771_v47, %v2271_v26  ;;  %v15803_v10 = vsel %vm1298_vm4, %v19773_v1, %v2271_v26  ;;  %v19775_v47 = vld [vmem:[#allocation137_spill] sm:$0xff] }
 0x37b   : > { %19772 = vst [vmem:[#allocation169_spill] sm:$0xff] %v15799_v42  ;;  %19774 = vst [vmem:[#allocation170_spill] sm:$0xff] %v15803_v10  ;;  %v15813_v21 = vsel %vm1298_vm4, %v15436_v45, %v2271_v26  ;;  %v15817_v41 = vsel %vm1298_vm4, %v19775_v47, %v2271_v26  ;;  %v19780_v45 = vld [vmem:[#allocation139_spill] sm:$0xff] }
 0x37c   : > { %19776 = vst [vmem:[#allocation171_spill] sm:$0xff] %v15817_v41  ;;  %v2365_v1 = vpack.c.bf16 %v15817_v41, %v15813_v21 }
 0x381   : > { %12311 = vmatmul.mubr.msk.bf16.gmra.mxu0 %vm2411_vm5, %v2361_v52  ;;  %v2363_v52 = vpack.c.bf16 %v15795_v50, %v15791_v33  ;;  %v19777_v33 = vld [vmem:[#allocation138_spill] sm:$0xff] }
 0x382   : > { %12314 = vmatprep.mubr.msk.bf16.mxu0 %vm2411_vm5, %v2362_v38  ;;  %v2364_v38 = vpack.c.bf16 %v15803_v10, %v15799_v42 }
 0x389   : > { %12315 = vmatmul.mubr.msk.bf16.gmra.mxu0 %vm2411_vm5, %v2363_v52  ;;  %v19778_v52 = vld [vmem:[#allocation140_spill] sm:$0xff] }
 0x38a   : > { %12318 = vmatprep.mubr.msk.bf16.mxu0 %vm2411_vm5, %v2364_v38 }
 0x391   : > { %12319 = vmatmul.mubr.msk.bf16.gmra.mxu0 %vm2411_vm5, %v2365_v1 }
 0x394   : > { %v2273_v50 = vpop.permute.xlu1 %2272 }
 0x395   : > { %v15824_v10 = vsel %vm1298_vm4, %v19777_v33, %v2273_v50  ;;  %v15828_v38 = vsel %vm1298_vm4, %v19778_v52, %v2273_v50  ;;  %v15832_v42 = vsel %vm1298_vm4, %v19780_v45, %v2273_v50  ;;  %v15836_v26 = vsel %vm1298_vm4, %v15474_v49, %v2273_v50  ;;  %v19782_v52 = vld [vmem:[#allocation144_spill] sm:$0xff] }
 0x396   : > { %19779 = vst [vmem:[#allocation172_spill] sm:$0xff] %v15828_v38  ;;  %v2366_v1 = vpack.c.bf16 %v15828_v38, %v15824_v10  ;;  %v2367_v47 = vpack.c.bf16 %v15836_v26, %v15832_v42  ;;  %v15844_v33 = vsel %vm1298_vm4, %v15485_v34, %v2273_v50  ;;  %v15848_v41 = vsel %vm1298_vm4, %v19782_v52, %v2273_v50 }
 0x397   : > { %19781 = vst [vmem:[#allocation139_spill] sm:$0xff] %v15844_v33  ;;  %19783 = vst [vmem:[#allocation173_spill] sm:$0xff] %v15848_v41  ;;  %v2368_v49 = vpack.c.bf16 %v15848_v41, %v15844_v33  ;;  %v15857_v38 = vsel %vm1298_vm4, %v15492_v59, %v2273_v50  ;;  %v15861_v34 = vsel %vm1298_vm4, %v15501_v23, %v2273_v50 }
 0x398   : > { %12322 = vmatprep.mubr.msk.bf16.mxu0 %vm2411_vm5, %v2366_v1  ;;  %19784 = vst [vmem:[#allocation174_spill] sm:$0xff] %v15857_v38  ;;  %19785 = vst [vmem:[#allocation175_spill] sm:$0xff] %v15861_v34  ;;  %v15865_v52 = vsel %vm1298_vm4, %v15510_v62, %v2273_v50  ;;  %v15869_v1 = vsel %vm1298_vm4, %v15521_v18, %v2273_v50  ;;  %v15879_v41 = vsel %vm1298_vm4, %v15517_v63, %v2273_v50 }
 0x399   : > { %12323 = vmatmul.mubr.msk.bf16.gmra.mxu0 %vm2411_vm5, %v2367_v47  ;;  %19786 = vst [vmem:[#allocation176_spill] sm:$0xff] %v15865_v52  ;;  %19787 = vst [vmem:[#allocation177_spill] sm:$0xff] %v15869_v1  ;;  %v2369_v47 = vpack.c.bf16 %v15861_v34, %v15857_v38  ;;  %v15883_v62 = vsel %vm1298_vm4, %v15526_v44, %v2273_v50  ;;  %v15887_v18 = vsel %vm1298_vm4, %v15535_v35, %v2273_v50 }
 0x39a   : > { %12326 = vmatprep.mubr.msk.bf16.mxu0 %vm2411_vm5, %v2368_v49  ;;  %v2370_v49 = vpack.c.bf16 %v15869_v1, %v15865_v52  ;;  %19788 = vst [vmem:[#allocation178_spill] sm:$0xff] %v15879_v41  ;;  %19789 = vst [vmem:[#allocation179_spill] sm:$0xff] %v15883_v62  ;;  %v15891_v23 = vsel %vm1298_vm4, %v15544_v31, %v2273_v50  ;;  %v15901_v1 = vsel %vm1298_vm4, %v15540_v48, %v2273_v50 }
 0x39b   : > { %19790 = vst [vmem:[#allocation180_spill] sm:$0xff] %v15887_v18  ;;  %19791 = vst [vmem:[#allocation181_spill] sm:$0xff] %v15891_v23  ;;  %v15905_v35 = vsel %vm1298_vm4, %v15546_v32, %v2273_v50 }
 0x39c   : > { %19792 = vst [vmem:[#allocation182_spill] sm:$0xff] %v15901_v1  ;;  %19793 = vst [vmem:[#allocation183_spill] sm:$0xff] %v15905_v35  ;;  %v2373_v31 = vpack.c.bf16 %v15905_v35, %v15901_v1 }
 0x3a1   : > { %12327 = vmatmul.mubr.msk.bf16.gmra.mxu0 %vm2411_vm5, %v2369_v47  ;;  %v2371_v47 = vpack.c.bf16 %v15883_v62, %v15879_v41 }
 0x3a2   : > { %12330 = vmatprep.mubr.msk.bf16.mxu0 %vm2411_vm5, %v2370_v49  ;;  %v2372_v49 = vpack.c.bf16 %v15891_v23, %v15887_v18 }
 0x3a9   : > { %12331 = vmatmul.mubr.msk.bf16.gmra.mxu0 %vm2411_vm5, %v2371_v47  ;;  %v15913_v47 = vld [vmem:[%s19175_s2 + $0x4] ss:$0 sm:$0xff] }
 0x3aa   : > { %12334 = vmatprep.mubr.msk.bf16.mxu0 %vm2411_vm5, %v2372_v49 }
 0x3b1   : > { %12335 = vmatmul.mubr.msk.bf16.gmra.mxu0 %vm2411_vm5, %v2373_v31 }
 0x3f9   : > { %v12276_v62 = vpop.f32.mrf.mxu0 }
 0x3fa   : > { %v2551_v50 = vadd.f32 %v12276_v62, %v15913_v47 }
 0x3fb   : > { %v2542_v41 = vpop.f32.mrf.mxu0 }
 0x3fc   : > { %v2543_v23 = vadd.f32 %v15913_v47, %v2542_v41  ;;  %v2799_v63 = vmax.f32 %v2551_v50, 0.0 }
 0x3fd   : > { %v12277_v49 = vpop.f32.mrf.mxu0 }
 0x3fe   : > { %v2554_v18 = vadd.f32 %v12277_v49, %v15913_v47  ;;  %v2797_v31 = vmax.f32 %v2543_v23, 0.0 }
 0x3ff   : > { %v2545_v32 = vpop.f32.mrf.mxu0 }
 0x400   : > { %v2546_v48 = vadd.f32 %v15913_v47, %v2545_v32  ;;  %v2800_v35 = vmax.f32 %v2554_v18, 0.0 }
 0x401   : > { %v12280_v1 = vpop.f32.mrf.mxu0 }
 0x402   : > { %v2798_v44 = vmax.f32 %v2546_v48, 0.0  ;;  %v2862_v34 = vpack.c.bf16 %v2800_v35, %v2799_v63  ;;  %v2567_v62 = vadd.f32 %v12280_v1, %v15913_v47 }
 0x403   : > { %v2558_v52 = vpop.f32.mrf.mxu0 }
 0x404   : > { %v2861_v59 = vpack.c.bf16 %v2798_v44, %v2797_v31  ;;  %v2559_v33 = vadd.f32 %v15913_v47, %v2558_v52  ;;  %v2803_v44 = vmax.f32 %v2567_v62, 0.0 }
 0x405   : > { %v12281_v38 = vpop.f32.mrf.mxu0 }
 0x406   : > { %v2570_v41 = vadd.f32 %v12281_v38, %v15913_v47  ;;  %12346 = vmatprep.mubr.msk.bf16.mxu1 %vm2411_vm5, %v2861_v59  ;;  %v2801_v32 = vmax.f32 %v2559_v33, 0.0 }
 0x407   : > { %v2561_v49 = vpop.f32.mrf.mxu0  ;;  %12347 = vmatmul.mubr.msk.bf16.vlgmr.msra.gmra.mxu1 %vm2411_vm5, %v2862_v34 }
 0x408   : > { %v2562_v18 = vadd.f32 %v15913_v47, %v2561_v49  ;;  %v2804_v23 = vmax.f32 %v2570_v41, 0.0 }
 0x409   : > { %v12284_v48 = vpop.f32.mrf.mxu0 }
 0x40a   : > { %v2802_v50 = vmax.f32 %v2562_v18, 0.0  ;;  %v2864_v31 = vpack.c.bf16 %v2804_v23, %v2803_v44  ;;  %v2583_v1 = vadd.f32 %v12284_v48, %v15913_v47 }
 0x40b   : > { %v2574_v63 = vpop.f32.mrf.mxu0 }
 0x40c   : > { %v2863_v35 = vpack.c.bf16 %v2802_v50, %v2801_v32  ;;  %v2575_v38 = vadd.f32 %v15913_v47, %v2574_v63  ;;  %v2807_v32 = vmax.f32 %v2583_v1, 0.0 }
 0x40d   : > { %v12285_v52 = vpop.f32.mrf.mxu0 }
 0x40e   : > { %v2586_v59 = vadd.f32 %v12285_v52, %v15913_v47  ;;  %12350 = vmatprep.mubr.msk.bf16.mxu1 %vm2411_vm5, %v2863_v35  ;;  %v2805_v62 = vmax.f32 %v2575_v38, 0.0 }
 0x40f   : > { %v2577_v34 = vpop.f32.mrf.mxu0  ;;  %12351 = vmatmul.mubr.msk.bf16.gmra.mxu1 %vm2411_vm5, %v2864_v31 }
 0x410   : > { %v2578_v41 = vadd.f32 %v15913_v47, %v2577_v34  ;;  %v2808_v33 = vmax.f32 %v2586_v59, 0.0 }
 0x411   : > { %v12288_v49 = vpop.f32.mrf.mxu0 }
 0x412   : > { %v2806_v18 = vmax.f32 %v2578_v41, 0.0  ;;  %v2866_v44 = vpack.c.bf16 %v2808_v33, %v2807_v32  ;;  %v2599_v48 = vadd.f32 %v12288_v49, %v15913_v47 }
 0x413   : > { %v2590_v23 = vpop.f32.mrf.mxu0 }
 0x414   : > { %v2865_v50 = vpack.c.bf16 %v2806_v18, %v2805_v62  ;;  %v2591_v52 = vadd.f32 %v15913_v47, %v2590_v23  ;;  %v2811_v62 = vmax.f32 %v2599_v48, 0.0 }
 0x415   : > { %v12289_v63 = vpop.f32.mrf.mxu0 }
 0x416   : > { %v2602_v35 = vadd.f32 %v12289_v63, %v15913_v47  ;;  %12354 = vmatprep.mubr.msk.bf16.mxu1 %vm2411_vm5, %v2865_v50  ;;  %v2809_v1 = vmax.f32 %v2591_v52, 0.0 }
 0x417   : > { %v2593_v31 = vpop.f32.mrf.mxu0  ;;  %12355 = vmatmul.mubr.msk.bf16.gmra.mxu1 %vm2411_vm5, %v2866_v44 }
 0x418   : > { %v2594_v59 = vadd.f32 %v15913_v47, %v2593_v31  ;;  %v2812_v38 = vmax.f32 %v2602_v35, 0.0 }
 0x419   : > { %v12292_v34 = vpop.f32.mrf.mxu0 }
 0x41a   : > { %v2810_v41 = vmax.f32 %v2594_v59, 0.0  ;;  %v2868_v32 = vpack.c.bf16 %v2812_v38, %v2811_v62  ;;  %v2615_v49 = vadd.f32 %v12292_v34, %v15913_v47 }
 0x41b   : > { %v2606_v33 = vpop.f32.mrf.mxu0 }
 0x41c   : > { %v2867_v18 = vpack.c.bf16 %v2810_v41, %v2809_v1  ;;  %v2607_v63 = vadd.f32 %v15913_v47, %v2606_v33  ;;  %v2815_v1 = vmax.f32 %v2615_v49, 0.0 }
 0x41d   : > { %v12293_v23 = vpop.f32.mrf.mxu0 }
 0x41e   : > { %v2618_v50 = vadd.f32 %v12293_v23, %v15913_v47  ;;  %12358 = vmatprep.mubr.msk.bf16.mxu1 %vm2411_vm5, %v2867_v18  ;;  %v2813_v48 = vmax.f32 %v2607_v63, 0.0 }
 0x41f   : > { %v2609_v44 = vpop.f32.mrf.mxu0  ;;  %12359 = vmatmul.mubr.msk.bf16.gmra.mxu1 %vm2411_vm5, %v2868_v32 }
 0x420   : > { %v2610_v35 = vadd.f32 %v15913_v47, %v2609_v44  ;;  %v2816_v52 = vmax.f32 %v2618_v50, 0.0 }
 0x421   : > { %v12296_v31 = vpop.f32.mrf.mxu0 }
 0x422   : > { %v2814_v59 = vmax.f32 %v2610_v35, 0.0  ;;  %v2870_v62 = vpack.c.bf16 %v2816_v52, %v2815_v1  ;;  %v2631_v34 = vadd.f32 %v12296_v31, %v15913_v47 }
 0x423   : > { %v2622_v38 = vpop.f32.mrf.mxu0 }
 0x424   : > { %v2869_v41 = vpack.c.bf16 %v2814_v59, %v2813_v48  ;;  %v2623_v23 = vadd.f32 %v15913_v47, %v2622_v38  ;;  %v2819_v48 = vmax.f32 %v2631_v34, 0.0 }
 0x425   : > { %v12297_v33 = vpop.f32.mrf.mxu0 }
 0x426   : > { %v2634_v18 = vadd.f32 %v12297_v33, %v15913_v47  ;;  %12362 = vmatprep.mubr.msk.bf16.mxu1 %vm2411_vm5, %v2869_v41  ;;  %v2817_v49 = vmax.f32 %v2623_v23, 0.0 }
 0x427   : > { %v2625_v32 = vpop.f32.mrf.mxu0  ;;  %12363 = vmatmul.mubr.msk.bf16.gmra.mxu1 %vm2411_vm5, %v2870_v62 }
 0x428   : > { %v2626_v50 = vadd.f32 %v15913_v47, %v2625_v32  ;;  %v2820_v63 = vmax.f32 %v2634_v18, 0.0 }
 0x429   : > { %v12300_v44 = vpop.f32.mrf.mxu0 }
 0x42a   : > { %v2818_v35 = vmax.f32 %v2626_v50, 0.0  ;;  %v2872_v1 = vpack.c.bf16 %v2820_v63, %v2819_v48  ;;  %v2647_v31 = vadd.f32 %v12300_v44, %v15913_v47 }
 0x42b   : > { %v2638_v52 = vpop.f32.mrf.mxu0 }
 0x42c   : > { %v2871_v59 = vpack.c.bf16 %v2818_v35, %v2817_v49  ;;  %v2639_v33 = vadd.f32 %v15913_v47, %v2638_v52  ;;  %v2823_v49 = vmax.f32 %v2647_v31, 0.0 }
 0x42d   : > { %v12301_v38 = vpop.f32.mrf.mxu0 }
 0x42e   : > { %v2650_v41 = vadd.f32 %v12301_v38, %v15913_v47  ;;  %12366 = vmatprep.mubr.msk.bf16.mxu1 %vm2411_vm5, %v2871_v59  ;;  %v2821_v34 = vmax.f32 %v2639_v33, 0.0 }
 0x42f   : > { %v2641_v62 = vpop.f32.mrf.mxu0  ;;  %12367 = vmatmul.mubr.msk.bf16.gmra.mxu1 %vm2411_vm5, %v2872_v1 }
 0x430   : > { %v2642_v18 = vadd.f32 %v15913_v47, %v2641_v62  ;;  %v2824_v23 = vmax.f32 %v2650_v41, 0.0 }
 0x431   : > { %v12304_v32 = vpop.f32.mrf.mxu0 }
 0x432   : > { %v2822_v50 = vmax.f32 %v2642_v18, 0.0  ;;  %v2874_v48 = vpack.c.bf16 %v2824_v23, %v2823_v49  ;;  %v2663_v44 = vadd.f32 %v12304_v32, %v15913_v47 }
 0x433   : > { %v2654_v63 = vpop.f32.mrf.mxu0 }
 0x434   : > { %v2873_v35 = vpack.c.bf16 %v2822_v50, %v2821_v34  ;;  %v2655_v38 = vadd.f32 %v15913_v47, %v2654_v63  ;;  %v2827_v34 = vmax.f32 %v2663_v44, 0.0 }
 0x435   : > { %v12305_v52 = vpop.f32.mrf.mxu0 }
 0x436   : > { %v2666_v59 = vadd.f32 %v12305_v52, %v15913_v47  ;;  %12370 = vmatprep.mubr.msk.bf16.mxu1 %vm2411_vm5, %v2873_v35  ;;  %v2825_v31 = vmax.f32 %v2655_v38, 0.0 }
 0x437   : > { %v2657_v1 = vpop.f32.mrf.mxu0  ;;  %12371 = vmatmul.mubr.msk.bf16.gmra.mxu1 %vm2411_vm5, %v2874_v48 }
 0x438   : > { %v2658_v41 = vadd.f32 %v15913_v47, %v2657_v1  ;;  %v2828_v33 = vmax.f32 %v2666_v59, 0.0 }
 0x439   : > { %v12308_v62 = vpop.f32.mrf.mxu0 }
 0x43a   : > { %v2826_v18 = vmax.f32 %v2658_v41, 0.0  ;;  %v2876_v49 = vpack.c.bf16 %v2828_v33, %v2827_v34  ;;  %v2679_v32 = vadd.f32 %v12308_v62, %v15913_v47 }
 0x43b   : > { %v2670_v23 = vpop.f32.mrf.mxu0 }
 0x43c   : > { %v2875_v50 = vpack.c.bf16 %v2826_v18, %v2825_v31  ;;  %v2671_v52 = vadd.f32 %v15913_v47, %v2670_v23  ;;  %v2831_v31 = vmax.f32 %v2679_v32, 0.0 }
 0x43d   : > { %v12309_v63 = vpop.f32.mrf.mxu0 }
 0x43e   : > { %v2682_v35 = vadd.f32 %v12309_v63, %v15913_v47  ;;  %12374 = vmatprep.mubr.msk.bf16.mxu1 %vm2411_vm5, %v2875_v50  ;;  %v2829_v44 = vmax.f32 %v2671_v52, 0.0 }
 0x43f   : > { %v2673_v48 = vpop.f32.mrf.mxu0  ;;  %12375 = vmatmul.mubr.msk.bf16.gmra.mxu1 %vm2411_vm5, %v2876_v49 }
 0x440   : > { %v2674_v59 = vadd.f32 %v15913_v47, %v2673_v48  ;;  %v2832_v38 = vmax.f32 %v2682_v35, 0.0 }
 0x441   : > { %v12312_v1 = vpop.f32.mrf.mxu0 }
 0x442   : > { %v2830_v41 = vmax.f32 %v2674_v59, 0.0  ;;  %v2878_v34 = vpack.c.bf16 %v2832_v38, %v2831_v31  ;;  %v2695_v62 = vadd.f32 %v12312_v1, %v15913_v47 }
 0x443   : > { %v2686_v33 = vpop.f32.mrf.mxu0 }
 0x444   : > { %v2877_v18 = vpack.c.bf16 %v2830_v41, %v2829_v44  ;;  %v2687_v63 = vadd.f32 %v15913_v47, %v2686_v33  ;;  %v2835_v44 = vmax.f32 %v2695_v62, 0.0 }
 0x445   : > { %v12313_v23 = vpop.f32.mrf.mxu0 }
 0x446   : > { %v2698_v50 = vadd.f32 %v12313_v23, %v15913_v47  ;;  %12378 = vmatprep.mubr.msk.bf16.mxu1 %vm2411_vm5, %v2877_v18  ;;  %v2833_v32 = vmax.f32 %v2687_v63, 0.0 }
 0x447   : > { %v2689_v49 = vpop.f32.mrf.mxu0  ;;  %12379 = vmatmul.mubr.msk.bf16.gmra.mxu1 %vm2411_vm5, %v2878_v34 }
 0x448   : > { %v2690_v35 = vadd.f32 %v15913_v47, %v2689_v49  ;;  %v2836_v52 = vmax.f32 %v2698_v50, 0.0 }
 0x449   : > { %v12316_v48 = vpop.f32.mrf.mxu0 }
 0x44a   : > { %v2834_v59 = vmax.f32 %v2690_v35, 0.0  ;;  %v2880_v31 = vpack.c.bf16 %v2836_v52, %v2835_v44  ;;  %v2711_v1 = vadd.f32 %v12316_v48, %v15913_v47 }
 0x44b   : > { %v2702_v38 = vpop.f32.mrf.mxu0 }
 0x44c   : > { %v2879_v41 = vpack.c.bf16 %v2834_v59, %v2833_v32  ;;  %v2703_v23 = vadd.f32 %v15913_v47, %v2702_v38  ;;  %v2839_v32 = vmax.f32 %v2711_v1, 0.0 }
 0x44d   : > { %v12317_v33 = vpop.f32.mrf.mxu0 }
 0x44e   : > { %v2714_v18 = vadd.f32 %v12317_v33, %v15913_v47  ;;  %12382 = vmatprep.mubr.msk.bf16.mxu1 %vm2411_vm5, %v2879_v41  ;;  %v2837_v62 = vmax.f32 %v2703_v23, 0.0 }
 0x44f   : > { %v2705_v34 = vpop.f32.mrf.mxu0  ;;  %12383 = vmatmul.mubr.msk.bf16.gmra.mxu1 %vm2411_vm5, %v2880_v31 }
 0x450   : > { %v2706_v50 = vadd.f32 %v15913_v47, %v2705_v34  ;;  %v2840_v63 = vmax.f32 %v2714_v18, 0.0 }
 0x451   : > { %v12320_v49 = vpop.f32.mrf.mxu0 }
 0x452   : > { %v2838_v35 = vmax.f32 %v2706_v50, 0.0  ;;  %v2882_v44 = vpack.c.bf16 %v2840_v63, %v2839_v32  ;;  %v2727_v48 = vadd.f32 %v12320_v49, %v15913_v47 }
 0x453   : > { %v2718_v52 = vpop.f32.mrf.mxu0 }
 0x454   : > { %v2881_v59 = vpack.c.bf16 %v2838_v35, %v2837_v62  ;;  %v2719_v33 = vadd.f32 %v15913_v47, %v2718_v52  ;;  %v2843_v62 = vmax.f32 %v2727_v48, 0.0 }
 0x455   : > { %v12321_v38 = vpop.f32.mrf.mxu0 }
 0x456   : > { %v2730_v41 = vadd.f32 %v12321_v38, %v15913_v47  ;;  %12386 = vmatprep.mubr.msk.bf16.mxu1 %vm2411_vm5, %v2881_v59  ;;  %v2841_v1 = vmax.f32 %v2719_v33, 0.0 }
 0x457   : > { %v2721_v31 = vpop.f32.mrf.mxu0  ;;  %12387 = vmatmul.mubr.msk.bf16.gmra.mxu1 %vm2411_vm5, %v2882_v44 }
 0x458   : > { %v2722_v18 = vadd.f32 %v15913_v47, %v2721_v31  ;;  %v2844_v23 = vmax.f32 %v2730_v41, 0.0 }
 0x459   : > { %v12324_v34 = vpop.f32.mrf.mxu0 }
 0x45a   : > { %v2842_v50 = vmax.f32 %v2722_v18, 0.0  ;;  %v2884_v32 = vpack.c.bf16 %v2844_v23, %v2843_v62  ;;  %v2743_v49 = vadd.f32 %v12324_v34, %v15913_v47 }
 0x45b   : > { %v2734_v63 = vpop.f32.mrf.mxu0 }
 0x45c   : > { %v2883_v35 = vpack.c.bf16 %v2842_v50, %v2841_v1  ;;  %v2735_v38 = vadd.f32 %v15913_v47, %v2734_v63  ;;  %v2847_v1 = vmax.f32 %v2743_v49, 0.0 }
 0x45d   : > { %v12325_v52 = vpop.f32.mrf.mxu0 }
 0x45e   : > { %v2746_v59 = vadd.f32 %v12325_v52, %v15913_v47  ;;  %12390 = vmatprep.mubr.msk.bf16.mxu1 %vm2411_vm5, %v2883_v35  ;;  %v2845_v48 = vmax.f32 %v2735_v38, 0.0 }
 0x45f   : > { %v2737_v44 = vpop.f32.mrf.mxu0  ;;  %12391 = vmatmul.mubr.msk.bf16.gmra.mxu1 %vm2411_vm5, %v2884_v32 }
 0x460   : > { %v2738_v41 = vadd.f32 %v15913_v47, %v2737_v44  ;;  %v2848_v33 = vmax.f32 %v2746_v59, 0.0 }
 0x461   : > { %v12328_v31 = vpop.f32.mrf.mxu0 }
 0x462   : > { %v2846_v18 = vmax.f32 %v2738_v41, 0.0  ;;  %v2886_v62 = vpack.c.bf16 %v2848_v33, %v2847_v1  ;;  %v2759_v34 = vadd.f32 %v12328_v31, %v15913_v47 }
 0x463   : > { %v2750_v23 = vpop.f32.mrf.mxu0 }
 0x464   : > { %v2885_v50 = vpack.c.bf16 %v2846_v18, %v2845_v48  ;;  %v2751_v52 = vadd.f32 %v15913_v47, %v2750_v23  ;;  %v2851_v48 = vmax.f32 %v2759_v34, 0.0 }
 0x465   : > { %v12329_v63 = vpop.f32.mrf.mxu0 }
 0x466   : > { %v2762_v35 = vadd.f32 %v12329_v63, %v15913_v47  ;;  %12394 = vmatprep.mubr.msk.bf16.mxu1 %vm2411_vm5, %v2885_v50  ;;  %v2849_v49 = vmax.f32 %v2751_v52, 0.0 }
 0x467   : > { %v2753_v32 = vpop.f32.mrf.mxu0  ;;  %12395 = vmatmul.mubr.msk.bf16.gmra.mxu1 %vm2411_vm5, %v2886_v62 }
 0x468   : > { %v2754_v59 = vadd.f32 %v15913_v47, %v2753_v32  ;;  %v2852_v38 = vmax.f32 %v2762_v35, 0.0 }
 0x469   : > { %v12332_v44 = vpop.f32.mrf.mxu0 }
 0x46a   : > { %v2850_v41 = vmax.f32 %v2754_v59, 0.0  ;;  %v2888_v1 = vpack.c.bf16 %v2852_v38, %v2851_v48  ;;  %v2775_v31 = vadd.f32 %v12332_v44, %v15913_v47 }
 0x46b   : > { %v2766_v33 = vpop.f32.mrf.mxu0 }
 0x46c   : > { %v2887_v18 = vpack.c.bf16 %v2850_v41, %v2849_v49  ;;  %v2767_v63 = vadd.f32 %v15913_v47, %v2766_v33  ;;  %v2855_v49 = vmax.f32 %v2775_v31, 0.0 }
 0x46d   : > { %v12333_v23 = vpop.f32.mrf.mxu0 }
 0x46e   : > { %v2778_v50 = vadd.f32 %v12333_v23, %v15913_v47  ;;  %12398 = vmatprep.mubr.msk.bf16.mxu1 %vm2411_vm5, %v2887_v18  ;;  %v2853_v34 = vmax.f32 %v2767_v63, 0.0 }
 0x46f   : > { %v2769_v62 = vpop.f32.mrf.mxu0  ;;  %12399 = vmatmul.mubr.msk.bf16.gmra.mxu1 %vm2411_vm5, %v2888_v1 }
 0x470   : > { %v2770_v35 = vadd.f32 %v15913_v47, %v2769_v62  ;;  %v2856_v52 = vmax.f32 %v2778_v50, 0.0 }
 0x471   : > { %v12336_v32 = vpop.f32.mrf.mxu0 }
 0x472   : > { %v2854_v59 = vmax.f32 %v2770_v35, 0.0  ;;  %v2890_v48 = vpack.c.bf16 %v2856_v52, %v2855_v49  ;;  %v2791_v44 = vadd.f32 %v12336_v32, %v15913_v47  ;;  %v13665_v49 = vld [vmem:[#allocation2 + $0xd8] sm:$0xff]   ;;  %v13668_v32 = vld [vmem:[#allocation2 + $0xa0] sm:$0xff]  }
 0x473   : > { %v2782_v38 = vpop.f32.mrf.mxu0 }
 0x474   : > { %v2889_v41 = vpack.c.bf16 %v2854_v59, %v2853_v34  ;;  %v2783_v23 = vadd.f32 %v15913_v47, %v2782_v38  ;;  %v2859_v35 = vmax.f32 %v2791_v44, 0.0  ;;  %v13664_v59 = vld [vmem:[#allocation2 + $0xb0] sm:$0xff]   ;;  %v13666_v38 = vld [vmem:[#allocation2 + $0xa8] sm:$0xff]  }
 0x475   : > { %v12337_v33 = vpop.f32.mrf.mxu0  ;;  %12410 = vmatprep.subr.bf16.mxu0 %v13664_v59 }
 0x476   : > { %v2794_v18 = vadd.f32 %v12337_v33, %v15913_v47  ;;  %12402 = vmatprep.mubr.msk.bf16.mxu1 %vm2411_vm5, %v2889_v41  ;;  %v2857_v62 = vmax.f32 %v2783_v23, 0.0  ;;  %v19438_v41 = vmov 0.0   ;;  %12411 = vmatpush3.bf16.msra.mxu0 %v13664_v59  ;;  %v13670_v33 = vld [vmem:[#allocation2 + $0xc8] sm:$0xff]   ;;  %v13671_v23 = vld [vmem:[#allocation2 + $0x90] sm:$0xff]  }
 0x477   : > { %v2785_v1 = vpop.f32.mrf.mxu0  ;;  %12403 = vmatmul.mubr.msk.bf16.gmra.mxu1 %vm2411_vm5, %v2890_v48  ;;  %12488 = vmatprep.subr.bf16.mxu1 %v19438_v41  ;;  %v13669_v48 = vld [vmem:[#allocation2 + $0x98] sm:$0xff]  }
 0x478   : > { %v2786_v50 = vadd.f32 %v15913_v47, %v2785_v1  ;;  %v2860_v63 = vmax.f32 %v2794_v18, 0.0  ;;  %12489 = vmatpush3.bf16.msra.mxu1 %v13665_v49  ;;  %12412 = vmatprep.subr.bf16.mxu0 %v13666_v38  ;;  %v13667_v47 = vld [vmem:[#allocation2 + $0xd0] sm:$0xff]   ;;  %v16017_v18 = vld [vmem:[%s19175_s2 + $0x5] ss:$0 sm:$0xff] }
 0x479   : > { %12490 = vmatprep.subr.bf16.mxu1 %v19438_v41 }
 0x47a   : > { %v2858_v31 = vmax.f32 %v2786_v50, 0.0  ;;  %v2892_v52 = vpack.c.bf16 %v2860_v63, %v2859_v35  ;;  %12413 = vmatpush3.bf16.msra.mxu0 %v13666_v38 }
 0x47b   : > { %12414 = vmatprep.subr.bf16.mxu0 %v13668_v32 }
 0x47c   : > { %v2891_v34 = vpack.c.bf16 %v2858_v31, %v2857_v62  ;;  %12491 = vmatpush3.bf16.msra.mxu1 %v13667_v47  ;;  %v13672_v62 = vld [vmem:[#allocation2 + $0x88] sm:$0xff]   ;;  %v13674_v47 = vld [vmem:[#allocation2 + $0x80] sm:$0xff]  }
 0x47d   : > { %12492 = vmatprep.subr.bf16.mxu1 %v19438_v41 }
 0x47e   : > { %12406 = vmatprep.mubr.msk.bf16.mxu1 %vm2411_vm5, %v2891_v34  ;;  %12415 = vmatpush3.bf16.msra.mxu0 %v13668_v32 }
 0x47f   : > { %12407 = vmatmul.mubr.msk.bf16.gmra.mxu1 %vm2411_vm5, %v2892_v52  ;;  %12416 = vmatprep.subr.bf16.mxu0 %v13669_v48 }
 0x480   : > { %12493 = vmatpush3.bf16.msra.mxu1 %v13670_v33  ;;  %12496 = vmatprep.mubr.msk.bf16.mxu1 %vm14024_vm6, %v19438_v41 }
 0x481   : > { %12494 = vmatprep.subr.bf16.mxu1 %v19438_v41 }
 0x482   : > { %12417 = vmatpush3.bf16.msra.mxu0 %v13669_v48 }
 0x483   : > { %12418 = vmatprep.subr.bf16.mxu0 %v13671_v23 }
 0x486   : > { %12419 = vmatpush3.bf16.msra.mxu0 %v13671_v23 }
 0x487   : > { %12420 = vmatprep.subr.bf16.mxu0 %v13672_v62 }
 0x48a   : > { %12421 = vmatpush3.bf16.msra.mxu0 %v13672_v62 }
 0x48b   : > { %12422 = vmatprep.subr.bf16.mxu0 %v13674_v47 }
 0x48e   : > { %12423 = vmatpush3.bf16.msra.mxu0 %v13674_v47 }
 0x4c7   : > { %v12348_v44 = vpop.f32.mrf.mxu1 }
 0x4c8   : > { %v3069_v1 = vadd.f32 %v12348_v44, %v16017_v18 }
 0x4c9   : > { %v3060_v50 = vpop.f32.mrf.mxu1 }
 0x4ca   : > { %v3061_v63 = vadd.f32 %v16017_v18, %v3060_v50  ;;  %v3317_v52 = vadd.f32 %v3069_v1, %v15568_v54 }
 0x4cb   : > { %v12349_v31 = vpop.f32.mrf.mxu1 }
 0x4cc   : > { %v3315_v35 = vadd.f32 %v3061_v63, %v15560_v5  ;;  %v3072_v34 = vadd.f32 %v12349_v31, %v16017_v18  ;;  %v3381_v44 = vmax.f32 %v3317_v52, 0.0 }
 0x4cd   : > { %v3063_v59 = vpop.f32.mrf.mxu1 }
 0x4ce   : > { %v3318_v49 = vadd.f32 %v3072_v34, %v15572_v4  ;;  %v3064_v38 = vadd.f32 %v16017_v18, %v3063_v59  ;;  %v3379_v48 = vmax.f32 %v3315_v35, 0.0 }
 0x4cf   : > { %v12352_v32 = vpop.f32.mrf.mxu1 }
 0x4d0   : > { %v3382_v33 = vmax.f32 %v3318_v49, 0.0  ;;  %v3316_v23 = vadd.f32 %v3064_v38, %v15564_v30  ;;  %v3085_v5 = vadd.f32 %v12352_v32, %v16017_v18  ;;  %v4084_v4 = vsel %vm2411_vm5, %v3379_v48, -inf }
 0x4d1   : > { %v3076_v50 = vpop.f32.mrf.mxu1  ;;  %v4087_v38 = vsel %vm2411_vm5, %v3381_v44, -inf }
 0x4d2   : > { %v3380_v63 = vmax.f32 %v3316_v23, 0.0  ;;  %v3077_v54 = vadd.f32 %v16017_v18, %v3076_v50  ;;  %v13342_v62 = vpack.i.bf16 %v3382_v33, %v3381_v44  ;;  %v3321_v52 = vadd.f32 %v3085_v5, %v15593_v28 }
 0x4d3   : > { %v12353_v1 = vpop.f32.mrf.mxu1  ;;  %v4089_v28 = vsel %vm2411_vm5, %v3382_v33, -inf }
 0x4d4   : > { %v4085_v31 = vsel %vm2411_vm5, %v3380_v63, -inf  ;;  %v3319_v35 = vadd.f32 %v3077_v54, %v15580_v57  ;;  %v3088_v34 = vadd.f32 %v12353_v1, %v16017_v18  ;;  %13343 = vrot.lane.b32.xlu1 %v13342_v62, %s14023_s6  ;;  %v13347_v49 = vpack.i.bf16 %v3380_v63, %v3379_v48 }
 0x4d5   : > { %v4086_v30 = vmax.f32 %v4084_v4, %v4085_v31  ;;  %v3079_v59 = vpop.f32.mrf.mxu1  ;;  %v13357_v54 = vpack.i.bf16 %v15123_v22, %v15111_v11  ;;  %v3385_v48 = vmax.f32 %v3321_v52, 0.0  ;;  %v13352_v62 = vpack.i.bf16 %v15117_v61, %v15104_v24 }
 0x4d6   : > { %v3383_v47 = vmax.f32 %v3319_v35, 0.0  ;;  %v3322_v32 = vadd.f32 %v3088_v34, %v15597_v27  ;;  %v3080_v23 = vadd.f32 %v16017_v18, %v3079_v59  ;;  %13348 = vrot.lane.b32.xlu0 %v13347_v49, %s14023_s6 }
 0x4d7   : > { %v4088_v50 = vmax.f32 %v4086_v30, %v4087_v38  ;;  %v12356_v57 = vpop.f32.mrf.mxu1  ;;  %v4095_v49 = vsel %vm2411_vm5, %v3385_v48, -inf }
 0x4d8   : > { %v3386_v5 = vmax.f32 %v3322_v32, 0.0  ;;  %v3320_v1 = vadd.f32 %v3080_v23, %v15584_v2  ;;  %v3101_v44 = vadd.f32 %v12356_v57, %v16017_v18  ;;  %13358 = vrot.lane.b32.xlu1 %v13357_v54, %s14021_s28  ;;  %v4091_v4 = vsel %vm2411_vm5, %v3383_v47, -inf }
 0x4d9   : > { %v4090_v63 = vmax.f32 %v4088_v50, %v4089_v28  ;;  %v3092_v27 = vpop.f32.mrf.mxu1  ;;  %v13377_v57 = vpack.i.bf16 %v15155_v58, %v15146_v39 }
 0x4da   : > { %v3384_v31 = vmax.f32 %v3320_v1, 0.0  ;;  %v3093_v11 = vadd.f32 %v16017_v18, %v3092_v27  ;;  %13353 = vrot.lane.b32.xlu0 %v13352_v62, %s14021_s28  ;;  %v13362_v2 = vpack.i.bf16 %v3386_v5, %v3385_v48  ;;  %v3325_v59 = vadd.f32 %v3101_v44, %v15615_v6 }
 0x4db   : > { %v4092_v22 = vmax.f32 %v4090_v63, %v4091_v4  ;;  %v12357_v33 = vpop.f32.mrf.mxu1  ;;  %v4097_v6 = vsel %vm2411_vm5, %v3386_v5, -inf  ;;  %v13372_v63 = vpack.i.bf16 %v15150_v36, %v15136_v3 }
 0x4dc   : > { %v4093_v35 = vsel %vm2411_vm5, %v3384_v31, -inf  ;;  %v3323_v34 = vadd.f32 %v3093_v11, %v15601_v12  ;;  %v3104_v30 = vadd.f32 %v12357_v33, %v16017_v18  ;;  %13363 = vrot.lane.b32.xlu1 %v13362_v2, %s14023_s6  ;;  %v13367_v61 = vpack.i.bf16 %v3384_v31, %v3383_v47  ;;  %v13673_v11 = vld [vmem:[#allocation2 + $0xc0] sm:$0xff]  }
 0x4dd   : > { %v4094_v52 = vmax.f32 %v4092_v22, %v4093_v35  ;;  %v3095_v24 = vpop.f32.mrf.mxu1  ;;  %v3389_v47 = vmax.f32 %v3325_v59, 0.0  ;;  %12495 = vmatpush3.bf16.msra.mxu1 %v13673_v11  ;;  %v13397_v59 = vpack.i.bf16 %v15187_v15, %v15175_v13 }
 0x4de   : > { %v3387_v38 = vmax.f32 %v3323_v34, 0.0  ;;  %v3326_v32 = vadd.f32 %v3104_v30, %v15619_v56  ;;  %v3096_v23 = vadd.f32 %v16017_v18, %v3095_v24  ;;  %13368 = vrot.lane.b32.xlu0 %v13367_v61, %s14023_s6 }
 0x4df   : > { %v4096_v50 = vmax.f32 %v4094_v52, %v4095_v49  ;;  %v12360_v12 = vpop.f32.mrf.mxu1  ;;  %v4103_v2 = vsel %vm2411_vm5, %v3389_v47, -inf  ;;  %v19794_v49 = vld [vmem:[#allocation105_spill] sm:$0xff] }
 0x4e0   : > { %v3390_v54 = vmax.f32 %v3326_v32, 0.0  ;;  %v3324_v28 = vadd.f32 %v3096_v23, %v15605_v43  ;;  %v3117_v48 = vadd.f32 %v12360_v12, %v16017_v18  ;;  %13378 = vrot.lane.b32.xlu1 %v13377_v57, %s14021_s28  ;;  %v4099_v44 = vsel %vm2411_vm5, %v3387_v38, -inf }
 0x4e1   : > { %v4098_v1 = vmax.f32 %v4096_v50, %v4097_v6  ;;  %v3108_v56 = vpop.f32.mrf.mxu1 }
 0x4e2   : > { %v3388_v27 = vmax.f32 %v3324_v28, 0.0  ;;  %v3109_v39 = vadd.f32 %v16017_v18, %v3108_v56  ;;  %13373 = vrot.lane.b32.xlu0 %v13372_v63, %s14021_s28  ;;  %v13382_v43 = vpack.i.bf16 %v3390_v54, %v3389_v47  ;;  %v3329_v3 = vadd.f32 %v3117_v48, %v15637_v46 }
 0x4e3   : > { %v4100_v58 = vmax.f32 %v4098_v1, %v4099_v44  ;;  %v12361_v5 = vpop.f32.mrf.mxu1  ;;  %v4105_v46 = vsel %vm2411_vm5, %v3390_v54, -inf }
 0x4e4   : > { %v4101_v62 = vsel %vm2411_vm5, %v3388_v27, -inf  ;;  %v3327_v4 = vadd.f32 %v3109_v39, %v15623_v20  ;;  %v3120_v31 = vadd.f32 %v12361_v5, %v16017_v18  ;;  %13383 = vrot.lane.b32.xlu1 %v13382_v43, %s14023_s6  ;;  %v13387_v33 = vpack.i.bf16 %v3388_v27, %v3387_v38  ;;  %v19796_v5 = vld [vmem:[#allocation109_spill] sm:$0xff] }
 0x4e5   : > { %v4102_v22 = vmax.f32 %v4100_v58, %v4101_v62  ;;  %v3111_v36 = vpop.f32.mrf.mxu1  ;;  %v13392_v38 = vpack.i.bf16 %v19794_v49, %v15168_v55  ;;  %v3393_v32 = vmax.f32 %v3329_v3, 0.0 }
 0x4e6   : > { %v3391_v35 = vmax.f32 %v3327_v4, 0.0  ;;  %v3330_v34 = vadd.f32 %v3120_v31, %v15641_v60  ;;  %v3112_v30 = vadd.f32 %v16017_v18, %v3111_v36  ;;  %13388 = vrot.lane.b32.xlu0 %v13387_v33, %s14023_s6  ;;  %v19797_v31 = vld [vmem:[#allocation154_spill] sm:$0xff] }
 0x4e7   : > { %v4104_v52 = vmax.f32 %v4102_v22, %v4103_v2  ;;  %v12364_v20 = vpop.f32.mrf.mxu1  ;;  %v4111_v63 = vsel %vm2411_vm5, %v3393_v32, -inf  ;;  %v19798_v33 = vld [vmem:[#allocation106_spill] sm:$0xff]  ;;  %v19799_v2 = vld [vmem:[#allocation108_spill] sm:$0xff] }
 0x4e8   : > { %v3394_v24 = vmax.f32 %v3330_v34, 0.0  ;;  %v3328_v61 = vadd.f32 %v3112_v30, %v15627_v51  ;;  %v3133_v23 = vadd.f32 %v12364_v20, %v16017_v18  ;;  %13398 = vrot.lane.b32.xlu1 %v13397_v59, %s14021_s28  ;;  %v4107_v12 = vsel %vm2411_vm5, %v3391_v35, -inf }
 0x4e9   : > { %v4106_v60 = vmax.f32 %v4104_v52, %v4105_v46  ;;  %v3124_v50 = vpop.f32.mrf.mxu1 }
 0x4ea   : > { %v3392_v57 = vmax.f32 %v3328_v61, 0.0  ;;  %v3125_v13 = vadd.f32 %v16017_v18, %v3124_v50  ;;  %13393 = vrot.lane.b32.xlu0 %v13392_v38, %s14021_s28  ;;  %v13402_v51 = vpack.i.bf16 %v3394_v24, %v3393_v32  ;;  %v3333_v1 = vadd.f32 %v3133_v23, %v15656_v14  ;;  %v19800_v38 = vld [vmem:[#allocation156_spill] sm:$0xff] }
 0x4eb   : > { %v4108_v15 = vmax.f32 %v4106_v60, %v4107_v12  ;;  %v12365_v55 = vpop.f32.mrf.mxu1  ;;  %v4113_v62 = vsel %vm2411_vm5, %v3394_v24, -inf }
 0x4ec   : > { %v4109_v6 = vsel %vm2411_vm5, %v3392_v57, -inf  ;;  %v3331_v54 = vadd.f32 %v3125_v13, %v15648_v40  ;;  %v3136_v28 = vadd.f32 %v12365_v55, %v16017_v18  ;;  %13403 = vrot.lane.b32.xlu1 %v13402_v51, %s14023_s6  ;;  %v13407_v56 = vpack.i.bf16 %v3392_v57, %v3391_v35  ;;  %v19795_v40 = vld [vmem:[#allocation107_spill] sm:$0xff]  ;;  %v19801_v57 = vld [vmem:[#allocation157_spill] sm:$0xff] }
 0x4ed   : > { %v4110_v47 = vmax.f32 %v4108_v15, %v4109_v6  ;;  %v3127_v48 = vpop.f32.mrf.mxu1  ;;  %v13417_v43 = vpack.i.bf16 %v19796_v5, %v19795_v40  ;;  %v3397_v3 = vmax.f32 %v3333_v1, 0.0  ;;  %v13412_v35 = vpack.i.bf16 %v19799_v2, %v19798_v33  ;;  %v19802_v51 = vld [vmem:[#allocation111_spill] sm:$0xff]  ;;  %v19803_v6 = vld [vmem:[#allocation113_spill] sm:$0xff] }
 0x4ee   : > { %v3334_v44 = vadd.f32 %v3136_v28, %v15660_v0  ;;  %v3128_v27 = vadd.f32 %v16017_v18, %v3127_v48  ;;  %13408 = vrot.lane.b32.xlu0 %v13407_v56, %s14023_s6  ;;  %v3395_v14 = vmax.f32 %v3331_v54, 0.0  ;;  %v13437_v54 = vpack.i.bf16 %v19803_v6, %v19802_v51  ;;  %v19804_v1 = vld [vmem:[#allocation155_spill] sm:$0xff] }
 0x4ef   : > { %v4112_v39 = vmax.f32 %v4110_v47, %v4111_v63  ;;  %v12368_v58 = vpop.f32.mrf.mxu1  ;;  %v4124_v50 = vsel %vm2411_vm5, %v3397_v3, -inf }
 0x4f0   : > { %v3398_v4 = vmax.f32 %v3334_v44, 0.0  ;;  %v3332_v11 = vadd.f32 %v3128_v27, %v19797_v31  ;;  %v3149_v0 = vadd.f32 %v12368_v58, %v16017_v18  ;;  %13418 = vrot.lane.b32.xlu1 %v13417_v43, %s14021_s28  ;;  %v4121_v59 = vsel %vm2411_vm5, %v3395_v14, -inf  ;;  %v19806_v58 = vld [vmem:[#allocation112_spill] sm:$0xff] }
 0x4f1   : > { %v16106_v22 = vmax.f32 %v4112_v39, %v4113_v62  ;;  %v3140_v36 = vpop.f32.mrf.mxu1  ;;  %v19805_v39 = vld [vmem:[#allocation110_spill] sm:$0xff] }
 0x4f2   : > { %v3396_v34 = vmax.f32 %v3332_v11, 0.0  ;;  %v3141_v30 = vadd.f32 %v16017_v18, %v3140_v36  ;;  %13413 = vrot.lane.b32.xlu0 %v13412_v35, %s14021_s28  ;;  %v13422_v20 = vpack.i.bf16 %v3398_v4, %v3397_v3  ;;  %v3337_v32 = vadd.f32 %v3149_v0, %v19800_v38 }
 0x4f3   : > { %v12369_v52 = vpop.f32.mrf.mxu1  ;;  %v4126_v28 = vsel %vm2411_vm5, %v3398_v4, -inf  ;;  %v13432_v40 = vpack.i.bf16 %v19806_v58, %v19805_v39 }
 0x4f4   : > { %v4122_v46 = vsel %vm2411_vm5, %v3396_v34, -inf  ;;  %v3335_v24 = vadd.f32 %v3141_v30, %v15668_v17  ;;  %v3152_v61 = vadd.f32 %v12369_v52, %v16017_v18  ;;  %13423 = vrot.lane.b32.xlu1 %v13422_v20, %s14023_s6  ;;  %v13427_v23 = vpack.i.bf16 %v3396_v34, %v3395_v14  ;;  %v19807_v52 = vld [vmem:[#allocation159_spill] sm:$0xff] }
 0x4f5   : > { %v4123_v49 = vmax.f32 %v4121_v59, %v4122_v46  ;;  %v3143_v60 = vpop.f32.mrf.mxu1  ;;  %v3401_v56 = vmax.f32 %v3337_v32, 0.0  ;;  %v19810_v32 = vld [vmem:[#allocation158_spill] sm:$0xff] }
 0x4f6   : > { %v3399_v12 = vmax.f32 %v3335_v24, 0.0  ;;  %v3338_v13 = vadd.f32 %v3152_v61, %v19801_v57  ;;  %v3144_v15 = vadd.f32 %v16017_v18, %v3143_v60  ;;  %13428 = vrot.lane.b32.xlu0 %v13427_v23, %s14023_s6  ;;  %v19808_v24 = vld [vmem:[#allocation115_spill] sm:$0xff]  ;;  %v19809_v61 = vld [vmem:[#allocation117_spill] sm:$0xff] }
 0x4f7   : > { %v4125_v55 = vmax.f32 %v4123_v49, %v4124_v50  ;;  %v12372_v17 = vpop.f32.mrf.mxu1  ;;  %v4132_v34 = vsel %vm2411_vm5, %v3401_v56, -inf  ;;  %v13457_v49 = vpack.i.bf16 %v19809_v61, %v19808_v24 }
 0x4f8   : > { %v3402_v47 = vmax.f32 %v3338_v13, 0.0  ;;  %v3336_v48 = vadd.f32 %v3144_v15, %v19804_v1  ;;  %v3165_v44 = vadd.f32 %v12372_v17, %v16017_v18  ;;  %13438 = vrot.lane.b32.xlu1 %v13437_v54, %s14021_s28  ;;  %v4128_v5 = vsel %vm2411_vm5, %v3399_v12, -inf  ;;  %v19811_v13 = vld [vmem:[#allocation114_spill] sm:$0xff]  ;;  %v19812_v15 = vld [vmem:[#allocation116_spill] sm:$0xff] }
 0x4f9   : > { %v4127_v63 = vmax.f32 %v4125_v55, %v4126_v28  ;;  %v3156_v27 = vpop.f32.mrf.mxu1  ;;  %v13452_v55 = vpack.i.bf16 %v19812_v15, %v19811_v13  ;;  %v4115_v54 = vrot.slane %v16106_v22, 4 }
 0x4fa   : > { %v3400_v43 = vmax.f32 %v3336_v48, 0.0  ;;  %v3157_v62 = vadd.f32 %v16017_v18, %v3156_v27  ;;  %13433 = vrot.lane.b32.xlu0 %v13432_v40, %s14021_s28  ;;  %v13442_v31 = vpack.i.bf16 %v3402_v47, %v3401_v56  ;;  %v3341_v33 = vadd.f32 %v3165_v44, %v15703_v25 }
 0x4fb   : > { %v4129_v14 = vmax.f32 %v4127_v63, %v4128_v5  ;;  %v12373_v4 = vpop.f32.mrf.mxu1  ;;  %v4134_v25 = vsel %vm2411_vm5, %v3402_v47, -inf }
 0x4fc   : > { %v4130_v11 = vsel %vm2411_vm5, %v3400_v43, -inf  ;;  %v3339_v3 = vadd.f32 %v3157_v62, %v15689_v53  ;;  %v3168_v0 = vadd.f32 %v12373_v4, %v16017_v18  ;;  %13443 = vrot.lane.b32.xlu1 %v13442_v31, %s14023_s6  ;;  %v13447_v35 = vpack.i.bf16 %v3400_v43, %v3399_v12  ;;  %v19813_v43 = vld [vmem:[#allocation161_spill] sm:$0xff] }
 0x4fd   : > { %v4131_v36 = vmax.f32 %v4129_v14, %v4130_v11  ;;  %v3159_v2 = vpop.f32.mrf.mxu1  ;;  %v3405_v23 = vmax.f32 %v3341_v33, 0.0  ;;  %v4116_v4 = vmax.f32 %v16106_v22, %v4115_v54  ;;  %v19814_v11 = vld [vmem:[#allocation119_spill] sm:$0xff]  ;;  %v19816_v33 = vld [vmem:[#allocation160_spill] sm:$0xff]  ;;  %v19817_v22 = vld [vmem:[#allocation118_spill] sm:$0xff] }
 0x4fe   : > { %v3403_v30 = vmax.f32 %v3339_v3, 0.0  ;;  %v3342_v20 = vadd.f32 %v3168_v0, %v19807_v52  ;;  %v3160_v59 = vadd.f32 %v16017_v18, %v3159_v2  ;;  %13448 = vrot.lane.b32.xlu0 %v13447_v35, %s14023_s6  ;;  %v19815_v3 = vld [vmem:[#allocation121_spill] sm:$0xff]  ;;  %v19819_v54 = vld [vmem:[#allocation123_spill] sm:$0xff] }
 0x4ff   : > { %v4133_v46 = vmax.f32 %v4131_v36, %v4132_v34  ;;  %v12376_v53 = vpop.f32.mrf.mxu1  ;;  %v4140_v40 = vsel %vm2411_vm5, %v3405_v23, -inf  ;;  %v4117_v61 = vrot.slane %v4116_v4, 2 }
 0x500   : > { %v3406_v38 = vmax.f32 %v3342_v20, 0.0  ;;  %v3340_v60 = vadd.f32 %v3160_v59, %v19810_v32  ;;  %v3181_v12 = vadd.f32 %v12376_v53, %v16017_v18  ;;  %13458 = vrot.lane.b32.xlu1 %v13457_v49, %s14021_s28  ;;  %v4136_v17 = vsel %vm2411_vm5, %v3403_v30, -inf  ;;  %v19818_v20 = vld [vmem:[#allocation120_spill] sm:$0xff] }
 0x501   : > { %v4135_v50 = vmax.f32 %v4133_v46, %v4134_v25  ;;  %v3172_v57 = vpop.f32.mrf.mxu1  ;;  %v13472_v59 = vpack.i.bf16 %v19818_v20, %v19817_v22 }
 0x502   : > { %v3404_v51 = vmax.f32 %v3340_v60, 0.0  ;;  %v3173_v6 = vadd.f32 %v16017_v18, %v3172_v57  ;;  %13453 = vrot.lane.b32.xlu0 %v13452_v55, %s14021_s28  ;;  %v13462_v1 = vpack.i.bf16 %v3406_v38, %v3405_v23  ;;  %v3345_v27 = vadd.f32 %v3181_v12, %v15725_v8 }
 0x503   : > { %v4137_v28 = vmax.f32 %v4135_v50, %v4136_v17  ;;  %v12377_v47 = vpop.f32.mrf.mxu1  ;;  %v13477_v8 = vpack.i.bf16 %v19815_v3, %v19814_v11  ;;  %v4142_v0 = vsel %vm2411_vm5, %v3406_v38, -inf }
 0x504   : > { %v4138_v48 = vsel %vm2411_vm5, %v3404_v51, -inf  ;;  %v3343_v56 = vadd.f32 %v3173_v6, %v15711_v7  ;;  %v3184_v63 = vadd.f32 %v12377_v47, %v16017_v18  ;;  %13463 = vrot.lane.b32.xlu1 %v13462_v1, %s14023_s6  ;;  %v13467_v58 = vpack.i.bf16 %v3404_v51, %v3403_v30 }
 0x505   : > { %v4139_v44 = vmax.f32 %v4137_v28, %v4138_v48  ;;  %v3175_v39 = vpop.f32.mrf.mxu1  ;;  %v3409_v35 = vmax.f32 %v3345_v27, 0.0  ;;  %v4118_v51 = vmax.f32 %v4116_v4, %v4117_v61  ;;  %v19820_v28 = vld [vmem:[#allocation125_spill] sm:$0xff] }
 0x506   : > { %v3407_v5 = vmax.f32 %v3343_v56, 0.0  ;;  %v3346_v62 = vadd.f32 %v3184_v63, %v19813_v43  ;;  %v3176_v14 = vadd.f32 %v16017_v18, %v3175_v39  ;;  %13468 = vrot.lane.b32.xlu0 %v13467_v58, %s14023_s6  ;;  %v13497_v47 = vpack.i.bf16 %v19820_v28, %v19819_v54  ;;  %v19821_v56 = vld [vmem:[#allocation162_spill] sm:$0xff] }
 0x507   : > { %v4141_v31 = vmax.f32 %v4139_v44, %v4140_v40  ;;  %v12380_v7 = vpop.f32.mrf.mxu1  ;;  %v4148_v15 = vsel %vm2411_vm5, %v3409_v35, -inf  ;;  %v19822_v58 = vld [vmem:[#allocation122_spill] sm:$0xff]  ;;  %v19823_v40 = vld [vmem:[#allocation124_spill] sm:$0xff] }
 0x508   : > { %v3410_v36 = vmax.f32 %v3346_v62, 0.0  ;;  %v3344_v2 = vadd.f32 %v3176_v14, %v19816_v33  ;;  %v3197_v30 = vadd.f32 %v12380_v7, %v16017_v18  ;;  %13478 = vrot.lane.b32.xlu1 %v13477_v8, %s14021_s28  ;;  %v4144_v46 = vsel %vm2411_vm5, %v3407_v5, -inf  ;;  %v19824_v8 = vld [vmem:[#allocation163_spill] sm:$0xff] }
 0x509   : > { %v4143_v34 = vmax.f32 %v4141_v31, %v4142_v0  ;;  %v3188_v52 = vpop.f32.mrf.mxu1  ;;  %v4119_v14 = vrot.slane %v4118_v51, 1 }
 0x50a   : > { %v3408_v53 = vmax.f32 %v3344_v2, 0.0  ;;  %v3189_v24 = vadd.f32 %v16017_v18, %v3188_v52  ;;  %13473 = vrot.lane.b32.xlu0 %v13472_v59, %s14021_s28  ;;  %v13482_v38 = vpack.i.bf16 %v3410_v36, %v3409_v35  ;;  %v3349_v12 = vadd.f32 %v3197_v30, %v15744_v29  ;;  %v19825_v35 = vld [vmem:[#allocation165_spill] sm:$0xff]  ;;  %v19826_v59 = vld [vmem:[#allocation166_spill] sm:$0xff] }
 0x50b   : > { %v4145_v49 = vmax.f32 %v4143_v34, %v4144_v46  ;;  %v12381_v25 = vpop.f32.mrf.mxu1  ;;  %v4150_v29 = vsel %vm2411_vm5, %v3410_v36, -inf }
 0x50c   : > { %v4146_v32 = vsel %vm2411_vm5, %v3408_v53, -inf  ;;  %v3347_v60 = vadd.f32 %v3189_v24, %v15736_v16  ;;  %v3200_v23 = vadd.f32 %v12381_v25, %v16017_v18  ;;  %13483 = vrot.lane.b32.xlu1 %v13482_v38, %s14023_s6  ;;  %v13487_v13 = vpack.i.bf16 %v3408_v53, %v3407_v5  ;;  %v19827_v25 = vld [vmem:[#allocation127_spill] sm:$0xff]  ;;  %v19828_v38 = vld [vmem:[#allocation129_spill] sm:$0xff] }
 0x50d   : > { %v4147_v50 = vmax.f32 %v4145_v49, %v4146_v32  ;;  %v3191_v57 = vpop.f32.mrf.mxu1  ;;  %v3413_v27 = vmax.f32 %v3349_v12, 0.0  ;;  %v13492_v5 = vpack.i.bf16 %v19823_v40, %v19822_v58  ;;  %v13517_v32 = vpack.i.bf16 %v19828_v38, %v19827_v25 }
 0x50e   : > { %v3350_v55 = vadd.f32 %v3200_v23, %v15748_v9  ;;  %v3192_v17 = vadd.f32 %v16017_v18, %v3191_v57  ;;  %13488 = vrot.lane.b32.xlu0 %v13487_v13, %s14023_s6  ;;  %v3411_v1 = vmax.f32 %v3347_v60, 0.0  ;;  %v19829_v60 = vld [vmem:[#allocation126_spill] sm:$0xff]  ;;  %v19830_v23 = vld [vmem:[#allocation128_spill] sm:$0xff]  ;;  %v4120_v12 = vmax.f32 %v4118_v51, %v4119_v14 }
 0x50f   : > { %v4149_v6 = vmax.f32 %v4147_v50, %v4148_v15  ;;  %v12384_v16 = vpop.f32.mrf.mxu1  ;;  %v4161_v22 = vsel %vm2411_vm5, %v3413_v27, -inf  ;;  %v13512_v50 = vpack.i.bf16 %v19830_v23, %v19829_v60  ;;  %v19831_v15 = vld [vmem:[#allocation164_spill] sm:$0xff] }
 0x510   : > { %v3414_v48 = vmax.f32 %v3350_v55, 0.0  ;;  %v3348_v63 = vadd.f32 %v3192_v17, %v19821_v56  ;;  %v3213_v9 = vadd.f32 %v12384_v16, %v16017_v18  ;;  %13498 = vrot.lane.b32.xlu1 %v13497_v47, %s14021_s28  ;;  %v4158_v11 = vsel %vm2411_vm5, %v3411_v1, -inf }
 0x511   : > { %v4151_v44 = vmax.f32 %v4149_v6, %v4150_v29  ;;  %v3204_v39 = vpop.f32.mrf.mxu1 }
 0x512   : > { %v3412_v43 = vmax.f32 %v3348_v63, 0.0  ;;  %v3205_v62 = vadd.f32 %v16017_v18, %v3204_v39  ;;  %13493 = vrot.lane.b32.xlu0 %v13492_v5, %s14021_s28  ;;  %v13502_v7 = vpack.i.bf16 %v3414_v48, %v3413_v27  ;;  %v3353_v34 = vadd.f32 %v3213_v9, %v19825_v35  ;;  %v19832_v39 = vld [vmem:[#allocation167_spill] sm:$0xff] }
 0x513   : > { %v4152_v4 = vrot.slane %v4151_v44, 4  ;;  %v12385_v31 = vpop.f32.mrf.mxu1  ;;  %v4163_v57 = vsel %vm2411_vm5, %v3414_v48, -inf  ;;  %v4706_v27 = vpack.c.bf16 %v4120_v12, %v4120_v12 }
 0x514   : > { %v4159_v3 = vsel %vm2411_vm5, %v3412_v43, -inf  ;;  %v3351_v0 = vadd.f32 %v3205_v62, %v19824_v8  ;;  %v3216_v36 = vadd.f32 %v12385_v31, %v16017_v18  ;;  %13503 = vrot.lane.b32.xlu1 %v13502_v7, %s14023_s6  ;;  %v13507_v52 = vpack.i.bf16 %v3412_v43, %v3411_v1  ;;  %v19833_v62 = vld [vmem:[#allocation131_spill] sm:$0xff] }
 0x515   : > { %v4153_v33 = vmax.f32 %v4151_v44, %v4152_v4  ;;  %v4160_v2 = vmax.f32 %v4158_v11, %v4159_v3  ;;  %v3207_v30 = vpop.f32.mrf.mxu1  ;;  %v3417_v6 = vmax.f32 %v3353_v34, 0.0  ;;  %v13537_v44 = vpack.i.bf16 %v19769_v37, %v19767_v19  ;;  %v19834_v3 = vld [vmem:[#allocation133_spill] sm:$0xff] }
 0x516   : > { %v3415_v20 = vmax.f32 %v3351_v0, 0.0  ;;  %v3354_v46 = vadd.f32 %v3216_v36, %v19826_v59  ;;  %v3208_v53 = vadd.f32 %v16017_v18, %v3207_v30  ;;  %13508 = vrot.lane.b32.xlu0 %v13507_v52, %s14023_s6  ;;  %v4722_v34 = vunpack.c.l.b16 %v4706_v27 }
 0x517   : > { %v4154_v24 = vrot.slane %v4153_v33, 2  ;;  %v4162_v61 = vmax.f32 %v4160_v2, %v4161_v22  ;;  %v12388_v49 = vpop.f32.mrf.mxu1  ;;  %v4169_v7 = vsel %vm2411_vm5, %v3417_v6, -inf  ;;  %v19836_v2 = vld [vmem:[#allocation132_spill] sm:$0xff] }
 0x518   : > { %v3418_v13 = vmax.f32 %v3354_v46, 0.0  ;;  %v3352_v55 = vadd.f32 %v3208_v53, %v19831_v15  ;;  %v3229_v54 = vadd.f32 %v12388_v49, %v16017_v18  ;;  %13518 = vrot.lane.b32.xlu1 %v13517_v32, %s14021_s28  ;;  %v4165_v47 = vsel %vm2411_vm5, %v3415_v20, -inf  ;;  %v19837_v22 = vld [vmem:[#allocation168_spill] sm:$0xff] }
 0x519   : > { %v4155_v17 = vmax.f32 %v4153_v33, %v4154_v24  ;;  %v4164_v16 = vmax.f32 %v4162_v61, %v4163_v57  ;;  %v3220_v28 = vpop.f32.mrf.mxu1  ;;  %v19835_v33 = vld [vmem:[#allocation130_spill] sm:$0xff] }
 0x51a   : > { %v3416_v29 = vmax.f32 %v3352_v55, 0.0  ;;  %v3221_v1 = vadd.f32 %v16017_v18, %v3220_v28  ;;  %13513 = vrot.lane.b32.xlu0 %v13512_v50, %s14021_s28  ;;  %v13522_v63 = vpack.i.bf16 %v3418_v13, %v3417_v6  ;;  %v3357_v14 = vadd.f32 %v3229_v54, %v19833_v62  ;;  %v19839_v28 = vld [vmem:[#allocation171_spill] sm:$0xff] }
 0x51b   : > { %v4156_v56 = vrot.slane %v4155_v17, 1  ;;  %v4166_v51 = vmax.f32 %v4164_v16, %v4165_v47  ;;  %v12389_v48 = vpop.f32.mrf.mxu1  ;;  %v13532_v35 = vpack.i.bf16 %v19836_v2, %v19835_v33  ;;  %v4171_v30 = vsel %vm2411_vm5, %v3418_v13, -inf  ;;  %v19838_v16 = vld [vmem:[#allocation169_spill] sm:$0xff] }
 0x51c   : > { %v4167_v9 = vsel %vm2411_vm5, %v3416_v29, -inf  ;;  %v3355_v58 = vadd.f32 %v3221_v1, %v19832_v39  ;;  %v3232_v40 = vadd.f32 %v12389_v48, %v16017_v18  ;;  %13523 = vrot.lane.b32.xlu1 %v13522_v63, %s14023_s6  ;;  %v13527_v31 = vpack.i.bf16 %v3416_v29, %v3415_v20  ;;  %v19841_v48 = vld [vmem:[#allocation137_spill] sm:$0xff] }
 0x51d   : > { %v4157_v5 = vmax.f32 %v4155_v17, %v4156_v56  ;;  %v4168_v43 = vmax.f32 %v4166_v51, %v4167_v9  ;;  %v3223_v4 = vpop.f32.mrf.mxu1  ;;  %v3421_v46 = vmax.f32 %v3357_v14, 0.0  ;;  %v19840_v51 = vld [vmem:[#allocation135_spill] sm:$0xff] }
 0x51e   : > { %v3419_v11 = vmax.f32 %v3355_v58, 0.0  ;;  %v3358_v37 = vadd.f32 %v3232_v40, %v19834_v3  ;;  %v3224_v19 = vadd.f32 %v16017_v18, %v3223_v4  ;;  %13528 = vrot.lane.b32.xlu0 %v13527_v31, %s14023_s6  ;;  %v19843_v40 = vld [vmem:[#allocation134_spill] sm:$0xff] }
 0x51f   : > { %v4707_v8 = vpack.c.bf16 %v4157_v5, %v4157_v5  ;;  %v4170_v0 = vmax.f32 %v4168_v43, %v4169_v7  ;;  %v12392_v36 = vpop.f32.mrf.mxu1  ;;  %v4177_v6 = vsel %vm2411_vm5, %v3421_v46, -inf  ;;  %v19844_v5 = vld [vmem:[#allocation136_spill] sm:$0xff] }
 0x520   : > { %v3422_v52 = vmax.f32 %v3358_v37, 0.0  ;;  %v3356_v20 = vadd.f32 %v3224_v19, %v19837_v22  ;;  %v3245_v24 = vadd.f32 %v12392_v36, %v16017_v18  ;;  %13538 = vrot.lane.b32.xlu1 %v13537_v44, %s14021_s28  ;;  %v4173_v49 = vsel %vm2411_vm5, %v3419_v11, -inf  ;;  %v19842_v44 = vld [vmem:[#allocation170_spill] sm:$0xff] }
 0x521   : > { %v4723_v59 = vunpack.c.l.b16 %v4707_v8  ;;  %v4172_v53 = vmax.f32 %v4170_v0, %v4171_v30  ;;  %v3236_v61 = vpop.f32.mrf.mxu1  ;;  %v13552_v43 = vpack.i.bf16 %v19844_v5, %v19843_v40 }
 0x522   : > { %v3420_v25 = vmax.f32 %v3356_v20, 0.0  ;;  %v3237_v38 = vadd.f32 %v16017_v18, %v3236_v61  ;;  %13533 = vrot.lane.b32.xlu0 %v13532_v35, %s14021_s28  ;;  %v13542_v50 = vpack.i.bf16 %v3422_v52, %v3421_v46  ;;  %v3361_v15 = vadd.f32 %v3245_v24, %v15813_v21  ;;  %v19847_v61 = vld [vmem:[#allocation138_spill] sm:$0xff] }
 0x523   : > { %v16237_v32 = vsel %vm4726_vm7, %v4723_v59, %v4722_v34  ;;  %v4174_v60 = vmax.f32 %v4172_v53, %v4173_v49  ;;  %v12393_v23 = vpop.f32.mrf.mxu1  ;;  %v13557_v21 = vpack.i.bf16 %v19841_v48, %v19840_v51  ;;  %v4179_v62 = vsel %vm2411_vm5, %v3422_v52, -inf  ;;  %v19846_v59 = vld [vmem:[#allocation172_spill] sm:$0xff]  ;;  %v19851_v51 = vld [vmem:[#allocation175_spill] sm:$0xff] }
 0x524   : > { %v4175_v12 = vsel %vm2411_vm5, %v3420_v25, -inf  ;;  %v3248_v57 = vadd.f32 %v12393_v23, %v16017_v18  ;;  %13543 = vrot.lane.b32.xlu1 %v13542_v50, %s14023_s6  ;;  %v13547_v17 = vpack.i.bf16 %v3420_v25, %v3419_v11  ;;  %v3359_v54 = vadd.f32 %v3237_v38, %v19838_v16  ;;  %v19848_v49 = vld [vmem:[#allocation140_spill] sm:$0xff]  ;;  %v19850_v16 = vld [vmem:[#allocation174_spill] sm:$0xff] }
 0x525   : > { %v4176_v13 = vmax.f32 %v4174_v60, %v4175_v12  ;;  %v3239_v55 = vpop.f32.mrf.mxu1  ;;  %v3425_v9 = vmax.f32 %v3361_v15, 0.0  ;;  %v13572_v25 = vpack.i.bf16 %v19848_v49, %v19847_v61  ;;  %v19861_v49 = vld [vmem:[#allocation146_spill] sm:$0xff] }
 0x526   : > { %v16247_v47 = vadd.f32 %v3248_v57, %v19839_v28  ;;  %v3240_v29 = vadd.f32 %v16017_v18, %v3239_v55  ;;  %13548 = vrot.lane.b32.xlu0 %v13547_v17, %s14023_s6  ;;  %v3423_v14 = vmax.f32 %v3359_v54, 0.0 }
 0x527   : > { %v4178_v1 = vmax.f32 %v4176_v13, %v4177_v6  ;;  %v12396_v56 = vpop.f32.mrf.mxu1  ;;  %v19849_v13 = vld [vmem:[#allocation139_spill] sm:$0xff]  ;;  %v4185_v17 = vsel %vm2411_vm5, %v3425_v9, -inf }
 0x528   : > { %v3426_v63 = vmax.f32 %v16247_v47, 0.0  ;;  %v3360_v27 = vadd.f32 %v3240_v29, %v19842_v44  ;;  %v3261_v39 = vadd.f32 %v12396_v56, %v16017_v18  ;;  %13558 = vrot.lane.b32.xlu1 %v13557_v21, %s14021_s28  ;;  %v4181_v33 = vsel %vm2411_vm5, %v3423_v14, -inf  ;;  %v19858_v47 = vld [vmem:[#allocation147_spill] sm:$0xff] }
 0x529   : > { %v3252_v58 = vpop.f32.mrf.mxu1  ;;  %v4180_v7 = vmax.f32 %v4178_v1, %v4179_v62  ;;  %v19854_v62 = vld [vmem:[#allocation173_spill] sm:$0xff] }
 0x52a   : > { %v3424_v4 = vmax.f32 %v3360_v27, 0.0  ;;  %v3253_v31 = vadd.f32 %v16017_v18, %v3252_v58  ;;  %13553 = vrot.lane.b32.xlu0 %v13552_v43, %s14021_s28  ;;  %v13562_v3 = vpack.i.bf16 %v3426_v63, %v3425_v9  ;;  %v3365_v8 = vadd.f32 %v3261_v39, %v15832_v42  ;;  %v19852_v9 = vld [vmem:[#allocation143_spill] sm:$0xff]  ;;  %v19853_v58 = vld [vmem:[#allocation145_spill] sm:$0xff] }
 0x52b   : > { %v12397_v11 = vpop.f32.mrf.mxu1  ;;  %v4182_v34 = vmax.f32 %v4180_v7, %v4181_v33  ;;  %v13597_v40 = vpack.i.bf16 %v19853_v58, %v19852_v9 }
 0x52c   : > { %v3363_v37 = vadd.f32 %v3253_v31, %v15824_v10  ;;  %v3264_v19 = vadd.f32 %v12397_v11, %v16017_v18  ;;  %13563 = vrot.lane.b32.xlu1 %v13562_v3, %s14023_s6  ;;  %v13567_v36 = vpack.i.bf16 %v3424_v4, %v3423_v14  ;;  %v19845_v10 = vld [vmem:[#allocation141_spill] sm:$0xff]  ;;  %v4183_v22 = vsel %vm2411_vm5, %v3424_v4, -inf  ;;  %v19855_v3 = vld [vmem:[#allocation142_spill] sm:$0xff] }
 0x52d   : > { %v3255_v0 = vpop.f32.mrf.mxu1  ;;  %v13577_v52 = vpack.i.bf16 %v19845_v10, %v19780_v45  ;;  %v3429_v53 = vmax.f32 %v3365_v8, 0.0  ;;  %v4184_v23 = vmax.f32 %v4182_v34, %v4183_v22  ;;  %v4187_v8 = vsel %vm2411_vm5, %v3426_v63, -inf }
 0x52e   : > { %v3366_v2 = vadd.f32 %v3264_v19, %v15836_v26  ;;  %v3256_v35 = vadd.f32 %v16017_v18, %v3255_v0  ;;  %13568 = vrot.lane.b32.xlu0 %v13567_v36, %s14023_s6  ;;  %v3427_v42 = vmax.f32 %v3363_v37, 0.0  ;;  %v19856_v37 = vld [vmem:[#allocation144_spill] sm:$0xff] }
 0x52f   : > { %v12400_v30 = vpop.f32.mrf.mxu1  ;;  %v4198_v1 = vsel %vm2411_vm5, %v3429_v53, -inf  ;;  %v4186_v44 = vmax.f32 %v4184_v23, %v4185_v17  ;;  %v13592_v19 = vpack.i.bf16 %v19856_v37, %v19855_v3  ;;  %v19864_v17 = vld [vmem:[#allocation151_spill] sm:$0xff]  ;;  %v19869_v3 = vld [vmem:[#allocation44_spill] sm:$0xff] }
 0x530   : > { %v3430_v20 = vmax.f32 %v3366_v2, 0.0  ;;  %v3364_v46 = vadd.f32 %v3256_v35, %v19846_v59  ;;  %v3277_v24 = vadd.f32 %v12400_v30, %v16017_v18  ;;  %13578 = vrot.lane.b32.xlu1 %v13577_v52, %s14021_s28  ;;  %v4195_v12 = vsel %vm2411_vm5, %v3427_v42, -inf  ;;  %v19857_v52 = vld [vmem:[#allocation176_spill] sm:$0xff]  ;;  %v13334_v59 = vpop.permute.xlu0 %13333 }
 0x531   : > { %v3268_v26 = vpop.f32.mrf.mxu1  ;;  %v4188_v2 = vmax.f32 %v4186_v44, %v4187_v8  ;;  %v13335_v44 = vunpack.i.l.bf16 %v13334_v59  ;;  %v19870_v37 = vmax.f32 %v19869_v3, 0.0 }
 0x532   : > { %v3428_v38 = vmax.f32 %v3364_v46, 0.0  ;;  %v3269_v60 = vadd.f32 %v16017_v18, %v3268_v26  ;;  %13573 = vrot.lane.b32.xlu0 %v13572_v25, %s14021_s28  ;;  %v13582_v50 = vpack.i.bf16 %v3430_v20, %v3429_v53  ;;  %v3369_v54 = vadd.f32 %v3277_v24, %v19850_v16  ;;  %v19860_v53 = vld [vmem:[#allocation178_spill] sm:$0xff]  ;;  %v19862_v25 = vld [vmem:[#allocation148_spill] sm:$0xff] }
 0x533   : > { %v12401_v45 = vpop.f32.mrf.mxu1  ;;  %v4200_v5 = vsel %vm2411_vm5, %v3430_v20, -inf  ;;  %v19859_v20 = vld [vmem:[#allocation149_spill] sm:$0xff] }
 0x534   : > { %v4196_v57 = vsel %vm2411_vm5, %v3428_v38, -inf  ;;  %v3367_v15 = vadd.f32 %v3269_v60, %v19849_v13  ;;  %v3280_v55 = vadd.f32 %v12401_v45, %v16017_v18  ;;  %13583 = vrot.lane.b32.xlu1 %v13582_v50, %s14023_s6  ;;  %v13587_v29 = vpack.i.bf16 %v3428_v38, %v3427_v42  ;;  %v19863_v45 = vld [vmem:[#allocation179_spill] sm:$0xff] }
 0x535   : > { %v4197_v6 = vmax.f32 %v4195_v12, %v4196_v57  ;;  %v3271_v28 = vpop.f32.mrf.mxu1  ;;  %v3433_v4 = vmax.f32 %v3369_v54, 0.0  ;;  %v13617_v63 = vpack.i.bf16 %v19859_v20, %v19858_v47  ;;  %v13612_v38 = vpack.i.bf16 %v19862_v25, %v19861_v49  ;;  %v13339_v57 = vpop.permute.xlu1 %13338  ;;  %v19866_v54 = vld [vmem:[#allocation150_spill] sm:$0xff] }
 0x536   : > { %v3431_v56 = vmax.f32 %v3367_v15, 0.0  ;;  %v3370_v48 = vadd.f32 %v3280_v55, %v19851_v51  ;;  %v3272_v21 = vadd.f32 %v16017_v18, %v3271_v28  ;;  %13588 = vrot.lane.b32.xlu0 %v13587_v29, %s14023_s6  ;;  %v4189_v13 = vrot.slane %v4188_v2, 4  ;;  %v19867_v28 = vld [vmem:[#allocation152_spill] sm:$0xff] }
 0x537   : > { %v4199_v27 = vmax.f32 %v4197_v6, %v4198_v1  ;;  %v12404_v39 = vpop.f32.mrf.mxu1  ;;  %v4206_v60 = vsel %vm2411_vm5, %v3433_v4, -inf  ;;  %v19865_v6 = vld [vmem:[#allocation153_spill] sm:$0xff]  ;;  %v13632_v29 = vpack.i.bf16 %v19867_v28, %v19866_v54  ;;  %v13336_v1 = vunpack.i.h.bf16 %v13334_v59 }
 0x538   : > { %v3434_v43 = vmax.f32 %v3370_v48, 0.0  ;;  %v3368_v14 = vadd.f32 %v3272_v21, %v19854_v62  ;;  %v3293_v7 = vadd.f32 %v12404_v39, %v16017_v18  ;;  %13598 = vrot.lane.b32.xlu1 %v13597_v40, %s14021_s28  ;;  %v4202_v0 = vsel %vm2411_vm5, %v3431_v56, -inf  ;;  %v19868_v48 = vld [vmem:[#allocation177_spill] sm:$0xff] }
 0x539   : > { %v4201_v31 = vmax.f32 %v4199_v27, %v4200_v5  ;;  %v3284_v11 = vpop.f32.mrf.mxu1  ;;  %v13637_v16 = vpack.i.bf16 %v19865_v6, %v19864_v17  ;;  %v13341_v40 = vunpack.i.h.bf16 %v13339_v57 }
 0x53a   : > { %v3432_v36 = vmax.f32 %v3368_v14, 0.0  ;;  %v3285_v33 = vadd.f32 %v16017_v18, %v3284_v11  ;;  %13593 = vrot.lane.b32.xlu0 %v13592_v19, %s14021_s28  ;;  %v13602_v30 = vpack.i.bf16 %v3434_v43, %v3433_v4  ;;  %v3373_v24 = vadd.f32 %v3293_v7, %v19860_v53  ;;  %v19876_v53 = vld [vmem:[#allocation42_spill] sm:$0xff] }
 0x53b   : > { %v4203_v35 = vmax.f32 %v4201_v31, %v4202_v0  ;;  %v12405_v34 = vpop.f32.mrf.mxu1  ;;  %v13340_v4 = vunpack.i.l.bf16 %v13339_v57  ;;  %v4190_v31 = vmax.f32 %v4188_v2, %v4189_v13  ;;  %v3956_v19 = vsel %vm795_vm3, %v19870_v37, %v13336_v1  ;;  %v19871_v0 = vld [vmem:[#allocation180_spill] sm:$0xff] }
 0x53c   : > { %v4204_v10 = vsel %vm2411_vm5, %v3432_v36, -inf  ;;  %v3371_v22 = vadd.f32 %v3285_v33, %v19857_v52  ;;  %v3296_v42 = vadd.f32 %v12405_v34, %v16017_v18  ;;  %13603 = vrot.lane.b32.xlu1 %v13602_v30, %s14023_s6  ;;  %v13607_v61 = vpack.i.bf16 %v3432_v36, %v3431_v56  ;;  %v13923_v33 = vld [vmem:[%s19175_s2 + $0x5] ss:$0 sm:$0xff] }
 0x53d   : > { %v4205_v46 = vmax.f32 %v4203_v35, %v4204_v10  ;;  %v3287_v26 = vpop.f32.mrf.mxu1  ;;  %v4208_v56 = vsel %vm2411_vm5, %v3434_v43, -inf  ;;  %v3437_v27 = vmax.f32 %v3373_v24, 0.0  ;;  %v19872_v35 = vld [vmem:[#allocation41_spill] sm:$0xff]  ;;  %v19874_v10 = vld [vmem:[#allocation182_spill] sm:$0xff]  ;;  %v19877_v24 = vmax.f32 %v19876_v53, 0.0 }
 0x53e   : > { %v3435_v23 = vmax.f32 %v3371_v22, 0.0  ;;  %v3374_v50 = vadd.f32 %v3296_v42, %v19863_v45  ;;  %v3288_v12 = vadd.f32 %v16017_v18, %v3287_v26  ;;  %13608 = vrot.lane.b32.xlu0 %v13607_v61, %s14023_s6  ;;  %v19873_v2 = vmax.f32 %v19872_v35, 0.0  ;;  %v19878_v61 = vld [vmem:[#allocation43_spill] sm:$0xff] }
 0x53f   : > { %v4207_v15 = vmax.f32 %v4205_v46, %v4206_v60  ;;  %v12408_v55 = vpop.f32.mrf.mxu1  ;;  %v4214_v47 = vsel %vm2411_vm5, %v3437_v27, -inf  ;;  %v3958_v26 = vsel %vm795_vm3, %v19877_v24, %v13341_v40  ;;  %v19879_v49 = vmax.f32 %v19878_v61, 0.0 }
 0x540   : > { %v3438_v51 = vmax.f32 %v3374_v50, 0.0  ;;  %v3372_v21 = vadd.f32 %v3288_v12, %v19868_v48  ;;  %v3309_v9 = vadd.f32 %v12408_v55, %v16017_v18  ;;  %13618 = vrot.lane.b32.xlu1 %v13617_v63, %s14021_s28  ;;  %v4210_v5 = vsel %vm2411_vm5, %v3435_v23, -inf  ;;  %v19875_v63 = vld [vmem:[#allocation183_spill] sm:$0xff]  ;;  %v19880_v12 = vld [vmem:[#allocation181_spill] sm:$0xff] }
 0x541   : > { %v4209_v39 = vmax.f32 %v4207_v15, %v4208_v56  ;;  %v3300_v58 = vpop.f32.mrf.mxu1  ;;  %v3955_v34 = vsel %vm795_vm3, %v19873_v2, %v13335_v44  ;;  %v3957_v25 = vsel %vm795_vm3, %v19879_v49, %v13340_v4 }
 0x542   : > { %v3436_v62 = vmax.f32 %v3372_v21, 0.0  ;;  %v3301_v14 = vadd.f32 %v16017_v18, %v3300_v58  ;;  %13613 = vrot.lane.b32.xlu0 %v13612_v38, %s14021_s28  ;;  %v13622_v11 = vpack.i.bf16 %v3438_v51, %v3437_v27  ;;  %v3377_v52 = vadd.f32 %v3309_v9, %v19874_v10 }
 0x543   : > { %v4211_v43 = vmax.f32 %v4209_v39, %v4210_v5  ;;  %v12409_v7 = vpop.f32.mrf.mxu1  ;;  %v4191_v38 = vrot.slane %v4190_v31, 2 }
 0x544   : > { %v4212_v8 = vsel %vm2411_vm5, %v3436_v62, -inf  ;;  %v3375_v36 = vadd.f32 %v3301_v14, %v19871_v0  ;;  %v3312_v18 = vadd.f32 %v13923_v33, %v12409_v7  ;;  %13623 = vrot.lane.b32.xlu1 %v13622_v11, %s14023_s6  ;;  %v13627_v42 = vpack.i.bf16 %v3436_v62, %v3435_v23 }
 0x545   : > { %v4213_v30 = vmax.f32 %v4211_v43, %v4212_v8  ;;  %v3303_v22 = vpop.f32.mrf.mxu1  ;;  %v4216_v23 = vsel %vm2411_vm5, %v3438_v51, -inf  ;;  %v3441_v15 = vmax.f32 %v3377_v52, 0.0  ;;  %v4192_v56 = vmax.f32 %v4190_v31, %v4191_v38 }
 0x546   : > { %v3439_v20 = vmax.f32 %v3375_v36, 0.0  ;;  %v3378_v59 = vadd.f32 %v3312_v18, %v19875_v63  ;;  %v3304_v46 = vadd.f32 %v13923_v33, %v3303_v22  ;;  %v13344_v45 = vpop.permute.xlu1 %13343  ;;  %13628 = vrot.lane.b32.xlu0 %v13627_v42, %s14023_s6  ;;  %v19881_v18 = vld [vmem:[#allocation46_spill] sm:$0xff]  ;;  %v19885_v22 = vld [vmem:[#allocation48_spill] sm:$0xff] }
 0x547   : > { %v4215_v60 = vmax.f32 %v4213_v30, %v4214_v47  ;;  %v13346_v13 = vunpack.i.h.bf16 %v13344_v45  ;;  %v13345_v17 = vunpack.i.l.bf16 %v13344_v45  ;;  %v4222_v4 = vsel %vm2411_vm5, %v3441_v15, -inf  ;;  %v19883_v30 = vld [vmem:[#allocation47_spill] sm:$0xff] }
 0x548   : > { %v3442_v50 = vmax.f32 %v3378_v59, 0.0  ;;  %v3376_v57 = vadd.f32 %v3304_v46, %v19880_v12  ;;  %13638 = vrot.lane.b32.xlu1 %v13637_v16, %s14021_s28  ;;  %v13349_v6 = vpop.permute.xlu0 %13348  ;;  %v4218_v54 = vsel %vm2411_vm5, %v3439_v20, -inf  ;;  %v4193_v36 = vrot.slane %v4192_v56, 1  ;;  %v19887_v46 = vld [vmem:[#allocation45_spill] sm:$0xff] }
 0x549   : > { %v4217_v55 = vmax.f32 %v4215_v60, %v4216_v23  ;;  %v13351_v1 = vunpack.i.h.bf16 %v13349_v6  ;;  %v13350_v21 = vunpack.i.l.bf16 %v13349_v6  ;;  %v4023_v39 = vsel %vm4019_vm8, %v3958_v26, %v13346_v13 }
 0x54a   : > { %v3440_v28 = vmax.f32 %v3376_v57, 0.0  ;;  %v13359_v51 = vpop.permute.xlu1 %13358  ;;  %13633 = vrot.lane.b32.xlu0 %v13632_v29, %s14021_s28  ;;  %v13647_v44 = vpack.i.bf16 %v3442_v50, %v3441_v15  ;;  %v4022_v9 = vsel %vm4019_vm8, %v3957_v25, %v13345_v17  ;;  %v19882_v35 = vmax.f32 %v19881_v18, 0.0  ;;  %s179_s28 = sand.u32 1, %s14006_s13  }
 0x54b   : > { %v4219_v48 = vmax.f32 %v4217_v55, %v4218_v54  ;;  %v4021_v16 = vsel %vm4019_vm8, %v3956_v19, %v13351_v1  ;;  %v4020_v40 = vsel %vm4019_vm8, %v3955_v34, %v13350_v21  ;;  %v13361_v5 = vunpack.i.h.bf16 %v13359_v51  ;;  %s10870_s29 = sshll.u32 %s179_s28, 3  ;;  %s19131_s9 = scalar_lea.sflag [#allocation4], %s179_s28 }
 0x54c   : > { %v4220_v27 = vsel %vm2411_vm5, %v3440_v28, -inf  ;;  %13648 = vrot.lane.b32.xlu1 %v13647_v44, %s14023_s6  ;;  %v13354_v62 = vpop.permute.xlu0 %13353  ;;  %v13642_v14 = vpack.i.bf16 %v3440_v28, %v3439_v20  ;;  %v4232_v29 = vpack.c.bf16 %v4021_v16, %v4020_v40  ;;  %v13360_v31 = vunpack.i.l.bf16 %v13359_v51  ;;  %v19891_v16 = vld [vmem:[#allocation51_spill] sm:$0xff]  ;;  %s19112_s30 = scalar_lea.vmem [#allocation5], %s10870_s29 }
 0x54d   : > { %v4221_v58 = vmax.f32 %v4219_v48, %v4220_v27  ;;  %v13356_v43 = vunpack.i.h.bf16 %v13354_v62  ;;  %v4233_v11 = vpack.c.bf16 %v4023_v39, %v4022_v9  ;;  %v13355_v3 = vunpack.i.l.bf16 %v13354_v62  ;;  %s10790_s4 = sshll.u32 %s19112_s30, 4  ;;  %s19121_s4 = int_to_ptr.vmem [resolvable:$true] %s10790_s4 }
 0x54e   : > { %v13364_v37 = vpop.permute.xlu1 %13363  ;;  %13643 = vrot.lane.b32.xlu0 %v13642_v14, %s14023_s6  ;;  %v4224_v19 = vsel %vm2411_vm5, %v3442_v50, -inf  ;;  %12424 = vmatprep.mubr.msk.bf16.mxu0 %vm4320_vm9, %v4232_v29  ;;  %v3962_v2 = vsel %vm795_vm3, %v19882_v35, %v13361_v5  ;;  %v19884_v10 = vmax.f32 %v19883_v30, 0.0  ;;  %v19886_v42 = vmax.f32 %v19885_v22, 0.0  ;;  %v19893_v5 = vld [vmem:[#allocation52_spill] sm:$0xff]  ;;  %s13950_s10 = scalar_lea.vmem %s19121_s4, 128  ;;  %p13957_p11 = scmp.lt.s32.totalorder %s19121_s4, %s13955_s11 }
 0x54f   : > { %v4223_v7 = vmax.f32 %v4221_v58, %v4222_v4  ;;  %v13366_v8 = vunpack.i.h.bf16 %v13364_v37  ;;  %v13365_v0 = vunpack.i.l.bf16 %v13364_v37  ;;  %12425 = vmatmul.mubr.msk.bf16.vlgmr.msra.gmra.mxu0 %vm4320_vm9, %v4233_v11  ;;  %v19888_v53 = vmax.f32 %v19887_v46, 0.0  ;;  %v19895_v4 = vld [vmem:[#allocation49_spill] sm:$0xff]  ;;  %p13951_p8 = scmp.ne.s32.totalorder %s19121_s4, %s13950_s10  ;;  %p13958_p12 = scmp.lt.s32.totalorder %s13956_s17, %s13950_s10 }
 0x550   : > { %v13369_v34 = vpop.permute.xlu0 %13368  ;;  %v3961_v52 = vsel %vm795_vm3, %v19884_v10, %v13360_v31  ;;  %v3960_v47 = vsel %vm795_vm3, %v19886_v42, %v13356_v43  ;;  %v4194_v60 = vmax.f32 %v4192_v56, %v4193_v36  ;;  %v19889_v56 = vld [vmem:[#allocation50_spill] sm:$0xff]  ;;  %v19892_v58 = vmax.f32 %v19891_v16, 0.0 }
 0x551   : > { %v4225_v33 = vmax.f32 %v4223_v7, %v4224_v19  ;;  %v13371_v20 = vunpack.i.h.bf16 %v13369_v34  ;;  %v13370_v63 = vunpack.i.l.bf16 %v13369_v34  ;;  %v3959_v24 = vsel %vm795_vm3, %v19888_v53, %v13355_v3  ;;  %v19899_v53 = vld [vmem:[#allocation55_spill] sm:$0xff]  ;;  %p13952_p9 = pnand %p13951_p8, %p14086_p5  ;;  %p13959_p13 = por %p13958_p12, %p13957_p11 }
 0x552   : > { %v4027_v26 = vsel %vm4019_vm8, %v3962_v2, %v13366_v8  ;;  %v4026_v61 = vsel %vm4019_vm8, %v3961_v52, %v13365_v0  ;;  %v13379_v49 = vpop.permute.xlu1 %13378  ;;  %v4708_v1 = vpack.c.bf16 %v4194_v60, %v4194_v60  ;;  %v19890_v51 = vmax.f32 %v19889_v56, 0.0 }
 0x553   : > { %v4226_v59 = vrot.slane %v4225_v33, 4  ;;  %v4024_v25 = vsel %vm4019_vm8, %v3959_v24, %v13370_v63  ;;  %v4025_v38 = vsel %vm4019_vm8, %v3960_v47, %v13371_v20  ;;  %v4235_v12 = vpack.c.bf16 %v4027_v26, %v4026_v61  ;;  %v19897_v63 = vld [vmem:[#allocation54_spill] sm:$0xff]  ;;  %p13953_p10 = pneg %p13952_p9 }
 0x554   : > { %v4234_v23 = vpack.c.bf16 %v4025_v38, %v4024_v25  ;;  %v13374_v50 = vpop.permute.xlu0 %13373  ;;  %v13381_v57 = vunpack.i.h.bf16 %v13379_v49  ;;  %v13380_v15 = vunpack.i.l.bf16 %v13379_v49  ;;  %v19894_v62 = vmax.f32 %v19893_v5, 0.0  ;;  %v19901_v38 = vld [vmem:[#allocation56_spill] sm:$0xff] }
 0x555   : > { %v4227_v45 = vmax.f32 %v4225_v33, %v4226_v59  ;;  %v13376_v55 = vunpack.i.h.bf16 %v13374_v50  ;;  %v13375_v17 = vunpack.i.l.bf16 %v13374_v50  ;;  %v19896_v29 = vmax.f32 %v19895_v4, 0.0  ;;  %p13960_p0 = pnand %p13959_p13, %p13953_p10 }
 0x556   : > { %v13384_v6 = vpop.permute.xlu1 %13383  ;;  %12428 = vmatprep.mubr.msk.bf16.mxu0 %vm4320_vm9, %v4234_v23  ;;  %v3966_v44 = vsel %vm795_vm3, %v19890_v51, %v13381_v57  ;;  %v3965_v40 = vsel %vm795_vm3, %v19892_v58, %v13380_v15  ;;  %v4724_v19 = vunpack.c.l.b16 %v4708_v1  ;;  %v19898_v59 = vmax.f32 %v19897_v63, 0.0 }
 0x557   : > { %v4228_v13 = vrot.slane %v4227_v45, 2  ;;  %v13386_v54 = vunpack.i.h.bf16 %v13384_v6  ;;  %v13385_v28 = vunpack.i.l.bf16 %v13384_v6  ;;  %12429 = vmatmul.mubr.msk.bf16.gmra.mxu0 %vm4320_vm9, %v4235_v12  ;;  %v3964_v14 = vsel %vm795_vm3, %v19894_v62, %v13376_v55 }
 0x558   : > { %v13389_v21 = vpop.permute.xlu0 %13388  ;;  %v3963_v31 = vsel %vm795_vm3, %v19896_v29, %v13375_v17  ;;  %v4729_v42 = vsel %vm4728_vm10, %v4724_v19, %v16237_v32  ;;  %v19900_v24 = vmax.f32 %v19899_v53, 0.0  ;;  %v19902_v60 = vmax.f32 %v19901_v38, 0.0  ;;  %v19909_v29 = vld [vmem:[#allocation60_spill] sm:$0xff] }
 0x559   : > { %v4229_v48 = vmax.f32 %v4227_v45, %v4228_v13  ;;  %v13391_v27 = vunpack.i.h.bf16 %v13389_v21  ;;  %v13390_v39 = vunpack.i.l.bf16 %v13389_v21  ;;  %v4031_v7 = vsel %vm4019_vm8, %v3966_v44, %v13386_v54  ;;  %v19903_v45 = vld [vmem:[#allocation53_spill] sm:$0xff] }
 0x55a   : > { %v13399_v43 = vpop.permute.xlu1 %13398  ;;  %v4030_v11 = vsel %vm4019_vm8, %v3965_v40, %v13385_v28  ;;  %v19904_v23 = vmax.f32 %v19903_v45, 0.0  ;;  %v19907_v40 = vld [vmem:[#allocation59_spill] sm:$0xff] }
 0x55b   : > { %v4230_v9 = vrot.slane %v4229_v48, 1  ;;  %v4028_v3 = vsel %vm4019_vm8, %v3963_v31, %v13390_v39  ;;  %v4029_v37 = vsel %vm4019_vm8, %v3964_v14, %v13391_v27  ;;  %v13401_v33 = vunpack.i.h.bf16 %v13399_v43 }
 0x55c   : > { %v4236_v0 = vpack.c.bf16 %v4029_v37, %v4028_v3  ;;  %v13394_v36 = vpop.permute.xlu0 %13393  ;;  %v13400_v18 = vunpack.i.l.bf16 %v13399_v43  ;;  %v4237_v2 = vpack.c.bf16 %v4031_v7, %v4030_v11  ;;  %v19908_v5 = vmax.f32 %v19907_v40, 0.0  ;;  %v19911_v7 = vld [vmem:[#allocation57_spill] sm:$0xff] }
 0x55d   : > { %v4231_v8 = vmax.f32 %v4229_v48, %v4230_v9  ;;  %v13396_v34 = vunpack.i.h.bf16 %v13394_v36  ;;  %v13395_v30 = vunpack.i.l.bf16 %v13394_v36  ;;  %v3970_v46 = vsel %vm795_vm3, %v19898_v59, %v13401_v33  ;;  %v19905_v9 = vld [vmem:[#allocation58_spill] sm:$0xff] }
 0x55e   : > { %v13404_v10 = vpop.permute.xlu1 %13403  ;;  %12432 = vmatprep.mubr.msk.bf16.mxu0 %vm4320_vm9, %v4236_v0  ;;  %v3969_v26 = vsel %vm795_vm3, %v19900_v24, %v13400_v18  ;;  %v19906_v16 = vmax.f32 %v19905_v9, 0.0  ;;  %v19910_v31 = vmax.f32 %v19909_v29, 0.0  ;;  %v19912_v11 = vmax.f32 %v19911_v7, 0.0  ;;  %v19913_v59 = vld [vmem:[#allocation62_spill] sm:$0xff]  ;;  %v19915_v24 = vld [vmem:[#allocation63_spill] sm:$0xff]  ;;  %v19927_v29 = vld [vmem:[#allocation65_spill] sm:$0xff] }
 0x55f   : > { %v4709_v35 = vpack.c.bf16 %v4231_v8, %v4231_v8  ;;  %v13406_v52 = vunpack.i.h.bf16 %v13404_v10  ;;  %v13405_v22 = vunpack.i.l.bf16 %v13404_v10  ;;  %12433 = vmatmul.mubr.msk.bf16.gmra.mxu0 %vm4320_vm9, %v4237_v2  ;;  %v3968_v32 = vsel %vm795_vm3, %v19902_v60, %v13396_v34  ;;  %v19919_v60 = vld [vmem:[#allocation61_spill] sm:$0xff]  ;;  %v19923_v9 = vld [vmem:[#allocation67_spill] sm:$0xff] }
 0x560   : > { %v13409_v20 = vpop.permute.xlu0 %13408  ;;  %v3967_v50 = vsel %vm795_vm3, %v19904_v23, %v13395_v30 }
 0x561   : > { %v4725_v47 = vunpack.c.l.b16 %v4709_v35  ;;  %v13411_v61 = vunpack.i.h.bf16 %v13409_v20  ;;  %v13410_v49 = vunpack.i.l.bf16 %v13409_v20  ;;  %v4035_v12 = vsel %vm4019_vm8, %v3970_v46, %v13406_v52 }
 0x562   : > { %v13419_v57 = vpop.permute.xlu1 %13418  ;;  %v4034_v15 = vsel %vm4019_vm8, %v3969_v26, %v13405_v22  ;;  %v19914_v46 = vmax.f32 %v19913_v59, 0.0  ;;  %v19916_v26 = vmax.f32 %v19915_v24, 0.0  ;;  %v19931_v59 = vld [vmem:[#allocation71_spill] sm:$0xff]  ;;  %v19933_v24 = vld [vmem:[#allocation72_spill] sm:$0xff] }
 0x563   : > { %v4731_v25 = vsel %vm4730_vm11, %v4725_v47, %v4729_v42  ;;  %v4032_v55 = vsel %vm4019_vm8, %v3967_v50, %v13410_v49  ;;  %v4033_v17 = vsel %vm4019_vm8, %v3968_v32, %v13411_v61  ;;  %v13421_v28 = vunpack.i.h.bf16 %v13419_v57  ;;  %v19917_v49 = vld [vmem:[#allocation64_spill] sm:$0xff] }
 0x564   : > { %v4732_v13 = vpack.c.b16 %v4731_v25, %v4731_v25  ;;  %v4238_v6 = vpack.c.bf16 %v4033_v17, %v4032_v55  ;;  %v13414_v54 = vpop.permute.xlu0 %13413  ;;  %v13420_v1 = vunpack.i.l.bf16 %v13419_v57  ;;  %v4239_v48 = vpack.c.bf16 %v4035_v12, %v4034_v15 }
 0x565   : > { %v13416_v21 = vunpack.i.h.bf16 %v13414_v54  ;;  %v13415_v56 = vunpack.i.l.bf16 %v13414_v54  ;;  %v3974_v58 = vsel %vm795_vm3, %v19906_v16, %v13421_v28  ;;  %v19918_v25 = vmax.f32 %v19917_v49, 0.0  ;;  %v19935_v49 = vld [vmem:[#allocation69_spill] sm:$0xff] }
 0x566   : > { %12497 = vmatmul.mubr.msk.bf16.vlgmr.msra.gmra.mxu1 %vm2411_vm5, %v4732_v13  ;;  %v13424_v51 = vpop.permute.xlu1 %13423  ;;  %12436 = vmatprep.mubr.msk.bf16.mxu0 %vm4320_vm9, %v4238_v6  ;;  %v3973_v62 = vsel %vm795_vm3, %v19908_v5, %v13420_v1  ;;  %v19920_v32 = vmax.f32 %v19919_v60, 0.0  ;;  %v19924_v16 = vmax.f32 %v19923_v9, 0.0 }
 0x567   : > { %v13426_v44 = vunpack.i.h.bf16 %v13424_v51  ;;  %v13425_v27 = vunpack.i.l.bf16 %v13424_v51  ;;  %12437 = vmatmul.mubr.msk.bf16.gmra.mxu0 %vm4320_vm9, %v4239_v48  ;;  %v3972_v43 = vsel %vm795_vm3, %v19910_v31, %v13416_v21  ;;  %v3971_v3 = vsel %vm795_vm3, %v19912_v11, %v13415_v56 }
 0x568   : > { %v13429_v39 = vpop.permute.xlu0 %13428  ;;  %v19928_v31 = vmax.f32 %v19927_v29, 0.0 }
 0x569   : > { %v13431_v14 = vunpack.i.h.bf16 %v13429_v39  ;;  %v13430_v4 = vunpack.i.l.bf16 %v13429_v39  ;;  %v4039_v37 = vsel %vm4019_vm8, %v3974_v58, %v13426_v44  ;;  %v4038_v19 = vsel %vm4019_vm8, %v3973_v62, %v13425_v27  ;;  %v19921_v44 = vld [vmem:[#allocation66_spill] sm:$0xff]  ;;  %v19925_v62 = vld [vmem:[#allocation68_spill] sm:$0xff] }
 0x56a   : > { %v13439_v8 = vpop.permute.xlu1 %13438  ;;  %v4241_v35 = vpack.c.bf16 %v4039_v37, %v4038_v19  ;;  %v19922_v27 = vmax.f32 %v19921_v44, 0.0  ;;  %v19939_v44 = vld [vmem:[#allocation75_spill] sm:$0xff] }
 0x56b   : > { %v4036_v0 = vsel %vm4019_vm8, %v3971_v3, %v13430_v4  ;;  %v4037_v36 = vsel %vm4019_vm8, %v3972_v43, %v13431_v14  ;;  %v13441_v2 = vunpack.i.h.bf16 %v13439_v8  ;;  %v13440_v34 = vunpack.i.l.bf16 %v13439_v8 }
 0x56c   : > { %v4240_v33 = vpack.c.bf16 %v4037_v36, %v4036_v0  ;;  %v13434_v18 = vpop.permute.xlu0 %13433  ;;  %v19926_v14 = vmax.f32 %v19925_v62, 0.0  ;;  %v19943_v62 = vld [vmem:[#allocation73_spill] sm:$0xff] }
 0x56d   : > { %v13436_v30 = vunpack.i.h.bf16 %v13434_v18  ;;  %v13435_v10 = vunpack.i.l.bf16 %v13434_v18  ;;  %v3978_v53 = vsel %vm795_vm3, %v19914_v46, %v13441_v2  ;;  %v3977_v61 = vsel %vm795_vm3, %v19916_v26, %v13440_v34 }
 0x56e   : > { %v13444_v52 = vpop.permute.xlu1 %13443  ;;  %12440 = vmatprep.mubr.msk.bf16.mxu0 %vm4320_vm9, %v4240_v33  ;;  %v19932_v46 = vmax.f32 %v19931_v59, 0.0  ;;  %v19934_v26 = vmax.f32 %v19933_v24, 0.0  ;;  %v19949_v59 = vld [vmem:[#allocation80_spill] sm:$0xff]  ;;  %v19951_v24 = vld [vmem:[#allocation77_spill] sm:$0xff] }
 0x56f   : > { %v13446_v22 = vunpack.i.h.bf16 %v13444_v52  ;;  %v13445_v42 = vunpack.i.l.bf16 %v13444_v52  ;;  %12441 = vmatmul.mubr.msk.bf16.gmra.mxu0 %vm4320_vm9, %v4241_v35  ;;  %v3976_v38 = vsel %vm795_vm3, %v19918_v25, %v13436_v30  ;;  %v3975_v45 = vsel %vm795_vm3, %v19920_v32, %v13435_v10 }
 0x570   : > { %v13449_v47 = vpop.permute.xlu0 %13448  ;;  %v19936_v25 = vmax.f32 %v19935_v49, 0.0 }
 0x571   : > { %v13451_v20 = vunpack.i.h.bf16 %v13449_v47  ;;  %v13450_v63 = vunpack.i.l.bf16 %v13449_v47  ;;  %v4043_v50 = vsel %vm4019_vm8, %v3978_v53, %v13446_v22  ;;  %v4042_v12 = vsel %vm4019_vm8, %v3977_v61, %v13445_v42  ;;  %v19929_v47 = vld [vmem:[#allocation70_spill] sm:$0xff] }
 0x572   : > { %v13459_v23 = vpop.permute.xlu1 %13458  ;;  %v4243_v54 = vpack.c.bf16 %v4043_v50, %v4042_v12 }
 0x573   : > { %v4040_v57 = vsel %vm4019_vm8, %v3975_v45, %v13450_v63  ;;  %v4041_v13 = vsel %vm4019_vm8, %v3976_v38, %v13451_v20  ;;  %v13461_v17 = vunpack.i.h.bf16 %v13459_v23  ;;  %v13460_v6 = vunpack.i.l.bf16 %v13459_v23 }
 0x574   : > { %v4242_v15 = vpack.c.bf16 %v4041_v13, %v4040_v57  ;;  %v13454_v55 = vpop.permute.xlu0 %13453  ;;  %v19930_v20 = vmax.f32 %v19929_v47, 0.0  ;;  %v19947_v47 = vld [vmem:[#allocation79_spill] sm:$0xff] }
 0x575   : > { %v13456_v28 = vunpack.i.h.bf16 %v13454_v55  ;;  %v13455_v1 = vunpack.i.l.bf16 %v13454_v55  ;;  %v3982_v39 = vsel %vm795_vm3, %v19922_v27, %v13461_v17  ;;  %v3981_v58 = vsel %vm795_vm3, %v19924_v16, %v13460_v6 }
 0x576   : > { %v13464_v48 = vpop.permute.xlu1 %13463  ;;  %12444 = vmatprep.mubr.msk.bf16.mxu0 %vm4320_vm9, %v4242_v15  ;;  %v19940_v27 = vmax.f32 %v19939_v44, 0.0 }
 0x577   : > { %v13466_v21 = vunpack.i.h.bf16 %v13464_v48  ;;  %v13465_v56 = vunpack.i.l.bf16 %v13464_v48  ;;  %12445 = vmatmul.mubr.msk.bf16.gmra.mxu0 %vm4320_vm9, %v4243_v54  ;;  %v3980_v4 = vsel %vm795_vm3, %v19926_v14, %v13456_v28  ;;  %v3979_v43 = vsel %vm795_vm3, %v19928_v31, %v13455_v1 }
 0x578   : > { %v13469_v51 = vpop.permute.xlu0 %13468  ;;  %v19944_v14 = vmax.f32 %v19943_v62, 0.0 }
 0x579   : > { %v13471_v40 = vunpack.i.h.bf16 %v13469_v51  ;;  %v13470_v5 = vunpack.i.l.bf16 %v13469_v51  ;;  %v4047_v7 = vsel %vm4019_vm8, %v3982_v39, %v13466_v21  ;;  %v4046_v11 = vsel %vm4019_vm8, %v3981_v58, %v13465_v56  ;;  %v19937_v21 = vld [vmem:[#allocation74_spill] sm:$0xff]  ;;  %v19941_v58 = vld [vmem:[#allocation76_spill] sm:$0xff] }
 0x57a   : > { %v13479_v3 = vpop.permute.xlu1 %13478  ;;  %v4245_v36 = vpack.c.bf16 %v4047_v7, %v4046_v11  ;;  %v19938_v56 = vmax.f32 %v19937_v21, 0.0 }
 0x57b   : > { %v4044_v37 = vsel %vm4019_vm8, %v3979_v43, %v13470_v5  ;;  %v4045_v19 = vsel %vm4019_vm8, %v3980_v4, %v13471_v40  ;;  %v13481_v33 = vunpack.i.h.bf16 %v13479_v3  ;;  %v13480_v18 = vunpack.i.l.bf16 %v13479_v3 }
 0x57c   : > { %v4244_v8 = vpack.c.bf16 %v4045_v19, %v4044_v37  ;;  %v13474_v0 = vpop.permute.xlu0 %13473  ;;  %v19942_v40 = vmax.f32 %v19941_v58, 0.0 }
 0x57d   : > { %v13476_v35 = vunpack.i.h.bf16 %v13474_v0  ;;  %v13475_v2 = vunpack.i.l.bf16 %v13474_v0  ;;  %v3986_v63 = vsel %vm795_vm3, %v19930_v20, %v13481_v33  ;;  %v3985_v53 = vsel %vm795_vm3, %v19932_v46, %v13480_v18 }
 0x57e   : > { %v13484_v34 = vpop.permute.xlu1 %13483  ;;  %12448 = vmatprep.mubr.msk.bf16.mxu0 %vm4320_vm9, %v4244_v8  ;;  %v19948_v20 = vmax.f32 %v19947_v47, 0.0  ;;  %v19950_v46 = vmax.f32 %v19949_v59, 0.0  ;;  %v19963_v47 = vld [vmem:[#allocation87_spill] sm:$0xff]  ;;  %v19965_v59 = vld [vmem:[#allocation88_spill] sm:$0xff] }
 0x57f   : > { %v13486_v30 = vunpack.i.h.bf16 %v13484_v34  ;;  %v13485_v10 = vunpack.i.l.bf16 %v13484_v34  ;;  %12449 = vmatmul.mubr.msk.bf16.gmra.mxu0 %vm4320_vm9, %v4245_v36  ;;  %v3984_v61 = vsel %vm795_vm3, %v19934_v26, %v13476_v35  ;;  %v3983_v38 = vsel %vm795_vm3, %v19936_v25, %v13475_v2 }
 0x580   : > { %v13489_v52 = vpop.permute.xlu0 %13488  ;;  %v19952_v26 = vmax.f32 %v19951_v24, 0.0  ;;  %v19967_v24 = vld [vmem:[#allocation85_spill] sm:$0xff] }
 0x581   : > { %v13491_v22 = vunpack.i.h.bf16 %v13489_v52  ;;  %v13490_v42 = vunpack.i.l.bf16 %v13489_v52  ;;  %v4051_v32 = vsel %vm4019_vm8, %v3986_v63, %v13486_v30  ;;  %v4050_v45 = vsel %vm4019_vm8, %v3985_v53, %v13485_v10  ;;  %v19945_v52 = vld [vmem:[#allocation78_spill] sm:$0xff] }
 0x582   : > { %v13499_v60 = vpop.permute.xlu1 %13498  ;;  %v4247_v55 = vpack.c.bf16 %v4051_v32, %v4050_v45 }
 0x583   : > { %v4048_v23 = vsel %vm4019_vm8, %v3983_v38, %v13490_v42  ;;  %v4049_v50 = vsel %vm4019_vm8, %v3984_v61, %v13491_v22  ;;  %v13501_v13 = vunpack.i.h.bf16 %v13499_v60  ;;  %v13500_v15 = vunpack.i.l.bf16 %v13499_v60 }
 0x584   : > { %v4246_v12 = vpack.c.bf16 %v4049_v50, %v4048_v23  ;;  %v13494_v57 = vpop.permute.xlu0 %13493  ;;  %v19946_v22 = vmax.f32 %v19945_v52, 0.0  ;;  %v19961_v52 = vld [vmem:[#allocation86_spill] sm:$0xff] }
 0x585   : > { %v13496_v17 = vunpack.i.h.bf16 %v13494_v57  ;;  %v13495_v6 = vunpack.i.l.bf16 %v13494_v57  ;;  %v3990_v51 = vsel %vm795_vm3, %v19938_v56, %v13501_v13  ;;  %v3989_v39 = vsel %vm795_vm3, %v19940_v27, %v13500_v15  ;;  %v19955_v56 = vld [vmem:[#allocation83_spill] sm:$0xff] }
 0x586   : > { %v13504_v54 = vpop.permute.xlu1 %13503  ;;  %12452 = vmatprep.mubr.msk.bf16.mxu0 %vm4320_vm9, %v4246_v12 }
 0x587   : > { %v13506_v28 = vunpack.i.h.bf16 %v13504_v54  ;;  %v13505_v1 = vunpack.i.l.bf16 %v13504_v54  ;;  %12453 = vmatmul.mubr.msk.bf16.gmra.mxu0 %vm4320_vm9, %v4247_v55  ;;  %v3988_v5 = vsel %vm795_vm3, %v19942_v40, %v13496_v17  ;;  %v3987_v4 = vsel %vm795_vm3, %v19944_v14, %v13495_v6  ;;  %v13675_v17 = vld [vmem:[#allocation2 + $0x118] sm:$0xff]   ;;  %v19959_v40 = vld [vmem:[#allocation81_spill] sm:$0xff] }
 0x588   : > { %v13509_v48 = vpop.permute.xlu0 %13508  ;;  %12500 = vmatprep.subr.bf16.mxu1 %v13675_v17 }
 0x589   : > { %v13511_v9 = vunpack.i.h.bf16 %v13509_v48  ;;  %v13510_v16 = vunpack.i.l.bf16 %v13509_v48  ;;  %v4055_v29 = vsel %vm4019_vm8, %v3990_v51, %v13506_v28  ;;  %v4054_v31 = vsel %vm4019_vm8, %v3989_v39, %v13505_v1  ;;  %v19953_v1 = vld [vmem:[#allocation82_spill] sm:$0xff]  ;;  %12501 = vmatpush3.bf16.msra.mxu1 %v13675_v17 }
 0x58a   : > { %v13519_v43 = vpop.permute.xlu1 %13518  ;;  %v4249_v19 = vpack.c.bf16 %v4055_v29, %v4054_v31  ;;  %v19954_v48 = vmax.f32 %v19953_v1, 0.0  ;;  %v19956_v51 = vmax.f32 %v19955_v56, 0.0  ;;  %v13676_v31 = vld [vmem:[#allocation2 + $0x110] sm:$0xff]   ;;  %v13679_v1 = vld [vmem:[#allocation2 + $0xf8] sm:$0xff]  }
 0x58b   : > { %v4052_v7 = vsel %vm4019_vm8, %v3987_v4, %v13510_v16  ;;  %v4053_v11 = vsel %vm4019_vm8, %v3988_v5, %v13511_v9  ;;  %v13521_v8 = vunpack.i.h.bf16 %v13519_v43  ;;  %v13520_v0 = vunpack.i.l.bf16 %v13519_v43  ;;  %v19957_v9 = vld [vmem:[#allocation84_spill] sm:$0xff]  ;;  %12502 = vmatprep.subr.bf16.mxu1 %v13676_v31 }
 0x58c   : > { %v4248_v3 = vpack.c.bf16 %v4053_v11, %v4052_v7  ;;  %v13514_v37 = vpop.permute.xlu0 %13513  ;;  %v19958_v16 = vmax.f32 %v19957_v9, 0.0  ;;  %v19960_v5 = vmax.f32 %v19959_v40, 0.0 }
 0x58d   : > { %v13516_v36 = vunpack.i.h.bf16 %v13514_v37  ;;  %v13515_v33 = vunpack.i.l.bf16 %v13514_v37  ;;  %v3994_v42 = vsel %vm795_vm3, %v19946_v22, %v13521_v8  ;;  %v3993_v63 = vsel %vm795_vm3, %v19948_v20, %v13520_v0  ;;  %12503 = vmatpush3.bf16.msra.mxu1 %v13676_v31 }
 0x58e   : > { %v13524_v18 = vpop.permute.xlu1 %13523  ;;  %12456 = vmatprep.mubr.msk.bf16.mxu0 %vm4320_vm9, %v4248_v3  ;;  %v19962_v22 = vmax.f32 %v19961_v52, 0.0  ;;  %v19964_v20 = vmax.f32 %v19963_v47, 0.0  ;;  %v19977_v52 = vld [vmem:[#allocation94_spill] sm:$0xff]  ;;  %v19979_v47 = vld [vmem:[#allocation95_spill] sm:$0xff] }
 0x58f   : > { %v13526_v35 = vunpack.i.h.bf16 %v13524_v18  ;;  %v13525_v2 = vunpack.i.l.bf16 %v13524_v18  ;;  %12457 = vmatmul.mubr.msk.bf16.gmra.mxu0 %vm4320_vm9, %v4249_v19  ;;  %v3992_v53 = vsel %vm795_vm3, %v19950_v46, %v13516_v36  ;;  %v3991_v61 = vsel %vm795_vm3, %v19952_v26, %v13515_v33  ;;  %v13677_v18 = vld [vmem:[#allocation2 + $0x108] sm:$0xff]  }
 0x590   : > { %v13529_v34 = vpop.permute.xlu0 %13528  ;;  %12504 = vmatprep.subr.bf16.mxu1 %v13677_v18  ;;  %v19966_v46 = vmax.f32 %v19965_v59, 0.0  ;;  %v19968_v26 = vmax.f32 %v19967_v24, 0.0  ;;  %v19981_v59 = vld [vmem:[#allocation96_spill] sm:$0xff]  ;;  %v19983_v24 = vld [vmem:[#allocation93_spill] sm:$0xff] }
 0x591   : > { %v13531_v30 = vunpack.i.h.bf16 %v13529_v34  ;;  %v13530_v10 = vunpack.i.l.bf16 %v13529_v34  ;;  %v4059_v25 = vsel %vm4019_vm8, %v3994_v42, %v13526_v35  ;;  %v4058_v38 = vsel %vm4019_vm8, %v3993_v63, %v13525_v2  ;;  %12505 = vmatpush3.bf16.msra.mxu1 %v13677_v18  ;;  %v13680_v18 = vld [vmem:[#allocation2 + $0xf0] sm:$0xff]  }
 0x592   : > { %v13539_v49 = vpop.permute.xlu1 %13538  ;;  %v4251_v57 = vpack.c.bf16 %v4059_v25, %v4058_v38  ;;  %v13678_v25 = vld [vmem:[#allocation2 + $0x100] sm:$0xff]  }
 0x593   : > { %v4056_v60 = vsel %vm4019_vm8, %v3991_v61, %v13530_v10  ;;  %v4057_v32 = vsel %vm4019_vm8, %v3992_v53, %v13531_v30  ;;  %v13541_v50 = vunpack.i.h.bf16 %v13539_v49  ;;  %v13540_v12 = vunpack.i.l.bf16 %v13539_v49  ;;  %12506 = vmatprep.subr.bf16.mxu1 %v13678_v25 }
 0x594   : > { %v4250_v45 = vpack.c.bf16 %v4057_v32, %v4056_v60  ;;  %v13534_v23 = vpop.permute.xlu0 %13533 }
 0x595   : > { %v13536_v13 = vunpack.i.h.bf16 %v13534_v23  ;;  %v13535_v15 = vunpack.i.l.bf16 %v13534_v23  ;;  %v3998_v21 = vsel %vm795_vm3, %v19954_v48, %v13541_v50  ;;  %v3997_v44 = vsel %vm795_vm3, %v19956_v51, %v13540_v12  ;;  %12507 = vmatpush3.bf16.msra.mxu1 %v13678_v25  ;;  %v19969_v48 = vld [vmem:[#allocation90_spill] sm:$0xff]  ;;  %v19971_v51 = vld [vmem:[#allocation91_spill] sm:$0xff] }
 0x596   : > { %v13544_v55 = vpop.permute.xlu1 %13543  ;;  %12460 = vmatprep.mubr.msk.bf16.mxu0 %vm4320_vm9, %v4250_v45  ;;  %12508 = vmatprep.subr.bf16.mxu1 %v13679_v1 }
 0x597   : > { %v13546_v6 = vunpack.i.h.bf16 %v13544_v55  ;;  %v13545_v54 = vunpack.i.l.bf16 %v13544_v55  ;;  %12461 = vmatmul.mubr.msk.bf16.gmra.mxu0 %vm4320_vm9, %v4251_v57  ;;  %v3996_v58 = vsel %vm795_vm3, %v19958_v16, %v13536_v13  ;;  %v3995_v62 = vsel %vm795_vm3, %v19960_v5, %v13535_v15  ;;  %v19973_v16 = vld [vmem:[#allocation92_spill] sm:$0xff]  ;;  %v19975_v5 = vld [vmem:[#allocation89_spill] sm:$0xff] }
 0x598   : > { %v13549_v28 = vpop.permute.xlu0 %13548 }
 0x599   : > { %v13551_v27 = vunpack.i.h.bf16 %v13549_v28  ;;  %v13550_v39 = vunpack.i.l.bf16 %v13549_v28  ;;  %v4063_v14 = vsel %vm4019_vm8, %v3998_v21, %v13546_v6  ;;  %v4062_v4 = vsel %vm4019_vm8, %v3997_v44, %v13545_v54  ;;  %12509 = vmatpush3.bf16.msra.mxu1 %v13679_v1  ;;  %v19985_v1 = vld [vmem:[#allocation100_spill] sm:$0xff] }
 0x59a   : > { %v13559_v29 = vpop.permute.xlu1 %13558  ;;  %v4253_v37 = vpack.c.bf16 %v4063_v14, %v4062_v4  ;;  %v19970_v21 = vmax.f32 %v19969_v48, 0.0  ;;  %v19972_v44 = vmax.f32 %v19971_v51, 0.0  ;;  %12510 = vmatprep.subr.bf16.mxu1 %v13680_v18  ;;  %v19986_v48 = vmax.f32 %v19985_v1, 0.0 }
 0x59b   : > { %v4060_v43 = vsel %vm4019_vm8, %v3995_v62, %v13550_v39  ;;  %v4061_v7 = vsel %vm4019_vm8, %v3996_v58, %v13551_v27  ;;  %v13561_v19 = vunpack.i.h.bf16 %v13559_v29  ;;  %v13560_v8 = vunpack.i.l.bf16 %v13559_v29 }
 0x59c   : > { %v4252_v11 = vpack.c.bf16 %v4061_v7, %v4060_v43  ;;  %v13554_v3 = vpop.permute.xlu0 %13553  ;;  %v19974_v58 = vmax.f32 %v19973_v16, 0.0  ;;  %v19976_v62 = vmax.f32 %v19975_v5, 0.0 }
 0x59d   : > { %v13556_v0 = vunpack.i.h.bf16 %v13554_v3  ;;  %v13555_v36 = vunpack.i.l.bf16 %v13554_v3  ;;  %v4002_v42 = vsel %vm795_vm3, %v19962_v22, %v13561_v19  ;;  %v4001_v63 = vsel %vm795_vm3, %v19964_v20, %v13560_v8  ;;  %12511 = vmatpush3.bf16.msra.mxu1 %v13680_v18 }
 0x59e   : > { %v13564_v33 = vpop.permute.xlu1 %13563  ;;  %12464 = vmatprep.mubr.msk.bf16.mxu0 %vm4320_vm9, %v4252_v11  ;;  %v19978_v22 = vmax.f32 %v19977_v52, 0.0  ;;  %v19980_v20 = vmax.f32 %v19979_v47, 0.0 }
 0x59f   : > { %v13566_v35 = vunpack.i.h.bf16 %v13564_v33  ;;  %v13565_v2 = vunpack.i.l.bf16 %v13564_v33  ;;  %12465 = vmatmul.mubr.msk.bf16.gmra.mxu0 %vm4320_vm9, %v4253_v37  ;;  %v4000_v53 = vsel %vm795_vm3, %v19966_v46, %v13556_v0  ;;  %v3999_v61 = vsel %vm795_vm3, %v19968_v26, %v13555_v36 }
 0x5a0   : > { %v13569_v34 = vpop.permute.xlu0 %13568  ;;  %v19982_v46 = vmax.f32 %v19981_v59, 0.0  ;;  %v19984_v26 = vmax.f32 %v19983_v24, 0.0 }
 0x5a1   : > { %v13571_v30 = vunpack.i.h.bf16 %v13569_v34  ;;  %v13570_v10 = vunpack.i.l.bf16 %v13569_v34  ;;  %v4067_v38 = vsel %vm4019_vm8, %v4002_v42, %v13566_v35  ;;  %v4066_v60 = vsel %vm4019_vm8, %v4001_v63, %v13565_v2 }
 0x5a2   : > { %v13579_v49 = vpop.permute.xlu1 %13578  ;;  %v4255_v13 = vpack.c.bf16 %v4067_v38, %v4066_v60 }
 0x5a3   : > { %v4064_v32 = vsel %vm4019_vm8, %v3999_v61, %v13570_v10  ;;  %v4065_v45 = vsel %vm4019_vm8, %v4000_v53, %v13571_v30  ;;  %v13581_v12 = vunpack.i.h.bf16 %v13579_v49  ;;  %v13580_v57 = vunpack.i.l.bf16 %v13579_v49 }
 0x5a4   : > { %v4254_v23 = vpack.c.bf16 %v4065_v45, %v4064_v32  ;;  %v13574_v50 = vpop.permute.xlu0 %13573 }
 0x5a5   : > { %v13576_v15 = vunpack.i.h.bf16 %v13574_v50  ;;  %v13575_v55 = vunpack.i.l.bf16 %v13574_v50  ;;  %v4006_v56 = vsel %vm795_vm3, %v19970_v21, %v13581_v12  ;;  %v4005_v27 = vsel %vm795_vm3, %v19972_v44, %v13580_v57 }
 0x5a6   : > { %v13584_v17 = vpop.permute.xlu1 %13583  ;;  %12468 = vmatprep.mubr.msk.bf16.mxu0 %vm4320_vm9, %v4254_v23 }
 0x5a7   : > { %v13586_v6 = vunpack.i.h.bf16 %v13584_v17  ;;  %v13585_v54 = vunpack.i.l.bf16 %v13584_v17  ;;  %12469 = vmatmul.mubr.msk.bf16.gmra.mxu0 %vm4320_vm9, %v4255_v13  ;;  %v4004_v40 = vsel %vm795_vm3, %v19974_v58, %v13576_v15  ;;  %v4003_v14 = vsel %vm795_vm3, %v19976_v62, %v13575_v55  ;;  %v13681_v17 = vld [vmem:[#allocation2 + $0xe8] sm:$0xff]  }
 0x5a8   : > { %v13589_v28 = vpop.permute.xlu0 %13588  ;;  %12512 = vmatprep.subr.bf16.mxu1 %v13681_v17 }
 0x5a9   : > { %v13591_v39 = vunpack.i.h.bf16 %v13589_v28  ;;  %v13590_v9 = vunpack.i.l.bf16 %v13589_v28  ;;  %v4071_v4 = vsel %vm4019_vm8, %v4006_v56, %v13586_v6  ;;  %v4070_v29 = vsel %vm4019_vm8, %v4005_v27, %v13585_v54  ;;  %v19987_v56 = vld [vmem:[#allocation101_spill] sm:$0xff]  ;;  %12513 = vmatpush3.bf16.msra.mxu1 %v13681_v17 }
 0x5aa   : > { %v13599_v31 = vpop.permute.xlu1 %13598  ;;  %v4257_v37 = vpack.c.bf16 %v4071_v4, %v4070_v29  ;;  %v19988_v51 = vmax.f32 %v19987_v56, 0.0  ;;  %v4804_v17 = vlaneseq }
 0x5ab   : > { %v4068_v43 = vsel %vm4019_vm8, %v4003_v14, %v13590_v9  ;;  %v4069_v7 = vsel %vm4019_vm8, %v4004_v40, %v13591_v39  ;;  %v13601_v19 = vunpack.i.h.bf16 %v13599_v31  ;;  %v13600_v8 = vunpack.i.l.bf16 %v13599_v31  ;;  %v19989_v9 = vld [vmem:[#allocation102_spill] sm:$0xff]  ;;  %v19991_v40 = vld [vmem:[#allocation99_spill] sm:$0xff]  ;;  %v13682_v31 = vld [vmem:[#allocation2 + $0xe0] sm:$0xff]  }
 0x5ac   : > { %v4256_v11 = vpack.c.bf16 %v4069_v7, %v4068_v43  ;;  %v13594_v3 = vpop.permute.xlu0 %13593  ;;  %v19990_v16 = vmax.f32 %v19989_v9, 0.0  ;;  %v19992_v5 = vmax.f32 %v19991_v40, 0.0  ;;  %12514 = vmatprep.subr.bf16.mxu1 %v13682_v31  ;;  %v4805_v1 = vshrl.u32 %v4804_v17, 7 }
 0x5ad   : > { %v13596_v0 = vunpack.i.h.bf16 %v13594_v3  ;;  %v13595_v36 = vunpack.i.l.bf16 %v13594_v3  ;;  %v4010_v42 = vsel %vm795_vm3, %v19978_v22, %v13601_v19  ;;  %v4009_v63 = vsel %vm795_vm3, %v19980_v20, %v13600_v8  ;;  %12515 = vmatpush3.bf16.msra.mxu1 %v13682_v31 }
 0x5ae   : > { %v13604_v33 = vpop.permute.xlu1 %13603  ;;  %12472 = vmatprep.mubr.msk.bf16.mxu0 %vm4320_vm9, %v4256_v11  ;;  %12600 = vmatprep.subr.bf16.mxu1 %v19438_v41  ;;  %v16649_v9 = vsub.s32 0, %v4805_v1 }
 0x5af   : > { %v13606_v35 = vunpack.i.h.bf16 %v13604_v33  ;;  %v13605_v2 = vunpack.i.l.bf16 %v13604_v33  ;;  %12473 = vmatmul.mubr.msk.bf16.gmra.mxu0 %vm4320_vm9, %v4257_v37  ;;  %v4008_v53 = vsel %vm795_vm3, %v19982_v46, %v13596_v0  ;;  %v4007_v61 = vsel %vm795_vm3, %v19984_v26, %v13595_v36 }
 0x5b0   : > { %v13609_v34 = vpop.permute.xlu0 %13608  ;;  %20002 = vst [vmem:[#allocation107_spill] sm:$0xff] %v16649_v9 }
 0x5b1   : > { %v13611_v30 = vunpack.i.h.bf16 %v13609_v34  ;;  %v13610_v10 = vunpack.i.l.bf16 %v13609_v34  ;;  %v4075_v25 = vsel %vm4019_vm8, %v4010_v42, %v13606_v35  ;;  %v4074_v38 = vsel %vm4019_vm8, %v4009_v63, %v13605_v2  ;;  %v19995_v42 = vld [vmem:[#allocation103_spill] sm:$0xff]  ;;  %v19997_v63 = vld [vmem:[#allocation98_spill] sm:$0xff] }
 0x5b2   : > { %v13619_v49 = vpop.permute.xlu1 %13618  ;;  %v4259_v57 = vpack.c.bf16 %v4075_v25, %v4074_v38  ;;  %v19996_v47 = vmax.f32 %v19995_v42, 0.0  ;;  %v19998_v59 = vmax.f32 %v19997_v63, 0.0 }
 0x5b3   : > { %v4072_v60 = vsel %vm4019_vm8, %v4007_v61, %v13610_v10  ;;  %v4073_v32 = vsel %vm4019_vm8, %v4008_v53, %v13611_v30  ;;  %v13621_v50 = vunpack.i.h.bf16 %v13619_v49  ;;  %v13620_v12 = vunpack.i.l.bf16 %v13619_v49  ;;  %v19993_v10 = vld [vmem:[#allocation104_spill] sm:$0xff]  ;;  %v19999_v53 = vld [vmem:[#allocation97_spill] sm:$0xff] }
 0x5b4   : > { %v4258_v45 = vpack.c.bf16 %v4073_v32, %v4072_v60  ;;  %v13614_v23 = vpop.permute.xlu0 %13613  ;;  %v19994_v52 = vmax.f32 %v19993_v10, 0.0  ;;  %v20000_v24 = vmax.f32 %v19999_v53, 0.0 }
 0x5b5   : > { %v13616_v13 = vunpack.i.h.bf16 %v13614_v23  ;;  %v13615_v15 = vunpack.i.l.bf16 %v13614_v23  ;;  %v4014_v21 = vsel %vm795_vm3, %v19986_v48, %v13621_v50  ;;  %v4013_v44 = vsel %vm795_vm3, %v19988_v51, %v13620_v12 }
 0x5b6   : > { %v13624_v55 = vpop.permute.xlu1 %13623  ;;  %12476 = vmatprep.mubr.msk.bf16.mxu0 %vm4320_vm9, %v4258_v45 }
 0x5b7   : > { %v13626_v6 = vunpack.i.h.bf16 %v13624_v55  ;;  %v13625_v54 = vunpack.i.l.bf16 %v13624_v55  ;;  %12477 = vmatmul.mubr.msk.bf16.gmra.mxu0 %vm4320_vm9, %v4259_v57  ;;  %v4012_v58 = vsel %vm795_vm3, %v19990_v16, %v13616_v13  ;;  %v4011_v62 = vsel %vm795_vm3, %v19992_v5, %v13615_v15 }
 0x5b8   : > { %v13629_v28 = vpop.permute.xlu0 %13628  ;;  %v14025_v15 = vmov 1966171168  }
 0x5b9   : > { %v13631_v27 = vunpack.i.h.bf16 %v13629_v28  ;;  %v13630_v39 = vunpack.i.l.bf16 %v13629_v28  ;;  %v4079_v14 = vsel %vm4019_vm8, %v4014_v21, %v13626_v6  ;;  %v4078_v4 = vsel %vm4019_vm8, %v4013_v44, %v13625_v54 }
 0x5ba   : > { %v13639_v29 = vpop.permute.xlu1 %13638  ;;  %v4261_v37 = vpack.c.bf16 %v4079_v14, %v4078_v4  ;;  %v4802_v55 = vunpack.c.l.s4 %v14025_v15 }
 0x5bb   : > { %v4076_v43 = vsel %vm4019_vm8, %v4011_v62, %v13630_v39  ;;  %v4077_v7 = vsel %vm4019_vm8, %v4012_v58, %v13631_v27  ;;  %v13641_v19 = vunpack.i.h.bf16 %v13639_v29  ;;  %v13640_v8 = vunpack.i.l.bf16 %v13639_v29 }
 0x5bc   : > { %v4260_v11 = vpack.c.bf16 %v4077_v7, %v4076_v43  ;;  %v13634_v3 = vpop.permute.xlu0 %13633  ;;  %v4803_v28 = vunpack.c.0.s8 %v4802_v55  ;;  %v16668_v7 = vld [vmem:[%s19175_s2 + $0x6] ss:$0 sm:$0xff] }
 0x5bd   : > { %v13636_v0 = vunpack.i.h.bf16 %v13634_v3  ;;  %v13635_v36 = vunpack.i.l.bf16 %v13634_v3  ;;  %v4018_v22 = vsel %vm795_vm3, %v19994_v52, %v13641_v19  ;;  %v4017_v20 = vsel %vm795_vm3, %v19996_v47, %v13640_v8 }
 0x5be   : > { %v13649_v33 = vpop.permute.xlu1 %13648  ;;  %12480 = vmatprep.mubr.msk.bf16.mxu0 %vm4320_vm9, %v4260_v11  ;;  %v16644_v56 = vsub.s32 %v4803_v28, %v4805_v1 }
 0x5bf   : > { %v13651_v18 = vunpack.i.h.bf16 %v13649_v33  ;;  %v13650_v35 = vunpack.i.l.bf16 %v13649_v33  ;;  %12481 = vmatmul.mubr.msk.bf16.gmra.mxu0 %vm4320_vm9, %v4261_v37  ;;  %v4016_v46 = vsel %vm795_vm3, %v19998_v59, %v13636_v0  ;;  %v4015_v26 = vsel %vm795_vm3, %v20000_v24, %v13635_v36 }
 0x5c0   : > { %v13644_v2 = vpop.permute.xlu0 %13643  ;;  %20001 = vst [vmem:[#allocation105_spill] sm:$0xff] %v16644_v56 }
 0x5c1   : > { %v13646_v34 = vunpack.i.h.bf16 %v13644_v2  ;;  %v13645_v30 = vunpack.i.l.bf16 %v13644_v2  ;;  %v4083_v61 = vsel %vm4019_vm8, %v4018_v22, %v13651_v18  ;;  %v4082_v49 = vsel %vm4019_vm8, %v4017_v20, %v13650_v35 }
 0x5c2   : > { %v4263_v32 = vpack.c.bf16 %v4083_v61, %v4082_v49 }
 0x5c3   : > { %v4080_v25 = vsel %vm4019_vm8, %v4015_v26, %v13645_v30  ;;  %v4081_v38 = vsel %vm4019_vm8, %v4016_v46, %v13646_v34 }
 0x5c4   : > { %v4262_v60 = vpack.c.bf16 %v4081_v38, %v4080_v25 }
 0x5c6   : > { %12484 = vmatprep.mubr.msk.bf16.mxu0 %vm4320_vm9, %v4262_v60 }
 0x5c7   : > { %12485 = vmatmul.mubr.msk.bf16.gmra.mxu0 %vm4320_vm9, %v4263_v32 }
 0x60f   : > { %v12426_v45 = vpop.f32.mrf.mxu0 }
 0x611   : > { %v4451_v23 = vpop.f32.mrf.mxu0 }
 0x613   : > { %v12427_v50 = vpop.f32.mrf.mxu0 }
 0x615   : > { %v4454_v12 = vpop.f32.mrf.mxu0 }
 0x617   : > { %v12430_v57 = vpop.f32.mrf.mxu0 }
 0x619   : > { %v4467_v13 = vpop.f32.mrf.mxu0 }
 0x61b   : > { %v12431_v6 = vpop.f32.mrf.mxu0 }
 0x61d   : > { %v4470_v54 = vpop.f32.mrf.mxu0 }
 0x61f   : > { %v12434_v48 = vpop.f32.mrf.mxu0 }
 0x621   : > { %v4483_v21 = vpop.f32.mrf.mxu0 }
 0x623   : > { %v12435_v51 = vpop.f32.mrf.mxu0 }
 0x625   : > { %v4486_v27 = vpop.f32.mrf.mxu0 }
 0x626   : > { %v4794_v44 = vpop.f32.mrf.mxu1 }
 0x627   : > { %v16647_v39 = vrot.slane %v4794_v44, %v16644_v56  ;;  %v16655_v40 = vpop.f32.mrf.mxu0 }
 0x628   : > { %v12498_v16 = vpop.f32.mrf.mxu1 }
 0x629   : > { %v16653_v58 = vrot.slane %v16647_v39, %v16644_v56  ;;  %v4499_v14 = vpop.f32.mrf.mxu0 }
 0x62a   : > { %v4797_v5 = vpop.f32.mrf.mxu1 }
 0x62b   : > { %v16659_v62 = vrot.slane %v16653_v58, %v16649_v9  ;;  %v16661_v29 = vpop.f32.mrf.mxu0 }
 0x62c   : > { %v12499_v4 = vpop.f32.mrf.mxu1 }
 0x62d   : > { %v4845_v31 = vadd.f32 %v16659_v62, %v4451_v23  ;;  %v4846_v43 = vadd.f32 %v16659_v62, %v4454_v12  ;;  %v4502_v11 = vpop.f32.mrf.mxu0  ;;  %v4847_v3 = vadd.f32 %v12426_v45, %v16659_v62  ;;  %v4848_v37 = vadd.f32 %v12427_v50, %v16659_v62 }
 0x62e   : > { %v4849_v8 = vadd.f32 %v16659_v62, %v4467_v13  ;;  %v4850_v0 = vadd.f32 %v16659_v62, %v4470_v54  ;;  %v4851_v47 = vadd.f32 %v12430_v57, %v16659_v62  ;;  %v4852_v20 = vadd.f32 %v12431_v6, %v16659_v62 }
 0x62f   : > { %v16672_v19 = vpop.f32.mrf.mxu0  ;;  %v4914_v36 = vadd.f32 %v16668_v7, %v4845_v31  ;;  %v4915_v33 = vadd.f32 %v16668_v7, %v4846_v43  ;;  %v4916_v35 = vadd.f32 %v16668_v7, %v4847_v3  ;;  %v4917_v2 = vadd.f32 %v16668_v7, %v4848_v37 }
 0x630   : > { %v4918_v30 = vadd.f32 %v16668_v7, %v4849_v8  ;;  %v4919_v10 = vadd.f32 %v16668_v7, %v4850_v0  ;;  %v4853_v46 = vadd.f32 %v16659_v62, %v4483_v21  ;;  %v4854_v53 = vadd.f32 %v16659_v62, %v4486_v27 }
 0x631   : > { %v4515_v18 = vpop.f32.mrf.mxu0  ;;  %v16684_v52 = vmax.f32 %v4914_v36, 0.0  ;;  %v16686_v22 = vmax.f32 %v4915_v33, 0.0  ;;  %v16690_v63 = vmax.f32 %v4916_v35, 0.0  ;;  %v16692_v59 = vmax.f32 %v4917_v2, 0.0 }
 0x632   : > { %v16698_v26 = vmax.f32 %v4918_v30, 0.0  ;;  %v16700_v61 = vmax.f32 %v4919_v10, 0.0  ;;  %v4920_v38 = vadd.f32 %v16668_v7, %v4851_v47  ;;  %v4921_v60 = vadd.f32 %v16668_v7, %v4852_v20 }
 0x633   : > { %v16680_v34 = vpop.f32.mrf.mxu0  ;;  %20003 = vst [vmem:[#allocation109_spill] sm:$0xff] %v16684_v52  ;;  %20004 = vst [vmem:[#allocation154_spill] sm:$0xff] %v16686_v22  ;;  %v5042_v49 = vpack.c.bf16 %v16686_v22, %v16684_v52  ;;  %v5043_v32 = vpack.c.bf16 %v16692_v59, %v16690_v63  ;;  %v4922_v45 = vadd.f32 %v16668_v7, %v4853_v46 }
 0x634   : > { %20005 = vst [vmem:[#allocation106_spill] sm:$0xff] %v16690_v63  ;;  %20006 = vst [vmem:[#allocation108_spill] sm:$0xff] %v16692_v59  ;;  %v4923_v23 = vadd.f32 %v16668_v7, %v4854_v53  ;;  %v5044_v12 = vpack.c.bf16 %v16700_v61, %v16698_v26  ;;  %v4808_v57 = vcombine.high %v16647_v39, %v16647_v39  ;;  %v16720_v17 = vmax.f32 %v4920_v38, 0.0 }
 0x635   : > { %v4518_v42 = vpop.f32.mrf.mxu0  ;;  %20007 = vst [vmem:[#allocation156_spill] sm:$0xff] %v16698_v26  ;;  %20008 = vst [vmem:[#allocation157_spill] sm:$0xff] %v16700_v61  ;;  %12516 = vmatprep.mubr.bf16.mxu1 %v5042_v49  ;;  %v4855_v15 = vadd.f32 %v12434_v48, %v16659_v62  ;;  %v4856_v55 = vadd.f32 %v12435_v51, %v16659_v62  ;;  %v16722_v6 = vmax.f32 %v4921_v60, 0.0  ;;  %v16725_v28 = vmax.f32 %v4922_v45, 0.0 }
 0x636   : > { %12517 = vmatmul.mubr.bf16.vlgmr.msra.gmra.mxu1 %v5043_v32  ;;  %20009 = vst [vmem:[#allocation111_spill] sm:$0xff] %v16720_v17  ;;  %v4857_v54 = vadd.f32 %v16659_v62, %v4499_v14  ;;  %v16727_v1 = vmax.f32 %v4923_v23, 0.0  ;;  %v4858_v21 = vadd.f32 %v16659_v62, %v4502_v11  ;;  %v16733_v27 = vrot.slane %v4808_v57, %v16644_v56 }
 0x637   : > { %v16696_v24 = vpop.f32.mrf.mxu0  ;;  %20010 = vst [vmem:[#allocation113_spill] sm:$0xff] %v16722_v6  ;;  %12520 = vmatprep.mubr.bf16.mxu1 %v5044_v12  ;;  %20011 = vst [vmem:[#allocation155_spill] sm:$0xff] %v16725_v28  ;;  %v4924_v51 = vadd.f32 %v16668_v7, %v4855_v15  ;;  %v4925_v39 = vadd.f32 %v16668_v7, %v4856_v55  ;;  %v5045_v16 = vpack.c.bf16 %v16722_v6, %v16720_v17 }
 0x638   : > { %20012 = vst [vmem:[#allocation110_spill] sm:$0xff] %v16727_v1  ;;  %v4926_v5 = vadd.f32 %v16668_v7, %v4857_v54  ;;  %v4927_v14 = vadd.f32 %v16668_v7, %v4858_v21  ;;  %v5046_v4 = vpack.c.bf16 %v16727_v1, %v16725_v28  ;;  %v16747_v43 = vrot.slane %v16733_v27, %v16649_v9 }
 0x639   : > { %v16704_v25 = vpop.f32.mrf.mxu0  ;;  %v4859_v3 = vadd.f32 %v16655_v40, %v16659_v62  ;;  %v16751_v37 = vmax.f32 %v4924_v51, 0.0  ;;  %v16753_v8 = vmax.f32 %v4925_v39, 0.0  ;;  %v4860_v0 = vadd.f32 %v16661_v29, %v16659_v62 }
 0x63a   : > { %v16757_v36 = vmax.f32 %v4926_v5, 0.0  ;;  %v16759_v33 = vmax.f32 %v4927_v14, 0.0  ;;  %v4862_v35 = vadd.f32 %v16747_v43, %v4518_v42  ;;  %v4861_v30 = vadd.f32 %v16747_v43, %v4515_v18 }
 0x63b   : > { %v16712_v50 = vpop.f32.mrf.mxu0  ;;  %20013 = vst [vmem:[#allocation112_spill] sm:$0xff] %v16751_v37  ;;  %20014 = vst [vmem:[#allocation159_spill] sm:$0xff] %v16753_v8  ;;  %v4928_v40 = vadd.f32 %v16668_v7, %v4859_v3  ;;  %v4929_v47 = vadd.f32 %v16668_v7, %v4860_v0  ;;  %v5047_v20 = vpack.c.bf16 %v16753_v8, %v16751_v37 }
 0x63c   : > { %20015 = vst [vmem:[#allocation115_spill] sm:$0xff] %v16757_v36  ;;  %20016 = vst [vmem:[#allocation117_spill] sm:$0xff] %v16759_v33  ;;  %v4931_v62 = vadd.f32 %v16668_v7, %v4862_v35  ;;  %v5048_v29 = vpack.c.bf16 %v16759_v33, %v16757_v36  ;;  %v4930_v42 = vadd.f32 %v16668_v7, %v4861_v30 }
 0x63d   : > { %v4534_v13 = vpop.f32.mrf.mxu0  ;;  %v16775_v53 = vmax.f32 %v4928_v40, 0.0  ;;  %v16777_v49 = vmax.f32 %v4929_v47, 0.0  ;;  %v4864_v38 = vadd.f32 %v16680_v34, %v16747_v43  ;;  %v4863_v23 = vadd.f32 %v16672_v19, %v16747_v43 }
 0x63e   : > { %12521 = vmatmul.mubr.bf16.gmra.mxu1 %v5045_v16  ;;  %v16781_v60 = vmax.f32 %v4931_v62, 0.0  ;;  %v4866_v32 = vadd.f32 %v16747_v43, %v4534_v13  ;;  %v16788_v12 = vmax.f32 %v4930_v42, 0.0  ;;  %v4865_v57 = vadd.f32 %v16747_v43, %v16704_v25 }
 0x63f   : > { %v16730_v44 = vpop.f32.mrf.mxu0  ;;  %12524 = vmatprep.mubr.bf16.mxu1 %v5046_v4  ;;  %20017 = vst [vmem:[#allocation158_spill] sm:$0xff] %v16775_v53  ;;  %20018 = vst [vmem:[#allocation114_spill] sm:$0xff] %v16777_v49  ;;  %v4933_v55 = vadd.f32 %v16668_v7, %v4864_v38  ;;  %v5049_v34 = vpack.c.bf16 %v16777_v49, %v16775_v53  ;;  %v4932_v19 = vadd.f32 %v16668_v7, %v4863_v23 }
 0x640   : > { %20019 = vst [vmem:[#allocation116_spill] sm:$0xff] %v16781_v60  ;;  %20020 = vst [vmem:[#allocation161_spill] sm:$0xff] %v16788_v12  ;;  %v4935_v54 = vadd.f32 %v16668_v7, %v4866_v32  ;;  %v5050_v13 = vpack.c.bf16 %v16781_v60, %v16788_v12  ;;  %v4934_v51 = vadd.f32 %v16668_v7, %v4865_v57 }
 0x641   : > { %v4547_v48 = vpop.f32.mrf.mxu0  ;;  %v16802_v39 = vmax.f32 %v4933_v55, 0.0  ;;  %v4868_v16 = vadd.f32 %v16712_v50, %v16747_v43  ;;  %v16811_v3 = vmax.f32 %v4932_v19, 0.0  ;;  %v4867_v0 = vadd.f32 %v16696_v24, %v16747_v43 }
 0x642   : > { %v16806_v5 = vmax.f32 %v4935_v54, 0.0  ;;  %v16815_v35 = vmax.f32 %v4934_v51, 0.0  ;;  %v4869_v30 = vadd.f32 %v16747_v43, %v4547_v48  ;;  %v4823_v54 = vcombine.high %v16653_v58, %v16653_v58 }
 0x643   : > { %v16743_v31 = vpop.f32.mrf.mxu0  ;;  %20021 = vst [vmem:[#allocation119_spill] sm:$0xff] %v16802_v39  ;;  %20023 = vst [vmem:[#allocation160_spill] sm:$0xff] %v16811_v3  ;;  %v4937_v47 = vadd.f32 %v16668_v7, %v4868_v16  ;;  %v5051_v50 = vpack.c.bf16 %v16802_v39, %v16811_v3 }
 0x644   : > { %20022 = vst [vmem:[#allocation121_spill] sm:$0xff] %v16806_v5  ;;  %20024 = vst [vmem:[#allocation118_spill] sm:$0xff] %v16815_v35  ;;  %v4938_v24 = vadd.f32 %v16668_v7, %v4869_v30  ;;  %v4872_v38 = vadd.f32 %v16743_v31, %v16747_v43  ;;  %v16856_v58 = vrot.slane %v4823_v54, %v16649_v9 }
 0x645   : > { %v4550_v11 = vpop.f32.mrf.mxu0  ;;  %v16828_v42 = vmax.f32 %v4937_v47, 0.0 }
 0x646   : > { %12525 = vmatmul.mubr.bf16.gmra.mxu1 %v5047_v20  ;;  %v4870_v14 = vadd.f32 %v16747_v43, %v4550_v11  ;;  %v5052_v11 = vpack.c.bf16 %v16806_v5, %v16815_v35  ;;  %v4941_v31 = vadd.f32 %v16668_v7, %v4872_v38 }
 0x647   : > { %v16762_v2 = vpop.f32.mrf.mxu0  ;;  %12528 = vmatprep.mubr.bf16.mxu1 %v5048_v29  ;;  %v4936_v29 = vadd.f32 %v16668_v7, %v4867_v0  ;;  %20025 = vst [vmem:[#allocation120_spill] sm:$0xff] %v16828_v42 }
 0x648   : > { %v4939_v20 = vadd.f32 %v16668_v7, %v4870_v14  ;;  %v16859_v47 = vmax.f32 %v4941_v31, 0.0  ;;  %v4875_v38 = vadd.f32 %v16762_v2, %v16747_v43 }
 0x649   : > { %v4563_v10 = vpop.f32.mrf.mxu0  ;;  %v16837_v55 = vmax.f32 %v4936_v29, 0.0 }
 0x64a   : > { %v16832_v32 = vmax.f32 %v4939_v20, 0.0  ;;  %v4873_v19 = vadd.f32 %v16747_v43, %v4563_v10  ;;  %20029 = vst [vmem:[#allocation122_spill] sm:$0xff] %v16859_v47 }
 0x64b   : > { %v16772_v46 = vpop.f32.mrf.mxu0  ;;  %20027 = vst [vmem:[#allocation125_spill] sm:$0xff] %v16837_v55 }
 0x64c   : > { %20026 = vst [vmem:[#allocation123_spill] sm:$0xff] %v16832_v32  ;;  %v4942_v10 = vadd.f32 %v16668_v7, %v4873_v19 }
 0x64d   : > { %v4566_v18 = vpop.f32.mrf.mxu0 }
 0x64e   : > { %12529 = vmatmul.mubr.bf16.gmra.mxu1 %v5049_v34  ;;  %v4874_v23 = vadd.f32 %v16747_v43, %v4566_v18  ;;  %v4871_v34 = vadd.f32 %v16730_v44, %v16747_v43  ;;  %v5053_v18 = vpack.c.bf16 %v16828_v42, %v16837_v55 }
 0x64f   : > { %v16784_v45 = vpop.f32.mrf.mxu0  ;;  %12532 = vmatprep.mubr.bf16.mxu1 %v5050_v13  ;;  %v16843_v13 = vmax.f32 %v4938_v24, 0.0 }
 0x650   : > { %v4943_v16 = vadd.f32 %v16668_v7, %v4874_v23  ;;  %v4940_v44 = vadd.f32 %v16668_v7, %v4871_v34  ;;  %v16872_v23 = vmax.f32 %v4942_v10, 0.0 }
 0x651   : > { %v4579_v15 = vpop.f32.mrf.mxu0  ;;  %20028 = vst [vmem:[#allocation162_spill] sm:$0xff] %v16843_v13  ;;  %v5054_v14 = vpack.c.bf16 %v16832_v32, %v16843_v13 }
 0x652   : > { %v16863_v20 = vmax.f32 %v4943_v16, 0.0  ;;  %v16868_v24 = vmax.f32 %v4940_v44, 0.0  ;;  %20032 = vst [vmem:[#allocation165_spill] sm:$0xff] %v16872_v23  ;;  %v4877_v34 = vadd.f32 %v16856_v58, %v4579_v15  ;;  %v4944_v16 = vadd.f32 %v16668_v7, %v4875_v38 }
 0x653   : > { %v16798_v21 = vpop.f32.mrf.mxu0  ;;  %v4879_v38 = vadd.f32 %v16784_v45, %v16856_v58 }
 0x654   : > { %20030 = vst [vmem:[#allocation124_spill] sm:$0xff] %v16863_v20  ;;  %20031 = vst [vmem:[#allocation163_spill] sm:$0xff] %v16868_v24 }
 0x655   : > { %v4582_v25 = vpop.f32.mrf.mxu0  ;;  %v4948_v41 = vadd.f32 %v16668_v7, %v4879_v38 }
 0x656   : > { %12533 = vmatmul.mubr.bf16.gmra.mxu1 %v5051_v50  ;;  %v4876_v50 = vadd.f32 %v16772_v46, %v16747_v43  ;;  %v5055_v46 = vpack.c.bf16 %v16859_v47, %v16868_v24  ;;  %v4946_v43 = vadd.f32 %v16668_v7, %v4877_v34 }
 0x657   : > { %v16809_v4 = vpop.f32.mrf.mxu0  ;;  %12536 = vmatprep.mubr.bf16.mxu1 %v5052_v11  ;;  %v4878_v11 = vadd.f32 %v16856_v58, %v4582_v25  ;;  %v5056_v25 = vpack.c.bf16 %v16863_v20, %v16872_v23 }
 0x658   : > { %v4945_v19 = vadd.f32 %v16668_v7, %v4876_v50  ;;  %v4883_v38 = vadd.f32 %v16809_v4, %v16856_v58 }
 0x659   : > { %v4595_v40 = vpop.f32.mrf.mxu0  ;;  %v4947_v31 = vadd.f32 %v16668_v7, %v4878_v11  ;;  %v16894_v11 = vmax.f32 %v4944_v16, 0.0 }
 0x65a   : > { %v16885_v15 = vmax.f32 %v4945_v19, 0.0  ;;  %v4881_v34 = vadd.f32 %v16856_v58, %v4595_v40 }
 0x65b   : > { %v16824_v62 = vpop.f32.mrf.mxu0  ;;  %v16889_v44 = vmax.f32 %v4947_v31, 0.0  ;;  %20035 = vst [vmem:[#allocation129_spill] sm:$0xff] %v16894_v11 }
 0x65c   : > { %20033 = vst [vmem:[#allocation166_spill] sm:$0xff] %v16885_v15  ;;  %v4950_v45 = vadd.f32 %v16668_v7, %v4881_v34 }
 0x65d   : > { %v4598_v48 = vpop.f32.mrf.mxu0  ;;  %20034 = vst [vmem:[#allocation127_spill] sm:$0xff] %v16889_v44 }
 0x65e   : > { %12537 = vmatmul.mubr.bf16.gmra.mxu1 %v5053_v18  ;;  %v4882_v10 = vadd.f32 %v16856_v58, %v4598_v48 }
 0x65f   : > { %v16835_v57 = vpop.f32.mrf.mxu0  ;;  %12540 = vmatprep.mubr.bf16.mxu1 %v5054_v14  ;;  %v4880_v14 = vadd.f32 %v16798_v21, %v16856_v58  ;;  %v5057_v21 = vpack.c.bf16 %v16885_v15, %v16894_v11 }
 0x660   : > { %v4951_v31 = vadd.f32 %v16668_v7, %v4882_v10 }
 0x661   : > { %v4611_v51 = vpop.f32.mrf.mxu0 }
 0x662   : > { %v16915_v56 = vmax.f32 %v4951_v31, 0.0  ;;  %v4885_v34 = vadd.f32 %v16856_v58, %v4611_v51 }
 0x663   : > { %v16852_v0 = vpop.f32.mrf.mxu0 }
 0x664   : > { %20038 = vst [vmem:[#allocation164_spill] sm:$0xff] %v16915_v56  ;;  %v4954_v4 = vadd.f32 %v16668_v7, %v4885_v34  ;;  %v4824_v34 = vcombine.high %v16733_v27, %v16733_v27 }
 0x665   : > { %v4614_v30 = vpop.f32.mrf.mxu0 }
 0x666   : > { %12541 = vmatmul.mubr.bf16.gmra.mxu1 %v5055_v46  ;;  %v16898_v46 = vmax.f32 %v4946_v43, 0.0  ;;  %v4886_v10 = vadd.f32 %v16856_v58, %v4614_v30  ;;  %v16963_v27 = vrot.slane %v4824_v34, %v16649_v9 }
 0x667   : > { %v16866_v29 = vpop.f32.mrf.mxu0  ;;  %12544 = vmatprep.mubr.bf16.mxu1 %v5056_v25  ;;  %v4949_v25 = vadd.f32 %v16668_v7, %v4880_v14  ;;  %v4884_v14 = vadd.f32 %v16824_v62, %v16856_v58 }
 0x668   : > { %20036 = vst [vmem:[#allocation126_spill] sm:$0xff] %v16898_v46  ;;  %v5058_v48 = vpack.c.bf16 %v16889_v44, %v16898_v46  ;;  %v16920_v46 = vmax.f32 %v4948_v41, 0.0  ;;  %v4955_v31 = vadd.f32 %v16668_v7, %v4886_v10  ;;  %v4952_v44 = vadd.f32 %v16668_v7, %v4883_v38 }
 0x669   : > { %v4627_v54 = vpop.f32.mrf.mxu0  ;;  %v16911_v43 = vmax.f32 %v4949_v25, 0.0 }
 0x66a   : > { %20039 = vst [vmem:[#allocation167_spill] sm:$0xff] %v16920_v46 }
 0x66b   : > { %v16881_v18 = vpop.f32.mrf.mxu0  ;;  %20037 = vst [vmem:[#allocation128_spill] sm:$0xff] %v16911_v43  ;;  %v5059_v62 = vpack.c.bf16 %v16911_v43, %v16920_v46  ;;  %v16941_v43 = vmax.f32 %v4955_v31, 0.0  ;;  %v16944_v46 = vmax.f32 %v4952_v44, 0.0 }
 0x66d   : > { %v4630_v2 = vpop.f32.mrf.mxu0  ;;  %20042 = vst [vmem:[#allocation130_spill] sm:$0xff] %v16941_v43  ;;  %20043 = vst [vmem:[#allocation132_spill] sm:$0xff] %v16944_v46 }
 0x66e   : > { %12545 = vmatmul.mubr.bf16.gmra.mxu1 %v5057_v21  ;;  %v16924_v21 = vmax.f32 %v4950_v45, 0.0  ;;  %v4890_v10 = vadd.f32 %v16856_v58, %v4630_v2 }
 0x66f   : > { %v16892_v50 = vpop.f32.mrf.mxu0  ;;  %12548 = vmatprep.mubr.bf16.mxu1 %v5058_v48  ;;  %v4953_v48 = vadd.f32 %v16668_v7, %v4884_v14  ;;  %v4888_v14 = vadd.f32 %v16852_v0, %v16856_v58 }
 0x670   : > { %20040 = vst [vmem:[#allocation131_spill] sm:$0xff] %v16924_v21  ;;  %v5060_v30 = vpack.c.bf16 %v16915_v56, %v16924_v21  ;;  %v4887_v56 = vadd.f32 %v16835_v57, %v16856_v58  ;;  %v4959_v2 = vadd.f32 %v16668_v7, %v4890_v10  ;;  %v4895_v9 = vadd.f32 %v16892_v50, %v16963_v27 }
 0x671   : > { %v4643_v19 = vpop.f32.mrf.mxu0  ;;  %v16937_v45 = vmax.f32 %v4953_v48, 0.0  ;;  %v4889_v48 = vadd.f32 %v16856_v58, %v4627_v54  ;;  %v4957_v0 = vadd.f32 %v16668_v7, %v4888_v14  ;;  %v4892_v14 = vadd.f32 %v16881_v18, %v16856_v58 }
 0x672   : > { %v4956_v57 = vadd.f32 %v16668_v7, %v4887_v56  ;;  %v4891_v56 = vadd.f32 %v16866_v29, %v16856_v58 }
 0x673   : > { %v16907_v16 = vpop.f32.mrf.mxu0  ;;  %20041 = vst [vmem:[#allocation133_spill] sm:$0xff] %v16937_v45  ;;  %v5061_v31 = vpack.c.bf16 %v16937_v45, %v16944_v46  ;;  %v16966_v54 = vmax.f32 %v4957_v0, 0.0  ;;  %v16970_v45 = vmax.f32 %v4959_v2, 0.0  ;;  %v4961_v0 = vadd.f32 %v16668_v7, %v4892_v14 }
 0x674   : > { %v4960_v2 = vadd.f32 %v16668_v7, %v4891_v56 }
 0x675   : > { %v4646_v40 = vpop.f32.mrf.mxu0  ;;  %20045 = vst [vmem:[#allocation169_spill] sm:$0xff] %v16966_v54  ;;  %20046 = vst [vmem:[#allocation171_spill] sm:$0xff] %v16970_v45  ;;  %v16988_v29 = vmax.f32 %v4961_v0, 0.0 }
 0x676   : > { %12549 = vmatmul.mubr.bf16.gmra.mxu1 %v5059_v62  ;;  %v16952_v62 = vmax.f32 %v4954_v4, 0.0  ;;  %v4958_v4 = vadd.f32 %v16668_v7, %v4889_v48  ;;  %v4894_v10 = vadd.f32 %v16963_v27, %v4646_v40  ;;  %v4893_v48 = vadd.f32 %v16963_v27, %v4643_v19 }
 0x677   : > { %v16918_v15 = vpop.f32.mrf.mxu0  ;;  %12552 = vmatprep.mubr.bf16.mxu1 %v5060_v30  ;;  %20049 = vst [vmem:[#allocation170_spill] sm:$0xff] %v16988_v29  ;;  %v4896_v19 = vadd.f32 %v16907_v16, %v16963_v27 }
 0x678   : > { %20044 = vst [vmem:[#allocation168_spill] sm:$0xff] %v16952_v62  ;;  %v5062_v44 = vpack.c.bf16 %v16941_v43, %v16952_v62  ;;  %v16973_v43 = vmax.f32 %v4956_v57, 0.0  ;;  %v16977_v34 = vmax.f32 %v4958_v4, 0.0  ;;  %v4963_v18 = vadd.f32 %v16668_v7, %v4894_v10 }
 0x679   : > { %v4659_v25 = vpop.f32.mrf.mxu0  ;;  %v4962_v58 = vadd.f32 %v16668_v7, %v4893_v48  ;;  %v16995_v10 = vmax.f32 %v4960_v2, 0.0  ;;  %v4965_v0 = vadd.f32 %v16668_v7, %v4896_v19 }
 0x67a   : > { %20047 = vst [vmem:[#allocation135_spill] sm:$0xff] %v16973_v43  ;;  %20048 = vst [vmem:[#allocation137_spill] sm:$0xff] %v16977_v34  ;;  %v5064_v40 = vpack.c.bf16 %v16970_v45, %v16977_v34  ;;  %v16992_v4 = vmax.f32 %v4963_v18, 0.0  ;;  %v4897_v48 = vadd.f32 %v16963_v27, %v4659_v25  ;;  %v4964_v18 = vadd.f32 %v16668_v7, %v4895_v9 }
 0x67b   : > { %v16933_v41 = vpop.f32.mrf.mxu0  ;;  %20051 = vst [vmem:[#allocation136_spill] sm:$0xff] %v16995_v10  ;;  %v16999_v45 = vmax.f32 %v4962_v58, 0.0  ;;  %v17010_v2 = vmax.f32 %v4965_v0, 0.0 }
 0x67c   : > { %20050 = vst [vmem:[#allocation134_spill] sm:$0xff] %v16992_v4  ;;  %v4966_v50 = vadd.f32 %v16668_v7, %v4897_v48  ;;  %v4900_v25 = vadd.f32 %v16933_v41, %v16963_v27 }
 0x67d   : > { %v4662_v51 = vpop.f32.mrf.mxu0  ;;  %20052 = vst [vmem:[#allocation141_spill] sm:$0xff] %v16999_v45  ;;  %20053 = vst [vmem:[#allocation172_spill] sm:$0xff] %v17010_v2 }
 0x67e   : > { %12553 = vmatmul.mubr.bf16.gmra.mxu1 %v5061_v31  ;;  %v4898_v14 = vadd.f32 %v16963_v27, %v4662_v51  ;;  %v5066_v51 = vpack.c.bf16 %v16992_v4, %v16999_v45  ;;  %v4969_v0 = vadd.f32 %v16668_v7, %v4900_v25 }
 0x67f   : > { %v16948_v38 = vpop.f32.mrf.mxu0  ;;  %12556 = vmatprep.mubr.bf16.mxu1 %v5062_v44  ;;  %v5063_v44 = vpack.c.bf16 %v16966_v54, %v16973_v43 }
 0x680   : > { %v4967_v16 = vadd.f32 %v16668_v7, %v4898_v14  ;;  %v17017_v14 = vmax.f32 %v4964_v18, 0.0  ;;  %v17032_v18 = vmax.f32 %v4969_v0, 0.0 }
 0x681   : > { %v4675_v30 = vpop.f32.mrf.mxu0 }
 0x682   : > { %v17014_v58 = vmax.f32 %v4967_v16, 0.0  ;;  %20055 = vst [vmem:[#allocation140_spill] sm:$0xff] %v17017_v14  ;;  %v4901_v48 = vadd.f32 %v16963_v27, %v4675_v30  ;;  %20057 = vst [vmem:[#allocation174_spill] sm:$0xff] %v17032_v18 }
 0x683   : > { %v12483_v31 = vpop.f32.mrf.mxu0 }
 0x684   : > { %20054 = vst [vmem:[#allocation138_spill] sm:$0xff] %v17014_v58  ;;  %v4904_v30 = vadd.f32 %v12483_v31, %v16963_v27 }
 0x685   : > { %v4678_v57 = vpop.f32.mrf.mxu0 }
 0x686   : > { %12557 = vmatmul.mubr.bf16.gmra.mxu1 %v5063_v44  ;;  %v5065_v44 = vpack.c.bf16 %v16988_v29, %v16995_v10  ;;  %v4902_v19 = vadd.f32 %v16963_v27, %v4678_v57  ;;  %v4899_v29 = vadd.f32 %v16918_v15, %v16963_v27  ;;  %v17021_v10 = vmax.f32 %v4966_v50, 0.0 }
 0x687   : > { %12560 = vmatprep.mubr.bf16.mxu1 %v5064_v40  ;;  %v12486_v56 = vpop.f32.mrf.mxu0  ;;  %v4970_v15 = vadd.f32 %v16668_v7, %v4901_v48  ;;  %v4973_v48 = vadd.f32 %v16668_v7, %v4904_v30 }
 0x688   : > { %20056 = vst [vmem:[#allocation139_spill] sm:$0xff] %v17021_v10  ;;  %v4971_v41 = vadd.f32 %v16668_v7, %v4902_v19  ;;  %v5068_v57 = vpack.c.bf16 %v17014_v58, %v17021_v10  ;;  %v4968_v16 = vadd.f32 %v16668_v7, %v4899_v29  ;;  %v4903_v19 = vadd.f32 %v16948_v38, %v16963_v27 }
 0x689   : > { %v4691_v40 = vpop.f32.mrf.mxu0  ;;  %v17042_v54 = vmax.f32 %v4970_v15, 0.0  ;;  %v17053_v38 = vmax.f32 %v4973_v48, 0.0  ;;  %v4907_v15 = vadd.f32 %v12486_v56, %v16963_v27  ;;  %v20067_v56 = vmov 0.0  }
 0x68a   : > { %v17035_v50 = vmax.f32 %v4971_v41, 0.0  ;;  %v17038_v34 = vmax.f32 %v4968_v16, 0.0  ;;  %v4905_v29 = vadd.f32 %v16963_v27, %v4691_v40  ;;  %v4972_v41 = vadd.f32 %v16668_v7, %v4903_v19 }
 0x68b   : > { %v12487_v9 = vpop.f32.mrf.mxu0  ;;  %20060 = vst [vmem:[#allocation145_spill] sm:$0xff] %v17042_v54  ;;  %20061 = vst [vmem:[#allocation173_spill] sm:$0xff] %v17053_v38  ;;  %v4976_v48 = vadd.f32 %v16668_v7, %v4907_v15 }
 0x68c   : > { %20058 = vst [vmem:[#allocation175_spill] sm:$0xff] %v17035_v50  ;;  %20059 = vst [vmem:[#allocation143_spill] sm:$0xff] %v17038_v34  ;;  %v5069_v0 = vpack.c.bf16 %v17032_v18, %v17038_v34  ;;  %v4908_v40 = vadd.f32 %v12487_v9, %v16963_v27 }
 0x68e   : > { %12561 = vmatmul.mubr.bf16.gmra.mxu1 %v5065_v44  ;;  %v5067_v44 = vpack.c.bf16 %v17010_v2, %v17017_v14 }
 0x68f   : > { %12564 = vmatprep.mubr.bf16.mxu1 %v5066_v51  ;;  %v4694_v51 = vpop.f32.mrf.mxu0 }
 0x690   : > { %v4906_v25 = vadd.f32 %v16963_v27, %v4694_v51  ;;  %v17058_v51 = vmax.f32 %v4972_v41, 0.0 }
 0x692   : > { %v4975_v31 = vadd.f32 %v16668_v7, %v4906_v25  ;;  %20063 = vst [vmem:[#allocation144_spill] sm:$0xff] %v17058_v51  ;;  %v4977_v25 = vadd.f32 %v16668_v7, %v4908_v40  ;;  %v5071_v19 = vpack.c.bf16 %v17053_v38, %v17058_v51 }
 0x694   : > { %v17056_v16 = vmax.f32 %v4975_v31, 0.0  ;;  %v17069_v9 = vmax.f32 %v4977_v25, 0.0 }
 0x696   : > { %12565 = vmatmul.mubr.bf16.gmra.mxu1 %v5067_v44  ;;  %v5070_v44 = vpack.c.bf16 %v17035_v50, %v17042_v54  ;;  %20062 = vst [vmem:[#allocation142_spill] sm:$0xff] %v17056_v16  ;;  %20065 = vst [vmem:[#allocation147_spill] sm:$0xff] %v17069_v9 }
 0x697   : > { %12568 = vmatprep.mubr.bf16.mxu1 %v5068_v57  ;;  %v4974_v57 = vadd.f32 %v16668_v7, %v4905_v29  ;;  %v17080_v7 = vld [vmem:[%s19175_s2 + $0x7] ss:$0 sm:$0xff] }
 0x699   : > { %v17061_v30 = vmax.f32 %v4974_v57, 0.0 }
 0x69b   : > { %20064 = vst [vmem:[#allocation176_spill] sm:$0xff] %v17061_v30  ;;  %v5072_v29 = vpack.c.bf16 %v17056_v16, %v17061_v30 }
 0x69e   : > { %12569 = vmatmul.mubr.bf16.gmra.mxu1 %v5069_v0  ;;  %v17071_v0 = vmax.f32 %v4976_v48, 0.0 }
 0x69f   : > { %12572 = vmatprep.mubr.bf16.mxu1 %v5070_v44 }
 0x6a0   : > { %20066 = vst [vmem:[#allocation149_spill] sm:$0xff] %v17071_v0  ;;  %v5073_v27 = vpack.c.bf16 %v17069_v9, %v17071_v0 }
 0x6a6   : > { %12573 = vmatmul.mubr.bf16.gmra.mxu1 %v5071_v19 }
 0x6a7   : > { %12576 = vmatprep.mubr.bf16.mxu1 %v5072_v29 }
 0x6ae   : > { %12577 = vmatmul.mubr.bf16.gmra.mxu1 %v5073_v27 }
 0x6af   : > { %12616 = vmatprep.mubr.msk.bf16.mxu1 %vm14024_vm6, %v20067_v56 }
 0x6f6   : > { %v12518_v31 = vpop.f32.mrf.mxu1 }
 0x6f7   : > { %v17089_v19 = vadd.f32 %v12518_v31, %v17080_v7 }
 0x6f8   : > { %v5177_v44 = vpop.f32.mrf.mxu1 }
 0x6f9   : > { %v17083_v40 = vadd.f32 %v17080_v7, %v5177_v44 }
 0x6fa   : > { %v12519_v41 = vpop.f32.mrf.mxu1 }
 0x6fb   : > { %v17094_v27 = vadd.f32 %v12519_v41, %v17080_v7 }
 0x6fc   : > { %v5180_v57 = vpop.f32.mrf.mxu1 }
 0x6fd   : > { %v17086_v15 = vadd.f32 %v17080_v7, %v5180_v57 }
 0x6fe   : > { %v12522_v25 = vpop.f32.mrf.mxu1 }
 0x6ff   : > { %v5432_v29 = vmax.f32 %v17083_v40, %v17086_v15  ;;  %v17106_v51 = vadd.f32 %v12522_v25, %v17080_v7 }
 0x700   : > { %v5193_v48 = vpop.f32.mrf.mxu1 }
 0x701   : > { %v5433_v9 = vmax.f32 %v5432_v29, %v17089_v19  ;;  %v17098_v44 = vadd.f32 %v17080_v7, %v5193_v48 }
 0x702   : > { %v12523_v0 = vpop.f32.mrf.mxu1 }
 0x703   : > { %v5434_v57 = vmax.f32 %v5433_v9, %v17094_v27  ;;  %v17110_v29 = vadd.f32 %v12523_v0, %v17080_v7 }
 0x704   : > { %v5196_v16 = vpop.f32.mrf.mxu1 }
 0x705   : > { %v5435_v30 = vmax.f32 %v5434_v57, %v17098_v44  ;;  %v17103_v31 = vadd.f32 %v17080_v7, %v5196_v16 }
 0x706   : > { %v12526_v38 = vpop.f32.mrf.mxu1 }
 0x707   : > { %v5436_v41 = vmax.f32 %v5435_v30, %v17103_v31  ;;  %v17122_v30 = vadd.f32 %v12526_v38, %v17080_v7 }
 0x708   : > { %v5209_v50 = vpop.f32.mrf.mxu1 }
 0x709   : > { %v5437_v48 = vmax.f32 %v5436_v41, %v17106_v51  ;;  %v17114_v9 = vadd.f32 %v17080_v7, %v5209_v50 }
 0x70a   : > { %v12527_v54 = vpop.f32.mrf.mxu1 }
 0x70b   : > { %v5438_v57 = vmax.f32 %v5437_v48, %v17110_v29  ;;  %v17126_v41 = vadd.f32 %v12527_v54, %v17080_v7 }
 0x70c   : > { %v5212_v16 = vpop.f32.mrf.mxu1 }
 0x70d   : > { %v5439_v43 = vmax.f32 %v5438_v57, %v17114_v9  ;;  %v17119_v25 = vadd.f32 %v17080_v7, %v5212_v16 }
 0x70e   : > { %v12530_v18 = vpop.f32.mrf.mxu1 }
 0x70f   : > { %v5440_v0 = vmax.f32 %v5439_v43, %v17119_v25  ;;  %v17138_v43 = vadd.f32 %v12530_v18, %v17080_v7 }
 0x710   : > { %v5225_v62 = vpop.f32.mrf.mxu1 }
 0x711   : > { %v5441_v50 = vmax.f32 %v5440_v0, %v17122_v30  ;;  %v17130_v48 = vadd.f32 %v17080_v7, %v5225_v62 }
 0x712   : > { %v12531_v34 = vpop.f32.mrf.mxu1 }
 0x713   : > { %v5442_v57 = vmax.f32 %v5441_v50, %v17126_v41  ;;  %v17142_v0 = vadd.f32 %v12531_v34, %v17080_v7 }
 0x714   : > { %v5228_v16 = vpop.f32.mrf.mxu1 }
 0x715   : > { %v5443_v46 = vmax.f32 %v5442_v57, %v17130_v48  ;;  %v17135_v38 = vadd.f32 %v17080_v7, %v5228_v16 }
 0x716   : > { %v12534_v58 = vpop.f32.mrf.mxu1 }
 0x717   : > { %v5444_v54 = vmax.f32 %v5443_v46, %v17135_v38  ;;  %v17153_v46 = vadd.f32 %v12534_v58, %v17080_v7 }
 0x718   : > { %v5241_v10 = vpop.f32.mrf.mxu1 }
 0x719   : > { %v5445_v62 = vmax.f32 %v5444_v54, %v17138_v43  ;;  %v17147_v16 = vadd.f32 %v17080_v7, %v5241_v10 }
 0x71a   : > { %v12535_v21 = vpop.f32.mrf.mxu1 }
 0x71b   : > { %v5446_v50 = vmax.f32 %v5445_v62, %v17142_v0  ;;  %v17158_v62 = vadd.f32 %v12535_v21, %v17080_v7 }
 0x71c   : > { %v5244_v2 = vpop.f32.mrf.mxu1 }
 0x71d   : > { %v5447_v57 = vrot.slane %v5446_v50, 4  ;;  %v17150_v14 = vadd.f32 %v17080_v7, %v5244_v2 }
 0x71e   : > { %v12538_v18 = vpop.f32.mrf.mxu1 }
 0x71f   : > { %v5448_v45 = vmax.f32 %v5446_v50, %v5447_v57  ;;  %v5453_v34 = vmax.f32 %v17147_v16, %v17150_v14 }
 0x720   : > { %v5257_v54 = vpop.f32.mrf.mxu1 }
 0x721   : > { %v5449_v4 = vrot.slane %v5448_v45, 2  ;;  %v5454_v11 = vmax.f32 %v5453_v34, %v17153_v46  ;;  %v17162_v2 = vadd.f32 %v17080_v7, %v5257_v54 }
 0x722   : > { %v12539_v10 = vpop.f32.mrf.mxu1 }
 0x723   : > { %v5450_v20 = vmax.f32 %v5448_v45, %v5449_v4  ;;  %v5455_v50 = vmax.f32 %v5454_v11, %v17158_v62 }
 0x724   : > { %v5260_v57 = vpop.f32.mrf.mxu1 }
 0x725   : > { %v5451_v58 = vrot.slane %v5450_v20, 1  ;;  %v5456_v23 = vmax.f32 %v5455_v50, %v17162_v2  ;;  %v17167_v47 = vadd.f32 %v17080_v7, %v5260_v57 }
 0x726   : > { %v12542_v24 = vpop.f32.mrf.mxu1 }
 0x727   : > { %v17169_v32 = vmax.f32 %v5450_v20, %v5451_v58  ;;  %v5457_v21 = vmax.f32 %v5456_v23, %v17167_v47 }
 0x728   : > { %v5273_v34 = vpop.f32.mrf.mxu1 }
 0x729   : > { %v5516_v45 = vsub.f32 %v17083_v40, %v17169_v32  ;;  %v5517_v4 = vsub.f32 %v17086_v15, %v17169_v32  ;;  %v5518_v11 = vsub.f32 %v17089_v19, %v17169_v32  ;;  %v5519_v54 = vsub.f32 %v17094_v27, %v17169_v32 }
 0x72a   : > { %v5520_v50 = vsub.f32 %v17098_v44, %v17169_v32  ;;  %v5522_v20 = vsub.f32 %v17106_v51, %v17169_v32  ;;  %v5523_v23 = vsub.f32 %v17110_v29, %v17169_v32  ;;  %v12543_v57 = vpop.f32.mrf.mxu1  ;;  %v5524_v40 = vsub.f32 %v17114_v9, %v17169_v32 }
 0x72b   : > { %v5526_v15 = vsub.f32 %v17122_v30, %v17169_v32  ;;  %v5527_v19 = vsub.f32 %v17126_v41, %v17169_v32  ;;  %v17193_v27 = vadd.f32 %v12538_v18, %v17080_v7  ;;  %v5580_v9 = vmul.f32 1.442695, %v5516_v45 }
 0x72c   : > { %v5276_v58 = vpop.f32.mrf.mxu1  ;;  %v5582_v13 = vmul.f32 1.442695, %v5517_v4  ;;  %v5584_v42 = vmul.f32 1.442695, %v5518_v11  ;;  %v5521_v41 = vsub.f32 %v17103_v31, %v17169_v32  ;;  %v5586_v18 = vmul.f32 1.442695, %v5519_v54 }
 0x72d   : > { %v5458_v30 = vmax.f32 %v5457_v21, %v17193_v27  ;;  %13779 = vpow2.f32 %v5580_v9  ;;  %v17205_v44 = vadd.f32 %v12539_v10, %v17080_v7  ;;  %v5588_v5 = vmul.f32 1.442695, %v5520_v50 }
 0x72e   : > { %v12546_v55 = vpop.f32.mrf.mxu1  ;;  %13781 = vpow2.f32 %v5582_v13  ;;  %v17208_v29 = vadd.f32 %v17080_v7, %v5273_v34  ;;  %v17212_v4 = vadd.f32 %v17080_v7, %v5276_v58  ;;  %v5590_v11 = vmul.f32 1.442695, %v5521_v41 }
 0x72f   : > { %13783 = vpow2.f32 %v5584_v42  ;;  %v5459_v45 = vmax.f32 %v5458_v30, %v17205_v44  ;;  %v5592_v10 = vmul.f32 1.442695, %v5522_v20  ;;  %v17216_v54 = vadd.f32 %v12542_v24, %v17080_v7 }
 0x730   : > { %v5289_v51 = vpop.f32.mrf.mxu1  ;;  %13785 = vpow2.f32 %v5586_v18  ;;  %v5525_v50 = vsub.f32 %v17119_v25, %v17169_v32  ;;  %v5594_v9 = vmul.f32 1.442695, %v5523_v23  ;;  %v17222_v58 = vadd.f32 %v12543_v57, %v17080_v7 }
 0x731   : > { %v5460_v13 = vmax.f32 %v5459_v45, %v17208_v29  ;;  %13787 = vpow2.f32 %v5588_v5  ;;  %v5596_v18 = vmul.f32 1.442695, %v5524_v40  ;;  %v17226_v5 = vadd.f32 %v17080_v7, %v5289_v51 }
 0x732   : > { %v12547_v21 = vpop.f32.mrf.mxu1  ;;  %13789 = vpow2.f32 %v5590_v11  ;;  %v5598_v23 = vmul.f32 1.442695, %v5525_v50  ;;  %v5600_v40 = vmul.f32 1.442695, %v5526_v15  ;;  %v5529_v15 = vsub.f32 %v17135_v38, %v17169_v32 }
 0x733   : > { %v5461_v42 = vmax.f32 %v5460_v13, %v17212_v4  ;;  %13791 = vpow2.f32 %v5592_v10 }
 0x734   : > { %v5292_v31 = vpop.f32.mrf.mxu1  ;;  %13793 = vpow2.f32 %v5594_v9  ;;  %v5606_v12 = vmul.f32 1.442695, %v5529_v15 }
 0x735   : > { %v5462_v30 = vmax.f32 %v5461_v42, %v17216_v54  ;;  %v17230_v20 = vadd.f32 %v17080_v7, %v5292_v31  ;;  %13795 = vpow2.f32 %v5596_v18  ;;  %v17246_v42 = vadd.f32 %v12546_v55, %v17080_v7 }
 0x736   : > { %v12550_v34 = vpop.f32.mrf.mxu1  ;;  %13797 = vpow2.f32 %v5598_v23  ;;  %v17260_v55 = vadd.f32 %v12547_v21, %v17080_v7 }
 0x737   : > { %v5463_v24 = vmax.f32 %v5462_v30, %v17222_v58  ;;  %13799 = vpow2.f32 %v5600_v40 }
 0x738   : > { %v5305_v41 = vpop.f32.mrf.mxu1 }
 0x739   : > { %v5464_v57 = vmax.f32 %v5463_v24, %v17226_v5  ;;  %v17238_v10 = vadd.f32 %v17080_v7, %v5305_v41  ;;  %v5602_v41 = vmul.f32 1.442695, %v5527_v19  ;;  %v17254_v24 = vadd.f32 %v12550_v34, %v17080_v7 }
 0x73a   : > { %v12551_v45 = vpop.f32.mrf.mxu1  ;;  %v17232_v25 = vpop.eup %13779  ;;  %v20068_v34 = vsub.f32 %v17130_v48, %v17169_v32 }
 0x73b   : > { %v17235_v13 = vpop.eup %13781  ;;  %v5465_v50 = vmax.f32 %v5464_v57, %v17230_v20  ;;  %v17266_v38 = vadd.f32 %v12551_v45, %v17080_v7  ;;  %13801 = vpow2.f32 %v5602_v41 }
 0x73c   : > { %v5308_v11 = vpop.f32.mrf.mxu1  ;;  %v5708_v31 = vadd.f32 %v17235_v13, %v17232_v25  ;;  %v17249_v30 = vpop.eup %13783  ;;  %v5604_v23 = vmul.f32 1.442695, %v20068_v34 }
 0x73d   : > { %v17241_v51 = vadd.f32 %v17080_v7, %v5308_v11  ;;  %v5466_v57 = vmax.f32 %v5465_v50, %v17246_v42  ;;  %v17263_v39 = vpop.eup %13785 }
 0x73e   : > { %v12554_v9 = vpop.f32.mrf.mxu1  ;;  %v5709_v11 = vadd.f32 %v17249_v30, %v5708_v31  ;;  %v17274_v60 = vpop.eup %13787  ;;  %13803 = vpow2.f32 %v5604_v23 }
 0x73f   : > { %v5474_v18 = vmax.f32 %v17238_v10, %v17241_v51  ;;  %v5467_v21 = vmax.f32 %v5466_v57, %v17260_v55  ;;  %v17281_v48 = vpop.eup %13789  ;;  %13805 = vpow2.f32 %v5606_v12 }
 0x740   : > { %v5321_v35 = vpop.f32.mrf.mxu1  ;;  %v5710_v31 = vadd.f32 %v17263_v39, %v5709_v11  ;;  %v17291_v53 = vpop.eup %13791 }
 0x741   : > { %v5475_v19 = vmax.f32 %v5474_v18, %v17254_v24  ;;  %v17277_v50 = vadd.f32 %v17080_v7, %v5321_v35  ;;  %v5468_v18 = vrot.slane %v5467_v21, 4  ;;  %v20069_v35 = vsub.f32 %v17138_v43, %v17169_v32  ;;  %v17301_v56 = vpop.eup %13793 }
 0x742   : > { %v12555_v3 = vpop.f32.mrf.mxu1  ;;  %v5711_v40 = vadd.f32 %v17274_v60, %v5710_v31  ;;  %v17294_v31 = vadd.f32 %v12554_v9, %v17080_v7 }
 0x743   : > { %v5476_v45 = vmax.f32 %v5475_v19, %v17266_v38  ;;  %v5608_v34 = vmul.f32 1.442695, %v20069_v35  ;;  %v5469_v41 = vmax.f32 %v5467_v21, %v5468_v18  ;;  %v17304_v21 = vadd.f32 %v12555_v3, %v17080_v7 }
 0x744   : > { %v5324_v49 = vpop.f32.mrf.mxu1  ;;  %v5712_v19 = vadd.f32 %v17281_v48, %v5711_v40 }
 0x745   : > { %v5477_v11 = vmax.f32 %v5476_v45, %v17277_v50  ;;  %v17285_v57 = vadd.f32 %v17080_v7, %v5324_v49  ;;  %v20070_v49 = vsub.f32 %v17142_v0, %v17169_v32  ;;  %v5470_v43 = vrot.slane %v5469_v41, 2  ;;  %20071 = vst [vmem:[#allocation178_spill] sm:$0xff] %v17304_v21 }
 0x746   : > { %v12558_v15 = vpop.f32.mrf.mxu1  ;;  %v5713_v45 = vadd.f32 %v17291_v53, %v5712_v19  ;;  %13807 = vpow2.f32 %v5608_v34 }
 0x747   : > { %v5478_v33 = vmax.f32 %v5477_v11, %v17285_v57  ;;  %v5610_v23 = vmul.f32 1.442695, %v20070_v49  ;;  %v5471_v18 = vmax.f32 %v5469_v41, %v5470_v43  ;;  %v17308_v11 = vpop.eup %13795 }
 0x748   : > { %v5337_v35 = vpop.f32.mrf.mxu1  ;;  %v5714_v9 = vadd.f32 %v17301_v56, %v5713_v45  ;;  %v17312_v36 = vpop.eup %13797 }
 0x749   : > { %v5479_v40 = vmax.f32 %v5478_v33, %v17294_v31  ;;  %13809 = vpow2.f32 %v5610_v23  ;;  %v5472_v19 = vrot.slane %v5471_v18, 1  ;;  %v17315_v3 = vadd.f32 %v17080_v7, %v5337_v35  ;;  %v17320_v45 = vpop.eup %13799 }
 0x74a   : > { %v12559_v12 = vpop.f32.mrf.mxu1  ;;  %v5715_v0 = vadd.f32 %v17308_v11, %v5714_v9 }
 0x74b   : > { %v5480_v32 = vmax.f32 %v5479_v40, %v17304_v21  ;;  %20072 = vst [vmem:[#allocation146_spill] sm:$0xff] %v17315_v3  ;;  %v17318_v34 = vmax.f32 %v5471_v18, %v5472_v19 }
 0x74c   : > { %v5340_v49 = vpop.f32.mrf.mxu1  ;;  %v5716_v33 = vadd.f32 %v17312_v36, %v5715_v0  ;;  %v17331_v0 = vpop.eup %13801 }
 0x74d   : > { %v5481_v43 = vmax.f32 %v5480_v32, %v17315_v3  ;;  %v17324_v23 = vadd.f32 %v17080_v7, %v5340_v49  ;;  %v5532_v9 = vsub.f32 %v17147_v16, %v17318_v34  ;;  %v5534_v35 = vsub.f32 %v17153_v46, %v17318_v34  ;;  %v17346_v1 = vpop.eup %13803 }
 0x74e   : > { %v12562_v41 = vpop.f32.mrf.mxu1  ;;  %v5717_v40 = vadd.f32 %v17320_v45, %v5716_v33  ;;  %v5533_v18 = vsub.f32 %v17150_v14, %v17318_v34  ;;  %v5535_v32 = vsub.f32 %v17158_v62, %v17318_v34  ;;  %v5536_v19 = vsub.f32 %v17162_v2, %v17318_v34  ;;  %v17360_v17 = vpop.eup %13805 }
 0x74f   : > { %20073 = vst [vmem:[#allocation148_spill] sm:$0xff] %v17324_v23  ;;  %v5538_v49 = vsub.f32 %v17193_v27, %v17318_v34  ;;  %v5539_v46 = vsub.f32 %v17205_v44, %v17318_v34  ;;  %v5540_v33 = vsub.f32 %v17208_v29, %v17318_v34  ;;  %v5482_v27 = vmax.f32 %v5481_v43, %v17324_v23 }
 0x750   : > { %v5353_v8 = vpop.f32.mrf.mxu1  ;;  %v5718_v16 = vadd.f32 %v17331_v0, %v5717_v40  ;;  %v5612_v28 = vmul.f32 1.442695, %v5532_v9  ;;  %v5614_v14 = vmul.f32 1.442695, %v5533_v18  ;;  %v5616_v3 = vmul.f32 1.442695, %v5534_v35 }
 0x751   : > { %v17363_v62 = vadd.f32 %v12558_v15, %v17080_v7  ;;  %v5537_v44 = vsub.f32 %v17167_v47, %v17318_v34  ;;  %v5618_v29 = vmul.f32 1.442695, %v5535_v32  ;;  %v5620_v15 = vmul.f32 1.442695, %v5536_v19 }
 0x752   : > { %v12563_v37 = vpop.f32.mrf.mxu1  ;;  %v5719_v40 = vadd.f32 %v17346_v1, %v5718_v16  ;;  %13811 = vpow2.f32 %v5612_v28  ;;  %v17379_v47 = vadd.f32 %v17080_v7, %v5353_v8 }
 0x753   : > { %v17366_v16 = vpop.eup %13807  ;;  %13813 = vpow2.f32 %v5614_v14  ;;  %v5483_v9 = vmax.f32 %v5482_v27, %v17363_v62  ;;  %v5622_v61 = vmul.f32 1.442695, %v5537_v44 }
 0x754   : > { %v5356_v6 = vpop.f32.mrf.mxu1  ;;  %v5720_v2 = vadd.f32 %v17360_v17, %v5719_v40  ;;  %13815 = vpow2.f32 %v5616_v3  ;;  %v17375_v40 = vadd.f32 %v12559_v12, %v17080_v7  ;;  %v5624_v3 = vmul.f32 1.442695, %v5538_v49 }
 0x755   : > { %13817 = vpow2.f32 %v5618_v29 }
 0x756   : > { %v12566_v43 = vpop.f32.mrf.mxu1  ;;  %v5721_v23 = vadd.f32 %v17366_v16, %v5720_v2  ;;  %v17372_v35 = vpop.eup %13809  ;;  %v5484_v32 = vmax.f32 %v5483_v9, %v17375_v40  ;;  %v17383_v2 = vadd.f32 %v17080_v7, %v5356_v6  ;;  %13819 = vpow2.f32 %v5620_v15 }
 0x757   : > { %v5541_v6 = vsub.f32 %v17212_v4, %v17318_v34  ;;  %13821 = vpow2.f32 %v5622_v61  ;;  %v5626_v9 = vmul.f32 1.442695, %v5539_v46 }
 0x758   : > { %v5369_v18 = vpop.f32.mrf.mxu1  ;;  %v5722_v28 = vadd.f32 %v17372_v35, %v5721_v23  ;;  %20074 = vst [vmem:[#allocation179_spill] sm:$0xff] %v17383_v2  ;;  %v5485_v12 = vmax.f32 %v5484_v32, %v17379_v47  ;;  %v17387_v23 = vadd.f32 %v12562_v41, %v17080_v7  ;;  %13823 = vpow2.f32 %v5624_v3 }
 0x759   : > { %v17390_v44 = vadd.f32 %v17080_v7, %v5369_v18  ;;  %v5628_v32 = vmul.f32 1.442695, %v5540_v33  ;;  %13825 = vpow2.f32 %v5626_v9 }
 0x75a   : > { %v12567_v21 = vpop.f32.mrf.mxu1  ;;  %v5723_v14 = vrot.slane %v5722_v28, 4  ;;  %v5486_v49 = vmax.f32 %v5485_v12, %v17383_v2  ;;  %v5630_v2 = vmul.f32 1.442695, %v5541_v6 }
 0x75b   : > { %20075 = vst [vmem:[#allocation151_spill] sm:$0xff] %v17390_v44  ;;  %v17408_v61 = vadd.f32 %v12567_v21, %v17080_v7  ;;  %13827 = vpow2.f32 %v5628_v32 }
 0x75c   : > { %v5372_v27 = vpop.f32.mrf.mxu1  ;;  %v5724_v19 = vadd.f32 %v5723_v14, %v5722_v28  ;;  %v17399_v28 = vadd.f32 %v12566_v43, %v17080_v7  ;;  %v17404_v14 = vadd.f32 %v12563_v37, %v17080_v7  ;;  %13829 = vpow2.f32 %v5630_v2 }
 0x75d   : > { %v17393_v8 = vadd.f32 %v17080_v7, %v5372_v27  ;;  %v5487_v27 = vmax.f32 %v5486_v49, %v17387_v23  ;;  %20078 = vst [vmem:[#allocation152_spill] sm:$0xff] %v17408_v61  ;;  %v20083_v2 = vsub.f32 %v17216_v54, %v17318_v34 }
 0x75e   : > { %v12570_v29 = vpop.f32.mrf.mxu1  ;;  %v5725_v15 = vrot.slane %v5724_v19, 2  ;;  %20077 = vst [vmem:[#allocation150_spill] sm:$0xff] %v17399_v28 }
 0x75f   : > { %20076 = vst [vmem:[#allocation153_spill] sm:$0xff] %v17393_v8  ;;  %v5495_v41 = vmax.f32 %v17390_v44, %v17393_v8  ;;  %v17411_v43 = vpop.eup %13811  ;;  %v5488_v8 = vmax.f32 %v5487_v27, %v17404_v14 }
 0x760   : > { %v5385_v18 = vpop.f32.mrf.mxu1  ;;  %v5726_v4 = vadd.f32 %v5725_v15, %v5724_v19  ;;  %20079 = vst [vmem:[#allocation177_spill] sm:$0xff] %v17411_v43  ;;  %v17414_v3 = vpop.eup %13813 }
 0x761   : > { %v5496_v46 = vmax.f32 %v5495_v41, %v17399_v28  ;;  %20080 = vst [vmem:[#allocation44_spill] sm:$0xff] %v17414_v3  ;;  %v17417_v37 = vadd.f32 %v17080_v7, %v5385_v18  ;;  %v5729_v21 = vadd.f32 %v17414_v3, %v17411_v43  ;;  %v5489_v15 = vrot.slane %v5488_v8, 4  ;;  %v17425_v6 = vpop.eup %13815 }
 0x762   : > { %v12571_v12 = vpop.f32.mrf.mxu1  ;;  %v5727_v33 = vrot.slane %v5726_v4, 1 }
 0x763   : > { %20081 = vst [vmem:[#allocation180_spill] sm:$0xff] %v17417_v37  ;;  %v5497_v19 = vmax.f32 %v5496_v46, %v17408_v61  ;;  %v5730_v18 = vadd.f32 %v17425_v6, %v5729_v21  ;;  %v5490_v46 = vmax.f32 %v5488_v8, %v5489_v15  ;;  %v17431_v61 = vpop.eup %13817  ;;  %v17444_v21 = vadd.f32 %v12570_v29, %v17080_v7 }
 0x764   : > { %v5388_v49 = vpop.f32.mrf.mxu1  ;;  %v5728_v9 = vadd.f32 %v5727_v33, %v5726_v4  ;;  %v17435_v44 = vpop.eup %13819  ;;  %v5545_v4 = vsub.f32 %v17230_v20, %v17318_v34  ;;  %v5632_v33 = vmul.f32 1.442695, %v20083_v2 }
 0x765   : > { %v17423_v41 = vadd.f32 %v17080_v7, %v5388_v49  ;;  %v5498_v27 = vmax.f32 %v5497_v19, %v17417_v37  ;;  %v5731_v32 = vadd.f32 %v17431_v61, %v5730_v18  ;;  %v5491_v3 = vrot.slane %v5490_v46, 2  ;;  %20084 = vst [vmem:[#allocation182_spill] sm:$0xff] %v17444_v21  ;;  %v17446_v15 = vpop.eup %13821 }
 0x766   : > { %v17428_v28 = vpop.f32.mrf.mxu1  ;;  %13831 = vrcp.f32 %v5728_v9  ;;  %20085 = vst [vmem:[#allocation183_spill] sm:$0xff] %v17446_v15  ;;  %v20086_v9 = vsub.f32 %v17222_v58, %v17318_v34  ;;  %v20087_v18 = vsub.f32 %v17226_v5, %v17318_v34  ;;  %v5638_v29 = vmul.f32 1.442695, %v5545_v4  ;;  %v13683_v4 = vld [vmem:[#allocation2 + $0x198] sm:$0xff]  }
 0x767   : > { %20082 = vst [vmem:[#allocation41_spill] sm:$0xff] %v17423_v41  ;;  %v5499_v49 = vmax.f32 %v5498_v27, %v17423_v41  ;;  %v5732_v8 = vadd.f32 %v17435_v44, %v5731_v32  ;;  %v5492_v19 = vmax.f32 %v5490_v46, %v5491_v3  ;;  %v17458_v3 = vpop.eup %13823  ;;  %v20088_v46 = vsub.f32 %v17246_v42, %v17318_v34 }
 0x768   : > { %v5401_v43 = vpop.f32.mrf.mxu1  ;;  %v5634_v27 = vmul.f32 1.442695, %v20086_v9  ;;  %v5636_v20 = vmul.f32 1.442695, %v20087_v18  ;;  %13833 = vpow2.f32 %v5632_v33  ;;  %v17467_v5 = vadd.f32 %v12571_v12, %v17080_v7  ;;  %11637 = vmatprep.subr.bf16.mxu0 %v13683_v4 }
 0x769   : > { %v5733_v41 = vadd.f32 %v17446_v15, %v5732_v8  ;;  %v5493_v54 = vrot.slane %v5492_v19, 1  ;;  %v5500_v2 = vmax.f32 %v5499_v49, %v17444_v21  ;;  %v5640_v37 = vmul.f32 1.442695, %v20088_v46  ;;  %v17469_v8 = vpop.eup %13825  ;;  %v13684_v21 = vld [vmem:[#allocation2 + $0x158] sm:$0xff]   ;;  %v13685_v15 = vld [vmem:[#allocation2 + $0x190] sm:$0xff]  }
 0x76a   : > { %v17456_v32 = vpop.f32.mrf.mxu1  ;;  %13835 = vpow2.f32 %v5634_v27  ;;  %v20089_v49 = vsub.f32 %v17260_v55, %v17318_v34  ;;  %v17482_v34 = vadd.f32 %v17080_v7, %v5401_v43  ;;  %11638 = vmatpush3.bf16.msra.mxu0 %v13684_v21  ;;  %v13686_v27 = vld [vmem:[#allocation2 + $0x150] sm:$0xff]  }
 0x76b   : > { %v5734_v58 = vadd.f32 %v17458_v3, %v5733_v41  ;;  %v17464_v9 = vmax.f32 %v5492_v19, %v5493_v54  ;;  %13837 = vpow2.f32 %v5636_v20  ;;  %v5501_v33 = vmax.f32 %v5500_v2, %v17467_v5  ;;  %v17478_v19 = vpop.eup %13827  ;;  %11639 = vmatprep.subr.bf16.mxu0 %v13685_v15  ;;  %v13687_v54 = vld [vmem:[#allocation2 + $0x188] sm:$0xff]  }
 0x76c   : > { %v5642_v18 = vmul.f32 1.442695, %v20089_v49  ;;  %v5404_v12 = vpop.f32.mrf.mxu1  ;;  %13839 = vpow2.f32 %v5638_v29  ;;  %v17484_v20 = vpop.eup %13829 }
 0x76d   : > { %v5735_v42 = vadd.f32 %v17469_v8, %v5734_v58  ;;  %v5548_v41 = vsub.f32 %v17238_v10, %v17464_v9  ;;  %13841 = vpow2.f32 %v5640_v37  ;;  %v17487_v10 = vadd.f32 %v17080_v7, %v5404_v12  ;;  %v13690_v12 = vld [vmem:[#allocation2 + $0x140] sm:$0xff]  }
 0x76e   : > { %13843 = vpow2.f32 %v5642_v18  ;;  %v5549_v37 = vsub.f32 %v17241_v51, %v17464_v9  ;;  %v17495_v43 = vmax.f32 %v5501_v33, %v17482_v34  ;;  %11640 = vmatpush3.bf16.msra.mxu0 %v13686_v27 }
 0x76f   : > { %v5736_v55 = vadd.f32 %v17478_v19, %v5735_v42  ;;  %v5644_v46 = vmul.f32 1.442695, %v5548_v41  ;;  %11641 = vmatprep.subr.bf16.mxu0 %v13687_v54  ;;  %v13691_v54 = vld [vmem:[#allocation2 + $0x178] sm:$0xff]  }
 0x770   : > { %v5503_v27 = vmax.f32 %v17495_v43, %v17487_v10  ;;  %v17564_v43 = vadd.f32 %v17428_v28, %v17080_v7 }
 0x771   : > { %v5737_v29 = vadd.f32 %v17484_v20, %v5736_v55  ;;  %13845 = vpow2.f32 %v5644_v46  ;;  %v13692_v46 = vld [vmem:[#allocation2 + $0x138] sm:$0xff]  }
 0x773   : > { %v17489_v2 = vpop.eup %13831 }
 0x774   : > { %v5796_v21 = vmul.f32 %v17489_v2, %v17232_v25  ;;  %v5797_v58 = vmul.f32 %v17489_v2, %v17235_v13  ;;  %v5798_v15 = vmul.f32 %v17489_v2, %v17249_v30  ;;  %v5799_v49 = vmul.f32 %v17489_v2, %v17263_v39  ;;  %v12578_v13 = vpop.f32.mrf.mxu1  ;;  %v13688_v30 = vld [vmem:[#allocation2 + $0x148] sm:$0xff]  }
 0x775   : > { %v5800_v18 = vmul.f32 %v17489_v2, %v17274_v60  ;;  %v5801_v51 = vmul.f32 %v17489_v2, %v17281_v48  ;;  %v17511_v4 = vmul.f32 %v17489_v2, %v17291_v53  ;;  %v17515_v25 = vmul.f32 %v17489_v2, %v17301_v56  ;;  %v13689_v56 = vld [vmem:[#allocation2 + $0x180] sm:$0xff]   ;;  %11642 = vmatpush3.bf16.msra.mxu0 %v13688_v30  ;;  %v17547_v55 = vpop.eup %13833 }
 0x776   : > { %v17519_v39 = vmul.f32 %v17489_v2, %v17308_v11  ;;  %v17523_v60 = vmul.f32 %v17489_v2, %v17312_v36  ;;  %v17527_v48 = vmul.f32 %v17489_v2, %v17320_v45  ;;  %v17531_v53 = vmul.f32 %v17489_v2, %v17331_v0  ;;  %v5417_v33 = vpop.f32.mrf.mxu1  ;;  %11643 = vmatprep.subr.bf16.mxu0 %v13689_v56 }
 0x777   : > { %v17535_v42 = vmul.f32 %v17489_v2, %v17346_v1  ;;  %v17539_v11 = vmul.f32 %v17489_v2, %v17360_v17  ;;  %v5860_v36 = vmul.f32 %v5796_v21, %v16684_v52  ;;  %v5861_v41 = vmul.f32 %v5797_v58, %v16686_v22  ;;  %v17554_v21 = vpop.eup %13835 }
 0x778   : > { %v5550_v45 = vsub.f32 %v17254_v24, %v17464_v9  ;;  %v5551_v0 = vsub.f32 %v17266_v38, %v17464_v9  ;;  %v5862_v1 = vmul.f32 %v5798_v15, %v16690_v63  ;;  %v5552_v17 = vsub.f32 %v17277_v50, %v17464_v9  ;;  %v17557_v30 = vpop.eup %13837 }
 0x779   : > { %v5924_v24 = vadd.f32 %v5861_v41, %v5860_v36  ;;  %v5738_v38 = vadd.f32 %v17547_v55, %v5737_v29  ;;  %v5646_v58 = vmul.f32 1.442695, %v5549_v37  ;;  %v5863_v52 = vmul.f32 %v5799_v49, %v16692_v59  ;;  %v17566_v56 = vpop.eup %13839  ;;  %v17569_v37 = vpop.f32.mrf.mxu1  ;;  %11644 = vmatpush3.bf16.msra.mxu0 %v13690_v12 }
 0x77a   : > { %v5553_v15 = vsub.f32 %v17285_v57, %v17464_v9  ;;  %v5648_v50 = vmul.f32 1.442695, %v5550_v45  ;;  %v5650_v29 = vmul.f32 1.442695, %v5551_v0  ;;  %v17571_v49 = vpop.eup %13841  ;;  %v5864_v57 = vmul.f32 %v5800_v18, %v16698_v26  ;;  %11645 = vmatprep.subr.bf16.mxu0 %v13691_v54  ;;  %v20091_v26 = vld [vmem:[#allocation178_spill] sm:$0xff] }
 0x77b   : > { %v5925_v63 = vadd.f32 %v5924_v24, %v5862_v1  ;;  %v5739_v36 = vadd.f32 %v17554_v21, %v5738_v38  ;;  %13847 = vpow2.f32 %v5646_v58  ;;  %v5554_v41 = vsub.f32 %v17294_v31, %v17464_v9  ;;  %v13693_v1 = vld [vmem:[#allocation2 + $0x170] sm:$0xff]   ;;  %v17580_v24 = vpop.eup %13843  ;;  %v20090_v58 = vld [vmem:[#allocation157_spill] sm:$0xff] }
 0x77c   : > { %v5652_v28 = vmul.f32 1.442695, %v5552_v17  ;;  %v17578_v45 = vadd.f32 %v17456_v32, %v17080_v7  ;;  %13849 = vpow2.f32 %v5648_v50  ;;  %v5504_v38 = vmax.f32 %v5503_v27, %v17564_v43  ;;  %v20092_v17 = vld [vmem:[#allocation146_spill] sm:$0xff]  ;;  %v20093_v27 = vld [vmem:[#allocation111_spill] sm:$0xff] }
 0x77d   : > { %v5926_v0 = vadd.f32 %v5925_v63, %v5863_v52  ;;  %v5740_v12 = vadd.f32 %v17557_v30, %v5739_v36  ;;  %v5865_v18 = vmul.f32 %v5801_v51, %v20090_v58  ;;  %v5555_v31 = vsub.f32 %v20091_v26, %v17464_v9  ;;  %v5420_v63 = vpop.f32.mrf.mxu1  ;;  %11646 = vmatpush3.bf16.msra.mxu0 %v13692_v46  ;;  %v13694_v50 = vld [vmem:[#allocation2 + $0x130] sm:$0xff]   ;;  %v20094_v36 = vld [vmem:[#allocation148_spill] sm:$0xff] }
 0x77e   : > { %v5556_v59 = vsub.f32 %v20092_v17, %v17464_v9  ;;  %v17590_v32 = vadd.f32 %v12578_v13, %v17080_v7  ;;  %13851 = vpow2.f32 %v5650_v29  ;;  %v5654_v52 = vmul.f32 1.442695, %v5553_v15  ;;  %11647 = vmatprep.subr.bf16.mxu0 %v13693_v1  ;;  %v13695_v17 = vld [vmem:[#allocation2 + $0x168] sm:$0xff]  }
 0x77f   : > { %v5927_v54 = vadd.f32 %v5926_v0, %v5864_v57  ;;  %v5741_v22 = vadd.f32 %v17566_v56, %v5740_v12  ;;  %v5866_v51 = vmul.f32 %v17511_v4, %v20093_v27  ;;  %v5557_v26 = vsub.f32 %v20094_v36, %v17464_v9  ;;  %v20095_v29 = vld [vmem:[#allocation113_spill] sm:$0xff]  ;;  %v17620_v36 = vpop.eup %13845 }
 0x780   : > { %13853 = vpow2.f32 %v5652_v28  ;;  %v5656_v58 = vmul.f32 1.442695, %v5554_v41  ;;  %v17599_v0 = vadd.f32 %v17080_v7, %v5417_v33  ;;  %v5505_v15 = vmax.f32 %v5504_v38, %v17578_v45  ;;  %v13696_v33 = vld [vmem:[#allocation2 + $0x128] sm:$0xff]   ;;  %v20096_v38 = vld [vmem:[#allocation155_spill] sm:$0xff] }
 0x781   : > { %v5928_v13 = vadd.f32 %v5927_v54, %v5865_v18  ;;  %v5742_v57 = vadd.f32 %v17571_v49, %v5741_v22  ;;  %v5867_v46 = vmul.f32 %v17515_v25, %v20095_v29  ;;  %v5658_v12 = vmul.f32 1.442695, %v5555_v31  ;;  %11648 = vmatpush3.bf16.msra.mxu0 %v13694_v50  ;;  %v13697_v54 = vld [vmem:[#allocation2 + $0x160] sm:$0xff]   ;;  %v20097_v50 = vld [vmem:[#allocation110_spill] sm:$0xff] }
 0x782   : > { %v17605_v4 = vadd.f32 %v17080_v7, %v5420_v63  ;;  %v17609_v41 = vmul.f32 %v17489_v2, %v17366_v16  ;;  %13855 = vpow2.f32 %v5654_v52  ;;  %v5506_v22 = vmax.f32 %v5505_v15, %v17599_v0  ;;  %11649 = vmatprep.subr.bf16.mxu0 %v13695_v17 }
 0x783   : > { %v5929_v28 = vadd.f32 %v5928_v13, %v5866_v51  ;;  %v5743_v1 = vadd.f32 %v17580_v24, %v5742_v57  ;;  %v5868_v18 = vmul.f32 %v17519_v39, %v20096_v38  ;;  %v5558_v25 = vsub.f32 %v17363_v62, %v17464_v9  ;;  %v13698_v62 = vld [vmem:[#allocation2 + $0x120] sm:$0xff]  }
 0x784   : > { %v5660_v31 = vmul.f32 1.442695, %v5556_v59  ;;  %v5811_v16 = vmul.f32 %v17489_v2, %v17372_v35  ;;  %13857 = vpow2.f32 %v5656_v58  ;;  %v5507_v52 = vmax.f32 %v5506_v22, %v17605_v4  ;;  %v20098_v35 = vld [vmem:[#allocation112_spill] sm:$0xff]  ;;  %v20099_v22 = vld [vmem:[#allocation159_spill] sm:$0xff] }
 0x785   : > { %v5930_v63 = vadd.f32 %v5929_v28, %v5867_v46  ;;  %v5744_v51 = vrot.slane %v5743_v1, 4  ;;  %v5869_v13 = vmul.f32 %v17523_v60, %v20097_v50  ;;  %v5662_v39 = vmul.f32 1.442695, %v5557_v26  ;;  %11650 = vmatpush3.bf16.msra.mxu0 %v13696_v33 }
 0x786   : > { %13859 = vpow2.f32 %v5658_v12  ;;  %v5508_v59 = vmax.f32 %v5507_v52, %v17590_v32  ;;  %v5870_v2 = vmul.f32 %v17527_v48, %v20098_v35  ;;  %v5559_v58 = vsub.f32 %v17375_v40, %v17464_v9  ;;  %11651 = vmatprep.subr.bf16.mxu0 %v13697_v54 }
 0x787   : > { %v5931_v57 = vadd.f32 %v5930_v63, %v5868_v18  ;;  %v5745_v15 = vadd.f32 %v5744_v51, %v5743_v1  ;;  %v5664_v46 = vmul.f32 1.442695, %v5558_v25  ;;  %v17633_v60 = vadd.f32 %v17569_v37, %v17080_v7  ;;  %v20100_v25 = vld [vmem:[#allocation115_spill] sm:$0xff] }
 0x788   : > { %v17625_v17 = vpop.eup %13847  ;;  %13861 = vpow2.f32 %v5660_v31  ;;  %v5871_v48 = vmul.f32 %v17531_v53, %v20099_v22  ;;  %v5872_v31 = vmul.f32 %v17535_v42, %v20100_v25  ;;  %v5666_v54 = vmul.f32 1.442695, %v5559_v58 }
 0x789   : > { %v5932_v26 = vadd.f32 %v5931_v57, %v5869_v13  ;;  %v5746_v12 = vrot.slane %v5745_v15, 2  ;;  %v5750_v28 = vadd.f32 %v17625_v17, %v17620_v36  ;;  %v17637_v1 = vpop.eup %13849  ;;  %v5509_v33 = vmax.f32 %v5508_v59, %v17633_v60  ;;  %11652 = vmatpush3.bf16.msra.mxu0 %v13698_v62 }
 0x78a   : > { %13863 = vpow2.f32 %v5662_v39  ;;  %v20101_v51 = vmov 0.0   ;;  %v5560_v58 = vsub.f32 %v17379_v47, %v17464_v9 }
 0x78b   : > { %v5933_v40 = vadd.f32 %v5932_v26, %v5870_v2  ;;  %v5747_v18 = vadd.f32 %v5746_v12, %v5745_v15  ;;  %v5751_v7 = vadd.f32 %v17637_v1, %v5750_v28  ;;  %v17643_v37 = vpop.eup %13851  ;;  %v5510_v63 = vrot.slane %v5509_v33, 4  ;;  %12580 = vmatprep.subr.bf16.mxu0 %v20101_v51  ;;  %v20102_v15 = vld [vmem:[#allocation117_spill] sm:$0xff] }
 0x78c   : > { %13865 = vpow2.f32 %v5664_v46  ;;  %v5873_v59 = vmul.f32 %v17539_v11, %v20102_v15  ;;  %v20104_v11 = vld [vmem:[#allocation179_spill] sm:$0xff] }
 0x78d   : > { %v17648_v52 = vpop.eup %13853  ;;  %v5934_v53 = vadd.f32 %v5933_v40, %v5871_v48  ;;  %v5748_v13 = vrot.slane %v5747_v18, 1  ;;  %v5752_v57 = vadd.f32 %v17643_v37, %v5751_v7  ;;  %v5511_v39 = vmax.f32 %v5509_v33, %v5510_v63  ;;  %v20103_v48 = vld [vmem:[#allocation158_spill] sm:$0xff] }
 0x78e   : > { %13867 = vpow2.f32 %v5666_v54  ;;  %v5874_v33 = vmul.f32 %v17609_v41, %v20103_v48  ;;  %v20105_v63 = vld [vmem:[#allocation114_spill] sm:$0xff]  ;;  %v5563_v41 = vsub.f32 %v17404_v14, %v17464_v9  ;;  %v20106_v14 = vld [vmem:[#allocation151_spill] sm:$0xff] }
 0x78f   : > { %v5935_v62 = vadd.f32 %v5934_v53, %v5872_v31  ;;  %v5749_v2 = vadd.f32 %v5748_v13, %v5747_v18  ;;  %v5753_v26 = vadd.f32 %v17648_v52, %v5752_v57  ;;  %v17654_v42 = vpop.eup %13855  ;;  %v5512_v12 = vrot.slane %v5511_v39, 2 }
 0x790   : > { %v5561_v18 = vsub.f32 %v20104_v11, %v17464_v9  ;;  %v5875_v53 = vmul.f32 %v5811_v16, %v20105_v63  ;;  %v5562_v13 = vsub.f32 %v17387_v23, %v17464_v9  ;;  %v5668_v57 = vmul.f32 1.442695, %v5560_v58  ;;  %v20107_v11 = vld [vmem:[#allocation153_spill] sm:$0xff]  ;;  %v20112_v63 = vld [vmem:[#allocation183_spill] sm:$0xff] }
 0x791   : > { %v5936_v28 = vadd.f32 %v5935_v62, %v5873_v59  ;;  %13869 = vrcp.f32 %v5749_v2  ;;  %v5754_v46 = vadd.f32 %v17654_v42, %v5753_v26  ;;  %v17661_v40 = vpop.eup %13857  ;;  %v5513_v7 = vmax.f32 %v5511_v39, %v5512_v12 }
 0x792   : > { %v5670_v26 = vmul.f32 1.442695, %v5561_v18  ;;  %13871 = vpow2.f32 %v5668_v57  ;;  %v5672_v23 = vmul.f32 1.442695, %v5562_v13  ;;  %v5674_v58 = vmul.f32 1.442695, %v5563_v41 }
 0x793   : > { %v5755_v31 = vadd.f32 %v17661_v40, %v5754_v46  ;;  %v5937_v47 = vadd.f32 %v5936_v28, %v5874_v33  ;;  %v17667_v54 = vpop.eup %13859  ;;  %v5514_v59 = vrot.slane %v5513_v7, 1 }
 0x794   : > { %13873 = vpow2.f32 %v5670_v26 }
 0x795   : > { %v5756_v62 = vadd.f32 %v17667_v54, %v5755_v31  ;;  %v17674_v2 = vadd.f32 %v5937_v47, %v5875_v53  ;;  %v17676_v39 = vpop.eup %13861  ;;  %v17678_v12 = vmax.f32 %v5513_v7, %v5514_v59  ;;  %13875 = vpow2.f32 %v5672_v23  ;;  %v20108_v53 = vld [vmem:[#allocation150_spill] sm:$0xff]  ;;  %v20109_v59 = vld [vmem:[#allocation152_spill] sm:$0xff] }
 0x796   : > { %13877 = vpow2.f32 %v5674_v58 }
 0x797   : > { %v5757_v16 = vadd.f32 %v17676_v39, %v5756_v62  ;;  %v17681_v28 = vpop.eup %13863  ;;  %v5564_v9 = vsub.f32 %v20106_v14, %v17678_v12  ;;  %v5565_v18 = vsub.f32 %v20107_v11, %v17678_v12  ;;  %v5566_v47 = vsub.f32 %v20108_v53, %v17678_v12  ;;  %v20111_v11 = vld [vmem:[#allocation44_spill] sm:$0xff] }
 0x798   : > { %v5567_v41 = vsub.f32 %v20109_v59, %v17678_v12 }
 0x799   : > { %v5758_v46 = vadd.f32 %v17681_v28, %v5757_v16  ;;  %v17684_v33 = vpop.eup %13865  ;;  %v5676_v62 = vmul.f32 1.442695, %v5564_v9  ;;  %v5678_v26 = vmul.f32 1.442695, %v5565_v18  ;;  %v20110_v16 = vld [vmem:[#allocation177_spill] sm:$0xff] }
 0x79a   : > { %v5682_v25 = vmul.f32 1.442695, %v5567_v41  ;;  %v20120_v41 = vld [vmem:[#allocation118_spill] sm:$0xff] }
 0x79b   : > { %v5759_v7 = vadd.f32 %v17684_v33, %v5758_v46  ;;  %v17691_v31 = vpop.eup %13867  ;;  %13879 = vpow2.f32 %v5676_v62  ;;  %v20119_v62 = vld [vmem:[#allocation119_spill] sm:$0xff] }
 0x79c   : > { %13881 = vpow2.f32 %v5678_v26 }
 0x79d   : > { %v5760_v57 = vadd.f32 %v17691_v31, %v5759_v7 }
 0x79e   : > { %v13870_v13 = vpop.eup %13869 }
 0x79f   : > { %v5812_v14 = vmul.f32 %v13870_v13, %v20110_v16  ;;  %v5813_v51 = vmul.f32 %v13870_v13, %v20111_v11  ;;  %v5814_v23 = vmul.f32 %v13870_v13, %v17425_v6  ;;  %v5815_v46 = vmul.f32 %v13870_v13, %v17431_v61  ;;  %v20113_v6 = vld [vmem:[#allocation161_spill] sm:$0xff] }
 0x7a0   : > { %v5816_v58 = vmul.f32 %v13870_v13, %v17435_v44  ;;  %v5817_v53 = vmul.f32 %v13870_v13, %v20112_v63  ;;  %v5818_v48 = vmul.f32 %v13870_v13, %v17458_v3  ;;  %v5819_v7 = vmul.f32 %v13870_v13, %v17469_v8  ;;  %v20114_v63 = vld [vmem:[#allocation116_spill] sm:$0xff] }
 0x7a1   : > { %v5820_v59 = vmul.f32 %v13870_v13, %v17478_v19  ;;  %v5821_v9 = vmul.f32 %v13870_v13, %v17484_v20  ;;  %v17709_v18 = vmul.f32 %v13870_v13, %v17547_v55  ;;  %v17712_v16 = vmul.f32 %v13870_v13, %v17554_v21  ;;  %v20115_v19 = vld [vmem:[#allocation180_spill] sm:$0xff]  ;;  %v17724_v55 = vpop.eup %13871  ;;  %v20116_v21 = vld [vmem:[#allocation41_spill] sm:$0xff] }
 0x7a2   : > { %v17715_v61 = vmul.f32 %v13870_v13, %v17557_v30  ;;  %v17718_v44 = vmul.f32 %v13870_v13, %v17566_v56  ;;  %v5876_v3 = vmul.f32 %v5812_v14, %v20113_v6  ;;  %v5877_v8 = vmul.f32 %v5813_v51, %v20114_v63  ;;  %v20117_v30 = vld [vmem:[#allocation160_spill] sm:$0xff]  ;;  %v17730_v14 = vpop.eup %13873  ;;  %v20118_v51 = vld [vmem:[#allocation182_spill] sm:$0xff] }
 0x7a3   : > { %v5568_v11 = vsub.f32 %v20115_v19, %v17678_v12  ;;  %v5680_v20 = vmul.f32 1.442695, %v5566_v47  ;;  %v5569_v15 = vsub.f32 %v20116_v21, %v17678_v12  ;;  %v5878_v22 = vmul.f32 %v5814_v23, %v20117_v30  ;;  %v17736_v21 = vpop.eup %13875 }
 0x7a4   : > { %v5945_v35 = vadd.f32 %v5877_v8, %v5876_v3  ;;  %v5761_v56 = vadd.f32 %v17724_v55, %v5760_v57  ;;  %v5570_v50 = vsub.f32 %v20118_v51, %v17678_v12  ;;  %v5879_v47 = vmul.f32 %v5815_v46, %v20119_v62  ;;  %v17741_v3 = vpop.eup %13877 }
 0x7a5   : > { %v5684_v19 = vmul.f32 1.442695, %v5568_v11  ;;  %13883 = vpow2.f32 %v5680_v20  ;;  %v5880_v23 = vmul.f32 %v5816_v58, %v20120_v41  ;;  %v5571_v57 = vsub.f32 %v17467_v5, %v17678_v12  ;;  %v20121_v58 = vld [vmem:[#allocation121_spill] sm:$0xff] }
 0x7a6   : > { %v5946_v38 = vadd.f32 %v5945_v35, %v5878_v22  ;;  %v5762_v29 = vadd.f32 %v17730_v14, %v5761_v56  ;;  %v5686_v26 = vmul.f32 1.442695, %v5569_v15  ;;  %13885 = vpow2.f32 %v5682_v25  ;;  %v20122_v25 = vld [vmem:[#allocation125_spill] sm:$0xff] }
 0x7a7   : > { %v17745_v46 = vmul.f32 %v13870_v13, %v17571_v49  ;;  %v5572_v35 = vsub.f32 %v17482_v34, %v17678_v12  ;;  %v5688_v22 = vmul.f32 1.442695, %v5570_v50  ;;  %v17750_v11 = vmul.f32 %v13870_v13, %v17580_v24  ;;  %v20123_v34 = vld [vmem:[#allocation120_spill] sm:$0xff] }
 0x7a8   : > { %v5947_v8 = vadd.f32 %v5946_v38, %v5879_v47  ;;  %v5763_v51 = vadd.f32 %v17736_v21, %v5762_v29  ;;  %v5881_v20 = vmul.f32 %v5817_v53, %v20121_v58  ;;  %13887 = vpow2.f32 %v5684_v19  ;;  %v20124_v19 = vld [vmem:[#allocation162_spill] sm:$0xff] }
 0x7a9   : > { %v5573_v29 = vsub.f32 %v17487_v10, %v17678_v12  ;;  %v5690_v38 = vmul.f32 1.442695, %v5571_v57  ;;  %v5882_v49 = vmul.f32 %v5818_v48, %v20122_v25  ;;  %13889 = vpow2.f32 %v5686_v26 }
 0x7aa   : > { %v5948_v5 = vadd.f32 %v5947_v8, %v5880_v23  ;;  %v5764_v15 = vadd.f32 %v17741_v3, %v5763_v51  ;;  %v5883_v50 = vmul.f32 %v5819_v7, %v20123_v34  ;;  %v5574_v24 = vsub.f32 %v17564_v43, %v17678_v12  ;;  %v17760_v8 = vpop.eup %13879  ;;  %v20125_v7 = vld [vmem:[#allocation123_spill] sm:$0xff] }
 0x7ab   : > { %13891 = vpow2.f32 %v5688_v22  ;;  %v5692_v23 = vmul.f32 1.442695, %v5572_v35  ;;  %v5884_v51 = vmul.f32 %v5820_v59, %v20124_v19  ;;  %v5575_v10 = vsub.f32 %v17578_v45, %v17678_v12  ;;  %v20126_v45 = vld [vmem:[#allocation163_spill] sm:$0xff] }
 0x7ac   : > { %v5949_v56 = vadd.f32 %v5948_v5, %v5881_v20  ;;  %v5765_v47 = vrot.slane %v5764_v15, 4  ;;  %13893 = vpow2.f32 %v5690_v38  ;;  %v5694_v26 = vmul.f32 1.442695, %v5573_v29  ;;  %v17765_v20 = vpop.eup %13881 }
 0x7ad   : > { %v5885_v5 = vmul.f32 %v5821_v9, %v20125_v7  ;;  %v5576_v43 = vsub.f32 %v17599_v0, %v17678_v12  ;;  %v5696_v22 = vmul.f32 1.442695, %v5574_v24  ;;  %13895 = vpow2.f32 %v5692_v23  ;;  %v20127_v24 = vld [vmem:[#allocation122_spill] sm:$0xff] }
 0x7ae   : > { %v5950_v13 = vadd.f32 %v5949_v56, %v5882_v49  ;;  %v5766_v53 = vadd.f32 %v5765_v47, %v5764_v15  ;;  %v5771_v59 = vadd.f32 %v17765_v20, %v17760_v8  ;;  %v5886_v38 = vmul.f32 %v17709_v18, %v20126_v45 }
 0x7af   : > { %v5577_v29 = vsub.f32 %v17605_v4, %v17678_v12  ;;  %v5698_v56 = vmul.f32 1.442695, %v5575_v10  ;;  %13897 = vpow2.f32 %v5694_v26  ;;  %v5700_v23 = vmul.f32 1.442695, %v5576_v43 }
 0x7b0   : > { %v5951_v48 = vadd.f32 %v5950_v13, %v5883_v50  ;;  %v5767_v57 = vrot.slane %v5766_v53, 2  ;;  %v5887_v13 = vmul.f32 %v17712_v16, %v20127_v24  ;;  %13899 = vpow2.f32 %v5696_v22 }
 0x7b1   : > { %v5579_v26 = vsub.f32 %v17633_v60, %v17678_v12  ;;  %13901 = vpow2.f32 %v5698_v56  ;;  %v5702_v16 = vmul.f32 1.442695, %v5577_v29  ;;  %v20131_v29 = vld [vmem:[#allocation129_spill] sm:$0xff] }
 0x7b2   : > { %v5952_v35 = vadd.f32 %v5951_v48, %v5884_v51  ;;  %v5768_v15 = vadd.f32 %v5767_v57, %v5766_v53  ;;  %v17772_v49 = vpop.eup %13883  ;;  %v5578_v53 = vsub.f32 %v17590_v32, %v17678_v12  ;;  %v20128_v48 = vld [vmem:[#allocation165_spill] sm:$0xff]  ;;  %v5890_v56 = vmul.f32 %v17745_v46, %v20131_v29 }
 0x7b3   : > { %v5772_v0 = vadd.f32 %v17772_v49, %v5771_v59  ;;  %v17779_v50 = vpop.eup %13885  ;;  %v5888_v57 = vmul.f32 %v17715_v61, %v20128_v48 }
 0x7b4   : > { %v5953_v9 = vadd.f32 %v5952_v35, %v5885_v5  ;;  %v5769_v47 = vrot.slane %v5768_v15, 1  ;;  %v20129_v35 = vld [vmem:[#allocation124_spill] sm:$0xff]  ;;  %v5704_v59 = vmul.f32 1.442695, %v5578_v53 }
 0x7b5   : > { %v5773_v4 = vadd.f32 %v17779_v50, %v5772_v0  ;;  %v17786_v10 = vpop.eup %13887  ;;  %v5889_v22 = vmul.f32 %v17718_v44, %v20129_v35  ;;  %v20133_v0 = vld [vmem:[#allocation166_spill] sm:$0xff] }
 0x7b6   : > { %v5954_v51 = vadd.f32 %v5953_v9, %v5886_v38  ;;  %v5770_v18 = vadd.f32 %v5769_v47, %v5768_v15  ;;  %v17793_v43 = vpop.eup %13889  ;;  %v5706_v9 = vmul.f32 1.442695, %v5579_v26 }
 0x7b7   : > { %v5774_v32 = vadd.f32 %v17786_v10, %v5773_v4 }
 0x7b8   : > { %v5955_v5 = vadd.f32 %v5954_v51, %v5887_v13  ;;  %13903 = vrcp.f32 %v5770_v18  ;;  %v17798_v61 = vpop.eup %13891  ;;  %v5891_v13 = vmul.f32 %v17750_v11, %v20133_v0  ;;  %v5939_v18 = vrot.slane %v17674_v2, 4 }
 0x7b9   : > { %13905 = vpow2.f32 %v5700_v23  ;;  %v5775_v38 = vadd.f32 %v17793_v43, %v5774_v32  ;;  %20130 = vst [vmem:[#allocation42_spill] sm:$0xff] %v17798_v61  ;;  %v17803_v47 = vpop.eup %13893  ;;  %v6029_v11 = vmax.f32 %v20113_v6, %v20114_v63  ;;  %v20139_v32 = vld [vmem:[#allocation126_spill] sm:$0xff] }
 0x7ba   : > { %v5956_v15 = vadd.f32 %v5955_v5, %v5888_v57  ;;  %13907 = vpow2.f32 %v5702_v16  ;;  %20132 = vst [vmem:[#allocation43_spill] sm:$0xff] %v17803_v47  ;;  %v17808_v23 = vpop.eup %13895  ;;  %v20138_v16 = vld [vmem:[#allocation127_spill] sm:$0xff] }
 0x7bb   : > { %v5776_v12 = vadd.f32 %v17798_v61, %v5775_v38  ;;  %13909 = vpow2.f32 %v5704_v59  ;;  %20134 = vst [vmem:[#allocation181_spill] sm:$0xff] %v17808_v23  ;;  %v5940_v59 = vadd.f32 %v5939_v18, %v17674_v2  ;;  %v6030_v2 = vmax.f32 %v6029_v11, %v20117_v30  ;;  %v20145_v18 = vld [vmem:[#allocation167_spill] sm:$0xff] }
 0x7bc   : > { %v5957_v60 = vadd.f32 %v5956_v15, %v5889_v22  ;;  %13911 = vpow2.f32 %v5706_v9  ;;  %v17812_v57 = vpop.eup %13897  ;;  %v6050_v22 = vmax.f32 %v20139_v32, %v20138_v16  ;;  %v20140_v9 = vld [vmem:[#allocation154_spill] sm:$0xff] }
 0x7bd   : > { %v5777_v44 = vadd.f32 %v17803_v47, %v5776_v12  ;;  %20135 = vst [vmem:[#allocation46_spill] sm:$0xff] %v17812_v57  ;;  %v17815_v26 = vpop.eup %13899 }
 0x7be   : > { %v5958_v53 = vadd.f32 %v5957_v60, %v5890_v56  ;;  %20136 = vst [vmem:[#allocation47_spill] sm:$0xff] %v17815_v26  ;;  %v17817_v5 = vpop.eup %13901  ;;  %v20141_v60 = vld [vmem:[#allocation109_spill] sm:$0xff]  ;;  %v20142_v56 = vld [vmem:[#allocation134_spill] sm:$0xff] }
 0x7bf   : > { %v5778_v51 = vadd.f32 %v17808_v23, %v5777_v44  ;;  %20137 = vst [vmem:[#allocation48_spill] sm:$0xff] %v17817_v5  ;;  %v6008_v12 = vmax.f32 %v20141_v60, %v20140_v9  ;;  %v20143_v44 = vld [vmem:[#allocation141_spill] sm:$0xff]  ;;  %v5941_v60 = vrot.slane %v5940_v59, 2 }
 0x7c0   : > { %v5959_v4 = vadd.f32 %v5958_v53, %v5891_v13  ;;  %v6071_v13 = vmax.f32 %v20143_v44, %v20142_v56 }
 0x7c1   : > { %v5779_v46 = vadd.f32 %v17812_v57, %v5778_v51  ;;  %v20147_v57 = vld [vmem:[#allocation106_spill] sm:$0xff] }
 0x7c3   : > { %v5780_v15 = vadd.f32 %v17815_v26, %v5779_v46  ;;  %v5960_v46 = vrot.slane %v5959_v4, 4  ;;  %v6051_v26 = vmax.f32 %v6050_v22, %v20145_v18 }
 0x7c5   : > { %v17825_v38 = vpop.eup %13903  ;;  %v5781_v53 = vadd.f32 %v17817_v5, %v5780_v15  ;;  %v6009_v15 = vmax.f32 %v6008_v12, %v20147_v57  ;;  %v20148_v5 = vld [vmem:[#allocation140_spill] sm:$0xff]  ;;  %v5961_v22 = vadd.f32 %v5960_v46, %v5959_v4  ;;  %v5942_v12 = vadd.f32 %v5941_v60, %v5940_v59  ;;  %v20153_v59 = vld [vmem:[#allocation131_spill] sm:$0xff] }
 0x7c6   : > { %v17832_v51 = vpop.eup %13905  ;;  %v5828_v6 = vmul.f32 %v17825_v38, %v17620_v36  ;;  %v5829_v63 = vmul.f32 %v17825_v38, %v17625_v17  ;;  %v6072_v23 = vmax.f32 %v6071_v13, %v20148_v5  ;;  %v5830_v17 = vmul.f32 %v17825_v38, %v17637_v1  ;;  %v20152_v1 = vld [vmem:[#allocation172_spill] sm:$0xff] }
 0x7c7   : > { %20144 = vst [vmem:[#allocation45_spill] sm:$0xff] %v17832_v51  ;;  %v5782_v9 = vadd.f32 %v17832_v51, %v5781_v53  ;;  %v17841_v0 = vpop.eup %13907  ;;  %v6031_v53 = vmax.f32 %v6030_v2, %v20119_v62  ;;  %v20149_v51 = vld [vmem:[#allocation128_spill] sm:$0xff]  ;;  %v5832_v4 = vmul.f32 %v17825_v38, %v17648_v52  ;;  %v5943_v46 = vrot.slane %v5942_v12, 1  ;;  %v20155_v52 = vld [vmem:[#allocation139_spill] sm:$0xff] }
 0x7c8   : > { %20146 = vst [vmem:[#allocation50_spill] sm:$0xff] %v17841_v0  ;;  %v17846_v36 = vpop.eup %13909  ;;  %v5892_v30 = vmul.f32 %v5828_v6, %v20139_v32  ;;  %v5893_v11 = vmul.f32 %v5829_v63, %v20138_v16  ;;  %v6052_v47 = vmax.f32 %v6051_v26, %v20149_v51  ;;  %v6073_v35 = vmax.f32 %v6072_v23, %v20152_v1  ;;  %v20154_v60 = vld [vmem:[#allocation156_spill] sm:$0xff] }
 0x7c9   : > { %v5783_v29 = vadd.f32 %v17841_v0, %v5782_v9  ;;  %v17855_v13 = vpop.eup %13911  ;;  %v5831_v9 = vmul.f32 %v17825_v38, %v17643_v37  ;;  %v20151_v0 = vld [vmem:[#allocation108_spill] sm:$0xff]  ;;  %v5894_v62 = vmul.f32 %v5830_v17, %v20145_v18  ;;  %v5962_v26 = vrot.slane %v5961_v22, 2 }
 0x7ca   : > { %20150 = vst [vmem:[#allocation51_spill] sm:$0xff] %v17855_v13  ;;  %v6010_v61 = vmax.f32 %v6009_v15, %v20151_v0  ;;  %v5966_v16 = vadd.f32 %v5893_v11, %v5892_v30  ;;  %v6053_v6 = vmax.f32 %v6052_v47, %v20153_v59  ;;  %v5833_v37 = vmul.f32 %v17825_v38, %v17654_v42 }
 0x7cb   : > { %v5784_v57 = vadd.f32 %v17846_v36, %v5783_v29  ;;  %v6032_v29 = vmax.f32 %v6031_v53, %v20120_v41  ;;  %v5895_v0 = vmul.f32 %v5831_v9, %v20149_v51  ;;  %v5963_v23 = vadd.f32 %v5962_v26, %v5961_v22  ;;  %v20156_v53 = vld [vmem:[#allocation164_spill] sm:$0xff] }
 0x7cc   : > { %v5967_v2 = vadd.f32 %v5966_v16, %v5894_v62  ;;  %v6011_v15 = vmax.f32 %v6010_v61, %v20154_v60  ;;  %v5834_v17 = vmul.f32 %v17825_v38, %v17661_v40  ;;  %v5896_v41 = vmul.f32 %v5832_v4, %v20153_v59  ;;  %v20158_v40 = vld [vmem:[#allocation138_spill] sm:$0xff] }
 0x7cd   : > { %v5785_v32 = vadd.f32 %v17855_v13, %v5784_v57  ;;  %v6074_v57 = vmax.f32 %v6073_v35, %v20155_v52  ;;  %v5964_v47 = vrot.slane %v5963_v23, 1  ;;  %v6033_v11 = vmax.f32 %v6032_v29, %v20121_v58  ;;  %v20159_v58 = vld [vmem:[#allocation132_spill] sm:$0xff] }
 0x7ce   : > { %v5968_v30 = vadd.f32 %v5967_v2, %v5895_v0  ;;  %v6054_v42 = vmax.f32 %v6053_v6, %v20156_v53  ;;  %v5944_v51 = vadd.f32 %v5943_v46, %v5942_v12  ;;  %v5835_v22 = vmul.f32 %v17825_v38, %v17667_v54  ;;  %v20161_v2 = vld [vmem:[#allocation143_spill] sm:$0xff] }
 0x7cf   : > { %v5786_v63 = vrot.slane %v5785_v32, 4  ;;  %v5897_v61 = vmul.f32 %v5833_v37, %v20156_v53  ;;  %v5965_v35 = vadd.f32 %v5964_v47, %v5963_v23  ;;  %v6075_v26 = vmax.f32 %v6074_v57, %v20158_v40  ;;  %v20160_v37 = vld [vmem:[#allocation133_spill] sm:$0xff]  ;;  %v20162_v57 = vld [vmem:[#allocation168_spill] sm:$0xff]  ;;  %v20163_v47 = vld [vmem:[#allocation130_spill] sm:$0xff] }
 0x7d0   : > { %v5969_v9 = vadd.f32 %v5968_v30, %v5896_v41  ;;  %v5836_v16 = vmul.f32 %v17825_v38, %v17676_v39  ;;  %v5898_v29 = vmul.f32 %v5834_v17, %v20159_v58  ;;  %v6034_v54 = vmax.f32 %v6033_v11, %v20122_v25  ;;  %v20164_v11 = vld [vmem:[#allocation113_spill] sm:$0xff] }
 0x7d1   : > { %v5787_v18 = vadd.f32 %v5786_v63, %v5785_v32  ;;  %v20157_v32 = vld [vmem:[#allocation157_spill] sm:$0xff]  ;;  %v17886_v12 = vsel %vm4726_vm7, %v5965_v35, %v5944_v51  ;;  %v6055_v63 = vmax.f32 %v6054_v42, %v20159_v58  ;;  %v5837_v46 = vmul.f32 %v17825_v38, %v17681_v28  ;;  %v20165_v42 = vld [vmem:[#allocation174_spill] sm:$0xff] }
 0x7d2   : > { %v6012_v62 = vmax.f32 %v6011_v15, %v20157_v32  ;;  %v5970_v59 = vadd.f32 %v5969_v9, %v5897_v61  ;;  %v5899_v0 = vmul.f32 %v5835_v22, %v20160_v37  ;;  %v6076_v60 = vmax.f32 %v6075_v26, %v20161_v2  ;;  %v20166_v22 = vld [vmem:[#allocation135_spill] sm:$0xff]  ;;  %v20167_v32 = vld [vmem:[#allocation169_spill] sm:$0xff] }
 0x7d3   : > { %v5788_v13 = vrot.slane %v5787_v18, 2  ;;  %v5838_v15 = vmul.f32 %v17825_v38, %v17684_v33  ;;  %v6035_v17 = vmax.f32 %v6034_v54, %v20123_v34  ;;  %v6056_v41 = vmax.f32 %v6055_v63, %v20160_v37  ;;  %v20169_v58 = vld [vmem:[#allocation145_spill] sm:$0xff] }
 0x7d4   : > { %v6013_v23 = vmax.f32 %v6012_v62, %v20093_v27  ;;  %v5839_v28 = vmul.f32 %v17825_v38, %v17691_v31  ;;  %v5901_v30 = vmul.f32 %v5837_v46, %v20163_v47  ;;  %v6077_v51 = vmax.f32 %v6076_v60, %v20165_v42  ;;  %v20171_v46 = vld [vmem:[#allocation171_spill] sm:$0xff]  ;;  %v20174_v60 = vld [vmem:[#allocation136_spill] sm:$0xff] }
 0x7d5   : > { %v5789_v4 = vadd.f32 %v5788_v13, %v5787_v18  ;;  %v5971_v13 = vadd.f32 %v5970_v59, %v5898_v29  ;;  %v5900_v18 = vmul.f32 %v5836_v16, %v20162_v57  ;;  %v5840_v33 = vmul.f32 %v17825_v38, %v17724_v55  ;;  %v20170_v59 = vld [vmem:[#allocation137_spill] sm:$0xff] }
 0x7d6   : > { %v6014_v53 = vmax.f32 %v6013_v23, %v20164_v11  ;;  %v5902_v61 = vmul.f32 %v5838_v15, %v20166_v22  ;;  %v6036_v34 = vmax.f32 %v6035_v17, %v20124_v19  ;;  %v6057_v9 = vmax.f32 %v6056_v41, %v20162_v57  ;;  %v20173_v23 = vld [vmem:[#allocation175_spill] sm:$0xff] }
 0x7d7   : > { %v5790_v6 = vrot.slane %v5789_v4, 1  ;;  %v5972_v25 = vadd.f32 %v5971_v13, %v5899_v0  ;;  %v5841_v31 = vmul.f32 %v17825_v38, %v17730_v14  ;;  %v5903_v62 = vmul.f32 %v5839_v28, %v20167_v32  ;;  %v20172_v0 = vld [vmem:[#allocation110_spill] sm:$0xff]  ;;  %v20175_v28 = vld [vmem:[#allocation112_spill] sm:$0xff] }
 0x7d8   : > { %v6078_v29 = vmax.f32 %v6077_v51, %v20169_v58  ;;  %v5842_v55 = vmul.f32 %v17825_v38, %v17736_v21  ;;  %v5904_v54 = vmul.f32 %v5840_v33, %v20170_v59  ;;  %v6037_v19 = vmax.f32 %v6036_v34, %v20125_v7 }
 0x7d9   : > { %v5791_v39 = vadd.f32 %v5790_v6, %v5789_v4  ;;  %v5973_v27 = vadd.f32 %v5972_v25, %v5900_v18  ;;  %v20168_v4 = vld [vmem:[#allocation155_spill] sm:$0xff]  ;;  %v6058_v63 = vmax.f32 %v6057_v9, %v20163_v47  ;;  %v5905_v37 = vmul.f32 %v5841_v31, %v20171_v46  ;;  %v20179_v9 = vld [vmem:[#allocation170_spill] sm:$0xff] }
 0x7da   : > { %v6015_v16 = vmax.f32 %v6014_v53, %v20168_v4  ;;  %v5906_v15 = vmul.f32 %v5842_v55, %v20174_v60  ;;  %v6038_v21 = vmax.f32 %v6037_v19, %v20126_v45  ;;  %v5843_v11 = vmul.f32 %v17825_v38, %v17741_v3  ;;  %v20182_v55 = vld [vmem:[#allocation124_spill] sm:$0xff] }
 0x7db   : > { %13913 = vrcp.f32 %v5791_v39  ;;  %v5974_v35 = vadd.f32 %v5973_v27, %v5901_v30  ;;  %v6079_v39 = vmax.f32 %v6078_v29, %v20173_v23  ;;  %v6059_v25 = vmax.f32 %v6058_v63, %v20166_v22  ;;  %v20176_v30 = vld [vmem:[#allocation144_spill] sm:$0xff]  ;;  %v20177_v22 = vld [vmem:[#allocation159_spill] sm:$0xff] }
 0x7dc   : > { %v6016_v13 = vmax.f32 %v6015_v16, %v20172_v0  ;;  %v6039_v53 = vmax.f32 %v6038_v21, %v20127_v24  ;;  %v5907_v3 = vmul.f32 %v5843_v11, %v20179_v9  ;;  %v20185_v0 = vld [vmem:[#allocation142_spill] sm:$0xff]  ;;  %v20187_v21 = vld [vmem:[#allocation129_spill] sm:$0xff] }
 0x7dd   : > { %v5975_v26 = vadd.f32 %v5974_v35, %v5902_v61  ;;  %v6080_v27 = vmax.f32 %v6079_v39, %v20176_v30  ;;  %v6060_v45 = vmax.f32 %v6059_v25, %v20167_v32  ;;  %v20178_v61 = vld [vmem:[#allocation173_spill] sm:$0xff]  ;;  %v20180_v32 = vld [vmem:[#allocation115_spill] sm:$0xff] }
 0x7de   : > { %v6017_v47 = vmax.f32 %v6016_v13, %v20175_v28  ;;  %v6040_v24 = vmax.f32 %v6039_v53, %v20128_v48  ;;  %v20190_v11 = vld [vmem:[#allocation149_spill] sm:$0xff] }
 0x7df   : > { %v5976_v6 = vadd.f32 %v5975_v26, %v5903_v62  ;;  %v6081_v35 = vmax.f32 %v6080_v27, %v20178_v61  ;;  %v6061_v38 = vmax.f32 %v6060_v45, %v20170_v59  ;;  %v20181_v26 = vld [vmem:[#allocation176_spill] sm:$0xff]  ;;  %v20191_v45 = vld [vmem:[#allocation46_spill] sm:$0xff] }
 0x7e0   : > { %v6041_v59 = vmax.f32 %v6040_v24, %v20182_v55 }
 0x7e1   : > { %v5977_v14 = vadd.f32 %v5976_v6, %v5904_v54  ;;  %v6082_v4 = vmax.f32 %v6081_v35, %v20181_v26  ;;  %v6062_v54 = vmax.f32 %v6061_v38, %v20171_v46  ;;  %v20193_v35 = vld [vmem:[#allocation47_spill] sm:$0xff]  ;;  %v20194_v38 = vld [vmem:[#allocation114_spill] sm:$0xff] }
 0x7e2   : > { %v6042_v46 = vmax.f32 %v6041_v59, %v20187_v21 }
 0x7e3   : > { %v5978_v57 = vadd.f32 %v5977_v14, %v5905_v37  ;;  %v20184_v37 = vld [vmem:[#allocation117_spill] sm:$0xff]  ;;  %v6083_v13 = vmax.f32 %v6082_v4, %v20185_v0  ;;  %v6063_v25 = vmax.f32 %v6062_v54, %v20174_v60  ;;  %v20198_v54 = vld [vmem:[#allocation50_spill] sm:$0xff] }
 0x7e5   : > { %v5979_v17 = vadd.f32 %v5978_v57, %v5906_v15  ;;  %v6084_v53 = vmax.f32 %v6083_v13, %v20190_v11 }
 0x7e7   : > { %v5980_v31 = vadd.f32 %v5979_v17, %v5907_v3  ;;  %v20188_v17 = vld [vmem:[#allocation181_spill] sm:$0xff] }
 0x7e8   : > { %v17924_v18 = vpop.eup %13913 }
 0x7e9   : > { %v5844_v7 = vmul.f32 %v17924_v18, %v17760_v8  ;;  %v5845_v41 = vmul.f32 %v17924_v18, %v17765_v20  ;;  %v5846_v51 = vmul.f32 %v17924_v18, %v17772_v49  ;;  %v6018_v20 = vmax.f32 %v6017_v47, %v20177_v22  ;;  %v20189_v47 = vld [vmem:[#allocation158_spill] sm:$0xff] }
 0x7ea   : > { %v5847_v34 = vmul.f32 %v17924_v18, %v17779_v50  ;;  %v5848_v49 = vmul.f32 %v17924_v18, %v17786_v10  ;;  %v5849_v50 = vmul.f32 %v17924_v18, %v17793_v43  ;;  %v5981_v29 = vrot.slane %v5980_v31, 4  ;;  %v20183_v10 = vld [vmem:[#allocation42_spill] sm:$0xff]  ;;  %v20186_v43 = vld [vmem:[#allocation43_spill] sm:$0xff] }
 0x7eb   : > { %v5908_v33 = vmul.f32 %v5844_v7, %v20143_v44  ;;  %v5909_v8 = vmul.f32 %v5845_v41, %v20142_v56  ;;  %v5910_v44 = vmul.f32 %v5846_v51, %v20148_v5  ;;  %v6019_v62 = vmax.f32 %v6018_v20, %v20180_v32  ;;  %v20192_v22 = vld [vmem:[#allocation166_spill] sm:$0xff] }
 0x7ec   : > { %v5911_v16 = vmul.f32 %v5847_v34, %v20152_v1  ;;  %v5850_v5 = vmul.f32 %v17924_v18, %v20183_v10  ;;  %v5912_v6 = vmul.f32 %v5848_v49, %v20155_v52  ;;  %v5982_v19 = vadd.f32 %v5981_v29, %v5980_v31 }
 0x7ed   : > { %v5987_v56 = vadd.f32 %v5909_v8, %v5908_v33  ;;  %v6020_v14 = vmax.f32 %v6019_v62, %v20184_v37  ;;  %v5851_v1 = vmul.f32 %v17924_v18, %v20186_v43  ;;  %v5913_v39 = vmul.f32 %v5849_v50, %v20158_v40 }
 0x7ee   : > { %v5983_v15 = vrot.slane %v5982_v19, 2  ;;  %v5852_v52 = vmul.f32 %v17924_v18, %v20188_v17  ;;  %v5914_v7 = vmul.f32 %v5850_v5, %v20161_v2  ;;  %v5853_v40 = vmul.f32 %v17924_v18, %v20191_v45 }
 0x7ef   : > { %v5988_v48 = vadd.f32 %v5987_v56, %v5910_v44  ;;  %v6021_v27 = vmax.f32 %v6020_v14, %v20189_v47  ;;  %v5915_v51 = vmul.f32 %v5851_v1, %v20165_v42  ;;  %v6043_v60 = vmax.f32 %v6042_v46, %v20192_v22  ;;  %v20195_v44 = vld [vmem:[#allocation147_spill] sm:$0xff]  ;;  %v20196_v56 = vld [vmem:[#allocation48_spill] sm:$0xff] }
 0x7f0   : > { %v5984_v41 = vadd.f32 %v5983_v15, %v5982_v19  ;;  %v6064_v20 = vmax.f32 %v6063_v25, %v20179_v9  ;;  %v5854_v2 = vmul.f32 %v17924_v18, %v20193_v35  ;;  %v5916_v34 = vmul.f32 %v5852_v52, %v20169_v58 }
 0x7f1   : > { %v5989_v63 = vadd.f32 %v5988_v48, %v5911_v16  ;;  %v6022_v49 = vmax.f32 %v6021_v27, %v20194_v38  ;;  %v6085_v31 = vmax.f32 %v6084_v53, %v20195_v44  ;;  %v5855_v42 = vmul.f32 %v17924_v18, %v20196_v56  ;;  %v20197_v16 = vld [vmem:[#allocation45_spill] sm:$0xff]  ;;  %v13699_v38 = vld [vmem:[#allocation2 + $0x1d8] sm:$0xff]  }
 0x7f2   : > { %v5985_v33 = vrot.slane %v5984_v41, 1  ;;  %v5917_v32 = vmul.f32 %v5853_v40, %v20173_v23  ;;  %v6044_v4 = vrot.slane %v6043_v60, 4  ;;  %v6065_v50 = vrot.slane %v6064_v20, 4  ;;  %v13701_v56 = vld [vmem:[#allocation2 + $0x1c8] sm:$0xff]  }
 0x7f3   : > { %v5990_v57 = vadd.f32 %v5989_v63, %v5912_v6  ;;  %v5856_v58 = vmul.f32 %v17924_v18, %v20197_v16  ;;  %v5918_v29 = vmul.f32 %v5854_v2, %v20176_v30  ;;  %v6023_v55 = vrot.slane %v6022_v49, 4  ;;  %v20199_v30 = vld [vmem:[#allocation51_spill] sm:$0xff]  ;;  %v13708_v16 = vld [vmem:[#allocation2 + $0x210] sm:$0xff]  }
 0x7f4   : > { %v5986_v3 = vadd.f32 %v5985_v33, %v5984_v41  ;;  %v6086_v59 = vrot.slane %v6085_v31, 4  ;;  %v5857_v10 = vmul.f32 %v17924_v18, %v20198_v54  ;;  %v5919_v5 = vmul.f32 %v5855_v42, %v20178_v61  ;;  %v13702_v42 = vld [vmem:[#allocation2 + $0x1c0] sm:$0xff]  }
 0x7f5   : > { %v5991_v28 = vadd.f32 %v5990_v57, %v5913_v39  ;;  %v6045_v6 = vmax.f32 %v6043_v60, %v6044_v4  ;;  %v6066_v19 = vmax.f32 %v6064_v20, %v6065_v50  ;;  %v5920_v63 = vmul.f32 %v5856_v58, %v20181_v26  ;;  %v13706_v4 = vld [vmem:[#allocation2 + $0x1a0] sm:$0xff]   ;;  %v13707_v50 = vld [vmem:[#allocation2 + $0x218] sm:$0xff]   ;;  %v13709_v58 = vld [vmem:[#allocation2 + $0x208] sm:$0xff]  }
 0x7f6   : > { %v6105_v9 = vsel %vm4728_vm10, %v5986_v3, %v17886_v12  ;;  %v5858_v12 = vmul.f32 %v17924_v18, %v17846_v36  ;;  %v6024_v14 = vmax.f32 %v6022_v49, %v6023_v55  ;;  %v6087_v13 = vmax.f32 %v6085_v31, %v6086_v59  ;;  %12601 = vmatpush3.bf16.msra.mxu1 %v13707_v50  ;;  %v13712_v55 = vld [vmem:[#allocation2 + $0x1f0] sm:$0xff]   ;;  %v13713_v59 = vld [vmem:[#allocation2 + $0x1e8] sm:$0xff]   ;;  %v13714_v54 = vld [vmem:[#allocation2 + $0x1e0] sm:$0xff]  }
 0x7f7   : > { %v5992_v8 = vadd.f32 %v5991_v28, %v5914_v7  ;;  %v5859_v43 = vmul.f32 %v17924_v18, %v20199_v30  ;;  %v5921_v1 = vmul.f32 %v5857_v10, %v20185_v0  ;;  %v6046_v15 = vrot.slane %v6045_v6, 2  ;;  %v20201_v30 = vld [vmem:[#allocation8_spill] sm:$0xff]  ;;  %v20229_v50 = vld [vmem:[#allocation38_spill] sm:$0xff] }
 0x7f8   : > { %v6067_v57 = vrot.slane %v6066_v19, 2  ;;  %v5922_v61 = vmul.f32 %v5858_v12, %v20190_v11  ;;  %v6025_v46 = vrot.slane %v6024_v14, 2  ;;  %v6088_v25 = vrot.slane %v6087_v13, 2 }
 0x7f9   : > { %v5993_v24 = vadd.f32 %v5992_v8, %v5915_v51  ;;  %v5923_v36 = vmul.f32 %v5859_v43, %v20195_v44  ;;  %v6047_v26 = vmax.f32 %v6045_v6, %v6046_v15  ;;  %v13700_v44 = vld [vmem:[#allocation2 + $0x1d0] sm:$0xff]   ;;  %v20200_v31 = vmov 0.0   ;;  %v13717_v15 = vld [vmem:[#allocation2 + $0x248] sm:$0xff]  }
 0x7fa   : > { %v6068_v52 = vmax.f32 %v6066_v19, %v6067_v57  ;;  %v6026_v41 = vmax.f32 %v6024_v14, %v6025_v46  ;;  %v6089_v28 = vmax.f32 %v6087_v13, %v6088_v25  ;;  %12602 = vmatprep.subr.bf16.mxu1 %v20200_v31  ;;  %v6610_v13 = vld [vmem:[#allocation2 + $0x260] sm:$0x3]  ;;  %v13721_v46 = vld [vmem:[#allocation2 + $0x228] sm:$0xff]  }
 0x7fb   : > { %v5994_v62 = vadd.f32 %v5993_v24, %v5916_v34  ;;  %v6048_v18 = vrot.slane %v6047_v26, 1  ;;  %12603 = vmatpush3.bf16.msra.mxu1 %v13708_v16  ;;  %v6612_v43 = vand.u32 %v6610_v13, %v20201_v30  ;;  %v13718_v57 = vld [vmem:[#allocation2 + $0x240] sm:$0xff]   ;;  %v11155_v25 = vld [vmem:[%s19175_s2 + $0x9] ss:$0 sm:$0xff]  ;;  %v20230_v16 = vld [vmem:[#allocation39_spill] sm:$0xff] }
 0x7fc   : > { %v6069_v27 = vrot.slane %v6068_v52, 1  ;;  %v6027_v53 = vrot.slane %v6026_v41, 1  ;;  %v6090_v45 = vrot.slane %v6089_v28, 1  ;;  %12604 = vmatprep.subr.bf16.mxu1 %v20200_v31 }
 0x7fd   : > { %v5995_v48 = vadd.f32 %v5994_v62, %v5917_v32  ;;  %v6049_v51 = vmax.f32 %v6047_v26, %v6048_v18  ;;  %v13703_v32 = vld [vmem:[#allocation2 + $0x1b8] sm:$0xff]   ;;  %v13704_v62 = vld [vmem:[#allocation2 + $0x1b0] sm:$0xff]  }
 0x7fe   : > { %v6070_v11 = vmax.f32 %v6068_v52, %v6069_v27  ;;  %v6028_v8 = vmax.f32 %v6026_v41, %v6027_v53  ;;  %v6091_v22 = vmax.f32 %v6089_v28, %v6090_v45  ;;  %v20203_v18 = vld [vmem:[#allocation10_spill] sm:$0xff]  ;;  %v20204_v27 = vld [vmem:[#allocation11_spill] sm:$0xff]  ;;  %v20206_v53 = vld [vmem:[#allocation13_spill] sm:$0xff] }
 0x7ff   : > { %v5996_v23 = vadd.f32 %v5995_v48, %v5918_v29  ;;  %12605 = vmatpush3.bf16.msra.mxu1 %v13709_v58  ;;  %v13710_v29 = vld [vmem:[#allocation2 + $0x200] sm:$0xff]   ;;  %v13711_v48 = vld [vmem:[#allocation2 + $0x1f8] sm:$0xff]   ;;  %v20207_v45 = vld [vmem:[#allocation14_spill] sm:$0xff] }
 0x800   : > { %v6096_v20 = vsel %vm4726_vm7, %v6049_v51, %v6028_v8  ;;  %12606 = vmatprep.subr.bf16.mxu1 %v20200_v31  ;;  %v20209_v51 = vld [vmem:[#allocation18_spill] sm:$0xff]  ;;  %v20212_v8 = vld [vmem:[#allocation21_spill] sm:$0xff]  ;;  %v20231_v58 = vld [vmem:[#allocation40_spill] sm:$0xff] }
 0x801   : > { %v5997_v37 = vadd.f32 %v5996_v23, %v5919_v5  ;;  %v6097_v2 = vsel %vm4728_vm10, %v6070_v11, %v6096_v20  ;;  %v11138_v5 = vld [vmem:[%s19175_s2 + $0x8] ss:$0 sm:$0xff]  ;;  %v20210_v11 = vld [vmem:[#allocation19_spill] sm:$0xff]  ;;  %v20215_v20 = vld [vmem:[#allocation24_spill] sm:$0xff] }
 0x802   : > { %v6098_v34 = vsel %vm4730_vm11, %v6091_v22, %v6097_v2  ;;  %v20213_v22 = vld [vmem:[#allocation22_spill] sm:$0xff] }
 0x803   : > { %v5998_v39 = vadd.f32 %v5997_v37, %v5920_v63  ;;  %v6108_v49 = vpack.c.bf16 %v6098_v34, %v6098_v34  ;;  %12607 = vmatpush3.bf16.msra.mxu1 %v13710_v29  ;;  %v20217_v2 = vld [vmem:[#allocation26_spill] sm:$0xff]  ;;  %v20218_v34 = vld [vmem:[#allocation27_spill] sm:$0xff]  ;;  %v20232_v29 = vld [vmem:[#allocation16_spill] sm:$0xff] }
 0x804   : > { %12608 = vmatprep.subr.bf16.mxu1 %v20200_v31 }
 0x805   : > { %v5999_v21 = vadd.f32 %v5998_v39, %v5921_v1  ;;  %v13715_v1 = vld [vmem:[#allocation2 + $0x258] sm:$0xff]   ;;  %v13716_v39 = vld [vmem:[#allocation2 + $0x250] sm:$0xff]  }
 0x807   : > { %v6000_v17 = vadd.f32 %v5999_v21, %v5922_v61  ;;  %12609 = vmatpush3.bf16.msra.mxu1 %v13711_v48  ;;  %v13719_v61 = vld [vmem:[#allocation2 + $0x238] sm:$0xff]   ;;  %v13720_v21 = vld [vmem:[#allocation2 + $0x230] sm:$0xff]   ;;  %v20233_v48 = vld [vmem:[#allocation17_spill] sm:$0xff] }
 0x808   : > { %12610 = vmatprep.subr.bf16.mxu1 %v20200_v31 }
 0x809   : > { %v6001_v7 = vadd.f32 %v6000_v17, %v5923_v36 }
 0x80b   : > { %v6002_v47 = vrot.slane %v6001_v7, 4  ;;  %12611 = vmatpush3.bf16.msra.mxu1 %v13712_v55  ;;  %v13723_v55 = vld [vmem:[#allocation2 + $0x2a8] sm:$0xff]  }
 0x80c   : > { %12612 = vmatprep.subr.bf16.mxu1 %v20200_v31 }
 0x80d   : > { %v6003_v0 = vadd.f32 %v6002_v47, %v6001_v7  ;;  %v20202_v47 = vld [vmem:[#allocation9_spill] sm:$0xff] }
 0x80f   : > { %v6004_v40 = vrot.slane %v6003_v0, 2  ;;  %12613 = vmatpush3.bf16.msra.mxu1 %v13713_v59  ;;  %v11164_v59 = vld [vmem:[%s19175_s2 + $0xa] ss:$0 sm:$0xff] }
 0x810   : > { %12614 = vmatprep.subr.bf16.mxu1 %v20200_v31 }
 0x811   : > { %v6005_v33 = vadd.f32 %v6004_v40, %v6003_v0  ;;  %v20205_v0 = vld [vmem:[#allocation12_spill] sm:$0xff]  ;;  %v20208_v40 = vld [vmem:[#allocation15_spill] sm:$0xff] }
 0x813   : > { %v6006_v60 = vrot.slane %v6005_v33, 1  ;;  %12615 = vmatpush3.bf16.msra.mxu1 %v13714_v54 }
 0x814   : > { %12640 = vmatprep.subr.bf16.mxu1 %v6612_v43 }
 0x815   : > { %v6007_v35 = vadd.f32 %v6006_v60, %v6005_v33  ;;  %v20211_v33 = vld [vmem:[#allocation20_spill] sm:$0xff]  ;;  %v20214_v60 = vld [vmem:[#allocation23_spill] sm:$0xff] }
 0x817   : > { %v6106_v3 = vsel %vm4730_vm11, %v6007_v35, %v6105_v9  ;;  %v13705_v9 = vld [vmem:[#allocation2 + $0x1a8] sm:$0xff]  }
 0x818   : > { %v6109_v24 = vpack.c.bf16 %v6106_v3, %v6106_v3  ;;  %v20216_v35 = vld [vmem:[#allocation25_spill] sm:$0xff]  ;;  %v13722_v3 = vld [vmem:[#allocation2 + $0x220] sm:$0xff]  }
 0x81a   : > { %6275 = vmatprep.mubr.bf16.mxu0 %v6109_v24  ;;  %v20219_v24 = vld [vmem:[#allocation28_spill] sm:$0xff] }
 0x81b   : > { %6276 = vmatmul.mubr.bf16.vlgmr.msra.gmra.mxu0 %v6108_v49  ;;  %v20221_v49 = vld [vmem:[#allocation30_spill] sm:$0xff] }
 0x81c   : > { %12581 = vmatpush3.bf16.msra.mxu0 %v13699_v38  ;;  %12596 = vmatprep.mubr.msk.bf16.mxu0 %vm14024_vm6, %v20200_v31  ;;  %v20220_v38 = vld [vmem:[#allocation29_spill] sm:$0xff] }
 0x81d   : > { %12582 = vmatprep.subr.bf16.mxu0 %v20200_v31 }
 0x820   : > { %12583 = vmatpush3.bf16.msra.mxu0 %v13700_v44  ;;  %v20222_v44 = vld [vmem:[#allocation31_spill] sm:$0xff] }
 0x821   : > { %12584 = vmatprep.subr.bf16.mxu0 %v20200_v31 }
 0x824   : > { %12585 = vmatpush3.bf16.msra.mxu0 %v13701_v56  ;;  %v20223_v56 = vld [vmem:[#allocation32_spill] sm:$0xff] }
 0x825   : > { %12586 = vmatprep.subr.bf16.mxu0 %v20200_v31 }
 0x828   : > { %12587 = vmatpush3.bf16.msra.mxu0 %v13702_v42  ;;  %v20224_v42 = vld [vmem:[#allocation33_spill] sm:$0xff] }
 0x829   : > { %12588 = vmatprep.subr.bf16.mxu0 %v20200_v31 }
 0x82c   : > { %12589 = vmatpush3.bf16.msra.mxu0 %v13703_v32  ;;  %v20225_v32 = vld [vmem:[#allocation34_spill] sm:$0xff] }
 0x82d   : > { %12590 = vmatprep.subr.bf16.mxu0 %v20200_v31 }
 0x830   : > { %12591 = vmatpush3.bf16.msra.mxu0 %v13704_v62  ;;  %v20226_v62 = vld [vmem:[#allocation35_spill] sm:$0xff] }
 0x831   : > { %12592 = vmatprep.subr.bf16.mxu0 %v20200_v31 }
 0x834   : > { %12593 = vmatpush3.bf16.msra.mxu0 %v13705_v9  ;;  %v20227_v9 = vld [vmem:[#allocation36_spill] sm:$0xff] }
 0x835   : > { %12594 = vmatprep.subr.bf16.mxu0 %v20200_v31 }
 0x838   : > { %12595 = vmatpush3.bf16.msra.mxu0 %v13706_v4  ;;  %v20228_v4 = vld [vmem:[#allocation37_spill] sm:$0xff] }
 0x839   : > { %12620 = vmatprep.subr.bf16.mxu0 %v20200_v31 }
 0x8db   : > { %v11653_v10 = vpop.f32.mrf.mxu0 }
 0x8dd   : > { %v11654_v23 = vpop.f32.mrf.mxu0 }
 0x8de   : > { %v11655_v6 = vadd.f32 %v11654_v23, %v11653_v10 }
 0x8df   : > { %v11656_v19 = vpop.f32.mrf.mxu0 }
 0x8e0   : > { %v6278_v12 = vadd.f32 %v11655_v6, %v11138_v5  ;;  %v13724_v6 = vld [vmem:[#allocation2 + $0x2a0] sm:$0xff]  }
 0x8e1   : > { %v11657_v63 = vpop.f32.mrf.mxu0 }
 0x8e2   : > { %v6283_v37 = vmax.f32 %v6278_v12, 0.0  ;;  %v13725_v63 = vld [vmem:[#allocation2 + $0x298] sm:$0xff]  }
 0x8e4   : > { %v6284_v14 = vpack.c.bf16 %v6283_v37, %v6283_v37  ;;  %v13726_v37 = vld [vmem:[#allocation2 + $0x290] sm:$0xff]  }
 0x8e6   : > { %12597 = vmatmul.mubr.bf16.vlgmr.msra.gmra.mxu0 %v6284_v14 }
 0x8e7   : > { %12636 = vmatprep.mubr.msk.bf16.mxu0 %vm14024_vm6, %v20200_v31  ;;  %12621 = vmatpush3.bf16.msra.mxu0 %v13715_v1  ;;  %v13727_v1 = vld [vmem:[#allocation2 + $0x288] sm:$0xff]  }
 0x8e8   : > { %12622 = vmatprep.subr.bf16.mxu0 %v20200_v31 }
 0x8eb   : > { %12623 = vmatpush3.bf16.msra.mxu0 %v13716_v39 }
 0x8ec   : > { %12624 = vmatprep.subr.bf16.mxu0 %v20200_v31 }
 0x8ef   : > { %12625 = vmatpush3.bf16.msra.mxu0 %v13717_v15  ;;  %v13728_v15 = vld [vmem:[#allocation2 + $0x280] sm:$0xff]  }
 0x8f0   : > { %12626 = vmatprep.subr.bf16.mxu0 %v20200_v31 }
 0x8f3   : > { %12627 = vmatpush3.bf16.msra.mxu0 %v13718_v57 }
 0x8f4   : > { %12628 = vmatprep.subr.bf16.mxu0 %v20200_v31 }
 0x8f7   : > { %12629 = vmatpush3.bf16.msra.mxu0 %v13719_v61  ;;  %v13729_v61 = vld [vmem:[#allocation2 + $0x278] sm:$0xff]  }
 0x8f8   : > { %12630 = vmatprep.subr.bf16.mxu0 %v20200_v31 }
 0x8fb   : > { %12631 = vmatpush3.bf16.msra.mxu0 %v13720_v21 }
 0x8fc   : > { %12632 = vmatprep.subr.bf16.mxu0 %v20200_v31 }
 0x8ff   : > { %12633 = vmatpush3.bf16.msra.mxu0 %v13721_v46  ;;  %v13730_v46 = vld [vmem:[#allocation2 + $0x270] sm:$0xff]  }
 0x900   : > { %12634 = vmatprep.subr.bf16.mxu0 %v20200_v31 }
 0x903   : > { %12635 = vmatpush3.bf16.msra.mxu0 %v13722_v3 }
 0x904   : > { %12706 = vmatprep.subr.bf16.mxu0 %v13723_v55 }
 0x9a6   : > { %v6388_v36 = vpop.f32.mrf.mxu0 }
 0x9a7   : > { %v6389_v17 = vadd.f32 %v11155_v25, %v6388_v36 }
 0x9a8   : > { %v12598_v26 = vpop.f32.mrf.mxu0 }
 0x9a9   : > { %v6394_v52 = vmax.f32 %v6389_v17, 0.0 }
 0x9aa   : > { %v6391_v7 = vpop.f32.mrf.mxu0 }
 0x9ab   : > { %v6395_v41 = vpack.c.bf16 %v6394_v52, %v6394_v52 }
 0x9ac   : > { %v12599_v28 = vpop.f32.mrf.mxu0 }
 0x9ad   : > { %12617 = vmatmul.mubr.bf16.vlgmr.msra.gmra.mxu1 %v6395_v41 }
 0x9ae   : > { %12641 = vmatpush3.bf16.msra.mxu1 %v6612_v43  ;;  %12642 = vmatprep.mubr.msk.bf16.mxu1 %vm293_vm2, %v20202_v47 }
 0x9b5   : > { %12643 = vmatmul.mubr.msk.bf16.vlgmr.msra.gmra.mxu1 %vm293_vm2, %v20203_v18 }
 0x9b6   : > { %12646 = vmatprep.mubr.msk.bf16.mxu1 %vm293_vm2, %v20204_v27 }
 0x9bd   : > { %12647 = vmatmul.mubr.msk.bf16.gmra.mxu1 %vm293_vm2, %v20205_v0 }
 0x9be   : > { %12650 = vmatprep.mubr.msk.bf16.mxu1 %vm293_vm2, %v20206_v53 }
 0x9c5   : > { %12651 = vmatmul.mubr.msk.bf16.gmra.mxu1 %vm293_vm2, %v20207_v45 }
 0x9c6   : > { %12654 = vmatprep.mubr.msk.bf16.mxu1 %vm293_vm2, %v20208_v40 }
 0x9cd   : > { %12655 = vmatmul.mubr.msk.bf16.gmra.mxu1 %vm293_vm2, %v20209_v51 }
 0x9ce   : > { %12658 = vmatprep.mubr.msk.bf16.mxu1 %vm293_vm2, %v20210_v11 }
 0x9d5   : > { %12659 = vmatmul.mubr.msk.bf16.gmra.mxu1 %vm293_vm2, %v20211_v33 }
 0x9d6   : > { %12662 = vmatprep.mubr.msk.bf16.mxu1 %vm293_vm2, %v20212_v8 }
 0x9dd   : > { %12663 = vmatmul.mubr.msk.bf16.gmra.mxu1 %vm293_vm2, %v20213_v22  ;;  %v13731_v22 = vld [vmem:[#allocation2 + $0x2e8] sm:$0xff]  }
 0x9de   : > { %12666 = vmatprep.mubr.msk.bf16.mxu1 %vm293_vm2, %v20214_v60  ;;  %12786 = vmatprep.subr.bf16.mxu1 %v13731_v22 }
 0x9df   : > { %12787 = vmatpush3.bf16.msra.mxu1 %v13731_v22 }
 0x9e5   : > { %12667 = vmatmul.mubr.msk.bf16.gmra.mxu1 %vm293_vm2, %v20215_v20 }
 0x9e6   : > { %12670 = vmatprep.mubr.msk.bf16.mxu1 %vm293_vm2, %v20216_v35 }
 0x9ed   : > { %12671 = vmatmul.mubr.msk.bf16.gmra.mxu1 %vm293_vm2, %v20217_v2 }
 0x9ee   : > { %12674 = vmatprep.mubr.msk.bf16.mxu1 %vm293_vm2, %v20218_v34  ;;  %v13732_v34 = vld [vmem:[#allocation2 + $0x2e0] sm:$0xff]  }
 0x9ef   : > { %12788 = vmatprep.subr.bf16.mxu1 %v13732_v34 }
 0x9f0   : > { %12789 = vmatpush3.bf16.msra.mxu1 %v13732_v34 }
 0x9f5   : > { %12675 = vmatmul.mubr.msk.bf16.gmra.mxu1 %vm293_vm2, %v20219_v24 }
 0x9f6   : > { %12678 = vmatprep.mubr.msk.bf16.mxu1 %vm293_vm2, %v20220_v38 }
 0x9fd   : > { %12679 = vmatmul.mubr.msk.bf16.gmra.mxu1 %vm293_vm2, %v20221_v49 }
 0x9fe   : > { %12682 = vmatprep.mubr.msk.bf16.mxu1 %vm293_vm2, %v20222_v44  ;;  %v13733_v44 = vld [vmem:[#allocation2 + $0x2d8] sm:$0xff]  }
 0x9ff   : > { %12790 = vmatprep.subr.bf16.mxu1 %v13733_v44 }
 0xa00   : > { %12791 = vmatpush3.bf16.msra.mxu1 %v13733_v44 }
 0xa05   : > { %12683 = vmatmul.mubr.msk.bf16.gmra.mxu1 %vm293_vm2, %v20223_v56 }
 0xa06   : > { %12686 = vmatprep.mubr.msk.bf16.mxu1 %vm293_vm2, %v20224_v42 }
 0xa0d   : > { %12687 = vmatmul.mubr.msk.bf16.gmra.mxu1 %vm293_vm2, %v20225_v32  ;;  %v20234_v32 = vld [vmem:[#allocation105_spill] sm:$0xff] }
 0xa0e   : > { %12690 = vmatprep.mubr.msk.bf16.mxu1 %vm293_vm2, %v20226_v62 }
 0xa15   : > { %12691 = vmatmul.mubr.msk.bf16.gmra.mxu1 %vm293_vm2, %v20227_v9 }
 0xa16   : > { %12694 = vmatprep.mubr.msk.bf16.mxu1 %vm293_vm2, %v20228_v4 }
 0xa1d   : > { %12695 = vmatmul.mubr.msk.bf16.gmra.mxu1 %vm293_vm2, %v20229_v50 }
 0xa1e   : > { %12698 = vmatprep.mubr.msk.bf16.mxu1 %vm293_vm2, %v20230_v16 }
 0xa25   : > { %12699 = vmatmul.mubr.msk.bf16.gmra.mxu1 %vm293_vm2, %v20231_v58  ;;  %v20235_v58 = vld [vmem:[#allocation107_spill] sm:$0xff] }
 0xa26   : > { %12702 = vmatprep.mubr.msk.bf16.mxu1 %vm293_vm2, %v20232_v29 }
 0xa2d   : > { %12703 = vmatmul.mubr.msk.bf16.gmra.mxu1 %vm293_vm2, %v20233_v48  ;;  %v18191_v48 = vld [vmem:[%s19175_s2 + $0xb] ss:$0 sm:$0xff] }
 0xa6d   : > { %v6499_v54 = vpop.f32.mrf.mxu1 }
 0xa6e   : > { %v6500_v10 = vadd.f32 %v11164_v59, %v6499_v54 }
 0xa6f   : > { %v12618_v5 = vpop.f32.mrf.mxu1 }
 0xa70   : > { %v18107_v23 = vpack.c.bf16 %v6500_v10, %v6500_v10 }
 0xa71   : > { %v6502_v19 = vpop.f32.mrf.mxu1 }
 0xa72   : > { %12637 = vmatmul.mubr.bf16.vlgmr.msra.gmra.mxu0 %v18107_v23 }
 0xa73   : > { %v12619_v12 = vpop.f32.mrf.mxu1  ;;  %12707 = vmatpush3.bf16.msra.mxu0 %v13723_v55 }
 0xa74   : > { %12708 = vmatprep.subr.bf16.mxu0 %v13724_v6 }
 0xa75   : > { %v18110_v14 = vpop.f32.mrf.mxu1 }
 0xa77   : > { %12709 = vmatpush3.bf16.msra.mxu0 %v13724_v6  ;;  %v18112_v13 = vpop.f32.mrf.mxu1 }
 0xa78   : > { %12710 = vmatprep.subr.bf16.mxu0 %v13725_v63 }
 0xa79   : > { %v18114_v30 = vpop.f32.mrf.mxu1 }
 0xa7b   : > { %12711 = vmatpush3.bf16.msra.mxu0 %v13725_v63  ;;  %v18116_v43 = vpop.f32.mrf.mxu1 }
 0xa7c   : > { %12712 = vmatprep.subr.bf16.mxu0 %v13726_v37 }
 0xa7d   : > { %v18118_v39 = vpop.f32.mrf.mxu1 }
 0xa7f   : > { %12713 = vmatpush3.bf16.msra.mxu0 %v13726_v37  ;;  %v18120_v57 = vpop.f32.mrf.mxu1 }
 0xa80   : > { %12714 = vmatprep.subr.bf16.mxu0 %v13727_v1 }
 0xa81   : > { %v18122_v21 = vpop.f32.mrf.mxu1 }
 0xa83   : > { %12715 = vmatpush3.bf16.msra.mxu0 %v13727_v1  ;;  %v6667_v25 = vpop.f32.mrf.mxu1 }
 0xa84   : > { %12716 = vmatprep.subr.bf16.mxu0 %v13728_v15 }
 0xa85   : > { %v18124_v36 = vpop.f32.mrf.mxu1 }
 0xa87   : > { %12717 = vmatpush3.bf16.msra.mxu0 %v13728_v15  ;;  %v18126_v17 = vpop.f32.mrf.mxu1 }
 0xa88   : > { %12718 = vmatprep.subr.bf16.mxu0 %v13729_v61 }
 0xa89   : > { %v18128_v26 = vpop.f32.mrf.mxu1 }
 0xa8b   : > { %12719 = vmatpush3.bf16.msra.mxu0 %v13729_v61  ;;  %v18130_v52 = vpop.f32.mrf.mxu1  ;;  %v13734_v61 = vld [vmem:[#allocation2 + $0x2d0] sm:$0xff]  }
 0xa8c   : > { %12720 = vmatprep.subr.bf16.mxu0 %v13730_v46  ;;  %12792 = vmatprep.subr.bf16.mxu1 %v13734_v61 }
 0xa8d   : > { %v18132_v7 = vpop.f32.mrf.mxu1  ;;  %12793 = vmatpush3.bf16.msra.mxu1 %v13734_v61 }
 0xa8f   : > { %12721 = vmatpush3.bf16.msra.mxu0 %v13730_v46  ;;  %v18134_v41 = vpop.f32.mrf.mxu1  ;;  %v13735_v46 = vld [vmem:[#allocation2 + $0x2c8] sm:$0xff]  }
 0xa90   : > { %12794 = vmatprep.subr.bf16.mxu1 %v13735_v46 }
 0xa91   : > { %v18136_v28 = vpop.f32.mrf.mxu1  ;;  %12795 = vmatpush3.bf16.msra.mxu1 %v13735_v46 }
 0xa93   : > { %v18138_v47 = vpop.f32.mrf.mxu1 }
 0xa95   : > { %v18140_v18 = vpop.f32.mrf.mxu1 }
 0xa97   : > { %v18142_v27 = vpop.f32.mrf.mxu1 }
 0xa99   : > { %v18144_v0 = vpop.f32.mrf.mxu1 }
 0xa9b   : > { %v18146_v53 = vpop.f32.mrf.mxu1 }
 0xa9d   : > { %v18148_v45 = vpop.f32.mrf.mxu1 }
 0xa9f   : > { %v18150_v40 = vpop.f32.mrf.mxu1 }
 0xaa1   : > { %v18152_v51 = vpop.f32.mrf.mxu1 }
 0xaa3   : > { %v18154_v11 = vpop.f32.mrf.mxu1 }
 0xaa5   : > { %v18156_v33 = vpop.f32.mrf.mxu1 }
 0xaa7   : > { %v18158_v8 = vpop.f32.mrf.mxu1 }
 0xaa9   : > { %v18160_v60 = vpop.f32.mrf.mxu1 }
 0xaab   : > { %v18162_v20 = vpop.f32.mrf.mxu1 }
 0xaad   : > { %v18164_v35 = vpop.f32.mrf.mxu1 }
 0xaaf   : > { %v18166_v2 = vpop.f32.mrf.mxu1 }
 0xab1   : > { %v18168_v3 = vpop.f32.mrf.mxu1 }
 0xab3   : > { %v18170_v24 = vpop.f32.mrf.mxu1 }
 0xab5   : > { %v18172_v38 = vpop.f32.mrf.mxu1 }
 0xab7   : > { %v18174_v49 = vpop.f32.mrf.mxu1 }
 0xab9   : > { %v18176_v42 = vpop.f32.mrf.mxu1 }
 0xabb   : > { %v18182_v16 = vpop.f32.mrf.mxu1 }
 0xabd   : > { %v18197_v10 = vpop.f32.mrf.mxu1 }
 0xb32   : > { %v6604_v56 = vpop.f32.mrf.mxu0 }
 0xb33   : > { %v6910_v62 = vrot.slane %v6604_v56, %v20234_v32 }
 0xb34   : > { %v12638_v9 = vpop.f32.mrf.mxu0 }
 0xb35   : > { %v18180_v4 = vrot.slane %v6910_v62, %v20234_v32 }
 0xb36   : > { %v6607_v50 = vpop.f32.mrf.mxu0 }
 0xb37   : > { %v18186_v29 = vrot.slane %v18180_v4, %v20235_v58  ;;  %v6911_v50 = vcombine.high %v6910_v62, %v6910_v62 }
 0xb38   : > { %v12639_v55 = vpop.f32.mrf.mxu0 }
 0xb39   : > { %v6948_v59 = vadd.f32 %v18186_v29, %v18112_v13  ;;  %v6949_v54 = vadd.f32 %v18186_v29, %v18116_v43  ;;  %v6950_v6 = vadd.f32 %v18110_v14, %v18186_v29  ;;  %v6951_v19 = vadd.f32 %v18114_v30, %v18186_v29  ;;  %v18207_v13 = vpop.f32.mrf.mxu1 }
 0xb3a   : > { %v6952_v63 = vadd.f32 %v18186_v29, %v18120_v57  ;;  %v6953_v15 = vadd.f32 %v18186_v29, %v6667_v25  ;;  %v6954_v30 = vadd.f32 %v18118_v39, %v18186_v29  ;;  %v6955_v55 = vadd.f32 %v18122_v21, %v18186_v29 }
 0xb3b   : > { %v7017_v5 = vadd.f32 %v18191_v48, %v6948_v59  ;;  %v7018_v12 = vadd.f32 %v18191_v48, %v6949_v54  ;;  %v7019_v43 = vadd.f32 %v18191_v48, %v6950_v6  ;;  %v7020_v1 = vadd.f32 %v18191_v48, %v6951_v19  ;;  %v18215_v57 = vpop.f32.mrf.mxu1  ;;  %v13736_v54 = vld [vmem:[#allocation2 + $0x2c0] sm:$0xff]  }
 0xb3c   : > { %v7021_v22 = vadd.f32 %v18191_v48, %v6952_v63  ;;  %v7022_v9 = vadd.f32 %v18191_v48, %v6953_v15  ;;  %v7023_v59 = vadd.f32 %v18191_v48, %v6954_v30  ;;  %v6956_v6 = vadd.f32 %v18186_v29, %v18126_v17  ;;  %12796 = vmatprep.subr.bf16.mxu1 %v13736_v54 }
 0xb3d   : > { %v7081_v37 = vmax.f32 %v7017_v5, 0.0  ;;  %v7082_v14 = vmax.f32 %v7018_v12, 0.0  ;;  %v7083_v44 = vmax.f32 %v7019_v43, 0.0  ;;  %v7084_v56 = vmax.f32 %v7020_v1, 0.0  ;;  %v18226_v62 = vpop.f32.mrf.mxu1  ;;  %v13737_v43 = vld [vmem:[#allocation2 + $0x2b8] sm:$0xff]   ;;  %12797 = vmatpush3.bf16.msra.mxu1 %v13736_v54 }
 0xb3e   : > { %v7085_v25 = vmax.f32 %v7021_v22, 0.0  ;;  %v7086_v5 = vmax.f32 %v7022_v9, 0.0  ;;  %v6957_v19 = vadd.f32 %v18186_v29, %v18130_v52  ;;  %v7024_v12 = vadd.f32 %v18191_v48, %v6955_v55  ;;  %12798 = vmatprep.subr.bf16.mxu1 %v13737_v43 }
 0xb3f   : > { %v7145_v34 = vpack.c.bf16 %v7082_v14, %v7081_v37  ;;  %v7146_v39 = vpack.c.bf16 %v7084_v56, %v7083_v44  ;;  %v7025_v21 = vadd.f32 %v18191_v48, %v6956_v6  ;;  %v18231_v1 = vrot.slane %v6911_v50, %v20234_v32  ;;  %v13738_v44 = vld [vmem:[#allocation2 + $0x2b0] sm:$0xff]  }
 0xb40   : > { %v7147_v63 = vpack.c.bf16 %v7086_v5, %v7085_v25  ;;  %v7026_v37 = vadd.f32 %v18191_v48, %v6957_v19  ;;  %v7087_v17 = vmax.f32 %v7023_v59, 0.0  ;;  %v7088_v15 = vmax.f32 %v7024_v12, 0.0 }
 0xb41   : > { %12722 = vmatprep.mubr.bf16.mxu0 %v7145_v34  ;;  %v6958_v52 = vadd.f32 %v18124_v36, %v18186_v29  ;;  %v6959_v61 = vadd.f32 %v18128_v26, %v18186_v29  ;;  %v7089_v46 = vmax.f32 %v7025_v21, 0.0  ;;  %v6960_v22 = vadd.f32 %v18186_v29, %v18134_v41  ;;  %v18241_v34 = vpop.f32.mrf.mxu1  ;;  %12799 = vmatpush3.bf16.msra.mxu1 %v13737_v43 }
 0xb42   : > { %12723 = vmatmul.mubr.bf16.vlgmr.msra.gmra.mxu0 %v7146_v39  ;;  %v7090_v14 = vmax.f32 %v7026_v37, 0.0  ;;  %v6961_v30 = vadd.f32 %v18186_v29, %v18138_v47  ;;  %v7148_v56 = vpack.c.bf16 %v7088_v15, %v7087_v17  ;;  %v18247_v26 = vrot.slane %v18231_v1, %v20235_v58  ;;  %12800 = vmatprep.subr.bf16.mxu1 %v13738_v44 }
 0xb43   : > { %12726 = vmatprep.mubr.bf16.mxu0 %v7147_v63  ;;  %v7027_v9 = vadd.f32 %v18191_v48, %v6958_v52  ;;  %v7028_v36 = vadd.f32 %v18191_v48, %v6959_v61  ;;  %v7029_v41 = vadd.f32 %v18191_v48, %v6960_v22  ;;  %v18251_v47 = vpop.f32.mrf.mxu1  ;;  %v6962_v54 = vadd.f32 %v18132_v7, %v18186_v29 }
 0xb44   : > { %v7149_v50 = vpack.c.bf16 %v7090_v14, %v7089_v46  ;;  %v7030_v25 = vadd.f32 %v18191_v48, %v6961_v30  ;;  %v6963_v39 = vadd.f32 %v18136_v28, %v18186_v29  ;;  %v6964_v19 = vadd.f32 %v18247_v26, %v18142_v27 }
 0xb45   : > { %v7091_v55 = vmax.f32 %v7027_v9, 0.0  ;;  %v7092_v59 = vmax.f32 %v7028_v36, 0.0  ;;  %v7093_v5 = vmax.f32 %v7029_v41, 0.0  ;;  %v6965_v12 = vadd.f32 %v18247_v26, %v18146_v53  ;;  %12801 = vmatpush3.bf16.msra.mxu1 %v13738_v44  ;;  %v18261_v63 = vpop.f32.mrf.mxu1 }
 0xb46   : > { %v7094_v6 = vmax.f32 %v7030_v25, 0.0  ;;  %12938 = vmatprep.subr.bf16.mxu1 %v20200_v31  ;;  %v7031_v37 = vadd.f32 %v18191_v48, %v6962_v54  ;;  %v7032_v7 = vadd.f32 %v18191_v48, %v6963_v39  ;;  %v7033_v28 = vadd.f32 %v18191_v48, %v6964_v19 }
 0xb47   : > { %v7150_v21 = vpack.c.bf16 %v7092_v59, %v7091_v55  ;;  %v7034_v29 = vadd.f32 %v18191_v48, %v6965_v12  ;;  %v18268_v17 = vpop.f32.mrf.mxu1  ;;  %v6966_v15 = vadd.f32 %v18140_v18, %v18247_v26  ;;  %v6967_v52 = vadd.f32 %v18144_v0, %v18247_v26 }
 0xb48   : > { %v7151_v43 = vpack.c.bf16 %v7094_v6, %v7093_v5  ;;  %v7095_v27 = vmax.f32 %v7031_v37, 0.0  ;;  %v7096_v53 = vmax.f32 %v7032_v7, 0.0  ;;  %v7097_v61 = vmax.f32 %v7033_v28, 0.0 }
 0xb49   : > { %v7098_v46 = vmax.f32 %v7034_v29, 0.0  ;;  %v6968_v14 = vadd.f32 %v18247_v26, %v18150_v40  ;;  %v6969_v22 = vadd.f32 %v18247_v26, %v18154_v11  ;;  %v18278_v30 = vpop.f32.mrf.mxu1  ;;  %v7036_v9 = vadd.f32 %v18191_v48, %v6967_v52 }
 0xb4a   : > { %12727 = vmatmul.mubr.bf16.gmra.mxu0 %v7148_v56  ;;  %v7152_v44 = vpack.c.bf16 %v7096_v53, %v7095_v27  ;;  %v7035_v56 = vadd.f32 %v18191_v48, %v6966_v15  ;;  %v6970_v11 = vadd.f32 %v18148_v45, %v18247_v26  ;;  %v6971_v25 = vadd.f32 %v18152_v51, %v18247_v26 }
 0xb4b   : > { %12730 = vmatprep.mubr.bf16.mxu0 %v7149_v50  ;;  %v7153_v36 = vpack.c.bf16 %v7098_v46, %v7097_v61  ;;  %v7037_v18 = vadd.f32 %v18191_v48, %v6968_v14  ;;  %v7038_v0 = vadd.f32 %v18191_v48, %v6969_v22  ;;  %v18284_v50 = vpop.f32.mrf.mxu1  ;;  %v7100_v41 = vmax.f32 %v7036_v9, 0.0 }
 0xb4c   : > { %v7099_v40 = vmax.f32 %v7035_v56, 0.0  ;;  %v6972_v54 = vadd.f32 %v18247_v26, %v18158_v8  ;;  %v6973_v39 = vadd.f32 %v18247_v26, %v18162_v20  ;;  %v7039_v19 = vadd.f32 %v18191_v48, %v6970_v11 }
 0xb4d   : > { %v7101_v55 = vmax.f32 %v7037_v18, 0.0  ;;  %v7102_v59 = vmax.f32 %v7038_v0, 0.0  ;;  %v18294_v5 = vpop.f32.mrf.mxu1  ;;  %v7040_v12 = vadd.f32 %v18191_v48, %v6971_v25  ;;  %v6926_v8 = vcombine.high %v18180_v4, %v18180_v4 }
 0xb4e   : > { %v7154_v6 = vpack.c.bf16 %v7100_v41, %v7099_v40  ;;  %v7041_v45 = vadd.f32 %v18191_v48, %v6972_v54  ;;  %v7042_v51 = vadd.f32 %v18191_v48, %v6973_v39  ;;  %v7103_v20 = vmax.f32 %v7039_v19, 0.0 }
 0xb4f   : > { %v18300_v37 = vpop.f32.mrf.mxu1  ;;  %v7104_v7 = vmax.f32 %v7040_v12, 0.0  ;;  %v6975_v28 = vadd.f32 %v18160_v60, %v18247_v26  ;;  %v6976_v53 = vadd.f32 %v18247_v26, %v18166_v2  ;;  %v6977_v15 = vadd.f32 %v18247_v26, %v18170_v24 }
 0xb50   : > { %v7105_v29 = vmax.f32 %v7041_v45, 0.0  ;;  %v7106_v27 = vmax.f32 %v7042_v51, 0.0  ;;  %v6978_v56 = vadd.f32 %v18164_v35, %v18247_v26  ;;  %v6979_v9 = vadd.f32 %v18168_v3, %v18247_v26 }
 0xb51   : > { %v18312_v52 = vpop.f32.mrf.mxu1  ;;  %v7156_v4 = vpack.c.bf16 %v7104_v7, %v7103_v20  ;;  %v7044_v46 = vadd.f32 %v18191_v48, %v6975_v28  ;;  %v7045_v60 = vadd.f32 %v18191_v48, %v6976_v53  ;;  %v7046_v22 = vadd.f32 %v18191_v48, %v6977_v15 }
 0xb52   : > { %12731 = vmatmul.mubr.bf16.gmra.mxu0 %v7150_v21  ;;  %v7155_v21 = vpack.c.bf16 %v7102_v59, %v7101_v55  ;;  %v7157_v14 = vpack.c.bf16 %v7106_v27, %v7105_v29  ;;  %v7047_v25 = vadd.f32 %v18191_v48, %v6978_v56  ;;  %v7048_v55 = vadd.f32 %v18191_v48, %v6979_v9 }
 0xb53   : > { %12734 = vmatprep.mubr.bf16.mxu0 %v7151_v43  ;;  %v6974_v43 = vadd.f32 %v18156_v33, %v18247_v26  ;;  %v18317_v33 = vrot.slane %v6926_v8, %v20235_v58  ;;  %v7108_v24 = vmax.f32 %v7044_v46, 0.0  ;;  %v7110_v18 = vmax.f32 %v7046_v22, 0.0 }
 0xb54   : > { %v7112_v54 = vmax.f32 %v7048_v55, 0.0 }
 0xb55   : > { %v7043_v61 = vadd.f32 %v18191_v48, %v6974_v43  ;;  %v6980_v0 = vadd.f32 %v18317_v33, %v18174_v49  ;;  %v6981_v40 = vadd.f32 %v18317_v33, %v18182_v16  ;;  %v7111_v49 = vmax.f32 %v7047_v25, 0.0 }
 0xb56   : > { %v6982_v16 = vadd.f32 %v18172_v38, %v18317_v33  ;;  %v6983_v39 = vadd.f32 %v18176_v42, %v18317_v33  ;;  %v6984_v12 = vadd.f32 %v18317_v33, %v18207_v13  ;;  %v6987_v29 = vadd.f32 %v18215_v57, %v18317_v33 }
 0xb57   : > { %v7107_v2 = vmax.f32 %v7043_v61, 0.0  ;;  %v7049_v35 = vadd.f32 %v18191_v48, %v6980_v0  ;;  %v7050_v3 = vadd.f32 %v18191_v48, %v6981_v40  ;;  %v7160_v51 = vpack.c.bf16 %v7112_v54, %v7111_v49 }
 0xb58   : > { %v7051_v8 = vadd.f32 %v18191_v48, %v6982_v16  ;;  %v7052_v20 = vadd.f32 %v18191_v48, %v6983_v39  ;;  %v7053_v38 = vadd.f32 %v18191_v48, %v6984_v12  ;;  %v6988_v15 = vadd.f32 %v18317_v33, %v18251_v47 }
 0xb59   : > { %v7158_v11 = vpack.c.bf16 %v7108_v24, %v7107_v2  ;;  %v7114_v19 = vmax.f32 %v7050_v3, 0.0  ;;  %v6927_v47 = vcombine.high %v18231_v1, %v18231_v1  ;;  %v6990_v56 = vadd.f32 %v18241_v34, %v18317_v33 }
 0xb5a   : > { %12735 = vmatmul.mubr.bf16.gmra.mxu0 %v7152_v44  ;;  %v18321_v44 = vpop.f32.mrf.mxu1  ;;  %v7115_v13 = vmax.f32 %v7051_v8, 0.0  ;;  %v7116_v28 = vmax.f32 %v7052_v20, 0.0  ;;  %v7117_v27 = vmax.f32 %v7053_v38, 0.0  ;;  %v6991_v9 = vadd.f32 %v18261_v63, %v18317_v33 }
 0xb5b   : > { %12738 = vmatprep.mubr.bf16.mxu0 %v7153_v36  ;;  %v7109_v36 = vmax.f32 %v7045_v60, 0.0  ;;  %v7056_v60 = vadd.f32 %v18191_v48, %v6987_v29  ;;  %v6992_v0 = vadd.f32 %v18317_v33, %v18284_v50  ;;  %v6993_v40 = vadd.f32 %v18317_v33, %v18300_v37 }
 0xb5c   : > { %v18331_v41 = vpop.f32.mrf.mxu1  ;;  %v7162_v46 = vpack.c.bf16 %v7116_v28, %v7115_v13  ;;  %v7059_v25 = vadd.f32 %v18191_v48, %v6990_v56  ;;  %v7060_v55 = vadd.f32 %v18191_v48, %v6991_v9  ;;  %v18384_v34 = vrot.slane %v6927_v47, %v20235_v58 }
 0xb5d   : > { %v7159_v59 = vpack.c.bf16 %v7110_v18, %v7109_v36  ;;  %v7061_v63 = vadd.f32 %v18191_v48, %v6992_v0  ;;  %v6994_v49 = vadd.f32 %v18278_v30, %v18317_v33  ;;  %v6995_v54 = vadd.f32 %v18294_v5, %v18317_v33 }
 0xb5e   : > { %v18337_v26 = vpop.f32.mrf.mxu1  ;;  %v7123_v50 = vmax.f32 %v7059_v25, 0.0  ;;  %v7124_v37 = vmax.f32 %v7060_v55, 0.0 }
 0xb5f   : > { %v7125_v16 = vmax.f32 %v7061_v63, 0.0  ;;  %v7064_v8 = vadd.f32 %v18191_v48, %v6995_v54 }
 0xb60   : > { %v18347_v45 = vpop.f32.mrf.mxu1 }
 0xb61   : > { %v7128_v38 = vmax.f32 %v7064_v8, 0.0 }
 0xb62   : > { %12739 = vmatmul.mubr.bf16.gmra.mxu0 %v7154_v6  ;;  %v7113_v6 = vmax.f32 %v7049_v35, 0.0  ;;  %v18353_v43 = vpop.f32.mrf.mxu1  ;;  %v7062_v35 = vadd.f32 %v18191_v48, %v6993_v40 }
 0xb63   : > { %12742 = vmatprep.mubr.bf16.mxu0 %v7155_v21  ;;  %v6985_v21 = vadd.f32 %v18317_v33, %v18226_v62  ;;  %v6986_v62 = vadd.f32 %v18197_v10, %v18317_v33  ;;  %v7057_v10 = vadd.f32 %v18191_v48, %v6988_v15  ;;  %v7000_v28 = vadd.f32 %v18384_v34, %v18353_v43 }
 0xb64   : > { %v7161_v7 = vpack.c.bf16 %v7114_v19, %v7113_v6  ;;  %v18363_v61 = vpop.f32.mrf.mxu1  ;;  %v7126_v39 = vmax.f32 %v7062_v35, 0.0  ;;  %v6996_v6 = vadd.f32 %v18384_v34, %v18321_v44  ;;  %v6997_v19 = vadd.f32 %v18384_v34, %v18337_v26 }
 0xb65   : > { %v7054_v42 = vadd.f32 %v18191_v48, %v6985_v21  ;;  %v7121_v36 = vmax.f32 %v7057_v10, 0.0  ;;  %v7166_v21 = vpack.c.bf16 %v7124_v37, %v7123_v50  ;;  %v6998_v44 = vadd.f32 %v18312_v52, %v18384_v34 }
 0xb66   : > { %v6859_v2 = vpop.f32.mrf.mxu1  ;;  %v7167_v20 = vpack.c.bf16 %v7126_v39, %v7125_v16  ;;  %v7065_v30 = vadd.f32 %v18191_v48, %v6996_v6  ;;  %v6999_v26 = vadd.f32 %v18331_v41, %v18384_v34  ;;  %v7002_v43 = vadd.f32 %v18347_v45, %v18384_v34 }
 0xb67   : > { %v7118_v53 = vmax.f32 %v7054_v42, 0.0 }
 0xb68   : > { %v7129_v42 = vmax.f32 %v7065_v30, 0.0  ;;  %v7068_v15 = vadd.f32 %v18191_v48, %v6999_v26  ;;  %v7071_v56 = vadd.f32 %v18191_v48, %v7002_v43 }
 0xb69   : > { %v7163_v22 = vpack.c.bf16 %v7118_v53, %v7117_v27  ;;  %v7067_v53 = vadd.f32 %v18191_v48, %v6998_v44  ;;  %v13743_v44 = vld [vmem:[#allocation2 + $0x300] sm:$0xff]  }
 0xb6a   : > { %12743 = vmatmul.mubr.bf16.gmra.mxu0 %v7156_v4  ;;  %v6989_v4 = vadd.f32 %v18317_v33, %v18268_v17  ;;  %v7120_v17 = vmax.f32 %v7056_v60, 0.0  ;;  %v7132_v60 = vmax.f32 %v7068_v15, 0.0 }
 0xb6b   : > { %12746 = vmatprep.mubr.bf16.mxu0 %v7157_v14  ;;  %v7055_v14 = vadd.f32 %v18191_v48, %v6986_v62  ;;  %v7001_v62 = vadd.f32 %v18384_v34, %v6859_v2  ;;  %v7131_v41 = vmax.f32 %v7067_v53, 0.0 }
 0xb6c   : > { %v7058_v57 = vadd.f32 %v18191_v48, %v6989_v4 }
 0xb6d   : > { %v7119_v24 = vmax.f32 %v7055_v14, 0.0  ;;  %v7070_v52 = vadd.f32 %v18191_v48, %v7001_v62 }
 0xb6e   : > { %v7122_v18 = vmax.f32 %v7058_v57, 0.0 }
 0xb6f   : > { %v7164_v1 = vpack.c.bf16 %v7120_v17, %v7119_v24  ;;  %v7134_v2 = vmax.f32 %v7070_v52, 0.0  ;;  %v7170_v17 = vpack.c.bf16 %v7132_v60, %v7131_v41  ;;  %v13740_v60 = vld [vmem:[#allocation2 + $0x348] sm:$0xff]  }
 0xb72   : > { %12747 = vmatmul.mubr.bf16.gmra.mxu0 %v7158_v11  ;;  %v18379_v11 = vpop.f32.mrf.mxu1 }
 0xb73   : > { %12750 = vmatprep.mubr.bf16.mxu0 %v7159_v59  ;;  %v7165_v59 = vpack.c.bf16 %v7122_v18, %v7121_v36 }
 0xb74   : > { %v6872_v3 = vpop.f32.mrf.mxu1 }
 0xb75   : > { %v7004_v47 = vadd.f32 %v18384_v34, %v6872_v3 }
 0xb76   : > { %v12701_v12 = vpop.f32.mrf.mxu1 }
 0xb77   : > { %v7073_v45 = vadd.f32 %v18191_v48, %v7004_v47  ;;  %v7007_v40 = vadd.f32 %v12701_v12, %v18384_v34 }
 0xb78   : > { %v6875_v5 = vpop.f32.mrf.mxu1 }
 0xb79   : > { %v7005_v10 = vadd.f32 %v18384_v34, %v6875_v5  ;;  %v7137_v35 = vmax.f32 %v7073_v45, 0.0  ;;  %v7076_v50 = vadd.f32 %v18191_v48, %v7007_v40 }
 0xb7a   : > { %12751 = vmatmul.mubr.bf16.gmra.mxu0 %v7160_v51  ;;  %v7063_v51 = vadd.f32 %v18191_v48, %v6994_v49  ;;  %v12704_v29 = vpop.f32.mrf.mxu1 }
 0xb7b   : > { %12754 = vmatprep.mubr.bf16.mxu0 %v7161_v7  ;;  %v7066_v7 = vadd.f32 %v18191_v48, %v6997_v19  ;;  %v7074_v36 = vadd.f32 %v18191_v48, %v7005_v10  ;;  %v7140_v39 = vmax.f32 %v7076_v50, 0.0  ;;  %v7010_v6 = vadd.f32 %v12704_v29, %v18384_v34 }
 0xb7c   : > { %v7127_v33 = vmax.f32 %v7063_v51, 0.0  ;;  %v6888_v14 = vpop.f32.mrf.mxu1 }
 0xb7d   : > { %v7130_v13 = vmax.f32 %v7066_v7, 0.0  ;;  %v7138_v55 = vmax.f32 %v7074_v36, 0.0  ;;  %v7079_v8 = vadd.f32 %v18191_v48, %v7010_v6 }
 0xb7e   : > { %v7168_v27 = vpack.c.bf16 %v7128_v38, %v7127_v33  ;;  %v12705_v24 = vpop.f32.mrf.mxu1  ;;  %v13739_v38 = vld [vmem:[#allocation2 + $0x308] sm:$0xff]  }
 0xb7f   : > { %v7169_v4 = vpack.c.bf16 %v7130_v13, %v7129_v42  ;;  %v7011_v19 = vadd.f32 %v12705_v24, %v18384_v34  ;;  %v7143_v7 = vmax.f32 %v7079_v8, 0.0  ;;  %12866 = vmatprep.subr.bf16.mxu0 %v13739_v38  ;;  %v18437_v42 = vld [vmem:[%s19175_s2 + $0xc] ss:$0 sm:$0xff]  ;;  %v13749_v24 = vld [vmem:[#allocation2 + $0x2f8] sm:$0xff]  }
 0xb80   : > { %v6891_v0 = vpop.f32.mrf.mxu1  ;;  %12867 = vmatpush3.bf16.msra.mxu0 %v13739_v38  ;;  %v13746_v38 = vld [vmem:[#allocation2 + $0x320] sm:$0xff]  }
 0xb81   : > { %v7009_v63 = vadd.f32 %v18384_v34, %v6891_v0  ;;  %12868 = vmatprep.subr.bf16.mxu0 %v13743_v44 }
 0xb82   : > { %12755 = vmatmul.mubr.bf16.gmra.mxu0 %v7162_v46  ;;  %v7069_v46 = vadd.f32 %v18191_v48, %v7000_v28 }
 0xb83   : > { %12758 = vmatprep.mubr.bf16.mxu0 %v7163_v22  ;;  %v7003_v22 = vadd.f32 %v18363_v61, %v18384_v34  ;;  %v7006_v61 = vadd.f32 %v18379_v11, %v18384_v34  ;;  %v7078_v54 = vadd.f32 %v18191_v48, %v7009_v63  ;;  %v7173_v11 = vpack.c.bf16 %v7138_v55, %v7137_v35 }
 0xb84   : > { %v7133_v57 = vmax.f32 %v7069_v46, 0.0  ;;  %12869 = vmatpush3.bf16.msra.mxu0 %v13743_v44 }
 0xb85   : > { %v7072_v9 = vadd.f32 %v18191_v48, %v7003_v22  ;;  %v7075_v3 = vadd.f32 %v18191_v48, %v7006_v61  ;;  %12870 = vmatprep.subr.bf16.mxu0 %v13749_v24 }
 0xb86   : > { %v7171_v18 = vpack.c.bf16 %v7134_v2, %v7133_v57 }
 0xb87   : > { %v7136_v25 = vmax.f32 %v7072_v9, 0.0  ;;  %v7139_v16 = vmax.f32 %v7075_v3, 0.0  ;;  %v13741_v9 = vld [vmem:[#allocation2 + $0x340] sm:$0xff]  }
 0xb88   : > { %12871 = vmatpush3.bf16.msra.mxu0 %v13749_v24 }
 0xb89   : > { %v7174_v51 = vpack.c.bf16 %v7140_v39, %v7139_v16 }
 0xb8a   : > { %12759 = vmatmul.mubr.bf16.gmra.mxu0 %v7164_v1  ;;  %v7135_v1 = vmax.f32 %v7071_v56, 0.0 }
 0xb8b   : > { %12762 = vmatprep.mubr.bf16.mxu0 %v7165_v59  ;;  %v7008_v59 = vadd.f32 %v18384_v34, %v6888_v14 }
 0xb8c   : > { %v7172_v37 = vpack.c.bf16 %v7136_v25, %v7135_v1  ;;  %v13742_v25 = vld [vmem:[#allocation2 + $0x338] sm:$0xff]  }
 0xb8d   : > { %v7077_v49 = vadd.f32 %v18191_v48, %v7008_v59 }
 0xb8f   : > { %v7141_v12 = vmax.f32 %v7077_v49, 0.0  ;;  %v13744_v49 = vld [vmem:[#allocation2 + $0x330] sm:$0xff]  }
 0xb92   : > { %12763 = vmatmul.mubr.bf16.gmra.mxu0 %v7166_v21  ;;  %v7142_v21 = vmax.f32 %v7078_v54, 0.0 }
 0xb93   : > { %12766 = vmatprep.mubr.bf16.mxu0 %v7167_v20  ;;  %v7080_v20 = vadd.f32 %v18191_v48, %v7011_v19 }
 0xb94   : > { %v7175_v30 = vpack.c.bf16 %v7142_v21, %v7141_v12  ;;  %v13745_v21 = vld [vmem:[#allocation2 + $0x328] sm:$0xff]  }
 0xb95   : > { %v7144_v5 = vmax.f32 %v7080_v20, 0.0 }
 0xb97   : > { %v7176_v33 = vpack.c.bf16 %v7144_v5, %v7143_v7 }
 0xb9a   : > { %12767 = vmatmul.mubr.bf16.gmra.mxu0 %v7168_v27 }
 0xb9b   : > { %12770 = vmatprep.mubr.bf16.mxu0 %v7169_v4 }
 0xba2   : > { %12771 = vmatmul.mubr.bf16.gmra.mxu0 %v7170_v17  ;;  %v13750_v17 = vld [vmem:[#allocation2 + $0x2f0] sm:$0xff]  }
 0xba3   : > { %12774 = vmatprep.mubr.bf16.mxu0 %v7171_v18  ;;  %12872 = vmatprep.subr.bf16.mxu0 %v13750_v17 }
 0xba4   : > { %12873 = vmatpush3.bf16.msra.mxu0 %v13750_v17 }
 0xbaa   : > { %12775 = vmatmul.mubr.bf16.gmra.mxu0 %v7172_v37 }
 0xbab   : > { %12778 = vmatprep.mubr.bf16.mxu0 %v7173_v11 }
 0xbb2   : > { %12779 = vmatmul.mubr.bf16.gmra.mxu0 %v7174_v51 }
 0xbb3   : > { %12782 = vmatprep.mubr.bf16.mxu0 %v7175_v30 }
 0xbba   : > { %12783 = vmatmul.mubr.bf16.gmra.mxu0 %v7176_v33 }
 0xc02   : > { %v12724_v34 = vpop.f32.mrf.mxu0 }
 0xc03   : > { %v7289_v62 = vadd.f32 %v12724_v34, %v18437_v42 }
 0xc04   : > { %v7280_v26 = vpop.f32.mrf.mxu0 }
 0xc05   : > { %v7281_v13 = vadd.f32 %v18437_v42, %v7280_v26  ;;  %v7537_v52 = vmax.f32 %v7289_v62, 0.0 }
 0xc06   : > { %v12725_v48 = vpop.f32.mrf.mxu0 }
 0xc07   : > { %v7292_v28 = vadd.f32 %v12725_v48, %v18437_v42  ;;  %v7535_v4 = vmax.f32 %v7281_v13, 0.0 }
 0xc08   : > { %v7283_v29 = vpop.f32.mrf.mxu0 }
 0xc09   : > { %v7284_v27 = vadd.f32 %v18437_v42, %v7283_v29  ;;  %v7538_v53 = vmax.f32 %v7292_v28, 0.0  ;;  %v13747_v29 = vld [vmem:[#allocation2 + $0x318] sm:$0xff]  }
 0xc0a   : > { %v12728_v15 = vpop.f32.mrf.mxu0 }
 0xc0b   : > { %v7536_v46 = vmax.f32 %v7284_v27, 0.0  ;;  %v7600_v43 = vpack.c.bf16 %v7538_v53, %v7537_v52  ;;  %v7305_v2 = vadd.f32 %v12728_v15, %v18437_v42 }
 0xc0c   : > { %v7296_v14 = vpop.f32.mrf.mxu0 }
 0xc0d   : > { %v7599_v41 = vpack.c.bf16 %v7536_v46, %v7535_v4  ;;  %v7297_v10 = vadd.f32 %v18437_v42, %v7296_v14  ;;  %v7541_v61 = vmax.f32 %v7305_v2, 0.0 }
 0xc0e   : > { %v12729_v22 = vpop.f32.mrf.mxu0 }
 0xc0f   : > { %v7308_v57 = vadd.f32 %v12729_v22, %v18437_v42  ;;  %12802 = vmatprep.mubr.bf16.mxu1 %v7599_v41  ;;  %v7539_v45 = vmax.f32 %v7297_v10, 0.0  ;;  %v13748_v41 = vld [vmem:[#allocation2 + $0x310] sm:$0xff]  }
 0xc10   : > { %v7299_v47 = vpop.f32.mrf.mxu0  ;;  %12803 = vmatmul.mubr.bf16.vlgmr.msra.gmra.mxu1 %v7600_v43 }
 0xc11   : > { %v7300_v56 = vadd.f32 %v18437_v42, %v7299_v47  ;;  %12939 = vmatpush3.bf16.msra.mxu1 %v13740_v60  ;;  %v7542_v36 = vmax.f32 %v7308_v57, 0.0 }
 0xc12   : > { %v12732_v18 = vpop.f32.mrf.mxu0  ;;  %12940 = vmatprep.subr.bf16.mxu1 %v20200_v31 }
 0xc13   : > { %v7540_v0 = vmax.f32 %v7300_v56, 0.0  ;;  %v7602_v55 = vpack.c.bf16 %v7542_v36, %v7541_v61  ;;  %v7321_v3 = vadd.f32 %v12732_v18, %v18437_v42 }
 0xc14   : > { %v7312_v40 = vpop.f32.mrf.mxu0 }
 0xc15   : > { %v7601_v1 = vpack.c.bf16 %v7540_v0, %v7539_v45  ;;  %12941 = vmatpush3.bf16.msra.mxu1 %v13741_v9  ;;  %v7313_v63 = vadd.f32 %v18437_v42, %v7312_v40  ;;  %v7545_v6 = vmax.f32 %v7321_v3, 0.0 }
 0xc16   : > { %v12733_v59 = vpop.f32.mrf.mxu0  ;;  %12942 = vmatprep.subr.bf16.mxu1 %v20200_v31 }
 0xc17   : > { %v7324_v35 = vadd.f32 %v12733_v59, %v18437_v42  ;;  %12806 = vmatprep.mubr.bf16.mxu1 %v7601_v1  ;;  %v7543_v16 = vmax.f32 %v7313_v63, 0.0 }
 0xc18   : > { %v7315_v50 = vpop.f32.mrf.mxu0  ;;  %12807 = vmatmul.mubr.bf16.gmra.mxu1 %v7602_v55 }
 0xc19   : > { %v7316_v37 = vadd.f32 %v18437_v42, %v7315_v50  ;;  %12943 = vmatpush3.bf16.msra.mxu1 %v13742_v25  ;;  %v7546_v54 = vmax.f32 %v7324_v35, 0.0 }
 0xc1a   : > { %v12736_v11 = vpop.f32.mrf.mxu0  ;;  %12944 = vmatprep.subr.bf16.mxu1 %v20200_v31 }
 0xc1b   : > { %v7544_v39 = vmax.f32 %v7316_v37, 0.0  ;;  %v7604_v51 = vpack.c.bf16 %v7546_v54, %v7545_v6  ;;  %v7337_v7 = vadd.f32 %v12736_v11, %v18437_v42 }
 0xc1c   : > { %v7328_v19 = vpop.f32.mrf.mxu0 }
 0xc1d   : > { %v7603_v12 = vpack.c.bf16 %v7544_v39, %v7543_v16  ;;  %12945 = vmatpush3.bf16.msra.mxu1 %v13744_v49  ;;  %v7329_v20 = vadd.f32 %v18437_v42, %v7328_v19  ;;  %v7549_v13 = vmax.f32 %v7337_v7, 0.0 }
 0xc1e   : > { %v12737_v8 = vpop.f32.mrf.mxu0  ;;  %12946 = vmatprep.subr.bf16.mxu1 %v20200_v31 }
 0xc1f   : > { %v7340_v30 = vadd.f32 %v12737_v8, %v18437_v42  ;;  %12810 = vmatprep.mubr.bf16.mxu1 %v7603_v12  ;;  %v7547_v26 = vmax.f32 %v7329_v20, 0.0 }
 0xc20   : > { %v7331_v5 = vpop.f32.mrf.mxu0  ;;  %12811 = vmatmul.mubr.bf16.gmra.mxu1 %v7604_v51 }
 0xc21   : > { %v7332_v33 = vadd.f32 %v18437_v42, %v7331_v5  ;;  %12947 = vmatpush3.bf16.msra.mxu1 %v13745_v21  ;;  %v7550_v44 = vmax.f32 %v7340_v30, 0.0 }
 0xc22   : > { %v12740_v34 = vpop.f32.mrf.mxu0  ;;  %12948 = vmatprep.subr.bf16.mxu1 %v20200_v31 }
 0xc23   : > { %v7548_v48 = vmax.f32 %v7332_v33, 0.0  ;;  %v7606_v27 = vpack.c.bf16 %v7550_v44, %v7549_v13  ;;  %v7353_v46 = vadd.f32 %v12740_v34, %v18437_v42 }
 0xc24   : > { %v7344_v28 = vpop.f32.mrf.mxu0 }
 0xc25   : > { %v7605_v62 = vpack.c.bf16 %v7548_v48, %v7547_v26  ;;  %12949 = vmatpush3.bf16.msra.mxu1 %v13746_v38  ;;  %v7345_v15 = vadd.f32 %v18437_v42, %v7344_v28  ;;  %v7553_v57 = vmax.f32 %v7353_v46, 0.0 }
 0xc26   : > { %v12741_v53 = vpop.f32.mrf.mxu0  ;;  %12950 = vmatprep.subr.bf16.mxu1 %v20200_v31 }
 0xc27   : > { %v7356_v4 = vadd.f32 %v12741_v53, %v18437_v42  ;;  %12814 = vmatprep.mubr.bf16.mxu1 %v7605_v62  ;;  %v7551_v22 = vmax.f32 %v7345_v15, 0.0 }
 0xc28   : > { %v7347_v52 = vpop.f32.mrf.mxu0  ;;  %12815 = vmatmul.mubr.bf16.gmra.mxu1 %v7606_v27 }
 0xc29   : > { %v7348_v14 = vadd.f32 %v18437_v42, %v7347_v52  ;;  %12951 = vmatpush3.bf16.msra.mxu1 %v13747_v29  ;;  %v7554_v60 = vmax.f32 %v7356_v4, 0.0 }
 0xc2a   : > { %v12744_v43 = vpop.f32.mrf.mxu0  ;;  %12952 = vmatprep.subr.bf16.mxu1 %v20200_v31 }
 0xc2b   : > { %v7552_v10 = vmax.f32 %v7348_v14, 0.0  ;;  %v7608_v24 = vpack.c.bf16 %v7554_v60, %v7553_v57  ;;  %v7369_v36 = vadd.f32 %v12744_v43, %v18437_v42 }
 0xc2c   : > { %v7360_v2 = vpop.f32.mrf.mxu0 }
 0xc2d   : > { %v7607_v47 = vpack.c.bf16 %v7552_v10, %v7551_v22  ;;  %12953 = vmatpush3.bf16.msra.mxu1 %v13748_v41  ;;  %v7361_v56 = vadd.f32 %v18437_v42, %v7360_v2  ;;  %v7557_v25 = vmax.f32 %v7369_v36, 0.0 }
 0xc2e   : > { %v12745_v17 = vpop.f32.mrf.mxu0 }
 0xc2f   : > { %v7372_v9 = vadd.f32 %v12745_v17, %v18437_v42  ;;  %12818 = vmatprep.mubr.bf16.mxu1 %v7607_v47  ;;  %v7555_v40 = vmax.f32 %v7361_v56, 0.0 }
 0xc30   : > { %v7363_v18 = vpop.f32.mrf.mxu0  ;;  %12819 = vmatmul.mubr.bf16.gmra.mxu1 %v7608_v24 }
 0xc31   : > { %v7364_v45 = vadd.f32 %v18437_v42, %v7363_v18  ;;  %v7558_v0 = vmax.f32 %v7372_v9, 0.0 }
 0xc32   : > { %v12748_v61 = vpop.f32.mrf.mxu0 }
 0xc33   : > { %v7556_v1 = vmax.f32 %v7364_v45, 0.0  ;;  %v7610_v63 = vpack.c.bf16 %v7558_v0, %v7557_v25  ;;  %v7385_v37 = vadd.f32 %v12748_v61, %v18437_v42 }
 0xc34   : > { %v7376_v55 = vpop.f32.mrf.mxu0 }
 0xc35   : > { %v7609_v59 = vpack.c.bf16 %v7556_v1, %v7555_v40  ;;  %v7377_v3 = vadd.f32 %v18437_v42, %v7376_v55  ;;  %v7561_v19 = vmax.f32 %v7385_v37, 0.0 }
 0xc36   : > { %v12749_v35 = vpop.f32.mrf.mxu0 }
 0xc37   : > { %v7388_v50 = vadd.f32 %v12749_v35, %v18437_v42  ;;  %12822 = vmatprep.mubr.bf16.mxu1 %v7609_v59  ;;  %v7559_v39 = vmax.f32 %v7377_v3, 0.0 }
 0xc38   : > { %v7379_v49 = vpop.f32.mrf.mxu0  ;;  %12823 = vmatmul.mubr.bf16.gmra.mxu1 %v7610_v63 }
 0xc39   : > { %v7380_v54 = vadd.f32 %v18437_v42, %v7379_v49  ;;  %v7562_v11 = vmax.f32 %v7388_v50, 0.0 }
 0xc3a   : > { %v12752_v16 = vpop.f32.mrf.mxu0 }
 0xc3b   : > { %v7560_v6 = vmax.f32 %v7380_v54, 0.0  ;;  %v7612_v51 = vpack.c.bf16 %v7562_v11, %v7561_v19  ;;  %v7401_v7 = vadd.f32 %v12752_v16, %v18437_v42 }
 0xc3c   : > { %v7392_v12 = vpop.f32.mrf.mxu0 }
 0xc3d   : > { %v7611_v21 = vpack.c.bf16 %v7560_v6, %v7559_v39  ;;  %v7393_v20 = vadd.f32 %v18437_v42, %v7392_v12  ;;  %v7565_v48 = vmax.f32 %v7401_v7, 0.0 }
 0xc3e   : > { %v12753_v8 = vpop.f32.mrf.mxu0 }
 0xc3f   : > { %v7404_v30 = vadd.f32 %v12753_v8, %v18437_v42  ;;  %12826 = vmatprep.mubr.bf16.mxu1 %v7611_v21  ;;  %v7563_v34 = vmax.f32 %v7393_v20, 0.0 }
 0xc40   : > { %v7395_v5 = vpop.f32.mrf.mxu0  ;;  %12827 = vmatmul.mubr.bf16.gmra.mxu1 %v7612_v51 }
 0xc41   : > { %v7396_v33 = vadd.f32 %v18437_v42, %v7395_v5  ;;  %v7566_v38 = vmax.f32 %v7404_v30, 0.0 }
 0xc42   : > { %v12756_v44 = vpop.f32.mrf.mxu0 }
 0xc43   : > { %v7564_v26 = vmax.f32 %v7396_v33, 0.0  ;;  %v7614_v62 = vpack.c.bf16 %v7566_v38, %v7565_v48  ;;  %v7417_v15 = vadd.f32 %v12756_v44, %v18437_v42 }
 0xc44   : > { %v7408_v13 = vpop.f32.mrf.mxu0 }
 0xc45   : > { %v7613_v28 = vpack.c.bf16 %v7564_v26, %v7563_v34  ;;  %v7409_v27 = vadd.f32 %v18437_v42, %v7408_v13  ;;  %v7569_v43 = vmax.f32 %v7417_v15, 0.0 }
 0xc46   : > { %v12757_v29 = vpop.f32.mrf.mxu0 }
 0xc47   : > { %v7420_v53 = vadd.f32 %v12757_v29, %v18437_v42  ;;  %12830 = vmatprep.mubr.bf16.mxu1 %v7613_v28  ;;  %v7567_v41 = vmax.f32 %v7409_v27, 0.0 }
 0xc48   : > { %v7411_v4 = vpop.f32.mrf.mxu0  ;;  %12831 = vmatmul.mubr.bf16.gmra.mxu1 %v7614_v62 }
 0xc49   : > { %v7412_v46 = vadd.f32 %v18437_v42, %v7411_v4  ;;  %v7570_v52 = vmax.f32 %v7420_v53, 0.0 }
 0xc4a   : > { %v12760_v14 = vpop.f32.mrf.mxu0 }
 0xc4b   : > { %v7568_v60 = vmax.f32 %v7412_v46, 0.0  ;;  %v7616_v57 = vpack.c.bf16 %v7570_v52, %v7569_v43  ;;  %v7433_v17 = vadd.f32 %v12760_v14, %v18437_v42 }
 0xc4c   : > { %v7424_v22 = vpop.f32.mrf.mxu0 }
 0xc4d   : > { %v7615_v10 = vpack.c.bf16 %v7568_v60, %v7567_v41  ;;  %v7425_v47 = vadd.f32 %v18437_v42, %v7424_v22  ;;  %v7573_v61 = vmax.f32 %v7433_v17, 0.0 }
 0xc4e   : > { %v12761_v2 = vpop.f32.mrf.mxu0 }
 0xc4f   : > { %v7436_v24 = vadd.f32 %v12761_v2, %v18437_v42  ;;  %12834 = vmatprep.mubr.bf16.mxu1 %v7615_v10  ;;  %v7571_v45 = vmax.f32 %v7425_v47, 0.0 }
 0xc50   : > { %v7427_v56 = vpop.f32.mrf.mxu0  ;;  %12835 = vmatmul.mubr.bf16.gmra.mxu1 %v7616_v57 }
 0xc51   : > { %v7428_v9 = vadd.f32 %v18437_v42, %v7427_v56  ;;  %v7574_v36 = vmax.f32 %v7436_v24, 0.0 }
 0xc52   : > { %v12764_v18 = vpop.f32.mrf.mxu0 }
 0xc53   : > { %v7572_v0 = vmax.f32 %v7428_v9, 0.0  ;;  %v7618_v25 = vpack.c.bf16 %v7574_v36, %v7573_v61  ;;  %v7449_v35 = vadd.f32 %v12764_v18, %v18437_v42 }
 0xc54   : > { %v7440_v40 = vpop.f32.mrf.mxu0 }
 0xc55   : > { %v7617_v1 = vpack.c.bf16 %v7572_v0, %v7571_v45  ;;  %v7441_v59 = vadd.f32 %v18437_v42, %v7440_v40  ;;  %v7577_v16 = vmax.f32 %v7449_v35, 0.0 }
 0xc56   : > { %v12765_v55 = vpop.f32.mrf.mxu0 }
 0xc57   : > { %v7452_v63 = vadd.f32 %v12765_v55, %v18437_v42  ;;  %12838 = vmatprep.mubr.bf16.mxu1 %v7617_v1  ;;  %v7575_v54 = vmax.f32 %v7441_v59, 0.0 }
 0xc58   : > { %v7443_v3 = vpop.f32.mrf.mxu0  ;;  %12839 = vmatmul.mubr.bf16.gmra.mxu1 %v7618_v25 }
 0xc59   : > { %v7444_v50 = vadd.f32 %v18437_v42, %v7443_v3  ;;  %v7578_v37 = vmax.f32 %v7452_v63, 0.0 }
 0xc5a   : > { %v12768_v49 = vpop.f32.mrf.mxu0 }
 0xc5b   : > { %v7576_v11 = vmax.f32 %v7444_v50, 0.0  ;;  %v7620_v19 = vpack.c.bf16 %v7578_v37, %v7577_v16  ;;  %v7465_v8 = vadd.f32 %v12768_v49, %v18437_v42 }
 0xc5c   : > { %v7456_v39 = vpop.f32.mrf.mxu0 }
 0xc5d   : > { %v7619_v6 = vpack.c.bf16 %v7576_v11, %v7575_v54  ;;  %v7457_v21 = vadd.f32 %v18437_v42, %v7456_v39  ;;  %v7581_v44 = vmax.f32 %v7465_v8, 0.0 }
 0xc5e   : > { %v12769_v12 = vpop.f32.mrf.mxu0 }
 0xc5f   : > { %v7468_v51 = vadd.f32 %v12769_v12, %v18437_v42  ;;  %12842 = vmatprep.mubr.bf16.mxu1 %v7619_v6  ;;  %v7579_v33 = vmax.f32 %v7457_v21, 0.0 }
 0xc60   : > { %v7459_v20 = vpop.f32.mrf.mxu0  ;;  %12843 = vmatmul.mubr.bf16.gmra.mxu1 %v7620_v19 }
 0xc61   : > { %v7460_v30 = vadd.f32 %v18437_v42, %v7459_v20  ;;  %v7582_v7 = vmax.f32 %v7468_v51, 0.0 }
 0xc62   : > { %v12772_v5 = vpop.f32.mrf.mxu0 }
 0xc63   : > { %v7580_v38 = vmax.f32 %v7460_v30, 0.0  ;;  %v7622_v48 = vpack.c.bf16 %v7582_v7, %v7581_v44  ;;  %v7481_v29 = vadd.f32 %v12772_v5, %v18437_v42 }
 0xc64   : > { %v7472_v34 = vpop.f32.mrf.mxu0 }
 0xc65   : > { %v7621_v26 = vpack.c.bf16 %v7580_v38, %v7579_v33  ;;  %v7473_v28 = vadd.f32 %v18437_v42, %v7472_v34  ;;  %v7585_v14 = vmax.f32 %v7481_v29, 0.0  ;;  %v18516_v34 = vld [vmem:[%s19175_s2 + $0xd] ss:$0 sm:$0xff] }
 0xc66   : > { %v12773_v13 = vpop.f32.mrf.mxu0 }
 0xc67   : > { %v7484_v62 = vadd.f32 %v12773_v13, %v18437_v42  ;;  %12846 = vmatprep.mubr.bf16.mxu1 %v7621_v26  ;;  %v7583_v46 = vmax.f32 %v7473_v28, 0.0 }
 0xc68   : > { %v7475_v27 = vpop.f32.mrf.mxu0  ;;  %12847 = vmatmul.mubr.bf16.gmra.mxu1 %v7622_v48 }
 0xc69   : > { %v7476_v53 = vadd.f32 %v18437_v42, %v7475_v27  ;;  %v7586_v15 = vmax.f32 %v7484_v62, 0.0 }
 0xc6a   : > { %v12776_v4 = vpop.f32.mrf.mxu0 }
 0xc6b   : > { %v7584_v52 = vmax.f32 %v7476_v53, 0.0  ;;  %v7624_v43 = vpack.c.bf16 %v7586_v15, %v7585_v14  ;;  %v7497_v2 = vadd.f32 %v12776_v4, %v18437_v42  ;;  %v13751_v53 = vld [vmem:[#allocation2 + $0x388] sm:$0xff]   ;;  %v13752_v15 = vld [vmem:[#allocation2 + $0x380] sm:$0xff]  }
 0xc6c   : > { %v7488_v41 = vpop.f32.mrf.mxu0  ;;  %12958 = vmatprep.subr.bf16.mxu1 %v13751_v53 }
 0xc6d   : > { %v7623_v60 = vpack.c.bf16 %v7584_v52, %v7583_v46  ;;  %v7489_v10 = vadd.f32 %v18437_v42, %v7488_v41  ;;  %v7589_v18 = vmax.f32 %v7497_v2, 0.0 }
 0xc6e   : > { %v12777_v22 = vpop.f32.mrf.mxu0 }
 0xc6f   : > { %v7500_v57 = vadd.f32 %v12777_v22, %v18437_v42  ;;  %12850 = vmatprep.mubr.bf16.mxu1 %v7623_v60  ;;  %v7587_v9 = vmax.f32 %v7489_v10, 0.0  ;;  %v13753_v22 = vld [vmem:[#allocation2 + $0x378] sm:$0xff]  }
 0xc70   : > { %v7491_v47 = vpop.f32.mrf.mxu0  ;;  %12851 = vmatmul.mubr.bf16.gmra.mxu1 %v7624_v43 }
 0xc71   : > { %v7492_v24 = vadd.f32 %v18437_v42, %v7491_v47  ;;  %v7590_v17 = vmax.f32 %v7500_v57, 0.0 }
 0xc72   : > { %v12780_v56 = vpop.f32.mrf.mxu0 }
 0xc73   : > { %v7588_v36 = vmax.f32 %v7492_v24, 0.0  ;;  %v7626_v61 = vpack.c.bf16 %v7590_v17, %v7589_v18  ;;  %v7513_v55 = vadd.f32 %v12780_v56, %v18437_v42 }
 0xc74   : > { %v7504_v45 = vpop.f32.mrf.mxu0 }
 0xc75   : > { %v7625_v0 = vpack.c.bf16 %v7588_v36, %v7587_v9  ;;  %v7505_v1 = vadd.f32 %v18437_v42, %v7504_v45  ;;  %v7593_v49 = vmax.f32 %v7513_v55, 0.0  ;;  %v13754_v9 = vld [vmem:[#allocation2 + $0x370] sm:$0xff]  }
 0xc76   : > { %v12781_v40 = vpop.f32.mrf.mxu0 }
 0xc77   : > { %v7516_v25 = vadd.f32 %v12781_v40, %v18437_v42  ;;  %12854 = vmatprep.mubr.bf16.mxu1 %v7625_v0  ;;  %v7591_v50 = vmax.f32 %v7505_v1, 0.0 }
 0xc78   : > { %v7507_v59 = vpop.f32.mrf.mxu0  ;;  %12855 = vmatmul.mubr.bf16.gmra.mxu1 %v7626_v61 }
 0xc79   : > { %v7508_v63 = vadd.f32 %v18437_v42, %v7507_v59  ;;  %v7594_v35 = vmax.f32 %v7516_v25, 0.0  ;;  %v13755_v25 = vld [vmem:[#allocation2 + $0x368] sm:$0xff]  }
 0xc7a   : > { %v12784_v3 = vpop.f32.mrf.mxu0 }
 0xc7b   : > { %v7592_v37 = vmax.f32 %v7508_v63, 0.0  ;;  %v7628_v16 = vpack.c.bf16 %v7594_v35, %v7593_v49  ;;  %v7529_v12 = vadd.f32 %v12784_v3, %v18437_v42 }
 0xc7c   : > { %v7520_v54 = vpop.f32.mrf.mxu0 }
 0xc7d   : > { %v7627_v11 = vpack.c.bf16 %v7592_v37, %v7591_v50  ;;  %v7521_v6 = vadd.f32 %v18437_v42, %v7520_v54  ;;  %v7597_v7 = vmax.f32 %v7529_v12, 0.0 }
 0xc7e   : > { %v12785_v39 = vpop.f32.mrf.mxu0 }
 0xc7f   : > { %v7532_v19 = vadd.f32 %v12785_v39, %v18437_v42  ;;  %12858 = vmatprep.mubr.bf16.mxu1 %v7627_v11  ;;  %v7595_v20 = vmax.f32 %v7521_v6, 0.0 }
 0xc80   : > { %v7523_v21 = vpop.f32.mrf.mxu0  ;;  %12859 = vmatmul.mubr.bf16.gmra.mxu1 %v7628_v16 }
 0xc81   : > { %v7524_v51 = vadd.f32 %v18437_v42, %v7523_v21  ;;  %v7598_v8 = vmax.f32 %v7532_v19, 0.0 }
 0xc83   : > { %v7596_v30 = vmax.f32 %v7524_v51, 0.0  ;;  %v7630_v33 = vpack.c.bf16 %v7598_v8, %v7597_v7 }
 0xc85   : > { %v7629_v5 = vpack.c.bf16 %v7596_v30, %v7595_v20 }
 0xc87   : > { %12862 = vmatprep.mubr.bf16.mxu1 %v7629_v5 }
 0xc88   : > { %12863 = vmatmul.mubr.bf16.gmra.mxu1 %v7630_v33 }
 0xc89   : > { %12954 = vmatprep.mubr.msk.bf16.mxu1 %vm14024_vm6, %v20200_v31 }
 0xc90   : > { %12955 = vmatmul.mubr.bf16.vlgmr.msra.gmra.mxu1 %v18107_v23 }
 0xc91   : > { %12959 = vmatpush3.bf16.msra.mxu1 %v13751_v53 }
 0xc92   : > { %12960 = vmatprep.subr.bf16.mxu1 %v13752_v15 }
 0xc95   : > { %12961 = vmatpush3.bf16.msra.mxu1 %v13752_v15 }
 0xc96   : > { %12962 = vmatprep.subr.bf16.mxu1 %v13753_v22 }
 0xc99   : > { %12963 = vmatpush3.bf16.msra.mxu1 %v13753_v22 }
 0xc9a   : > { %12964 = vmatprep.subr.bf16.mxu1 %v13754_v9 }
 0xc9d   : > { %12965 = vmatpush3.bf16.msra.mxu1 %v13754_v9 }
 0xc9e   : > { %12966 = vmatprep.subr.bf16.mxu1 %v13755_v25 }
 0xca1   : > { %12967 = vmatpush3.bf16.msra.mxu1 %v13755_v25 }
 0xcd0   : > { %v12804_v38 = vpop.f32.mrf.mxu1 }
 0xcd1   : > { %v7743_v13 = vadd.f32 %v12804_v38, %v18516_v34 }
 0xcd2   : > { %v7734_v44 = vpop.f32.mrf.mxu1 }
 0xcd3   : > { %v7735_v26 = vadd.f32 %v18516_v34, %v7734_v44  ;;  %v7991_v4 = vmax.f32 %v7743_v13, 0.0 }
 0xcd4   : > { %v12805_v42 = vpop.f32.mrf.mxu1 }
 0xcd5   : > { %v7746_v48 = vadd.f32 %v12805_v42, %v18516_v34  ;;  %v7989_v23 = vmax.f32 %v7735_v26, 0.0 }
 0xcd6   : > { %v7737_v28 = vpop.f32.mrf.mxu1 }
 0xcd7   : > { %v7738_v62 = vadd.f32 %v18516_v34, %v7737_v28  ;;  %v7992_v31 = vmax.f32 %v7746_v48, 0.0 }
 0xcd8   : > { %v12808_v29 = vpop.f32.mrf.mxu1 }
 0xcd9   : > { %v7990_v27 = vmax.f32 %v7738_v62, 0.0  ;;  %v8054_v14 = vpack.c.bf16 %v7992_v31, %v7991_v4  ;;  %v7759_v10 = vadd.f32 %v12808_v29, %v18516_v34 }
 0xcda   : > { %v7750_v46 = vpop.f32.mrf.mxu1 }
 0xcdb   : > { %v8053_v52 = vpack.c.bf16 %v7990_v27, %v7989_v23  ;;  %v7751_v60 = vadd.f32 %v18516_v34, %v7750_v46  ;;  %v7995_v36 = vmax.f32 %v7759_v10, 0.0 }
 0xcdc   : > { %v12809_v41 = vpop.f32.mrf.mxu1 }
 0xcdd   : > { %v7762_v43 = vadd.f32 %v12809_v41, %v18516_v34  ;;  %12874 = vmatprep.mubr.msk.bf16.mxu0 %vm2411_vm5, %v8053_v52  ;;  %v7993_v17 = vmax.f32 %v7751_v60, 0.0 }
 0xcde   : > { %v7753_v57 = vpop.f32.mrf.mxu1  ;;  %12875 = vmatmul.mubr.msk.bf16.vlgmr.msra.gmra.mxu0 %vm2411_vm5, %v8054_v14 }
 0xcdf   : > { %v7754_v2 = vadd.f32 %v18516_v34, %v7753_v57  ;;  %v7996_v47 = vmax.f32 %v7762_v43, 0.0 }
 0xce0   : > { %v12812_v24 = vpop.f32.mrf.mxu1 }
 0xce1   : > { %v7994_v56 = vmax.f32 %v7754_v2, 0.0  ;;  %v8056_v0 = vpack.c.bf16 %v7996_v47, %v7995_v36  ;;  %v7775_v55 = vadd.f32 %v12812_v24, %v18516_v34 }
 0xce2   : > { %v7766_v18 = vpop.f32.mrf.mxu1 }
 0xce3   : > { %v8055_v45 = vpack.c.bf16 %v7994_v56, %v7993_v17  ;;  %v7767_v40 = vadd.f32 %v18516_v34, %v7766_v18  ;;  %v7999_v49 = vmax.f32 %v7775_v55, 0.0 }
 0xce4   : > { %v12813_v61 = vpop.f32.mrf.mxu1 }
 0xce5   : > { %v7778_v1 = vadd.f32 %v12813_v61, %v18516_v34  ;;  %12878 = vmatprep.mubr.msk.bf16.mxu0 %vm2411_vm5, %v8055_v45  ;;  %v7997_v50 = vmax.f32 %v7767_v40, 0.0 }
 0xce6   : > { %v7769_v59 = vpop.f32.mrf.mxu1  ;;  %12879 = vmatmul.mubr.msk.bf16.gmra.mxu0 %vm2411_vm5, %v8056_v0 }
 0xce7   : > { %v7770_v63 = vadd.f32 %v18516_v34, %v7769_v59  ;;  %v8000_v35 = vmax.f32 %v7778_v1, 0.0 }
 0xce8   : > { %v12816_v3 = vpop.f32.mrf.mxu1 }
 0xce9   : > { %v7998_v37 = vmax.f32 %v7770_v63, 0.0  ;;  %v8058_v16 = vpack.c.bf16 %v8000_v35, %v7999_v49  ;;  %v7791_v12 = vadd.f32 %v12816_v3, %v18516_v34 }
 0xcea   : > { %v7782_v54 = vpop.f32.mrf.mxu1 }
 0xceb   : > { %v8057_v11 = vpack.c.bf16 %v7998_v37, %v7997_v50  ;;  %v7783_v6 = vadd.f32 %v18516_v34, %v7782_v54  ;;  %v8003_v5 = vmax.f32 %v7791_v12, 0.0 }
 0xcec   : > { %v12817_v39 = vpop.f32.mrf.mxu1 }
 0xced   : > { %v7794_v19 = vadd.f32 %v12817_v39, %v18516_v34  ;;  %12882 = vmatprep.mubr.msk.bf16.mxu0 %vm2411_vm5, %v8057_v11  ;;  %v8001_v30 = vmax.f32 %v7783_v6, 0.0 }
 0xcee   : > { %v7785_v21 = vpop.f32.mrf.mxu1  ;;  %12883 = vmatmul.mubr.msk.bf16.gmra.mxu0 %vm2411_vm5, %v8058_v16 }
 0xcef   : > { %v7786_v51 = vadd.f32 %v18516_v34, %v7785_v21  ;;  %v8004_v8 = vmax.f32 %v7794_v19, 0.0 }
 0xcf0   : > { %v12820_v20 = vpop.f32.mrf.mxu1 }
 0xcf1   : > { %v8002_v7 = vmax.f32 %v7786_v51, 0.0  ;;  %v8060_v44 = vpack.c.bf16 %v8004_v8, %v8003_v5  ;;  %v7807_v13 = vadd.f32 %v12820_v20, %v18516_v34 }
 0xcf2   : > { %v7798_v33 = vpop.f32.mrf.mxu1 }
 0xcf3   : > { %v8059_v38 = vpack.c.bf16 %v8002_v7, %v8001_v30  ;;  %v7799_v26 = vadd.f32 %v18516_v34, %v7798_v33  ;;  %v8007_v53 = vmax.f32 %v7807_v13, 0.0 }
 0xcf4   : > { %v12821_v42 = vpop.f32.mrf.mxu1 }
 0xcf5   : > { %v7810_v48 = vadd.f32 %v12821_v42, %v18516_v34  ;;  %12886 = vmatprep.mubr.msk.bf16.mxu0 %vm2411_vm5, %v8059_v38  ;;  %v8005_v23 = vmax.f32 %v7799_v26, 0.0 }
 0xcf6   : > { %v7801_v28 = vpop.f32.mrf.mxu1  ;;  %12887 = vmatmul.mubr.msk.bf16.gmra.mxu0 %vm2411_vm5, %v8060_v44 }
 0xcf7   : > { %v7802_v62 = vadd.f32 %v18516_v34, %v7801_v28  ;;  %v8008_v31 = vmax.f32 %v7810_v48, 0.0 }
 0xcf8   : > { %v12824_v29 = vpop.f32.mrf.mxu1 }
 0xcf9   : > { %v8006_v27 = vmax.f32 %v7802_v62, 0.0  ;;  %v8062_v46 = vpack.c.bf16 %v8008_v31, %v8007_v53  ;;  %v7823_v60 = vadd.f32 %v12824_v29, %v18516_v34 }
 0xcfa   : > { %v7814_v15 = vpop.f32.mrf.mxu1 }
 0xcfb   : > { %v8061_v4 = vpack.c.bf16 %v8006_v27, %v8005_v23  ;;  %v7815_v14 = vadd.f32 %v18516_v34, %v7814_v15  ;;  %v8011_v24 = vmax.f32 %v7823_v60, 0.0 }
 0xcfc   : > { %v12825_v52 = vpop.f32.mrf.mxu1 }
 0xcfd   : > { %v7826_v41 = vadd.f32 %v12825_v52, %v18516_v34  ;;  %12890 = vmatprep.mubr.msk.bf16.mxu0 %vm2411_vm5, %v8061_v4  ;;  %v8009_v2 = vmax.f32 %v7815_v14, 0.0  ;;  %v13756_v14 = vld [vmem:[#allocation2 + $0x360] sm:$0xff]  }
 0xcfe   : > { %v7817_v43 = vpop.f32.mrf.mxu1  ;;  %12891 = vmatmul.mubr.msk.bf16.gmra.mxu0 %vm2411_vm5, %v8062_v46  ;;  %12968 = vmatprep.subr.bf16.mxu1 %v13756_v14 }
 0xcff   : > { %v7818_v22 = vadd.f32 %v18516_v34, %v7817_v43  ;;  %v8012_v10 = vmax.f32 %v7826_v41, 0.0  ;;  %12969 = vmatpush3.bf16.msra.mxu1 %v13756_v14 }
 0xd00   : > { %v12828_v57 = vpop.f32.mrf.mxu1 }
 0xd01   : > { %v8010_v47 = vmax.f32 %v7818_v22, 0.0  ;;  %v8064_v9 = vpack.c.bf16 %v8012_v10, %v8011_v24  ;;  %v7839_v0 = vadd.f32 %v12828_v57, %v18516_v34 }
 0xd02   : > { %v7830_v17 = vpop.f32.mrf.mxu1 }
 0xd03   : > { %v8063_v56 = vpack.c.bf16 %v8010_v47, %v8009_v2  ;;  %v7831_v18 = vadd.f32 %v18516_v34, %v7830_v17  ;;  %v8015_v63 = vmax.f32 %v7839_v0, 0.0  ;;  %v13758_v0 = vld [vmem:[#allocation2 + $0x350] sm:$0xff]  }
 0xd04   : > { %v12829_v36 = vpop.f32.mrf.mxu1 }
 0xd05   : > { %v7842_v45 = vadd.f32 %v12829_v36, %v18516_v34  ;;  %12894 = vmatprep.mubr.msk.bf16.mxu0 %vm2411_vm5, %v8063_v56  ;;  %v8013_v55 = vmax.f32 %v7831_v18, 0.0 }
 0xd06   : > { %v7833_v61 = vpop.f32.mrf.mxu1  ;;  %12895 = vmatmul.mubr.msk.bf16.gmra.mxu0 %vm2411_vm5, %v8064_v9  ;;  %v13757_v9 = vld [vmem:[#allocation2 + $0x358] sm:$0xff]  }
 0xd07   : > { %v7834_v40 = vadd.f32 %v18516_v34, %v7833_v61  ;;  %v8016_v1 = vmax.f32 %v7842_v45, 0.0  ;;  %12970 = vmatprep.subr.bf16.mxu1 %v13757_v9 }
 0xd08   : > { %v12832_v25 = vpop.f32.mrf.mxu1  ;;  %12971 = vmatpush3.bf16.msra.mxu1 %v13757_v9 }
 0xd09   : > { %v8014_v59 = vmax.f32 %v7834_v40, 0.0  ;;  %v8066_v50 = vpack.c.bf16 %v8016_v1, %v8015_v63  ;;  %v7855_v11 = vadd.f32 %v12832_v25, %v18516_v34  ;;  %12972 = vmatprep.subr.bf16.mxu1 %v13758_v0 }
 0xd0a   : > { %v7846_v35 = vpop.f32.mrf.mxu1 }
 0xd0b   : > { %v8065_v3 = vpack.c.bf16 %v8014_v59, %v8013_v55  ;;  %v7847_v49 = vadd.f32 %v18516_v34, %v7846_v35  ;;  %v8019_v51 = vmax.f32 %v7855_v11, 0.0 }
 0xd0c   : > { %v12833_v37 = vpop.f32.mrf.mxu1  ;;  %12973 = vmatpush3.bf16.msra.mxu1 %v13758_v0 }
 0xd0d   : > { %v7858_v54 = vadd.f32 %v12833_v37, %v18516_v34  ;;  %12898 = vmatprep.mubr.msk.bf16.mxu0 %vm2411_vm5, %v8065_v3  ;;  %v8017_v12 = vmax.f32 %v7847_v49, 0.0 }
 0xd0e   : > { %v7849_v16 = vpop.f32.mrf.mxu1  ;;  %12899 = vmatmul.mubr.msk.bf16.gmra.mxu0 %vm2411_vm5, %v8066_v50 }
 0xd0f   : > { %v7850_v39 = vadd.f32 %v18516_v34, %v7849_v16  ;;  %v8020_v6 = vmax.f32 %v7858_v54, 0.0 }
 0xd10   : > { %v12836_v19 = vpop.f32.mrf.mxu1 }
 0xd11   : > { %v8018_v21 = vmax.f32 %v7850_v39, 0.0  ;;  %v8068_v30 = vpack.c.bf16 %v8020_v6, %v8019_v51  ;;  %v7871_v38 = vadd.f32 %v12836_v19, %v18516_v34 }
 0xd12   : > { %v7862_v8 = vpop.f32.mrf.mxu1 }
 0xd13   : > { %v8067_v20 = vpack.c.bf16 %v8018_v21, %v8017_v12  ;;  %v7863_v5 = vadd.f32 %v18516_v34, %v7862_v8  ;;  %v8023_v62 = vmax.f32 %v7871_v38, 0.0 }
 0xd14   : > { %v12837_v7 = vpop.f32.mrf.mxu1 }
 0xd15   : > { %v7874_v33 = vadd.f32 %v12837_v7, %v18516_v34  ;;  %12902 = vmatprep.mubr.msk.bf16.mxu0 %vm2411_vm5, %v8067_v20  ;;  %v8021_v13 = vmax.f32 %v7863_v5, 0.0 }
 0xd16   : > { %v7865_v44 = vpop.f32.mrf.mxu1  ;;  %12903 = vmatmul.mubr.msk.bf16.gmra.mxu0 %vm2411_vm5, %v8068_v30 }
 0xd17   : > { %v7866_v42 = vadd.f32 %v18516_v34, %v7865_v44  ;;  %v8024_v26 = vmax.f32 %v7874_v33, 0.0 }
 0xd18   : > { %v12840_v48 = vpop.f32.mrf.mxu1 }
 0xd19   : > { %v8022_v28 = vmax.f32 %v7866_v42, 0.0  ;;  %v8070_v23 = vpack.c.bf16 %v8024_v26, %v8023_v62  ;;  %v7887_v4 = vadd.f32 %v12840_v48, %v18516_v34 }
 0xd1a   : > { %v7878_v31 = vpop.f32.mrf.mxu1 }
 0xd1b   : > { %v8069_v29 = vpack.c.bf16 %v8022_v28, %v8021_v13  ;;  %v7879_v53 = vadd.f32 %v18516_v34, %v7878_v31  ;;  %v8027_v10 = vmax.f32 %v7887_v4, 0.0 }
 0xd1c   : > { %v12841_v27 = vpop.f32.mrf.mxu1 }
 0xd1d   : > { %v7890_v15 = vadd.f32 %v12841_v27, %v18516_v34  ;;  %12906 = vmatprep.mubr.msk.bf16.mxu0 %vm2411_vm5, %v8069_v29  ;;  %v8025_v43 = vmax.f32 %v7879_v53, 0.0 }
 0xd1e   : > { %v7881_v46 = vpop.f32.mrf.mxu1  ;;  %12907 = vmatmul.mubr.msk.bf16.gmra.mxu0 %vm2411_vm5, %v8070_v23 }
 0xd1f   : > { %v7882_v52 = vadd.f32 %v18516_v34, %v7881_v46  ;;  %v8028_v41 = vmax.f32 %v7890_v15, 0.0 }
 0xd20   : > { %v12844_v60 = vpop.f32.mrf.mxu1 }
 0xd21   : > { %v8026_v22 = vmax.f32 %v7882_v52, 0.0  ;;  %v8072_v47 = vpack.c.bf16 %v8028_v41, %v8027_v10  ;;  %v7903_v36 = vadd.f32 %v12844_v60, %v18516_v34 }
 0xd22   : > { %v7894_v57 = vpop.f32.mrf.mxu1 }
 0xd23   : > { %v8071_v2 = vpack.c.bf16 %v8026_v22, %v8025_v43  ;;  %v7895_v17 = vadd.f32 %v18516_v34, %v7894_v57  ;;  %v8031_v55 = vmax.f32 %v7903_v36, 0.0 }
 0xd24   : > { %v12845_v24 = vpop.f32.mrf.mxu1 }
 0xd25   : > { %v7906_v56 = vadd.f32 %v12845_v24, %v18516_v34  ;;  %12910 = vmatprep.mubr.msk.bf16.mxu0 %vm2411_vm5, %v8071_v2  ;;  %v8029_v1 = vmax.f32 %v7895_v17, 0.0 }
 0xd26   : > { %v7897_v18 = vpop.f32.mrf.mxu1  ;;  %12911 = vmatmul.mubr.msk.bf16.gmra.mxu0 %vm2411_vm5, %v8072_v47 }
 0xd27   : > { %v7898_v45 = vadd.f32 %v18516_v34, %v7897_v18  ;;  %v8032_v61 = vmax.f32 %v7906_v56, 0.0 }
 0xd28   : > { %v12848_v40 = vpop.f32.mrf.mxu1 }
 0xd29   : > { %v8030_v25 = vmax.f32 %v7898_v45, 0.0  ;;  %v8074_v35 = vpack.c.bf16 %v8032_v61, %v8031_v55  ;;  %v7919_v49 = vadd.f32 %v12848_v40, %v18516_v34 }
 0xd2a   : > { %v7910_v59 = vpop.f32.mrf.mxu1 }
 0xd2b   : > { %v8073_v63 = vpack.c.bf16 %v8030_v25, %v8029_v1  ;;  %v7911_v50 = vadd.f32 %v18516_v34, %v7910_v59  ;;  %v8035_v12 = vmax.f32 %v7919_v49, 0.0 }
 0xd2c   : > { %v12849_v3 = vpop.f32.mrf.mxu1 }
 0xd2d   : > { %v7922_v37 = vadd.f32 %v12849_v3, %v18516_v34  ;;  %12914 = vmatprep.mubr.msk.bf16.mxu0 %vm2411_vm5, %v8073_v63  ;;  %v8033_v6 = vmax.f32 %v7911_v50, 0.0 }
 0xd2e   : > { %v7913_v54 = vpop.f32.mrf.mxu1  ;;  %12915 = vmatmul.mubr.msk.bf16.gmra.mxu0 %vm2411_vm5, %v8074_v35 }
 0xd2f   : > { %v7914_v11 = vadd.f32 %v18516_v34, %v7913_v54  ;;  %v8036_v16 = vmax.f32 %v7922_v37, 0.0 }
 0xd30   : > { %v12852_v39 = vpop.f32.mrf.mxu1 }
 0xd31   : > { %v8034_v19 = vmax.f32 %v7914_v11, 0.0  ;;  %v8076_v8 = vpack.c.bf16 %v8036_v16, %v8035_v12  ;;  %v7935_v5 = vadd.f32 %v12852_v39, %v18516_v34 }
 0xd32   : > { %v7926_v21 = vpop.f32.mrf.mxu1 }
 0xd33   : > { %v8075_v51 = vpack.c.bf16 %v8034_v19, %v8033_v6  ;;  %v7927_v30 = vadd.f32 %v18516_v34, %v7926_v21  ;;  %v8039_v13 = vmax.f32 %v7935_v5, 0.0  ;;  %v13759_v21 = vld [vmem:[#allocation2 + $0x3c8] sm:$0xff]  }
 0xd34   : > { %v12853_v20 = vpop.f32.mrf.mxu1  ;;  %13038 = vmatprep.subr.bf16.mxu0 %v13759_v21  ;;  %v13763_v5 = vld [vmem:[#allocation2 + $0x3a8] sm:$0xff]  }
 0xd35   : > { %v7938_v7 = vadd.f32 %v12853_v20, %v18516_v34  ;;  %12918 = vmatprep.mubr.msk.bf16.mxu0 %vm2411_vm5, %v8075_v51  ;;  %v8037_v26 = vmax.f32 %v7927_v30, 0.0  ;;  %13039 = vmatpush3.bf16.msra.mxu0 %v13759_v21  ;;  %v13760_v51 = vld [vmem:[#allocation2 + $0x3c0] sm:$0xff]  }
 0xd36   : > { %v7929_v33 = vpop.f32.mrf.mxu1  ;;  %12919 = vmatmul.mubr.msk.bf16.gmra.mxu0 %vm2411_vm5, %v8076_v8  ;;  %13040 = vmatprep.subr.bf16.mxu0 %v13760_v51 }
 0xd37   : > { %v7930_v38 = vadd.f32 %v18516_v34, %v7929_v33  ;;  %v8040_v44 = vmax.f32 %v7938_v7, 0.0  ;;  %v13762_v7 = vld [vmem:[#allocation2 + $0x3b0] sm:$0xff]   ;;  %v18619_v33 = vld [vmem:[%s19175_s2 + $0xe] ss:$0 sm:$0xff] }
 0xd38   : > { %v12856_v42 = vpop.f32.mrf.mxu1 }
 0xd39   : > { %v8038_v48 = vmax.f32 %v7930_v38, 0.0  ;;  %v8078_v31 = vpack.c.bf16 %v8040_v44, %v8039_v13  ;;  %v7951_v53 = vadd.f32 %v12856_v42, %v18516_v34  ;;  %13041 = vmatpush3.bf16.msra.mxu0 %v13760_v51 }
 0xd3a   : > { %v7942_v28 = vpop.f32.mrf.mxu1 }
 0xd3b   : > { %v8077_v62 = vpack.c.bf16 %v8038_v48, %v8037_v26  ;;  %v7943_v23 = vadd.f32 %v18516_v34, %v7942_v28  ;;  %v8043_v60 = vmax.f32 %v7951_v53, 0.0  ;;  %v13764_v28 = vld [vmem:[#allocation2 + $0x3a0] sm:$0xff]  }
 0xd3c   : > { %v12857_v29 = vpop.f32.mrf.mxu1 }
 0xd3d   : > { %v7954_v27 = vadd.f32 %v12857_v29, %v18516_v34  ;;  %12922 = vmatprep.mubr.msk.bf16.mxu0 %vm2411_vm5, %v8077_v62  ;;  %v8041_v14 = vmax.f32 %v7943_v23, 0.0 }
 0xd3e   : > { %v7945_v15 = vpop.f32.mrf.mxu1  ;;  %12923 = vmatmul.mubr.msk.bf16.gmra.mxu0 %vm2411_vm5, %v8078_v31 }
 0xd3f   : > { %v7946_v4 = vadd.f32 %v18516_v34, %v7945_v15  ;;  %v8044_v46 = vmax.f32 %v7954_v27, 0.0  ;;  %v13765_v27 = vld [vmem:[#allocation2 + $0x398] sm:$0xff]  }
 0xd40   : > { %v12860_v52 = vpop.f32.mrf.mxu1 }
 0xd41   : > { %v8042_v41 = vmax.f32 %v7946_v4, 0.0  ;;  %v8080_v10 = vpack.c.bf16 %v8044_v46, %v8043_v60  ;;  %v7967_v24 = vadd.f32 %v12860_v52, %v18516_v34 }
 0xd42   : > { %v7958_v43 = vpop.f32.mrf.mxu1 }
 0xd43   : > { %v8079_v22 = vpack.c.bf16 %v8042_v41, %v8041_v14  ;;  %v7959_v2 = vadd.f32 %v18516_v34, %v7958_v43  ;;  %v8047_v0 = vmax.f32 %v7967_v24, 0.0  ;;  %v13766_v41 = vld [vmem:[#allocation2 + $0x390] sm:$0xff]  }
 0xd44   : > { %v12861_v57 = vpop.f32.mrf.mxu1 }
 0xd45   : > { %v7970_v47 = vadd.f32 %v12861_v57, %v18516_v34  ;;  %12926 = vmatprep.mubr.msk.bf16.mxu0 %vm2411_vm5, %v8079_v22  ;;  %v8045_v18 = vmax.f32 %v7959_v2, 0.0 }
 0xd46   : > { %v7961_v17 = vpop.f32.mrf.mxu1  ;;  %12927 = vmatmul.mubr.msk.bf16.gmra.mxu0 %vm2411_vm5, %v8080_v10 }
 0xd47   : > { %v7962_v56 = vadd.f32 %v18516_v34, %v7961_v17  ;;  %v8048_v9 = vmax.f32 %v7970_v47, 0.0 }
 0xd48   : > { %v12864_v36 = vpop.f32.mrf.mxu1 }
 0xd49   : > { %v8046_v45 = vmax.f32 %v7962_v56, 0.0  ;;  %v8082_v1 = vpack.c.bf16 %v8048_v9, %v8047_v0  ;;  %v7983_v63 = vadd.f32 %v12864_v36, %v18516_v34 }
 0xd4a   : > { %v7974_v61 = vpop.f32.mrf.mxu1 }
 0xd4b   : > { %v8081_v40 = vpack.c.bf16 %v8046_v45, %v8045_v18  ;;  %v7975_v55 = vadd.f32 %v18516_v34, %v7974_v61  ;;  %v8051_v11 = vmax.f32 %v7983_v63, 0.0 }
 0xd4c   : > { %v12865_v25 = vpop.f32.mrf.mxu1 }
 0xd4d   : > { %v7986_v59 = vadd.f32 %v12865_v25, %v18516_v34  ;;  %12930 = vmatprep.mubr.msk.bf16.mxu0 %vm2411_vm5, %v8081_v40  ;;  %v8049_v49 = vmax.f32 %v7975_v55, 0.0 }
 0xd4e   : > { %v7977_v35 = vpop.f32.mrf.mxu1  ;;  %12931 = vmatmul.mubr.msk.bf16.gmra.mxu0 %vm2411_vm5, %v8082_v1 }
 0xd4f   : > { %v7978_v3 = vadd.f32 %v18516_v34, %v7977_v35  ;;  %v8052_v50 = vmax.f32 %v7986_v59, 0.0  ;;  %v13761_v34 = vld [vmem:[#allocation2 + $0x3b8] sm:$0xff]  }
 0xd50   : > { %v18612_v37 = vpop.f32.mrf.mxu1  ;;  %13042 = vmatprep.subr.bf16.mxu0 %v13761_v34 }
 0xd51   : > { %v8050_v54 = vmax.f32 %v7978_v3, 0.0  ;;  %v8084_v6 = vpack.c.bf16 %v8052_v50, %v8051_v11  ;;  %13043 = vmatpush3.bf16.msra.mxu0 %v13761_v34 }
 0xd52   : > { %v12956_v16 = vpop.f32.mrf.mxu1  ;;  %13044 = vmatprep.subr.bf16.mxu0 %v13762_v7 }
 0xd53   : > { %v8083_v39 = vpack.c.bf16 %v8050_v54, %v8049_v49 }
 0xd54   : > { %v8608_v19 = vpop.f32.mrf.mxu1 }
 0xd55   : > { %12934 = vmatprep.mubr.msk.bf16.mxu0 %vm2411_vm5, %v8083_v39  ;;  %13045 = vmatpush3.bf16.msra.mxu0 %v13762_v7 }
 0xd56   : > { %12935 = vmatmul.mubr.msk.bf16.gmra.mxu0 %vm2411_vm5, %v8084_v6  ;;  %v12957_v12 = vpop.f32.mrf.mxu1  ;;  %13046 = vmatprep.subr.bf16.mxu0 %v13763_v5 }
 0xd59   : > { %13047 = vmatpush3.bf16.msra.mxu0 %v13763_v5 }
 0xd5a   : > { %13048 = vmatprep.subr.bf16.mxu0 %v13764_v28 }
 0xd5d   : > { %13049 = vmatpush3.bf16.msra.mxu0 %v13764_v28 }
 0xd5e   : > { %13050 = vmatprep.subr.bf16.mxu0 %v13765_v27 }
 0xd61   : > { %13051 = vmatpush3.bf16.msra.mxu0 %v13765_v27 }
 0xd62   : > { %13052 = vmatprep.subr.bf16.mxu0 %v13766_v41 }
 0xd65   : > { %13053 = vmatpush3.bf16.msra.mxu0 %v13766_v41 }
 0xd9e   : > { %v12876_v8 = vpop.f32.mrf.mxu0 }
 0xd9f   : > { %v8261_v48 = vadd.f32 %v12876_v8, %v18619_v33 }
 0xda0   : > { %v8252_v20 = vpop.f32.mrf.mxu0 }
 0xda1   : > { %v8253_v42 = vadd.f32 %v18619_v33, %v8252_v20 }
 0xda2   : > { %v12877_v30 = vpop.f32.mrf.mxu0 }
 0xda3   : > { %v8264_v38 = vadd.f32 %v12877_v30, %v18619_v33 }
 0xda4   : > { %v8255_v44 = vpop.f32.mrf.mxu0 }
 0xda5   : > { %v8256_v26 = vadd.f32 %v18619_v33, %v8255_v44  ;;  %v8612_v31 = vpack.c.bf16 %v8264_v38, %v8261_v48 }
 0xda6   : > { %v12880_v13 = vpop.f32.mrf.mxu0 }
 0xda7   : > { %v8611_v62 = vpack.c.bf16 %v8256_v26, %v8253_v42  ;;  %v8277_v52 = vadd.f32 %v12880_v13, %v18619_v33 }
 0xda8   : > { %v8268_v29 = vpop.f32.mrf.mxu0 }
 0xda9   : > { %12974 = vmatprep.mubr.bf16.mxu1 %v8611_v62  ;;  %v8269_v4 = vadd.f32 %v18619_v33, %v8268_v29 }
 0xdaa   : > { %v12881_v23 = vpop.f32.mrf.mxu0  ;;  %12975 = vmatmul.mubr.bf16.vlgmr.msra.gmra.mxu1 %v8612_v31 }
 0xdab   : > { %v8280_v53 = vadd.f32 %v12881_v23, %v18619_v33 }
 0xdac   : > { %v8271_v15 = vpop.f32.mrf.mxu0 }
 0xdad   : > { %v8272_v46 = vadd.f32 %v18619_v33, %v8271_v15  ;;  %v8614_v43 = vpack.c.bf16 %v8280_v53, %v8277_v52 }
 0xdae   : > { %v12884_v14 = vpop.f32.mrf.mxu0 }
 0xdaf   : > { %v8613_v60 = vpack.c.bf16 %v8272_v46, %v8269_v4  ;;  %v8293_v17 = vadd.f32 %v12884_v14, %v18619_v33 }
 0xdb0   : > { %v8284_v22 = vpop.f32.mrf.mxu0 }
 0xdb1   : > { %12978 = vmatprep.mubr.bf16.mxu1 %v8613_v60  ;;  %v8285_v47 = vadd.f32 %v18619_v33, %v8284_v22 }
 0xdb2   : > { %v12885_v10 = vpop.f32.mrf.mxu0  ;;  %12979 = vmatmul.mubr.bf16.gmra.mxu1 %v8614_v43 }
 0xdb3   : > { %v8296_v57 = vadd.f32 %v12885_v10, %v18619_v33 }
 0xdb4   : > { %v8287_v2 = vpop.f32.mrf.mxu0 }
 0xdb5   : > { %v8288_v24 = vadd.f32 %v18619_v33, %v8287_v2  ;;  %v8616_v36 = vpack.c.bf16 %v8296_v57, %v8293_v17 }
 0xdb6   : > { %v12888_v56 = vpop.f32.mrf.mxu0 }
 0xdb7   : > { %v8615_v9 = vpack.c.bf16 %v8288_v24, %v8285_v47  ;;  %v8309_v25 = vadd.f32 %v12888_v56, %v18619_v33 }
 0xdb8   : > { %v8300_v18 = vpop.f32.mrf.mxu0 }
 0xdb9   : > { %12982 = vmatprep.mubr.bf16.mxu1 %v8615_v9  ;;  %v8301_v40 = vadd.f32 %v18619_v33, %v8300_v18 }
 0xdba   : > { %v12889_v45 = vpop.f32.mrf.mxu0  ;;  %12983 = vmatmul.mubr.bf16.gmra.mxu1 %v8616_v36 }
 0xdbb   : > { %v8312_v0 = vadd.f32 %v12889_v45, %v18619_v33 }
 0xdbc   : > { %v8303_v61 = vpop.f32.mrf.mxu0 }
 0xdbd   : > { %v8304_v1 = vadd.f32 %v18619_v33, %v8303_v61  ;;  %v8618_v63 = vpack.c.bf16 %v8312_v0, %v8309_v25 }
 0xdbe   : > { %v12892_v55 = vpop.f32.mrf.mxu0 }
 0xdbf   : > { %v8617_v59 = vpack.c.bf16 %v8304_v1, %v8301_v40  ;;  %v8325_v16 = vadd.f32 %v12892_v55, %v18619_v33 }
 0xdc0   : > { %v8316_v35 = vpop.f32.mrf.mxu0 }
 0xdc1   : > { %12986 = vmatprep.mubr.bf16.mxu1 %v8617_v59  ;;  %v8317_v54 = vadd.f32 %v18619_v33, %v8316_v35 }
 0xdc2   : > { %v12893_v3 = vpop.f32.mrf.mxu0  ;;  %12987 = vmatmul.mubr.bf16.gmra.mxu1 %v8618_v63 }
 0xdc3   : > { %v8328_v50 = vadd.f32 %v12893_v3, %v18619_v33 }
 0xdc4   : > { %v8319_v49 = vpop.f32.mrf.mxu0 }
 0xdc5   : > { %v8320_v11 = vadd.f32 %v18619_v33, %v8319_v49  ;;  %v8620_v19 = vpack.c.bf16 %v8328_v50, %v8325_v16 }
 0xdc6   : > { %v12896_v39 = vpop.f32.mrf.mxu0 }
 0xdc7   : > { %v8619_v6 = vpack.c.bf16 %v8320_v11, %v8317_v54  ;;  %v8341_v30 = vadd.f32 %v12896_v39, %v18619_v33 }
 0xdc8   : > { %v8332_v12 = vpop.f32.mrf.mxu0 }
 0xdc9   : > { %12990 = vmatprep.mubr.bf16.mxu1 %v8619_v6  ;;  %v8333_v8 = vadd.f32 %v18619_v33, %v8332_v12 }
 0xdca   : > { %v12897_v21 = vpop.f32.mrf.mxu0  ;;  %12991 = vmatmul.mubr.bf16.gmra.mxu1 %v8620_v19 }
 0xdcb   : > { %v8344_v51 = vadd.f32 %v12897_v21, %v18619_v33 }
 0xdcc   : > { %v8335_v34 = vpop.f32.mrf.mxu0 }
 0xdcd   : > { %v8336_v20 = vadd.f32 %v18619_v33, %v8335_v34  ;;  %v8622_v38 = vpack.c.bf16 %v8344_v51, %v8341_v30 }
 0xdce   : > { %v12900_v7 = vpop.f32.mrf.mxu0 }
 0xdcf   : > { %v8621_v5 = vpack.c.bf16 %v8336_v20, %v8333_v8  ;;  %v8357_v62 = vadd.f32 %v12900_v7, %v18619_v33 }
 0xdd0   : > { %v8348_v44 = vpop.f32.mrf.mxu0 }
 0xdd1   : > { %12994 = vmatprep.mubr.bf16.mxu1 %v8621_v5  ;;  %v8349_v13 = vadd.f32 %v18619_v33, %v8348_v44 }
 0xdd2   : > { %v12901_v42 = vpop.f32.mrf.mxu0  ;;  %12995 = vmatmul.mubr.bf16.gmra.mxu1 %v8622_v38 }
 0xdd3   : > { %v8360_v26 = vadd.f32 %v12901_v42, %v18619_v33 }
 0xdd4   : > { %v8351_v48 = vpop.f32.mrf.mxu0 }
 0xdd5   : > { %v8352_v28 = vadd.f32 %v18619_v33, %v8351_v48  ;;  %v8624_v23 = vpack.c.bf16 %v8360_v26, %v8357_v62 }
 0xdd6   : > { %v12904_v31 = vpop.f32.mrf.mxu0 }
 0xdd7   : > { %v8623_v29 = vpack.c.bf16 %v8352_v28, %v8349_v13  ;;  %v8373_v14 = vadd.f32 %v12904_v31, %v18619_v33 }
 0xdd8   : > { %v8364_v27 = vpop.f32.mrf.mxu0 }
 0xdd9   : > { %12998 = vmatprep.mubr.bf16.mxu1 %v8623_v29  ;;  %v8365_v46 = vadd.f32 %v18619_v33, %v8364_v27 }
 0xdda   : > { %v12905_v53 = vpop.f32.mrf.mxu0  ;;  %12999 = vmatmul.mubr.bf16.gmra.mxu1 %v8624_v23 }
 0xddb   : > { %v8376_v15 = vadd.f32 %v12905_v53, %v18619_v33 }
 0xddc   : > { %v8367_v4 = vpop.f32.mrf.mxu0 }
 0xddd   : > { %v8368_v52 = vadd.f32 %v18619_v33, %v8367_v4  ;;  %v8626_v43 = vpack.c.bf16 %v8376_v15, %v8373_v14 }
 0xdde   : > { %v12908_v41 = vpop.f32.mrf.mxu0 }
 0xddf   : > { %v8625_v60 = vpack.c.bf16 %v8368_v52, %v8365_v46  ;;  %v8389_v17 = vadd.f32 %v12908_v41, %v18619_v33 }
 0xde0   : > { %v8380_v22 = vpop.f32.mrf.mxu0 }
 0xde1   : > { %13002 = vmatprep.mubr.bf16.mxu1 %v8625_v60  ;;  %v8381_v47 = vadd.f32 %v18619_v33, %v8380_v22 }
 0xde2   : > { %v12909_v10 = vpop.f32.mrf.mxu0  ;;  %13003 = vmatmul.mubr.bf16.gmra.mxu1 %v8626_v43 }
 0xde3   : > { %v8392_v57 = vadd.f32 %v12909_v10, %v18619_v33 }
 0xde4   : > { %v8383_v2 = vpop.f32.mrf.mxu0 }
 0xde5   : > { %v8384_v24 = vadd.f32 %v18619_v33, %v8383_v2  ;;  %v8628_v36 = vpack.c.bf16 %v8392_v57, %v8389_v17 }
 0xde6   : > { %v12912_v56 = vpop.f32.mrf.mxu0 }
 0xde7   : > { %v8627_v9 = vpack.c.bf16 %v8384_v24, %v8381_v47  ;;  %v8405_v25 = vadd.f32 %v12912_v56, %v18619_v33 }
 0xde8   : > { %v8396_v18 = vpop.f32.mrf.mxu0 }
 0xde9   : > { %13006 = vmatprep.mubr.bf16.mxu1 %v8627_v9  ;;  %v8397_v40 = vadd.f32 %v18619_v33, %v8396_v18 }
 0xdea   : > { %v12913_v45 = vpop.f32.mrf.mxu0  ;;  %13007 = vmatmul.mubr.bf16.gmra.mxu1 %v8628_v36 }
 0xdeb   : > { %v8408_v0 = vadd.f32 %v12913_v45, %v18619_v33 }
 0xdec   : > { %v8399_v61 = vpop.f32.mrf.mxu0 }
 0xded   : > { %v8400_v1 = vadd.f32 %v18619_v33, %v8399_v61  ;;  %v8630_v63 = vpack.c.bf16 %v8408_v0, %v8405_v25 }
 0xdee   : > { %v12916_v55 = vpop.f32.mrf.mxu0 }
 0xdef   : > { %v8629_v59 = vpack.c.bf16 %v8400_v1, %v8397_v40  ;;  %v8421_v16 = vadd.f32 %v12916_v55, %v18619_v33 }
 0xdf0   : > { %v8412_v35 = vpop.f32.mrf.mxu0 }
 0xdf1   : > { %13010 = vmatprep.mubr.bf16.mxu1 %v8629_v59  ;;  %v8413_v54 = vadd.f32 %v18619_v33, %v8412_v35  ;;  %v13768_v35 = vld [vmem:[#allocation2 + $0x400] sm:$0xff]  }
 0xdf2   : > { %v12917_v3 = vpop.f32.mrf.mxu0  ;;  %13011 = vmatmul.mubr.bf16.gmra.mxu1 %v8630_v63  ;;  %v13767_v63 = vld [vmem:[#allocation2 + $0x408] sm:$0xff]  }
 0xdf3   : > { %v8424_v50 = vadd.f32 %v12917_v3, %v18619_v33  ;;  %13118 = vmatprep.subr.bf16.mxu1 %v13767_v63  ;;  %v18687_v3 = vrot.slane %v18612_v37, %v20234_v32  ;;  %v18702_v37 = vld [vmem:[%s19175_s2 + $0xf] ss:$0 sm:$0xff] }
 0xdf4   : > { %v8415_v49 = vpop.f32.mrf.mxu0  ;;  %13119 = vmatpush3.bf16.msra.mxu1 %v13767_v63 }
 0xdf5   : > { %v8416_v11 = vadd.f32 %v18619_v33, %v8415_v49  ;;  %v8632_v19 = vpack.c.bf16 %v8424_v50, %v8421_v16  ;;  %13120 = vmatprep.subr.bf16.mxu1 %v13768_v35  ;;  %v18691_v50 = vrot.slane %v18687_v3, %v20234_v32  ;;  %v13769_v16 = vld [vmem:[#allocation2 + $0x3f8] sm:$0xff]  }
 0xdf6   : > { %v12920_v39 = vpop.f32.mrf.mxu0 }
 0xdf7   : > { %v8631_v6 = vpack.c.bf16 %v8416_v11, %v8413_v54  ;;  %v8437_v30 = vadd.f32 %v12920_v39, %v18619_v33 }
 0xdf8   : > { %v8428_v12 = vpop.f32.mrf.mxu0  ;;  %13121 = vmatpush3.bf16.msra.mxu1 %v13768_v35 }
 0xdf9   : > { %13014 = vmatprep.mubr.bf16.mxu1 %v8631_v6  ;;  %v8429_v8 = vadd.f32 %v18619_v33, %v8428_v12  ;;  %13122 = vmatprep.subr.bf16.mxu1 %v13769_v16 }
 0xdfa   : > { %v12921_v21 = vpop.f32.mrf.mxu0  ;;  %13015 = vmatmul.mubr.bf16.gmra.mxu1 %v8632_v19 }
 0xdfb   : > { %v8440_v51 = vadd.f32 %v12921_v21, %v18619_v33 }
 0xdfc   : > { %v8431_v34 = vpop.f32.mrf.mxu0  ;;  %13123 = vmatpush3.bf16.msra.mxu1 %v13769_v16 }
 0xdfd   : > { %v8432_v20 = vadd.f32 %v18619_v33, %v8431_v34  ;;  %v8634_v38 = vpack.c.bf16 %v8440_v51, %v8437_v30  ;;  %v13770_v30 = vld [vmem:[#allocation2 + $0x3f0] sm:$0xff]  }
 0xdfe   : > { %v12924_v7 = vpop.f32.mrf.mxu0  ;;  %13124 = vmatprep.subr.bf16.mxu1 %v13770_v30 }
 0xdff   : > { %v8633_v5 = vpack.c.bf16 %v8432_v20, %v8429_v8  ;;  %v8453_v62 = vadd.f32 %v12924_v7, %v18619_v33  ;;  %v13771_v7 = vld [vmem:[#allocation2 + $0x3e8] sm:$0xff]  }
 0xe00   : > { %v8444_v44 = vpop.f32.mrf.mxu0  ;;  %13125 = vmatpush3.bf16.msra.mxu1 %v13770_v30 }
 0xe01   : > { %13018 = vmatprep.mubr.bf16.mxu1 %v8633_v5  ;;  %v8445_v13 = vadd.f32 %v18619_v33, %v8444_v44  ;;  %13126 = vmatprep.subr.bf16.mxu1 %v13771_v7 }
 0xe02   : > { %v12925_v42 = vpop.f32.mrf.mxu0  ;;  %13019 = vmatmul.mubr.bf16.gmra.mxu1 %v8634_v38 }
 0xe03   : > { %v8456_v26 = vadd.f32 %v12925_v42, %v18619_v33 }
 0xe04   : > { %v8447_v48 = vpop.f32.mrf.mxu0  ;;  %13127 = vmatpush3.bf16.msra.mxu1 %v13771_v7 }
 0xe05   : > { %v8448_v28 = vadd.f32 %v18619_v33, %v8447_v48  ;;  %v8636_v23 = vpack.c.bf16 %v8456_v26, %v8453_v62 }
 0xe06   : > { %v12928_v31 = vpop.f32.mrf.mxu0 }
 0xe07   : > { %v8635_v29 = vpack.c.bf16 %v8448_v28, %v8445_v13  ;;  %v8469_v14 = vadd.f32 %v12928_v31, %v18619_v33  ;;  %v13772_v31 = vld [vmem:[#allocation2 + $0x3e0] sm:$0xff]  }
 0xe08   : > { %v8460_v27 = vpop.f32.mrf.mxu0  ;;  %13128 = vmatprep.subr.bf16.mxu1 %v13772_v31 }
 0xe09   : > { %13022 = vmatprep.mubr.bf16.mxu1 %v8635_v29  ;;  %v8461_v46 = vadd.f32 %v18619_v33, %v8460_v27  ;;  %13129 = vmatpush3.bf16.msra.mxu1 %v13772_v31 }
 0xe0a   : > { %v12929_v53 = vpop.f32.mrf.mxu0  ;;  %13023 = vmatmul.mubr.bf16.gmra.mxu1 %v8636_v23 }
 0xe0b   : > { %v8472_v15 = vadd.f32 %v12929_v53, %v18619_v33 }
 0xe0c   : > { %v8463_v4 = vpop.f32.mrf.mxu0 }
 0xe0d   : > { %v8464_v52 = vadd.f32 %v18619_v33, %v8463_v4  ;;  %v8638_v43 = vpack.c.bf16 %v8472_v15, %v8469_v14 }
 0xe0e   : > { %v12932_v41 = vpop.f32.mrf.mxu0 }
 0xe0f   : > { %v8637_v60 = vpack.c.bf16 %v8464_v52, %v8461_v46  ;;  %v8485_v17 = vadd.f32 %v12932_v41, %v18619_v33  ;;  %v13773_v41 = vld [vmem:[#allocation2 + $0x3d8] sm:$0xff]  }
 0xe10   : > { %v8476_v22 = vpop.f32.mrf.mxu0  ;;  %13130 = vmatprep.subr.bf16.mxu1 %v13773_v41 }
 0xe11   : > { %13026 = vmatprep.mubr.bf16.mxu1 %v8637_v60  ;;  %v8477_v47 = vadd.f32 %v18619_v33, %v8476_v22  ;;  %13131 = vmatpush3.bf16.msra.mxu1 %v13773_v41 }
 0xe12   : > { %v12933_v10 = vpop.f32.mrf.mxu0  ;;  %13027 = vmatmul.mubr.bf16.gmra.mxu1 %v8638_v43 }
 0xe13   : > { %v8488_v57 = vadd.f32 %v12933_v10, %v18619_v33 }
 0xe14   : > { %v8479_v2 = vpop.f32.mrf.mxu0 }
 0xe15   : > { %v8480_v24 = vadd.f32 %v18619_v33, %v8479_v2  ;;  %v8640_v36 = vpack.c.bf16 %v8488_v57, %v8485_v17 }
 0xe16   : > { %v12936_v56 = vpop.f32.mrf.mxu0 }
 0xe17   : > { %v8639_v9 = vpack.c.bf16 %v8480_v24, %v8477_v47  ;;  %v8501_v25 = vadd.f32 %v12936_v56, %v18619_v33  ;;  %v13774_v56 = vld [vmem:[#allocation2 + $0x3d0] sm:$0xff]  }
 0xe18   : > { %v8492_v18 = vpop.f32.mrf.mxu0  ;;  %13132 = vmatprep.subr.bf16.mxu1 %v13774_v56 }
 0xe19   : > { %13030 = vmatprep.mubr.bf16.mxu1 %v8639_v9  ;;  %v8493_v40 = vadd.f32 %v18619_v33, %v8492_v18  ;;  %13133 = vmatpush3.bf16.msra.mxu1 %v13774_v56 }
 0xe1a   : > { %v12937_v45 = vpop.f32.mrf.mxu0  ;;  %13031 = vmatmul.mubr.bf16.gmra.mxu1 %v8640_v36 }
 0xe1b   : > { %v8504_v0 = vadd.f32 %v12937_v45, %v18619_v33 }
 0xe1c   : > { %v8495_v61 = vpop.f32.mrf.mxu0 }
 0xe1d   : > { %v8496_v1 = vadd.f32 %v18619_v33, %v8495_v61  ;;  %v8642_v59 = vpack.c.bf16 %v8504_v0, %v8501_v25  ;;  %v18695_v33 = vrot.slane %v18691_v50, %v20235_v58 }
 0xe1f   : > { %v8641_v55 = vpack.c.bf16 %v8496_v1, %v8493_v40 }
 0xe21   : > { %13034 = vmatprep.mubr.bf16.mxu1 %v8641_v55  ;;  %v9004_v55 = vcombine.high %v18687_v3, %v18687_v3 }
 0xe22   : > { %13035 = vmatmul.mubr.bf16.gmra.mxu1 %v8642_v59 }
 0xe6a   : > { %v12976_v49 = vpop.f32.mrf.mxu1 }
 0xe6b   : > { %v9043_v39 = vadd.f32 %v12976_v49, %v18695_v33 }
 0xe6c   : > { %v8741_v54 = vpop.f32.mrf.mxu1 }
 0xe6d   : > { %v9041_v11 = vadd.f32 %v18695_v33, %v8741_v54  ;;  %v9112_v8 = vadd.f32 %v18702_v37, %v9043_v39 }
 0xe6e   : > { %v12977_v6 = vpop.f32.mrf.mxu1 }
 0xe6f   : > { %v9044_v19 = vadd.f32 %v12977_v6, %v18695_v33  ;;  %v9110_v21 = vadd.f32 %v18702_v37, %v9041_v11  ;;  %v9176_v13 = vmax.f32 %v9112_v8, 0.0 }
 0xe70   : > { %v8744_v12 = vpop.f32.mrf.mxu1 }
 0xe71   : > { %v9113_v51 = vadd.f32 %v18702_v37, %v9044_v19  ;;  %v9042_v34 = vadd.f32 %v18695_v33, %v8744_v12  ;;  %v9174_v42 = vmax.f32 %v9110_v21, 0.0  ;;  %v18731_v19 = vrot.slane %v9004_v55, %v20234_v32 }
 0xe72   : > { %v12980_v20 = vpop.f32.mrf.mxu1 }
 0xe73   : > { %v9111_v5 = vadd.f32 %v18702_v37, %v9042_v34  ;;  %v9177_v38 = vmax.f32 %v9113_v51, 0.0  ;;  %v9047_v28 = vadd.f32 %v12980_v20, %v18695_v33  ;;  %v18740_v32 = vrot.slane %v18731_v19, %v20235_v58 }
 0xe74   : > { %v8757_v44 = vpop.f32.mrf.mxu1 }
 0xe75   : > { %v9175_v26 = vmax.f32 %v9111_v5, 0.0  ;;  %v9045_v48 = vadd.f32 %v18695_v33, %v8757_v44  ;;  %v9239_v27 = vpack.c.bf16 %v9177_v38, %v9176_v13  ;;  %v9116_v52 = vadd.f32 %v18702_v37, %v9047_v28 }
 0xe76   : > { %v12981_v62 = vpop.f32.mrf.mxu1 }
 0xe77   : > { %v9048_v29 = vadd.f32 %v12981_v62, %v18695_v33  ;;  %v9238_v23 = vpack.c.bf16 %v9175_v26, %v9174_v42  ;;  %v9114_v15 = vadd.f32 %v18702_v37, %v9045_v48  ;;  %v9180_v47 = vmax.f32 %v9116_v52, 0.0 }
 0xe78   : > { %v8760_v53 = vpop.f32.mrf.mxu1 }
 0xe79   : > { %v9117_v4 = vadd.f32 %v18702_v37, %v9048_v29  ;;  %v9046_v46 = vadd.f32 %v18695_v33, %v8760_v53  ;;  %13054 = vmatprep.mubr.bf16.mxu0 %v9238_v23  ;;  %v9178_v10 = vmax.f32 %v9114_v15, 0.0 }
 0xe7a   : > { %v12984_v14 = vpop.f32.mrf.mxu1  ;;  %13055 = vmatmul.mubr.bf16.vlgmr.msra.gmra.mxu0 %v9239_v27 }
 0xe7b   : > { %v9115_v60 = vadd.f32 %v18702_v37, %v9046_v46  ;;  %v9181_v43 = vmax.f32 %v9117_v4, 0.0  ;;  %v9051_v24 = vadd.f32 %v12984_v14, %v18695_v33 }
 0xe7c   : > { %v8773_v22 = vpop.f32.mrf.mxu1 }
 0xe7d   : > { %v9179_v57 = vmax.f32 %v9115_v60, 0.0  ;;  %v9049_v2 = vadd.f32 %v18695_v33, %v8773_v22  ;;  %v9241_v18 = vpack.c.bf16 %v9181_v43, %v9180_v47  ;;  %v9120_v1 = vadd.f32 %v18702_v37, %v9051_v24 }
 0xe7e   : > { %v12985_v17 = vpop.f32.mrf.mxu1 }
 0xe7f   : > { %v9052_v9 = vadd.f32 %v12985_v17, %v18695_v33  ;;  %v9240_v36 = vpack.c.bf16 %v9179_v57, %v9178_v10  ;;  %v9118_v0 = vadd.f32 %v18702_v37, %v9049_v2  ;;  %v9184_v16 = vmax.f32 %v9120_v1, 0.0 }
 0xe80   : > { %v8776_v45 = vpop.f32.mrf.mxu1 }
 0xe81   : > { %v9121_v61 = vadd.f32 %v18702_v37, %v9052_v9  ;;  %v9050_v40 = vadd.f32 %v18695_v33, %v8776_v45  ;;  %13058 = vmatprep.mubr.bf16.mxu0 %v9240_v36  ;;  %v9182_v49 = vmax.f32 %v9118_v0, 0.0 }
 0xe82   : > { %v12988_v25 = vpop.f32.mrf.mxu1  ;;  %13059 = vmatmul.mubr.bf16.gmra.mxu0 %v9241_v18 }
 0xe83   : > { %v9119_v59 = vadd.f32 %v18702_v37, %v9050_v40  ;;  %v9185_v63 = vmax.f32 %v9121_v61, 0.0  ;;  %v9055_v39 = vadd.f32 %v12988_v25, %v18695_v33 }
 0xe84   : > { %v8789_v35 = vpop.f32.mrf.mxu1 }
 0xe85   : > { %v9183_v54 = vmax.f32 %v9119_v59, 0.0  ;;  %v9053_v11 = vadd.f32 %v18695_v33, %v8789_v35  ;;  %v9243_v3 = vpack.c.bf16 %v9185_v63, %v9184_v16  ;;  %v9124_v30 = vadd.f32 %v18702_v37, %v9055_v39 }
 0xe86   : > { %v12989_v6 = vpop.f32.mrf.mxu1 }
 0xe87   : > { %v9056_v12 = vadd.f32 %v12989_v6, %v18695_v33  ;;  %v9242_v21 = vpack.c.bf16 %v9183_v54, %v9182_v49  ;;  %v9122_v34 = vadd.f32 %v18702_v37, %v9053_v11  ;;  %v9188_v13 = vmax.f32 %v9124_v30, 0.0 }
 0xe88   : > { %v8792_v51 = vpop.f32.mrf.mxu1 }
 0xe89   : > { %v9125_v8 = vadd.f32 %v18702_v37, %v9056_v12  ;;  %v9054_v20 = vadd.f32 %v18695_v33, %v8792_v51  ;;  %13062 = vmatprep.mubr.bf16.mxu0 %v9242_v21  ;;  %v9186_v42 = vmax.f32 %v9122_v34, 0.0 }
 0xe8a   : > { %v12992_v7 = vpop.f32.mrf.mxu1  ;;  %13063 = vmatmul.mubr.bf16.gmra.mxu0 %v9243_v3 }
 0xe8b   : > { %v9123_v5 = vadd.f32 %v18702_v37, %v9054_v20  ;;  %v9189_v38 = vmax.f32 %v9125_v8, 0.0  ;;  %v9059_v33 = vadd.f32 %v12992_v7, %v18740_v32 }
 0xe8c   : > { %v8805_v44 = vpop.f32.mrf.mxu1 }
 0xe8d   : > { %v9187_v26 = vmax.f32 %v9123_v5, 0.0  ;;  %v9057_v48 = vadd.f32 %v18740_v32, %v8805_v44  ;;  %v9245_v29 = vpack.c.bf16 %v9189_v38, %v9188_v13  ;;  %v9128_v4 = vadd.f32 %v18702_v37, %v9059_v33 }
 0xe8e   : > { %v12993_v28 = vpop.f32.mrf.mxu1 }
 0xe8f   : > { %v9060_v62 = vadd.f32 %v12993_v28, %v18740_v32  ;;  %v9244_v31 = vpack.c.bf16 %v9187_v26, %v9186_v42  ;;  %v9126_v27 = vadd.f32 %v18702_v37, %v9057_v48  ;;  %v9192_v10 = vmax.f32 %v9128_v4, 0.0 }
 0xe90   : > { %v8808_v23 = vpop.f32.mrf.mxu1  ;;  %v9019_v26 = vcombine.high %v18691_v50, %v18691_v50 }
 0xe91   : > { %v9129_v53 = vadd.f32 %v18702_v37, %v9060_v62  ;;  %v9058_v15 = vadd.f32 %v18740_v32, %v8808_v23  ;;  %13066 = vmatprep.mubr.bf16.mxu0 %v9244_v31  ;;  %v9190_v60 = vmax.f32 %v9126_v27, 0.0 }
 0xe92   : > { %v12996_v46 = vpop.f32.mrf.mxu1  ;;  %13067 = vmatmul.mubr.bf16.gmra.mxu0 %v9245_v29 }
 0xe93   : > { %v9127_v52 = vadd.f32 %v18702_v37, %v9058_v15  ;;  %v9193_v14 = vmax.f32 %v9129_v53, 0.0  ;;  %v9063_v57 = vadd.f32 %v12996_v46, %v18740_v32  ;;  %v18777_v53 = vrot.slane %v9019_v26, %v20235_v58 }
 0xe94   : > { %v8821_v41 = vpop.f32.mrf.mxu1 }
 0xe95   : > { %v9191_v43 = vmax.f32 %v9127_v52, 0.0  ;;  %v9061_v22 = vadd.f32 %v18740_v32, %v8821_v41  ;;  %v9247_v17 = vpack.c.bf16 %v9193_v14, %v9192_v10  ;;  %v9132_v45 = vadd.f32 %v18702_v37, %v9063_v57 }
 0xe96   : > { %v12997_v2 = vpop.f32.mrf.mxu1 }
 0xe97   : > { %v9064_v47 = vadd.f32 %v12997_v2, %v18740_v32  ;;  %v9246_v24 = vpack.c.bf16 %v9191_v43, %v9190_v60  ;;  %v9130_v9 = vadd.f32 %v18702_v37, %v9061_v22  ;;  %v9196_v63 = vmax.f32 %v9132_v45, 0.0 }
 0xe98   : > { %v8824_v56 = vpop.f32.mrf.mxu1 }
 0xe99   : > { %v9133_v36 = vadd.f32 %v18702_v37, %v9064_v47  ;;  %v9062_v18 = vadd.f32 %v18740_v32, %v8824_v56  ;;  %13070 = vmatprep.mubr.bf16.mxu0 %v9246_v24  ;;  %v9194_v25 = vmax.f32 %v9130_v9, 0.0 }
 0xe9a   : > { %v13000_v0 = vpop.f32.mrf.mxu1  ;;  %13071 = vmatmul.mubr.bf16.gmra.mxu0 %v9247_v17 }
 0xe9b   : > { %v9131_v61 = vadd.f32 %v18702_v37, %v9062_v18  ;;  %v9197_v40 = vmax.f32 %v9133_v36, 0.0  ;;  %v9067_v35 = vadd.f32 %v13000_v0, %v18740_v32 }
 0xe9c   : > { %v8837_v1 = vpop.f32.mrf.mxu1 }
 0xe9d   : > { %v9195_v55 = vmax.f32 %v9131_v61, 0.0  ;;  %v9065_v59 = vadd.f32 %v18740_v32, %v8837_v1  ;;  %v9249_v16 = vpack.c.bf16 %v9197_v40, %v9196_v63  ;;  %v9136_v3 = vadd.f32 %v18702_v37, %v9067_v35 }
 0xe9e   : > { %v13001_v49 = vpop.f32.mrf.mxu1 }
 0xe9f   : > { %v9068_v54 = vadd.f32 %v13001_v49, %v18740_v32  ;;  %v9248_v11 = vpack.c.bf16 %v9195_v55, %v9194_v25  ;;  %v9134_v6 = vadd.f32 %v18702_v37, %v9065_v59  ;;  %v9200_v38 = vmax.f32 %v9136_v3, 0.0 }
 0xea0   : > { %v8840_v39 = vpop.f32.mrf.mxu1 }
 0xea1   : > { %v9137_v12 = vadd.f32 %v18702_v37, %v9068_v54  ;;  %v9066_v21 = vadd.f32 %v18740_v32, %v8840_v39  ;;  %13074 = vmatprep.mubr.bf16.mxu0 %v9248_v11  ;;  %v9198_v30 = vmax.f32 %v9134_v6, 0.0 }
 0xea2   : > { %v13004_v51 = vpop.f32.mrf.mxu1  ;;  %13075 = vmatmul.mubr.bf16.gmra.mxu0 %v9249_v16 }
 0xea3   : > { %v9135_v34 = vadd.f32 %v18702_v37, %v9066_v21  ;;  %v9201_v8 = vmax.f32 %v9137_v12, 0.0  ;;  %v9071_v44 = vadd.f32 %v13004_v51, %v18740_v32 }
 0xea4   : > { %v8853_v20 = vpop.f32.mrf.mxu1 }
 0xea5   : > { %v9199_v7 = vmax.f32 %v9135_v34, 0.0  ;;  %v9069_v5 = vadd.f32 %v18740_v32, %v8853_v20  ;;  %v9251_v33 = vpack.c.bf16 %v9201_v8, %v9200_v38  ;;  %v9140_v23 = vadd.f32 %v18702_v37, %v9071_v44 }
 0xea6   : > { %v13005_v42 = vpop.f32.mrf.mxu1 }
 0xea7   : > { %v9072_v48 = vadd.f32 %v13005_v42, %v18740_v32  ;;  %v9250_v13 = vpack.c.bf16 %v9199_v7, %v9198_v30  ;;  %v9138_v62 = vadd.f32 %v18702_v37, %v9069_v5  ;;  %v9204_v41 = vmax.f32 %v9140_v23, 0.0 }
 0xea8   : > { %v8856_v28 = vpop.f32.mrf.mxu1 }
 0xea9   : > { %v9141_v31 = vadd.f32 %v18702_v37, %v9072_v48  ;;  %v9070_v29 = vadd.f32 %v18740_v32, %v8856_v28  ;;  %13078 = vmatprep.mubr.bf16.mxu0 %v9250_v13  ;;  %v9202_v46 = vmax.f32 %v9138_v62, 0.0 }
 0xeaa   : > { %v13008_v27 = vpop.f32.mrf.mxu1  ;;  %13079 = vmatmul.mubr.bf16.gmra.mxu0 %v9251_v33 }
 0xeab   : > { %v9139_v50 = vadd.f32 %v18702_v37, %v9070_v29  ;;  %v9205_v15 = vmax.f32 %v9141_v31, 0.0  ;;  %v9075_v60 = vadd.f32 %v13008_v27, %v18777_v53 }
 0xeac   : > { %v8869_v4 = vpop.f32.mrf.mxu1 }
 0xead   : > { %v9203_v52 = vmax.f32 %v9139_v50, 0.0  ;;  %v9073_v14 = vadd.f32 %v18777_v53, %v8869_v4  ;;  %v9253_v10 = vpack.c.bf16 %v9205_v15, %v9204_v41  ;;  %v9144_v17 = vadd.f32 %v18702_v37, %v9075_v60 }
 0xeae   : > { %v13009_v32 = vpop.f32.mrf.mxu1 }
 0xeaf   : > { %v9076_v43 = vadd.f32 %v13009_v32, %v18777_v53  ;;  %v9252_v22 = vpack.c.bf16 %v9203_v52, %v9202_v46  ;;  %v9142_v2 = vadd.f32 %v18702_v37, %v9073_v14  ;;  %v9208_v40 = vmax.f32 %v9144_v17, 0.0 }
 0xeb0   : > { %v8872_v57 = vpop.f32.mrf.mxu1  ;;  %v9020_v46 = vcombine.high %v18731_v19, %v18731_v19 }
 0xeb1   : > { %v9145_v47 = vadd.f32 %v18702_v37, %v9076_v43  ;;  %v9074_v24 = vadd.f32 %v18777_v53, %v8872_v57  ;;  %13082 = vmatprep.mubr.bf16.mxu0 %v9252_v22  ;;  %v9206_v45 = vmax.f32 %v9142_v2, 0.0 }
 0xeb2   : > { %v13012_v56 = vpop.f32.mrf.mxu1  ;;  %13083 = vmatmul.mubr.bf16.gmra.mxu0 %v9253_v10  ;;  %v18814_v2 = vrot.slane %v9020_v46, %v20235_v58 }
 0xeb3   : > { %v9143_v9 = vadd.f32 %v18702_v37, %v9074_v24  ;;  %v9209_v36 = vmax.f32 %v9145_v47, 0.0  ;;  %v9079_v1 = vadd.f32 %v13012_v56, %v18777_v53 }
 0xeb4   : > { %v8885_v18 = vpop.f32.mrf.mxu1 }
 0xeb5   : > { %v9207_v0 = vmax.f32 %v9143_v9, 0.0  ;;  %v9077_v61 = vadd.f32 %v18777_v53, %v8885_v18  ;;  %v9255_v63 = vpack.c.bf16 %v9209_v36, %v9208_v40  ;;  %v9148_v16 = vadd.f32 %v18702_v37, %v9079_v1 }
 0xeb6   : > { %v13013_v25 = vpop.f32.mrf.mxu1 }
 0xeb7   : > { %v9080_v55 = vadd.f32 %v13013_v25, %v18777_v53  ;;  %v9254_v59 = vpack.c.bf16 %v9207_v0, %v9206_v45  ;;  %v9146_v49 = vadd.f32 %v18702_v37, %v9077_v61  ;;  %v9212_v8 = vmax.f32 %v9148_v16, 0.0 }
 0xeb8   : > { %v8888_v35 = vpop.f32.mrf.mxu1 }
 0xeb9   : > { %v9149_v54 = vadd.f32 %v18702_v37, %v9080_v55  ;;  %v9078_v11 = vadd.f32 %v18777_v53, %v8888_v35  ;;  %13086 = vmatprep.mubr.bf16.mxu0 %v9254_v59  ;;  %v9210_v3 = vmax.f32 %v9146_v49, 0.0 }
 0xeba   : > { %v13016_v39 = vpop.f32.mrf.mxu1  ;;  %13087 = vmatmul.mubr.bf16.gmra.mxu0 %v9255_v63 }
 0xebb   : > { %v9147_v6 = vadd.f32 %v18702_v37, %v9078_v11  ;;  %v9213_v12 = vmax.f32 %v9149_v54, 0.0  ;;  %v9083_v20 = vadd.f32 %v13016_v39, %v18777_v53 }
 0xebc   : > { %v8901_v21 = vpop.f32.mrf.mxu1 }
 0xebd   : > { %v9211_v51 = vmax.f32 %v9147_v6, 0.0  ;;  %v9081_v34 = vadd.f32 %v18777_v53, %v8901_v21  ;;  %v9257_v38 = vpack.c.bf16 %v9213_v12, %v9212_v8  ;;  %v9152_v13 = vadd.f32 %v18702_v37, %v9083_v20 }
 0xebe   : > { %v13017_v30 = vpop.f32.mrf.mxu1 }
 0xebf   : > { %v9084_v7 = vadd.f32 %v13017_v30, %v18777_v53  ;;  %v9256_v5 = vpack.c.bf16 %v9211_v51, %v9210_v3  ;;  %v9150_v42 = vadd.f32 %v18702_v37, %v9081_v34  ;;  %v9216_v50 = vmax.f32 %v9152_v13, 0.0 }
 0xec0   : > { %v8904_v44 = vpop.f32.mrf.mxu1 }
 0xec1   : > { %v9153_v26 = vadd.f32 %v18702_v37, %v9084_v7  ;;  %v9082_v48 = vadd.f32 %v18777_v53, %v8904_v44  ;;  %13090 = vmatprep.mubr.bf16.mxu0 %v9256_v5  ;;  %v9214_v29 = vmax.f32 %v9150_v42, 0.0 }
 0xec2   : > { %v13020_v33 = vpop.f32.mrf.mxu1  ;;  %13091 = vmatmul.mubr.bf16.gmra.mxu0 %v9257_v38 }
 0xec3   : > { %v9151_v28 = vadd.f32 %v18702_v37, %v9082_v48  ;;  %v9217_v62 = vmax.f32 %v9153_v26, 0.0  ;;  %v9087_v15 = vadd.f32 %v13020_v33, %v18777_v53 }
 0xec4   : > { %v8917_v31 = vpop.f32.mrf.mxu1 }
 0xec5   : > { %v9215_v23 = vmax.f32 %v9151_v28, 0.0  ;;  %v9085_v27 = vadd.f32 %v18777_v53, %v8917_v31  ;;  %v9259_v41 = vpack.c.bf16 %v9217_v62, %v9216_v50  ;;  %v9156_v10 = vadd.f32 %v18702_v37, %v9087_v15 }
 0xec6   : > { %v13021_v4 = vpop.f32.mrf.mxu1 }
 0xec7   : > { %v9088_v52 = vadd.f32 %v13021_v4, %v18777_v53  ;;  %v9258_v14 = vpack.c.bf16 %v9215_v23, %v9214_v29  ;;  %v9154_v32 = vadd.f32 %v18702_v37, %v9085_v27  ;;  %v9220_v36 = vmax.f32 %v9156_v10, 0.0 }
 0xec8   : > { %v8920_v60 = vpop.f32.mrf.mxu1 }
 0xec9   : > { %v9157_v43 = vadd.f32 %v18702_v37, %v9088_v52  ;;  %v9086_v22 = vadd.f32 %v18777_v53, %v8920_v60  ;;  %13094 = vmatprep.mubr.bf16.mxu0 %v9258_v14  ;;  %v9218_v17 = vmax.f32 %v9154_v32, 0.0 }
 0xeca   : > { %v13024_v57 = vpop.f32.mrf.mxu1  ;;  %13095 = vmatmul.mubr.bf16.gmra.mxu0 %v9259_v41 }
 0xecb   : > { %v9155_v19 = vadd.f32 %v18702_v37, %v9086_v22  ;;  %v9221_v47 = vmax.f32 %v9157_v43, 0.0  ;;  %v9091_v18 = vadd.f32 %v13024_v57, %v18814_v2 }
 0xecc   : > { %v8933_v24 = vpop.f32.mrf.mxu1 }
 0xecd   : > { %v9219_v56 = vmax.f32 %v9155_v19, 0.0  ;;  %v9089_v9 = vadd.f32 %v18814_v2, %v8933_v24  ;;  %v9261_v61 = vpack.c.bf16 %v9221_v47, %v9220_v36  ;;  %v9160_v55 = vadd.f32 %v18702_v37, %v9091_v18 }
 0xece   : > { %v13025_v53 = vpop.f32.mrf.mxu1 }
 0xecf   : > { %v9092_v45 = vadd.f32 %v13025_v53, %v18814_v2  ;;  %v9260_v0 = vpack.c.bf16 %v9219_v56, %v9218_v17  ;;  %v9158_v58 = vadd.f32 %v18702_v37, %v9089_v9  ;;  %v9224_v39 = vmax.f32 %v9160_v55, 0.0  ;;  %v13775_v55 = vld [vmem:[#allocation2 + $0x428] sm:$0xff]  }
 0xed0   : > { %v8936_v40 = vpop.f32.mrf.mxu1  ;;  %13198 = vmatprep.subr.bf16.mxu0 %v13775_v55 }
 0xed1   : > { %v9161_v1 = vadd.f32 %v18702_v37, %v9092_v45  ;;  %v9090_v25 = vadd.f32 %v18814_v2, %v8936_v40  ;;  %13098 = vmatprep.mubr.bf16.mxu0 %v9260_v0  ;;  %v9222_v54 = vmax.f32 %v9158_v58, 0.0  ;;  %13199 = vmatpush3.bf16.msra.mxu0 %v13775_v55 }
 0xed2   : > { %v13028_v59 = vpop.f32.mrf.mxu1  ;;  %13099 = vmatmul.mubr.bf16.gmra.mxu0 %v9261_v61 }
 0xed3   : > { %v9159_v63 = vadd.f32 %v18702_v37, %v9090_v25  ;;  %v9225_v35 = vmax.f32 %v9161_v1, 0.0  ;;  %v9095_v6 = vadd.f32 %v13028_v59, %v18814_v2  ;;  %v13776_v59 = vld [vmem:[#allocation2 + $0x420] sm:$0xff]  }
 0xed4   : > { %v8949_v49 = vpop.f32.mrf.mxu1  ;;  %13200 = vmatprep.subr.bf16.mxu0 %v13776_v59 }
 0xed5   : > { %v9223_v11 = vmax.f32 %v9159_v63, 0.0  ;;  %v9093_v16 = vadd.f32 %v18814_v2, %v8949_v49  ;;  %v9263_v51 = vpack.c.bf16 %v9225_v35, %v9224_v39  ;;  %v9164_v7 = vadd.f32 %v18702_v37, %v9095_v6  ;;  %13201 = vmatpush3.bf16.msra.mxu0 %v13776_v59  ;;  %v13777_v39 = vld [vmem:[#allocation2 + $0x418] sm:$0xff]   ;;  %v13778_v6 = vld [vmem:[#allocation2 + $0x410] sm:$0xff]  }
 0xed6   : > { %v13029_v12 = vpop.f32.mrf.mxu1  ;;  %13202 = vmatprep.subr.bf16.mxu0 %v13777_v39 }
 0xed7   : > { %v9096_v21 = vadd.f32 %v13029_v12, %v18814_v2  ;;  %v9262_v3 = vpack.c.bf16 %v9223_v11, %v9222_v54  ;;  %v9162_v8 = vadd.f32 %v18702_v37, %v9093_v16  ;;  %v9228_v33 = vmax.f32 %v9164_v7, 0.0 }
 0xed8   : > { %v8952_v34 = vpop.f32.mrf.mxu1 }
 0xed9   : > { %v9165_v20 = vadd.f32 %v18702_v37, %v9096_v21  ;;  %v9094_v30 = vadd.f32 %v18814_v2, %v8952_v34  ;;  %13102 = vmatprep.mubr.bf16.mxu0 %v9262_v3  ;;  %v9226_v26 = vmax.f32 %v9162_v8, 0.0  ;;  %13203 = vmatpush3.bf16.msra.mxu0 %v13777_v39 }
 0xeda   : > { %v13032_v5 = vpop.f32.mrf.mxu1  ;;  %13103 = vmatmul.mubr.bf16.gmra.mxu0 %v9263_v51  ;;  %13204 = vmatprep.subr.bf16.mxu0 %v13778_v6 }
 0xedb   : > { %v9163_v38 = vadd.f32 %v18702_v37, %v9094_v30  ;;  %v9229_v44 = vmax.f32 %v9165_v20, 0.0  ;;  %v9099_v28 = vadd.f32 %v13032_v5, %v18814_v2 }
 0xedc   : > { %v8965_v42 = vpop.f32.mrf.mxu1 }
 0xedd   : > { %v9227_v48 = vmax.f32 %v9163_v38, 0.0  ;;  %v9097_v13 = vadd.f32 %v18814_v2, %v8965_v42  ;;  %v9265_v23 = vpack.c.bf16 %v9229_v44, %v9228_v33  ;;  %v9168_v46 = vadd.f32 %v18702_v37, %v9099_v28  ;;  %13205 = vmatpush3.bf16.msra.mxu0 %v13778_v6 }
 0xede   : > { %v13033_v62 = vpop.f32.mrf.mxu1 }
 0xedf   : > { %v9100_v31 = vadd.f32 %v13033_v62, %v18814_v2  ;;  %v9264_v29 = vpack.c.bf16 %v9227_v48, %v9226_v26  ;;  %v9166_v50 = vadd.f32 %v18702_v37, %v9097_v13  ;;  %v9232_v10 = vmax.f32 %v9168_v46, 0.0 }
 0xee0   : > { %v8968_v27 = vpop.f32.mrf.mxu1 }
 0xee1   : > { %v9169_v15 = vadd.f32 %v18702_v37, %v9100_v31  ;;  %v9098_v4 = vadd.f32 %v18814_v2, %v8968_v27  ;;  %13106 = vmatprep.mubr.bf16.mxu0 %v9264_v29  ;;  %v9230_v32 = vmax.f32 %v9166_v50, 0.0 }
 0xee2   : > { %v13036_v52 = vpop.f32.mrf.mxu1  ;;  %13107 = vmatmul.mubr.bf16.gmra.mxu0 %v9265_v23 }
 0xee3   : > { %v9167_v14 = vadd.f32 %v18702_v37, %v9098_v4  ;;  %v9233_v41 = vmax.f32 %v9169_v15, 0.0  ;;  %v9103_v57 = vadd.f32 %v13036_v52, %v18814_v2 }
 0xee4   : > { %v8981_v60 = vpop.f32.mrf.mxu1 }
 0xee5   : > { %v9231_v43 = vmax.f32 %v9167_v14, 0.0  ;;  %v9101_v22 = vadd.f32 %v18814_v2, %v8981_v60  ;;  %v9267_v17 = vpack.c.bf16 %v9233_v41, %v9232_v10  ;;  %v9172_v53 = vadd.f32 %v18702_v37, %v9103_v57 }
 0xee6   : > { %v13037_v19 = vpop.f32.mrf.mxu1 }
 0xee7   : > { %v9104_v47 = vadd.f32 %v13037_v19, %v18814_v2  ;;  %v9266_v24 = vpack.c.bf16 %v9231_v43, %v9230_v32  ;;  %v9170_v9 = vadd.f32 %v18702_v37, %v9101_v22  ;;  %v9236_v58 = vmax.f32 %v9172_v53, 0.0 }
 0xee8   : > { %v8984_v56 = vpop.f32.mrf.mxu1 }
 0xee9   : > { %v9173_v36 = vadd.f32 %v18702_v37, %v9104_v47  ;;  %v9102_v18 = vadd.f32 %v18814_v2, %v8984_v56  ;;  %13110 = vmatprep.mubr.bf16.mxu0 %v9266_v24  ;;  %v9234_v61 = vmax.f32 %v9170_v9, 0.0 }
 0xeea   : > { %13111 = vmatmul.mubr.bf16.gmra.mxu0 %v9267_v17 }
 0xeeb   : > { %v9171_v45 = vadd.f32 %v18702_v37, %v9102_v18  ;;  %v9237_v0 = vmax.f32 %v9173_v36, 0.0  ;;  %v18852_v37 = vld [vmem:[%s19175_s2 + $0x10] ss:$0 sm:$0xff] }
 0xeed   : > { %v9235_v40 = vmax.f32 %v9171_v45, 0.0  ;;  %v9269_v25 = vpack.c.bf16 %v9237_v0, %v9236_v58 }
 0xeef   : > { %v9268_v1 = vpack.c.bf16 %v9235_v40, %v9234_v61 }
 0xef1   : > { %13114 = vmatprep.mubr.bf16.mxu0 %v9268_v1 }
 0xef2   : > { %13115 = vmatmul.mubr.bf16.gmra.mxu0 %v9269_v25 }
 0xf3a   : > { %v13056_v2 = vpop.f32.mrf.mxu0 }
 0xf3b   : > { %v9382_v11 = vadd.f32 %v13056_v2, %v18852_v37 }
 0xf3c   : > { %v9373_v63 = vpop.f32.mrf.mxu0 }
 0xf3d   : > { %v9374_v49 = vadd.f32 %v18852_v37, %v9373_v63  ;;  %v9630_v8 = vmax.f32 %v9382_v11, 0.0 }
 0xf3e   : > { %v13057_v35 = vpop.f32.mrf.mxu0 }
 0xf3f   : > { %v9385_v54 = vadd.f32 %v13057_v35, %v18852_v37  ;;  %v9628_v51 = vmax.f32 %v9374_v49, 0.0 }
 0xf40   : > { %v9376_v16 = vpop.f32.mrf.mxu0 }
 0xf41   : > { %v9377_v12 = vadd.f32 %v18852_v37, %v9376_v16  ;;  %v9631_v21 = vmax.f32 %v9385_v54, 0.0 }
 0xf42   : > { %v13060_v3 = vpop.f32.mrf.mxu0 }
 0xf43   : > { %v9629_v34 = vmax.f32 %v9377_v12, 0.0  ;;  %v9693_v7 = vpack.c.bf16 %v9631_v21, %v9630_v8  ;;  %v9398_v42 = vadd.f32 %v13060_v3, %v18852_v37 }
 0xf44   : > { %v9389_v20 = vpop.f32.mrf.mxu0 }
 0xf45   : > { %v9692_v30 = vpack.c.bf16 %v9629_v34, %v9628_v51  ;;  %v9390_v38 = vadd.f32 %v18852_v37, %v9389_v20  ;;  %v9634_v31 = vmax.f32 %v9398_v42, 0.0 }
 0xf46   : > { %v13061_v5 = vpop.f32.mrf.mxu0 }
 0xf47   : > { %v9401_v44 = vadd.f32 %v13061_v5, %v18852_v37  ;;  %13134 = vmatprep.mubr.bf16.mxu1 %v9692_v30  ;;  %v9632_v28 = vmax.f32 %v9390_v38, 0.0 }
 0xf48   : > { %v9392_v26 = vpop.f32.mrf.mxu0  ;;  %13135 = vmatmul.mubr.bf16.vlgmr.msra.gmra.mxu1 %v9693_v7 }
 0xf49   : > { %v9393_v48 = vadd.f32 %v18852_v37, %v9392_v26  ;;  %v9635_v13 = vmax.f32 %v9401_v44, 0.0 }
 0xf4a   : > { %v13064_v33 = vpop.f32.mrf.mxu0 }
 0xf4b   : > { %v9633_v62 = vmax.f32 %v9393_v48, 0.0  ;;  %v9695_v27 = vpack.c.bf16 %v9635_v13, %v9634_v31  ;;  %v9414_v46 = vadd.f32 %v13064_v33, %v18852_v37 }
 0xf4c   : > { %v9405_v29 = vpop.f32.mrf.mxu0 }
 0xf4d   : > { %v9694_v23 = vpack.c.bf16 %v9633_v62, %v9632_v28  ;;  %v9406_v15 = vadd.f32 %v18852_v37, %v9405_v29  ;;  %v9638_v22 = vmax.f32 %v9414_v46, 0.0 }
 0xf4e   : > { %v13065_v50 = vpop.f32.mrf.mxu0 }
 0xf4f   : > { %v9417_v4 = vadd.f32 %v13065_v50, %v18852_v37  ;;  %13138 = vmatprep.mubr.bf16.mxu1 %v9694_v23  ;;  %v9636_v32 = vmax.f32 %v9406_v15, 0.0 }
 0xf50   : > { %v9408_v52 = vpop.f32.mrf.mxu0  ;;  %13139 = vmatmul.mubr.bf16.gmra.mxu1 %v9695_v27 }
 0xf51   : > { %v9409_v14 = vadd.f32 %v18852_v37, %v9408_v52  ;;  %v9639_v41 = vmax.f32 %v9417_v4, 0.0 }
 0xf52   : > { %v13068_v60 = vpop.f32.mrf.mxu0 }
 0xf53   : > { %v9637_v43 = vmax.f32 %v9409_v14, 0.0  ;;  %v9697_v19 = vpack.c.bf16 %v9639_v41, %v9638_v22  ;;  %v9430_v56 = vadd.f32 %v13068_v60, %v18852_v37 }
 0xf54   : > { %v9421_v10 = vpop.f32.mrf.mxu0 }
 0xf55   : > { %v9696_v57 = vpack.c.bf16 %v9637_v43, %v9636_v32  ;;  %v9422_v24 = vadd.f32 %v18852_v37, %v9421_v10  ;;  %v9642_v61 = vmax.f32 %v9430_v56, 0.0 }
 0xf56   : > { %v13069_v47 = vpop.f32.mrf.mxu0 }
 0xf57   : > { %v9433_v17 = vadd.f32 %v13069_v47, %v18852_v37  ;;  %13142 = vmatprep.mubr.bf16.mxu1 %v9696_v57  ;;  %v9640_v45 = vmax.f32 %v9422_v24, 0.0 }
 0xf58   : > { %v9424_v9 = vpop.f32.mrf.mxu0  ;;  %13143 = vmatmul.mubr.bf16.gmra.mxu1 %v9697_v19 }
 0xf59   : > { %v9425_v36 = vadd.f32 %v18852_v37, %v9424_v9  ;;  %v9643_v18 = vmax.f32 %v9433_v17, 0.0 }
 0xf5a   : > { %v13072_v53 = vpop.f32.mrf.mxu0 }
 0xf5b   : > { %v9641_v0 = vmax.f32 %v9425_v36, 0.0  ;;  %v9699_v1 = vpack.c.bf16 %v9643_v18, %v9642_v61  ;;  %v9446_v2 = vadd.f32 %v13072_v53, %v18852_v37 }
 0xf5c   : > { %v9437_v40 = vpop.f32.mrf.mxu0 }
 0xf5d   : > { %v9698_v58 = vpack.c.bf16 %v9641_v0, %v9640_v45  ;;  %v9438_v55 = vadd.f32 %v18852_v37, %v9437_v40  ;;  %v9646_v39 = vmax.f32 %v9446_v2, 0.0 }
 0xf5e   : > { %v13073_v25 = vpop.f32.mrf.mxu0 }
 0xf5f   : > { %v9449_v59 = vadd.f32 %v13073_v25, %v18852_v37  ;;  %13146 = vmatprep.mubr.bf16.mxu1 %v9698_v58  ;;  %v9644_v11 = vmax.f32 %v9438_v55, 0.0 }
 0xf60   : > { %v9440_v63 = vpop.f32.mrf.mxu0  ;;  %13147 = vmatmul.mubr.bf16.gmra.mxu1 %v9699_v1 }
 0xf61   : > { %v9441_v35 = vadd.f32 %v18852_v37, %v9440_v63  ;;  %v9647_v49 = vmax.f32 %v9449_v59, 0.0 }
 0xf62   : > { %v13076_v54 = vpop.f32.mrf.mxu0 }
 0xf63   : > { %v9645_v16 = vmax.f32 %v9441_v35, 0.0  ;;  %v9701_v21 = vpack.c.bf16 %v9647_v49, %v9646_v39  ;;  %v9462_v8 = vadd.f32 %v13076_v54, %v18852_v37 }
 0xf64   : > { %v9453_v6 = vpop.f32.mrf.mxu0 }
 0xf65   : > { %v9700_v12 = vpack.c.bf16 %v9645_v16, %v9644_v11  ;;  %v9454_v51 = vadd.f32 %v18852_v37, %v9453_v6  ;;  %v9650_v42 = vmax.f32 %v9462_v8, 0.0 }
 0xf66   : > { %v13077_v3 = vpop.f32.mrf.mxu0 }
 0xf67   : > { %v9465_v34 = vadd.f32 %v13077_v3, %v18852_v37  ;;  %13150 = vmatprep.mubr.bf16.mxu1 %v9700_v12  ;;  %v9648_v38 = vmax.f32 %v9454_v51, 0.0 }
 0xf68   : > { %v9456_v20 = vpop.f32.mrf.mxu0  ;;  %13151 = vmatmul.mubr.bf16.gmra.mxu1 %v9701_v21 }
 0xf69   : > { %v9457_v30 = vadd.f32 %v18852_v37, %v9456_v20  ;;  %v9651_v7 = vmax.f32 %v9465_v34, 0.0 }
 0xf6a   : > { %v13080_v5 = vpop.f32.mrf.mxu0 }
 0xf6b   : > { %v9649_v44 = vmax.f32 %v9457_v30, 0.0  ;;  %v9703_v13 = vpack.c.bf16 %v9651_v7, %v9650_v42  ;;  %v9478_v31 = vadd.f32 %v13080_v5, %v18852_v37 }
 0xf6c   : > { %v9469_v26 = vpop.f32.mrf.mxu0 }
 0xf6d   : > { %v9702_v48 = vpack.c.bf16 %v9649_v44, %v9648_v38  ;;  %v9470_v28 = vadd.f32 %v18852_v37, %v9469_v26  ;;  %v9654_v46 = vmax.f32 %v9478_v31, 0.0 }
 0xf6e   : > { %v13081_v33 = vpop.f32.mrf.mxu0 }
 0xf6f   : > { %v9481_v62 = vadd.f32 %v13081_v33, %v18852_v37  ;;  %13154 = vmatprep.mubr.bf16.mxu1 %v9702_v48  ;;  %v9652_v15 = vmax.f32 %v9470_v28, 0.0 }
 0xf70   : > { %v9472_v29 = vpop.f32.mrf.mxu0  ;;  %13155 = vmatmul.mubr.bf16.gmra.mxu1 %v9703_v13 }
 0xf71   : > { %v9473_v23 = vadd.f32 %v18852_v37, %v9472_v29  ;;  %v9655_v27 = vmax.f32 %v9481_v62, 0.0 }
 0xf72   : > { %v13084_v50 = vpop.f32.mrf.mxu0 }
 0xf73   : > { %v9653_v4 = vmax.f32 %v9473_v23, 0.0  ;;  %v9705_v41 = vpack.c.bf16 %v9655_v27, %v9654_v46  ;;  %v9494_v22 = vadd.f32 %v13084_v50, %v18852_v37 }
 0xf74   : > { %v9485_v52 = vpop.f32.mrf.mxu0 }
 0xf75   : > { %v9704_v14 = vpack.c.bf16 %v9653_v4, %v9652_v15  ;;  %v9486_v32 = vadd.f32 %v18852_v37, %v9485_v52  ;;  %v9658_v56 = vmax.f32 %v9494_v22, 0.0 }
 0xf76   : > { %v13085_v60 = vpop.f32.mrf.mxu0 }
 0xf77   : > { %v9497_v43 = vadd.f32 %v13085_v60, %v18852_v37  ;;  %13158 = vmatprep.mubr.bf16.mxu1 %v9704_v14  ;;  %v9656_v24 = vmax.f32 %v9486_v32, 0.0 }
 0xf78   : > { %v9488_v10 = vpop.f32.mrf.mxu0  ;;  %13159 = vmatmul.mubr.bf16.gmra.mxu1 %v9705_v41 }
 0xf79   : > { %v9489_v57 = vadd.f32 %v18852_v37, %v9488_v10  ;;  %v9659_v19 = vmax.f32 %v9497_v43, 0.0 }
 0xf7a   : > { %v13088_v47 = vpop.f32.mrf.mxu0 }
 0xf7b   : > { %v9657_v17 = vmax.f32 %v9489_v57, 0.0  ;;  %v9707_v18 = vpack.c.bf16 %v9659_v19, %v9658_v56  ;;  %v9510_v61 = vadd.f32 %v13088_v47, %v18852_v37 }
 0xf7c   : > { %v9501_v9 = vpop.f32.mrf.mxu0 }
 0xf7d   : > { %v9706_v36 = vpack.c.bf16 %v9657_v17, %v9656_v24  ;;  %v9502_v45 = vadd.f32 %v18852_v37, %v9501_v9  ;;  %v9662_v2 = vmax.f32 %v9510_v61, 0.0 }
 0xf7e   : > { %v13089_v53 = vpop.f32.mrf.mxu0 }
 0xf7f   : > { %v9513_v0 = vadd.f32 %v13089_v53, %v18852_v37  ;;  %13162 = vmatprep.mubr.bf16.mxu1 %v9706_v36  ;;  %v9660_v55 = vmax.f32 %v9502_v45, 0.0 }
 0xf80   : > { %v9504_v40 = vpop.f32.mrf.mxu0  ;;  %13163 = vmatmul.mubr.bf16.gmra.mxu1 %v9707_v18 }
 0xf81   : > { %v9505_v58 = vadd.f32 %v18852_v37, %v9504_v40  ;;  %v9663_v1 = vmax.f32 %v9513_v0, 0.0 }
 0xf82   : > { %v13092_v25 = vpop.f32.mrf.mxu0 }
 0xf83   : > { %v9661_v59 = vmax.f32 %v9505_v58, 0.0  ;;  %v9709_v49 = vpack.c.bf16 %v9663_v1, %v9662_v2  ;;  %v9526_v39 = vadd.f32 %v13092_v25, %v18852_v37 }
 0xf84   : > { %v9517_v63 = vpop.f32.mrf.mxu0 }
 0xf85   : > { %v9708_v35 = vpack.c.bf16 %v9661_v59, %v9660_v55  ;;  %v9518_v11 = vadd.f32 %v18852_v37, %v9517_v63  ;;  %v9666_v8 = vmax.f32 %v9526_v39, 0.0 }
 0xf86   : > { %v13093_v54 = vpop.f32.mrf.mxu0 }
 0xf87   : > { %v9529_v16 = vadd.f32 %v13093_v54, %v18852_v37  ;;  %13166 = vmatprep.mubr.bf16.mxu1 %v9708_v35  ;;  %v9664_v51 = vmax.f32 %v9518_v11, 0.0 }
 0xf88   : > { %v9520_v6 = vpop.f32.mrf.mxu0  ;;  %13167 = vmatmul.mubr.bf16.gmra.mxu1 %v9709_v49 }
 0xf89   : > { %v9521_v12 = vadd.f32 %v18852_v37, %v9520_v6  ;;  %v9667_v21 = vmax.f32 %v9529_v16, 0.0 }
 0xf8a   : > { %v13096_v3 = vpop.f32.mrf.mxu0 }
 0xf8b   : > { %v9665_v34 = vmax.f32 %v9521_v12, 0.0  ;;  %v9711_v7 = vpack.c.bf16 %v9667_v21, %v9666_v8  ;;  %v9542_v42 = vadd.f32 %v13096_v3, %v18852_v37 }
 0xf8c   : > { %v9533_v20 = vpop.f32.mrf.mxu0 }
 0xf8d   : > { %v9710_v30 = vpack.c.bf16 %v9665_v34, %v9664_v51  ;;  %v9534_v38 = vadd.f32 %v18852_v37, %v9533_v20  ;;  %v9670_v31 = vmax.f32 %v9542_v42, 0.0 }
 0xf8e   : > { %v13097_v5 = vpop.f32.mrf.mxu0 }
 0xf8f   : > { %v9545_v44 = vadd.f32 %v13097_v5, %v18852_v37  ;;  %13170 = vmatprep.mubr.bf16.mxu1 %v9710_v30  ;;  %v9668_v28 = vmax.f32 %v9534_v38, 0.0 }
 0xf90   : > { %v9536_v26 = vpop.f32.mrf.mxu0  ;;  %13171 = vmatmul.mubr.bf16.gmra.mxu1 %v9711_v7 }
 0xf91   : > { %v9537_v48 = vadd.f32 %v18852_v37, %v9536_v26  ;;  %v9671_v13 = vmax.f32 %v9545_v44, 0.0 }
 0xf92   : > { %v13100_v33 = vpop.f32.mrf.mxu0 }
 0xf93   : > { %v9669_v62 = vmax.f32 %v9537_v48, 0.0  ;;  %v9713_v27 = vpack.c.bf16 %v9671_v13, %v9670_v31  ;;  %v9558_v46 = vadd.f32 %v13100_v33, %v18852_v37 }
 0xf94   : > { %v9549_v29 = vpop.f32.mrf.mxu0 }
 0xf95   : > { %v9712_v23 = vpack.c.bf16 %v9669_v62, %v9668_v28  ;;  %v9550_v15 = vadd.f32 %v18852_v37, %v9549_v29  ;;  %v9674_v22 = vmax.f32 %v9558_v46, 0.0 }
 0xf96   : > { %v13101_v50 = vpop.f32.mrf.mxu0 }
 0xf97   : > { %v9561_v4 = vadd.f32 %v13101_v50, %v18852_v37  ;;  %13174 = vmatprep.mubr.bf16.mxu1 %v9712_v23  ;;  %v9672_v32 = vmax.f32 %v9550_v15, 0.0 }
 0xf98   : > { %v9552_v52 = vpop.f32.mrf.mxu0  ;;  %13175 = vmatmul.mubr.bf16.gmra.mxu1 %v9713_v27 }
 0xf99   : > { %v9553_v14 = vadd.f32 %v18852_v37, %v9552_v52  ;;  %v9675_v41 = vmax.f32 %v9561_v4, 0.0 }
 0xf9a   : > { %v13104_v60 = vpop.f32.mrf.mxu0 }
 0xf9b   : > { %v9673_v43 = vmax.f32 %v9553_v14, 0.0  ;;  %v9715_v19 = vpack.c.bf16 %v9675_v41, %v9674_v22  ;;  %v9574_v56 = vadd.f32 %v13104_v60, %v18852_v37  ;;  %v18921_v60 = vld [vmem:[%s19175_s2 + $0x11] ss:$0 sm:$0xff] }
 0xf9c   : > { %v9565_v10 = vpop.f32.mrf.mxu0 }
 0xf9d   : > { %v9714_v57 = vpack.c.bf16 %v9673_v43, %v9672_v32  ;;  %v9566_v24 = vadd.f32 %v18852_v37, %v9565_v10  ;;  %v9678_v61 = vmax.f32 %v9574_v56, 0.0 }
 0xf9e   : > { %v13105_v47 = vpop.f32.mrf.mxu0 }
 0xf9f   : > { %v9577_v17 = vadd.f32 %v13105_v47, %v18852_v37  ;;  %13178 = vmatprep.mubr.bf16.mxu1 %v9714_v57  ;;  %v9676_v45 = vmax.f32 %v9566_v24, 0.0 }
 0xfa0   : > { %v9568_v9 = vpop.f32.mrf.mxu0  ;;  %13179 = vmatmul.mubr.bf16.gmra.mxu1 %v9715_v19 }
 0xfa1   : > { %v9569_v36 = vadd.f32 %v18852_v37, %v9568_v9  ;;  %v9679_v18 = vmax.f32 %v9577_v17, 0.0 }
 0xfa2   : > { %v13108_v53 = vpop.f32.mrf.mxu0 }
 0xfa3   : > { %v9677_v0 = vmax.f32 %v9569_v36, 0.0  ;;  %v9717_v1 = vpack.c.bf16 %v9679_v18, %v9678_v61  ;;  %v9590_v2 = vadd.f32 %v13108_v53, %v18852_v37 }
 0xfa4   : > { %v9581_v40 = vpop.f32.mrf.mxu0 }
 0xfa5   : > { %v9716_v58 = vpack.c.bf16 %v9677_v0, %v9676_v45  ;;  %v9582_v55 = vadd.f32 %v18852_v37, %v9581_v40  ;;  %v9682_v39 = vmax.f32 %v9590_v2, 0.0 }
 0xfa6   : > { %v13109_v25 = vpop.f32.mrf.mxu0 }
 0xfa7   : > { %v9593_v59 = vadd.f32 %v13109_v25, %v18852_v37  ;;  %13182 = vmatprep.mubr.bf16.mxu1 %v9716_v58  ;;  %v9680_v11 = vmax.f32 %v9582_v55, 0.0 }
 0xfa8   : > { %v9584_v63 = vpop.f32.mrf.mxu0  ;;  %13183 = vmatmul.mubr.bf16.gmra.mxu1 %v9717_v1 }
 0xfa9   : > { %v9585_v35 = vadd.f32 %v18852_v37, %v9584_v63  ;;  %v9683_v49 = vmax.f32 %v9593_v59, 0.0 }
 0xfaa   : > { %v13112_v54 = vpop.f32.mrf.mxu0 }
 0xfab   : > { %v9681_v16 = vmax.f32 %v9585_v35, 0.0  ;;  %v9719_v21 = vpack.c.bf16 %v9683_v49, %v9682_v39  ;;  %v9606_v8 = vadd.f32 %v13112_v54, %v18852_v37 }
 0xfac   : > { %v9597_v6 = vpop.f32.mrf.mxu0 }
 0xfad   : > { %v9718_v12 = vpack.c.bf16 %v9681_v16, %v9680_v11  ;;  %v9598_v51 = vadd.f32 %v18852_v37, %v9597_v6  ;;  %v9686_v42 = vmax.f32 %v9606_v8, 0.0 }
 0xfae   : > { %v13113_v3 = vpop.f32.mrf.mxu0 }
 0xfaf   : > { %v9609_v34 = vadd.f32 %v13113_v3, %v18852_v37  ;;  %13186 = vmatprep.mubr.bf16.mxu1 %v9718_v12  ;;  %v9684_v38 = vmax.f32 %v9598_v51, 0.0 }
 0xfb0   : > { %v9600_v20 = vpop.f32.mrf.mxu0  ;;  %13187 = vmatmul.mubr.bf16.gmra.mxu1 %v9719_v21 }
 0xfb1   : > { %v9601_v30 = vadd.f32 %v18852_v37, %v9600_v20  ;;  %v9687_v7 = vmax.f32 %v9609_v34, 0.0 }
 0xfb2   : > { %v13116_v5 = vpop.f32.mrf.mxu0 }
 0xfb3   : > { %v9685_v44 = vmax.f32 %v9601_v30, 0.0  ;;  %v9721_v13 = vpack.c.bf16 %v9687_v7, %v9686_v42  ;;  %v9622_v31 = vadd.f32 %v13116_v5, %v18852_v37 }
 0xfb4   : > { %v9613_v26 = vpop.f32.mrf.mxu0 }
 0xfb5   : > { %v9720_v48 = vpack.c.bf16 %v9685_v44, %v9684_v38  ;;  %v9614_v28 = vadd.f32 %v18852_v37, %v9613_v26  ;;  %v9690_v4 = vmax.f32 %v9622_v31, 0.0 }
 0xfb6   : > { %v13117_v33 = vpop.f32.mrf.mxu0 }
 0xfb7   : > { %v9625_v62 = vadd.f32 %v13117_v33, %v18852_v37  ;;  %13190 = vmatprep.mubr.bf16.mxu1 %v9720_v48  ;;  %v9688_v50 = vmax.f32 %v9614_v28, 0.0 }
 0xfb8   : > { %v9616_v29 = vpop.f32.mrf.mxu0  ;;  %13191 = vmatmul.mubr.bf16.gmra.mxu1 %v9721_v13 }
 0xfb9   : > { %v9617_v23 = vadd.f32 %v18852_v37, %v9616_v29  ;;  %v9691_v27 = vmax.f32 %v9625_v62, 0.0 }
 0xfbb   : > { %v9689_v15 = vmax.f32 %v9617_v23, 0.0  ;;  %v9723_v52 = vpack.c.bf16 %v9691_v27, %v9690_v4 }
 0xfbd   : > { %v9722_v46 = vpack.c.bf16 %v9689_v15, %v9688_v50 }
 0xfbf   : > { %13194 = vmatprep.mubr.bf16.mxu1 %v9722_v46 }
 0xfc0   : > { %13195 = vmatmul.mubr.bf16.gmra.mxu1 %v9723_v52 }
0x1008   : > { %v13136_v14 = vpop.f32.mrf.mxu1 }
0x1009   : > { %v9836_v22 = vadd.f32 %v13136_v14, %v18921_v60 }
0x100a   : > { %v9827_v41 = vpop.f32.mrf.mxu1 }
0x100b   : > { %v9828_v43 = vadd.f32 %v18921_v60, %v9827_v41  ;;  %v10084_v56 = vmax.f32 %v9836_v22, 0.0 }
0x100c   : > { %v13137_v32 = vpop.f32.mrf.mxu1 }
0x100d   : > { %v9839_v37 = vadd.f32 %v13137_v32, %v18921_v60  ;;  %v10082_v24 = vmax.f32 %v9828_v43, 0.0 }
0x100e   : > { %v9830_v10 = vpop.f32.mrf.mxu1 }
0x100f   : > { %v9831_v57 = vadd.f32 %v18921_v60, %v9830_v10  ;;  %v10085_v19 = vmax.f32 %v9839_v37, 0.0 }
0x1010   : > { %v13140_v47 = vpop.f32.mrf.mxu1 }
0x1011   : > { %v10083_v17 = vmax.f32 %v9831_v57, 0.0  ;;  %v10147_v18 = vpack.c.bf16 %v10085_v19, %v10084_v56  ;;  %v9852_v61 = vadd.f32 %v13140_v47, %v18921_v60 }
0x1012   : > { %v9843_v9 = vpop.f32.mrf.mxu1 }
0x1013   : > { %v10146_v36 = vpack.c.bf16 %v10083_v17, %v10082_v24  ;;  %v9844_v45 = vadd.f32 %v18921_v60, %v9843_v9  ;;  %v10088_v2 = vmax.f32 %v9852_v61, 0.0 }
0x1014   : > { %v13141_v53 = vpop.f32.mrf.mxu1 }
0x1015   : > { %v9855_v0 = vadd.f32 %v13141_v53, %v18921_v60  ;;  %13206 = vmatprep.mubr.msk.bf16.mxu0 %vm2411_vm5, %v10146_v36  ;;  %v10086_v55 = vmax.f32 %v9844_v45, 0.0 }
0x1016   : > { %v9846_v40 = vpop.f32.mrf.mxu1  ;;  %13207 = vmatmul.mubr.msk.bf16.vlgmr.msra.gmra.mxu0 %vm2411_vm5, %v10147_v18 }
0x1017   : > { %v9847_v58 = vadd.f32 %v18921_v60, %v9846_v40  ;;  %v10089_v1 = vmax.f32 %v9855_v0, 0.0 }
0x1018   : > { %v13144_v25 = vpop.f32.mrf.mxu1 }
0x1019   : > { %v10087_v59 = vmax.f32 %v9847_v58, 0.0  ;;  %v10149_v49 = vpack.c.bf16 %v10089_v1, %v10088_v2  ;;  %v9868_v39 = vadd.f32 %v13144_v25, %v18921_v60 }
0x101a   : > { %v9859_v63 = vpop.f32.mrf.mxu1 }
0x101b   : > { %v10148_v35 = vpack.c.bf16 %v10087_v59, %v10086_v55  ;;  %v9860_v11 = vadd.f32 %v18921_v60, %v9859_v63  ;;  %v10092_v8 = vmax.f32 %v9868_v39, 0.0 }
0x101c   : > { %v13145_v54 = vpop.f32.mrf.mxu1 }
0x101d   : > { %v9871_v16 = vadd.f32 %v13145_v54, %v18921_v60  ;;  %13210 = vmatprep.mubr.msk.bf16.mxu0 %vm2411_vm5, %v10148_v35  ;;  %v10090_v51 = vmax.f32 %v9860_v11, 0.0 }
0x101e   : > { %v9862_v6 = vpop.f32.mrf.mxu1  ;;  %13211 = vmatmul.mubr.msk.bf16.gmra.mxu0 %vm2411_vm5, %v10149_v49 }
0x101f   : > { %v9863_v12 = vadd.f32 %v18921_v60, %v9862_v6  ;;  %v10093_v21 = vmax.f32 %v9871_v16, 0.0 }
0x1020   : > { %v13148_v3 = vpop.f32.mrf.mxu1 }
0x1021   : > { %v10091_v34 = vmax.f32 %v9863_v12, 0.0  ;;  %v10151_v7 = vpack.c.bf16 %v10093_v21, %v10092_v8  ;;  %v9884_v42 = vadd.f32 %v13148_v3, %v18921_v60 }
0x1022   : > { %v9875_v20 = vpop.f32.mrf.mxu1 }
0x1023   : > { %v10150_v30 = vpack.c.bf16 %v10091_v34, %v10090_v51  ;;  %v9876_v38 = vadd.f32 %v18921_v60, %v9875_v20  ;;  %v10096_v31 = vmax.f32 %v9884_v42, 0.0 }
0x1024   : > { %v13149_v5 = vpop.f32.mrf.mxu1 }
0x1025   : > { %v9887_v44 = vadd.f32 %v13149_v5, %v18921_v60  ;;  %13214 = vmatprep.mubr.msk.bf16.mxu0 %vm2411_vm5, %v10150_v30  ;;  %v10094_v28 = vmax.f32 %v9876_v38, 0.0 }
0x1026   : > { %v9878_v26 = vpop.f32.mrf.mxu1  ;;  %13215 = vmatmul.mubr.msk.bf16.gmra.mxu0 %vm2411_vm5, %v10151_v7 }
0x1027   : > { %v9879_v48 = vadd.f32 %v18921_v60, %v9878_v26  ;;  %v10097_v13 = vmax.f32 %v9887_v44, 0.0 }
0x1028   : > { %v13152_v33 = vpop.f32.mrf.mxu1 }
0x1029   : > { %v10095_v62 = vmax.f32 %v9879_v48, 0.0  ;;  %v10153_v27 = vpack.c.bf16 %v10097_v13, %v10096_v31  ;;  %v9900_v46 = vadd.f32 %v13152_v33, %v18921_v60 }
0x102a   : > { %v9891_v29 = vpop.f32.mrf.mxu1 }
0x102b   : > { %v10152_v23 = vpack.c.bf16 %v10095_v62, %v10094_v28  ;;  %v9892_v15 = vadd.f32 %v18921_v60, %v9891_v29  ;;  %v10100_v22 = vmax.f32 %v9900_v46, 0.0 }
0x102c   : > { %v13153_v50 = vpop.f32.mrf.mxu1 }
0x102d   : > { %v9903_v4 = vadd.f32 %v13153_v50, %v18921_v60  ;;  %13218 = vmatprep.mubr.msk.bf16.mxu0 %vm2411_vm5, %v10152_v23  ;;  %v10098_v43 = vmax.f32 %v9892_v15, 0.0 }
0x102e   : > { %v9894_v52 = vpop.f32.mrf.mxu1  ;;  %13219 = vmatmul.mubr.msk.bf16.gmra.mxu0 %vm2411_vm5, %v10153_v27 }
0x102f   : > { %v9895_v14 = vadd.f32 %v18921_v60, %v9894_v52  ;;  %v10101_v41 = vmax.f32 %v9903_v4, 0.0 }
0x1030   : > { %v13156_v32 = vpop.f32.mrf.mxu1 }
0x1031   : > { %v10099_v37 = vmax.f32 %v9895_v14, 0.0  ;;  %v10155_v19 = vpack.c.bf16 %v10101_v41, %v10100_v22  ;;  %v9916_v56 = vadd.f32 %v13156_v32, %v18921_v60 }
0x1032   : > { %v9907_v10 = vpop.f32.mrf.mxu1 }
0x1033   : > { %v10154_v57 = vpack.c.bf16 %v10099_v37, %v10098_v43  ;;  %v9908_v24 = vadd.f32 %v18921_v60, %v9907_v10  ;;  %v10104_v61 = vmax.f32 %v9916_v56, 0.0 }
0x1034   : > { %v13157_v47 = vpop.f32.mrf.mxu1 }
0x1035   : > { %v9919_v17 = vadd.f32 %v13157_v47, %v18921_v60  ;;  %13222 = vmatprep.mubr.msk.bf16.mxu0 %vm2411_vm5, %v10154_v57  ;;  %v10102_v45 = vmax.f32 %v9908_v24, 0.0 }
0x1036   : > { %v9910_v9 = vpop.f32.mrf.mxu1  ;;  %13223 = vmatmul.mubr.msk.bf16.gmra.mxu0 %vm2411_vm5, %v10155_v19 }
0x1037   : > { %v9911_v36 = vadd.f32 %v18921_v60, %v9910_v9  ;;  %v10105_v18 = vmax.f32 %v9919_v17, 0.0 }
0x1038   : > { %v13160_v53 = vpop.f32.mrf.mxu1 }
0x1039   : > { %v10103_v0 = vmax.f32 %v9911_v36, 0.0  ;;  %v10157_v1 = vpack.c.bf16 %v10105_v18, %v10104_v61  ;;  %v9932_v2 = vadd.f32 %v13160_v53, %v18921_v60 }
0x103a   : > { %v9923_v40 = vpop.f32.mrf.mxu1 }
0x103b   : > { %v10156_v58 = vpack.c.bf16 %v10103_v0, %v10102_v45  ;;  %v9924_v55 = vadd.f32 %v18921_v60, %v9923_v40  ;;  %v10108_v39 = vmax.f32 %v9932_v2, 0.0 }
0x103c   : > { %v13161_v25 = vpop.f32.mrf.mxu1 }
0x103d   : > { %v9935_v59 = vadd.f32 %v13161_v25, %v18921_v60  ;;  %13226 = vmatprep.mubr.msk.bf16.mxu0 %vm2411_vm5, %v10156_v58  ;;  %v10106_v11 = vmax.f32 %v9924_v55, 0.0 }
0x103e   : > { %v9926_v63 = vpop.f32.mrf.mxu1  ;;  %13227 = vmatmul.mubr.msk.bf16.gmra.mxu0 %vm2411_vm5, %v10157_v1 }
0x103f   : > { %v9927_v35 = vadd.f32 %v18921_v60, %v9926_v63  ;;  %v10109_v49 = vmax.f32 %v9935_v59, 0.0 }
0x1040   : > { %v13164_v54 = vpop.f32.mrf.mxu1 }
0x1041   : > { %v10107_v16 = vmax.f32 %v9927_v35, 0.0  ;;  %v10159_v21 = vpack.c.bf16 %v10109_v49, %v10108_v39  ;;  %v9948_v8 = vadd.f32 %v13164_v54, %v18921_v60 }
0x1042   : > { %v9939_v6 = vpop.f32.mrf.mxu1 }
0x1043   : > { %v10158_v12 = vpack.c.bf16 %v10107_v16, %v10106_v11  ;;  %v9940_v51 = vadd.f32 %v18921_v60, %v9939_v6  ;;  %v10112_v42 = vmax.f32 %v9948_v8, 0.0 }
0x1044   : > { %v13165_v3 = vpop.f32.mrf.mxu1 }
0x1045   : > { %v9951_v34 = vadd.f32 %v13165_v3, %v18921_v60  ;;  %13230 = vmatprep.mubr.msk.bf16.mxu0 %vm2411_vm5, %v10158_v12  ;;  %v10110_v38 = vmax.f32 %v9940_v51, 0.0 }
0x1046   : > { %v9942_v20 = vpop.f32.mrf.mxu1  ;;  %13231 = vmatmul.mubr.msk.bf16.gmra.mxu0 %vm2411_vm5, %v10159_v21 }
0x1047   : > { %v9943_v30 = vadd.f32 %v18921_v60, %v9942_v20  ;;  %v10113_v7 = vmax.f32 %v9951_v34, 0.0 }
0x1048   : > { %v13168_v5 = vpop.f32.mrf.mxu1 }
0x1049   : > { %v10111_v44 = vmax.f32 %v9943_v30, 0.0  ;;  %v10161_v13 = vpack.c.bf16 %v10113_v7, %v10112_v42  ;;  %v9964_v31 = vadd.f32 %v13168_v5, %v18921_v60 }
0x104a   : > { %v9955_v26 = vpop.f32.mrf.mxu1 }
0x104b   : > { %v10160_v48 = vpack.c.bf16 %v10111_v44, %v10110_v38  ;;  %v9956_v28 = vadd.f32 %v18921_v60, %v9955_v26  ;;  %v10116_v46 = vmax.f32 %v9964_v31, 0.0 }
0x104c   : > { %v13169_v33 = vpop.f32.mrf.mxu1 }
0x104d   : > { %v9967_v62 = vadd.f32 %v13169_v33, %v18921_v60  ;;  %13234 = vmatprep.mubr.msk.bf16.mxu0 %vm2411_vm5, %v10160_v48  ;;  %v10114_v15 = vmax.f32 %v9956_v28, 0.0 }
0x104e   : > { %v9958_v29 = vpop.f32.mrf.mxu1  ;;  %13235 = vmatmul.mubr.msk.bf16.gmra.mxu0 %vm2411_vm5, %v10161_v13 }
0x104f   : > { %v9959_v23 = vadd.f32 %v18921_v60, %v9958_v29  ;;  %v10117_v27 = vmax.f32 %v9967_v62, 0.0 }
0x1050   : > { %v13172_v50 = vpop.f32.mrf.mxu1 }
0x1051   : > { %v10115_v4 = vmax.f32 %v9959_v23, 0.0  ;;  %v10163_v41 = vpack.c.bf16 %v10117_v27, %v10116_v46  ;;  %v9980_v22 = vadd.f32 %v13172_v50, %v18921_v60 }
0x1052   : > { %v9971_v52 = vpop.f32.mrf.mxu1 }
0x1053   : > { %v10162_v14 = vpack.c.bf16 %v10115_v4, %v10114_v15  ;;  %v9972_v43 = vadd.f32 %v18921_v60, %v9971_v52  ;;  %v10120_v56 = vmax.f32 %v9980_v22, 0.0 }
0x1054   : > { %v13173_v32 = vpop.f32.mrf.mxu1 }
0x1055   : > { %v9983_v37 = vadd.f32 %v13173_v32, %v18921_v60  ;;  %13238 = vmatprep.mubr.msk.bf16.mxu0 %vm2411_vm5, %v10162_v14  ;;  %v10118_v24 = vmax.f32 %v9972_v43, 0.0 }
0x1056   : > { %v9974_v10 = vpop.f32.mrf.mxu1  ;;  %13239 = vmatmul.mubr.msk.bf16.gmra.mxu0 %vm2411_vm5, %v10163_v41 }
0x1057   : > { %v9975_v57 = vadd.f32 %v18921_v60, %v9974_v10  ;;  %v10121_v19 = vmax.f32 %v9983_v37, 0.0 }
0x1058   : > { %v13176_v47 = vpop.f32.mrf.mxu1 }
0x1059   : > { %v10119_v17 = vmax.f32 %v9975_v57, 0.0  ;;  %v10165_v18 = vpack.c.bf16 %v10121_v19, %v10120_v56  ;;  %v9996_v61 = vadd.f32 %v13176_v47, %v18921_v60 }
0x105a   : > { %v9987_v9 = vpop.f32.mrf.mxu1 }
0x105b   : > { %v10164_v36 = vpack.c.bf16 %v10119_v17, %v10118_v24  ;;  %v9988_v45 = vadd.f32 %v18921_v60, %v9987_v9  ;;  %v10124_v2 = vmax.f32 %v9996_v61, 0.0 }
0x105c   : > { %v13177_v53 = vpop.f32.mrf.mxu1 }
0x105d   : > { %v9999_v0 = vadd.f32 %v13177_v53, %v18921_v60  ;;  %13242 = vmatprep.mubr.msk.bf16.mxu0 %vm2411_vm5, %v10164_v36  ;;  %v10122_v55 = vmax.f32 %v9988_v45, 0.0 }
0x105e   : > { %v9990_v40 = vpop.f32.mrf.mxu1  ;;  %13243 = vmatmul.mubr.msk.bf16.gmra.mxu0 %vm2411_vm5, %v10165_v18 }
0x105f   : > { %v9991_v58 = vadd.f32 %v18921_v60, %v9990_v40  ;;  %v10125_v1 = vmax.f32 %v9999_v0, 0.0 }
0x1060   : > { %v13180_v25 = vpop.f32.mrf.mxu1 }
0x1061   : > { %v10123_v59 = vmax.f32 %v9991_v58, 0.0  ;;  %v10167_v49 = vpack.c.bf16 %v10125_v1, %v10124_v2  ;;  %v10012_v39 = vadd.f32 %v13180_v25, %v18921_v60 }
0x1062   : > { %v10003_v63 = vpop.f32.mrf.mxu1 }
0x1063   : > { %v10166_v35 = vpack.c.bf16 %v10123_v59, %v10122_v55  ;;  %v10004_v11 = vadd.f32 %v18921_v60, %v10003_v63  ;;  %v10128_v8 = vmax.f32 %v10012_v39, 0.0 }
0x1064   : > { %v13181_v54 = vpop.f32.mrf.mxu1 }
0x1065   : > { %v10015_v16 = vadd.f32 %v13181_v54, %v18921_v60  ;;  %13246 = vmatprep.mubr.msk.bf16.mxu0 %vm2411_vm5, %v10166_v35  ;;  %v10126_v51 = vmax.f32 %v10004_v11, 0.0 }
0x1066   : > { %v10006_v6 = vpop.f32.mrf.mxu1  ;;  %13247 = vmatmul.mubr.msk.bf16.gmra.mxu0 %vm2411_vm5, %v10167_v49 }
0x1067   : > { %v10007_v12 = vadd.f32 %v18921_v60, %v10006_v6  ;;  %v10129_v21 = vmax.f32 %v10015_v16, 0.0 }
0x1068   : > { %v13184_v3 = vpop.f32.mrf.mxu1 }
0x1069   : > { %v10127_v34 = vmax.f32 %v10007_v12, 0.0  ;;  %v10169_v7 = vpack.c.bf16 %v10129_v21, %v10128_v8  ;;  %v10028_v42 = vadd.f32 %v13184_v3, %v18921_v60  ;;  %v19022_v21 = vld [vmem:[%s19175_s2 + $0x12] ss:$0 sm:$0xff] }
0x106a   : > { %v10019_v20 = vpop.f32.mrf.mxu1 }
0x106b   : > { %v10168_v30 = vpack.c.bf16 %v10127_v34, %v10126_v51  ;;  %v10020_v38 = vadd.f32 %v18921_v60, %v10019_v20  ;;  %v10132_v31 = vmax.f32 %v10028_v42, 0.0 }
0x106c   : > { %v13185_v5 = vpop.f32.mrf.mxu1 }
0x106d   : > { %v10031_v44 = vadd.f32 %v13185_v5, %v18921_v60  ;;  %13250 = vmatprep.mubr.msk.bf16.mxu0 %vm2411_vm5, %v10168_v30  ;;  %v10130_v28 = vmax.f32 %v10020_v38, 0.0 }
0x106e   : > { %v10022_v26 = vpop.f32.mrf.mxu1  ;;  %13251 = vmatmul.mubr.msk.bf16.gmra.mxu0 %vm2411_vm5, %v10169_v7 }
0x106f   : > { %v10023_v48 = vadd.f32 %v18921_v60, %v10022_v26  ;;  %v10133_v13 = vmax.f32 %v10031_v44, 0.0 }
0x1070   : > { %v13188_v33 = vpop.f32.mrf.mxu1 }
0x1071   : > { %v10131_v62 = vmax.f32 %v10023_v48, 0.0  ;;  %v10171_v27 = vpack.c.bf16 %v10133_v13, %v10132_v31  ;;  %v10044_v46 = vadd.f32 %v13188_v33, %v18921_v60 }
0x1072   : > { %v10035_v29 = vpop.f32.mrf.mxu1 }
0x1073   : > { %v10170_v23 = vpack.c.bf16 %v10131_v62, %v10130_v28  ;;  %v10036_v15 = vadd.f32 %v18921_v60, %v10035_v29  ;;  %v10136_v22 = vmax.f32 %v10044_v46, 0.0 }
0x1074   : > { %v13189_v50 = vpop.f32.mrf.mxu1 }
0x1075   : > { %v10047_v4 = vadd.f32 %v13189_v50, %v18921_v60  ;;  %13254 = vmatprep.mubr.msk.bf16.mxu0 %vm2411_vm5, %v10170_v23  ;;  %v10134_v43 = vmax.f32 %v10036_v15, 0.0 }
0x1076   : > { %v10038_v52 = vpop.f32.mrf.mxu1  ;;  %13255 = vmatmul.mubr.msk.bf16.gmra.mxu0 %vm2411_vm5, %v10171_v27 }
0x1077   : > { %v10039_v14 = vadd.f32 %v18921_v60, %v10038_v52  ;;  %v10137_v41 = vmax.f32 %v10047_v4, 0.0 }
0x1078   : > { %v13192_v32 = vpop.f32.mrf.mxu1 }
0x1079   : > { %v10135_v37 = vmax.f32 %v10039_v14, 0.0  ;;  %v10173_v19 = vpack.c.bf16 %v10137_v41, %v10136_v22  ;;  %v10060_v56 = vadd.f32 %v13192_v32, %v18921_v60 }
0x107a   : > { %v10051_v10 = vpop.f32.mrf.mxu1 }
0x107b   : > { %v10172_v57 = vpack.c.bf16 %v10135_v37, %v10134_v43  ;;  %v10052_v24 = vadd.f32 %v18921_v60, %v10051_v10  ;;  %v10140_v61 = vmax.f32 %v10060_v56, 0.0 }
0x107c   : > { %v13193_v47 = vpop.f32.mrf.mxu1 }
0x107d   : > { %v10063_v17 = vadd.f32 %v13193_v47, %v18921_v60  ;;  %13258 = vmatprep.mubr.msk.bf16.mxu0 %vm2411_vm5, %v10172_v57  ;;  %v10138_v45 = vmax.f32 %v10052_v24, 0.0 }
0x107e   : > { %v10054_v9 = vpop.f32.mrf.mxu1  ;;  %13259 = vmatmul.mubr.msk.bf16.gmra.mxu0 %vm2411_vm5, %v10173_v19 }
0x107f   : > { %v10055_v36 = vadd.f32 %v18921_v60, %v10054_v9  ;;  %v10141_v18 = vmax.f32 %v10063_v17, 0.0 }
0x1080   : > { %v13196_v53 = vpop.f32.mrf.mxu1 }
0x1081   : > { %v10139_v0 = vmax.f32 %v10055_v36, 0.0  ;;  %v10175_v1 = vpack.c.bf16 %v10141_v18, %v10140_v61  ;;  %v10076_v2 = vadd.f32 %v13196_v53, %v18921_v60 }
0x1082   : > { %v10067_v40 = vpop.f32.mrf.mxu1 }
0x1083   : > { %v10174_v58 = vpack.c.bf16 %v10139_v0, %v10138_v45  ;;  %v10068_v55 = vadd.f32 %v18921_v60, %v10067_v40  ;;  %v10144_v16 = vmax.f32 %v10076_v2, 0.0 }
0x1084   : > { %v13197_v25 = vpop.f32.mrf.mxu1 }
0x1085   : > { %v10079_v59 = vadd.f32 %v13197_v25, %v18921_v60  ;;  %13262 = vmatprep.mubr.msk.bf16.mxu0 %vm2411_vm5, %v10174_v58  ;;  %v10142_v54 = vmax.f32 %v10068_v55, 0.0 }
0x1086   : > { %v10070_v63 = vpop.f32.mrf.mxu1  ;;  %13263 = vmatmul.mubr.msk.bf16.gmra.mxu0 %vm2411_vm5, %v10175_v1 }
0x1087   : > { %v10071_v35 = vadd.f32 %v18921_v60, %v10070_v63  ;;  %v10145_v49 = vmax.f32 %v10079_v59, 0.0 }
0x1089   : > { %v10143_v11 = vmax.f32 %v10071_v35, 0.0  ;;  %v10177_v6 = vpack.c.bf16 %v10145_v49, %v10144_v16 }
0x108b   : > { %v10176_v39 = vpack.c.bf16 %v10143_v11, %v10142_v54 }
0x108d   : > { %13266 = vmatprep.mubr.msk.bf16.mxu0 %vm2411_vm5, %v10176_v39 }
0x108e   : > { %13267 = vmatmul.mubr.msk.bf16.gmra.mxu0 %vm2411_vm5, %v10177_v6 }
0x10d6   : > { %v13208_v12 = vpop.f32.mrf.mxu0 }
0x10d7   : > { %v10354_v7 = vadd.f32 %v13208_v12, %v19022_v21 }
0x10d8   : > { %v10345_v3 = vpop.f32.mrf.mxu0 }
0x10d9   : > { %v10346_v51 = vadd.f32 %v19022_v21, %v10345_v3 }
0x10da   : > { %v13209_v60 = vpop.f32.mrf.mxu0 }
0x10db   : > { %10600 = vxpose.xlu0.b32.start [1/16] (narrow) %v10346_v51, 8  ;;  %v10357_v44 = vadd.f32 %v13209_v60, %v19022_v21 }
0x10dc   : > { %v10348_v34 = vpop.f32.mrf.mxu0 }
0x10dd   : > { %v10349_v8 = vadd.f32 %v19022_v21, %v10348_v34 }
0x10de   : > { %v13212_v20 = vpop.f32.mrf.mxu0 }
0x10df   : > { %10601 = vxpose.xlu0.b32.cont [2/16] (narrow) %v10349_v8, 8  ;;  %v10370_v29 = vadd.f32 %v13212_v20, %v19022_v21 }
0x10e0   : > { %v10361_v30 = vpop.f32.mrf.mxu0 }
0x10e1   : > { %v10362_v48 = vadd.f32 %v19022_v21, %v10361_v30 }
0x10e2   : > { %v13213_v5 = vpop.f32.mrf.mxu0 }
0x10e3   : > { %10602 = vxpose.xlu0.b32.cont [3/16] (narrow) %v10354_v7, 8  ;;  %v10373_v50 = vadd.f32 %v13213_v5, %v19022_v21 }
0x10e4   : > { %v10364_v38 = vpop.f32.mrf.mxu0 }
0x10e5   : > { %v10365_v28 = vadd.f32 %v19022_v21, %v10364_v38 }
0x10e6   : > { %v13216_v42 = vpop.f32.mrf.mxu0 }
0x10e7   : > { %10603 = vxpose.xlu0.b32.cont [4/16] (narrow) %v10357_v44, 8  ;;  %v10386_v10 = vadd.f32 %v13216_v42, %v19022_v21 }
0x10e8   : > { %v10377_v26 = vpop.f32.mrf.mxu0 }
0x10e9   : > { %v10378_v46 = vadd.f32 %v19022_v21, %v10377_v26 }
0x10ea   : > { %v13217_v13 = vpop.f32.mrf.mxu0 }
0x10eb   : > { %10604 = vxpose.xlu0.b32.cont [5/16] (narrow) %v10362_v48, 8  ;;  %v10389_v24 = vadd.f32 %v13217_v13, %v19022_v21 }
0x10ec   : > { %v10380_v33 = vpop.f32.mrf.mxu0 }
0x10ed   : > { %v10381_v32 = vadd.f32 %v19022_v21, %v10380_v33 }
0x10ee   : > { %v13220_v62 = vpop.f32.mrf.mxu0 }
0x10ef   : > { %10605 = vxpose.xlu0.b32.cont [6/16] (narrow) %v10365_v28, 8  ;;  %v10402_v1 = vadd.f32 %v13220_v62, %v19022_v21 }
0x10f0   : > { %v10393_v31 = vpop.f32.mrf.mxu0 }
0x10f1   : > { %v10394_v36 = vadd.f32 %v19022_v21, %v10393_v31 }
0x10f2   : > { %v13221_v23 = vpop.f32.mrf.mxu0 }
0x10f3   : > { %10606 = vxpose.xlu0.b32.cont [7/16] (narrow) %v10370_v29, 8  ;;  %v10405_v2 = vadd.f32 %v13221_v23, %v19022_v21 }
0x10f4   : > { %v10396_v27 = vpop.f32.mrf.mxu0 }
0x10f5   : > { %v10397_v0 = vadd.f32 %v19022_v21, %v10396_v27 }
0x10f6   : > { %v13224_v15 = vpop.f32.mrf.mxu0 }
0x10f7   : > { %10607 = vxpose.xlu0.b32.cont [8/16] (narrow) %v10373_v50, 8  ;;  %v10418_v57 = vadd.f32 %v13224_v15, %v19022_v21 }
0x10f8   : > { %v10409_v4 = vpop.f32.mrf.mxu0 }
0x10f9   : > { %v10410_v52 = vadd.f32 %v19022_v21, %v10409_v4 }
0x10fa   : > { %v13225_v14 = vpop.f32.mrf.mxu0 }
0x10fb   : > { %10632 = vxpose.xlu1.b32.start [1/16] (narrow) %v10410_v52, 8  ;;  %10608 = vxpose.xlu0.b32.cont [9/16] (narrow) %v10378_v46, 8  ;;  %v10421_v17 = vadd.f32 %v13225_v14, %v19022_v21 }
0x10fc   : > { %v10412_v41 = vpop.f32.mrf.mxu0 }
0x10fd   : > { %v10413_v43 = vadd.f32 %v19022_v21, %v10412_v41 }
0x10fe   : > { %v13228_v37 = vpop.f32.mrf.mxu0 }
0x10ff   : > { %10633 = vxpose.xlu1.b32.cont [2/16] (narrow) %v10413_v43, 8  ;;  %10609 = vxpose.xlu0.b32.cont [10/16] (narrow) %v10381_v32, 8  ;;  %v10434_v25 = vadd.f32 %v13228_v37, %v19022_v21 }
0x1100   : > { %v10425_v22 = vpop.f32.mrf.mxu0 }
0x1101   : > { %v10426_v18 = vadd.f32 %v19022_v21, %v10425_v22 }
0x1102   : > { %v13229_v19 = vpop.f32.mrf.mxu0 }
0x1103   : > { %10634 = vxpose.xlu1.b32.cont [3/16] (narrow) %v10418_v57, 8  ;;  %10610 = vxpose.xlu0.b32.cont [11/16] (narrow) %v10386_v10, 8  ;;  %v10437_v63 = vadd.f32 %v13229_v19, %v19022_v21 }
0x1104   : > { %v10428_v47 = vpop.f32.mrf.mxu0 }
0x1105   : > { %v10429_v61 = vadd.f32 %v19022_v21, %v10428_v47 }
0x1106   : > { %v13232_v56 = vpop.f32.mrf.mxu0 }
0x1107   : > { %10635 = vxpose.xlu1.b32.cont [4/16] (narrow) %v10421_v17, 8  ;;  %10611 = vxpose.xlu0.b32.cont [12/16] (narrow) %v10389_v24, 8  ;;  %v10450_v51 = vadd.f32 %v13232_v56, %v19022_v21 }
0x1108   : > { %v10441_v9 = vpop.f32.mrf.mxu0 }
0x1109   : > { %v10442_v54 = vadd.f32 %v19022_v21, %v10441_v9 }
0x110a   : > { %v13233_v53 = vpop.f32.mrf.mxu0 }
0x110b   : > { %10636 = vxpose.xlu1.b32.cont [5/16] (narrow) %v10426_v18, 8  ;;  %10612 = vxpose.xlu0.b32.cont [13/16] (narrow) %v10394_v36, 8  ;;  %v10453_v8 = vadd.f32 %v13233_v53, %v19022_v21 }
0x110c   : > { %v10444_v45 = vpop.f32.mrf.mxu0 }
0x110d   : > { %v10445_v6 = vadd.f32 %v19022_v21, %v10444_v45 }
0x110e   : > { %v13236_v40 = vpop.f32.mrf.mxu0 }
0x110f   : > { %10637 = vxpose.xlu1.b32.cont [6/16] (narrow) %v10429_v61, 8  ;;  %10613 = vxpose.xlu0.b32.cont [14/16] (narrow) %v10397_v0, 8  ;;  %v10466_v48 = vadd.f32 %v13236_v40, %v19022_v21 }
0x1110   : > { %v10457_v58 = vpop.f32.mrf.mxu0 }
0x1111   : > { %v10458_v7 = vadd.f32 %v19022_v21, %v10457_v58 }
0x1112   : > { %v13237_v55 = vpop.f32.mrf.mxu0 }
0x1113   : > { %10638 = vxpose.xlu1.b32.cont [7/16] (narrow) %v10434_v25, 8  ;;  %10614 = vxpose.xlu0.b32.cont [15/16] (narrow) %v10402_v1, 8  ;;  %v10469_v28 = vadd.f32 %v13237_v55, %v19022_v21 }
0x1114   : > { %v10460_v59 = vpop.f32.mrf.mxu0 }
0x1115   : > { %v10461_v44 = vadd.f32 %v19022_v21, %v10460_v59 }
0x1116   : > { %v13240_v35 = vpop.f32.mrf.mxu0 }
0x1117   : > { %10639 = vxpose.xlu1.b32.cont [8/16] (narrow) %v10437_v63, 8  ;;  %10615 = vxpose.xlu0.b32.end [16/16] (narrow) %v10405_v2, 8  ;;  %v10482_v60 = vadd.f32 %v13240_v35, %v19022_v21 }
0x1118   : > { %v10473_v49 = vpop.f32.mrf.mxu0 }
0x1119   : > { %v10474_v11 = vadd.f32 %v19022_v21, %v10473_v49 }
0x111a   : > { %v13241_v16 = vpop.f32.mrf.mxu0 }
0x111b   : > { %10640 = vxpose.xlu1.b32.cont [9/16] (narrow) %v10442_v54, 8  ;;  %10664 = vxpose.xlu0.b32.start [1/16] (narrow) %v10474_v11, 8  ;;  %v10485_v20 = vadd.f32 %v13241_v16, %v19022_v21 }
0x111c   : > { %v10476_v39 = vpop.f32.mrf.mxu0 }
0x111d   : > { %v10477_v12 = vadd.f32 %v19022_v21, %v10476_v39 }
0x111e   : > { %v13244_v3 = vpop.f32.mrf.mxu0 }
0x111f   : > { %10641 = vxpose.xlu1.b32.cont [10/16] (narrow) %v10445_v6, 8  ;;  %10665 = vxpose.xlu0.b32.cont [2/16] (narrow) %v10477_v12, 8  ;;  %v10498_v13 = vadd.f32 %v13244_v3, %v19022_v21 }
0x1120   : > { %v10489_v34 = vpop.f32.mrf.mxu0 }
0x1121   : > { %v10490_v5 = vadd.f32 %v19022_v21, %v10489_v34 }
0x1122   : > { %v13245_v30 = vpop.f32.mrf.mxu0 }
0x1123   : > { %10642 = vxpose.xlu1.b32.cont [11/16] (narrow) %v10450_v51, 8  ;;  %10666 = vxpose.xlu0.b32.cont [3/16] (narrow) %v10482_v60, 8  ;;  %v10501_v62 = vadd.f32 %v13245_v30, %v19022_v21 }
0x1124   : > { %v10492_v38 = vpop.f32.mrf.mxu0 }
0x1125   : > { %v10493_v42 = vadd.f32 %v19022_v21, %v10492_v38 }
0x1126   : > { %v13248_v26 = vpop.f32.mrf.mxu0 }
0x1127   : > { %10643 = vxpose.xlu1.b32.cont [12/16] (narrow) %v10453_v8, 8  ;;  %10667 = vxpose.xlu0.b32.cont [4/16] (narrow) %v10485_v20, 8  ;;  %v10514_v15 = vadd.f32 %v13248_v26, %v19022_v21 }
0x1128   : > { %v10505_v33 = vpop.f32.mrf.mxu0 }
0x1129   : > { %v10506_v29 = vadd.f32 %v19022_v21, %v10505_v33 }
0x112a   : > { %v13249_v31 = vpop.f32.mrf.mxu0 }
0x112b   : > { %10644 = vxpose.xlu1.b32.cont [13/16] (narrow) %v10458_v7, 8  ;;  %10668 = vxpose.xlu0.b32.cont [5/16] (narrow) %v10490_v5, 8  ;;  %v10517_v46 = vadd.f32 %v13249_v31, %v19022_v21 }
0x112c   : > { %v10508_v23 = vpop.f32.mrf.mxu0 }
0x112d   : > { %v10509_v27 = vadd.f32 %v19022_v21, %v10508_v23 }
0x112e   : > { %v13252_v50 = vpop.f32.mrf.mxu0 }
0x112f   : > { %10645 = vxpose.xlu1.b32.cont [14/16] (narrow) %v10461_v44, 8  ;;  %10669 = vxpose.xlu0.b32.cont [6/16] (narrow) %v10493_v42, 8  ;;  %v10530_v43 = vadd.f32 %v13252_v50, %v19022_v21 }
0x1130   : > { %v10521_v4 = vpop.f32.mrf.mxu0 }
0x1131   : > { %v10522_v14 = vadd.f32 %v19022_v21, %v10521_v4 }
0x1132   : > { %v13253_v52 = vpop.f32.mrf.mxu0 }
0x1133   : > { %10646 = vxpose.xlu1.b32.cont [15/16] (narrow) %v10466_v48, 8  ;;  %10670 = vxpose.xlu0.b32.cont [7/16] (narrow) %v10498_v13, 8  ;;  %v10533_v37 = vadd.f32 %v13253_v52, %v19022_v21 }
0x1134   : > { %v10524_v41 = vpop.f32.mrf.mxu0 }
0x1135   : > { %v10525_v32 = vadd.f32 %v19022_v21, %v10524_v41 }
0x1136   : > { %v13256_v47 = vpop.f32.mrf.mxu0 }
0x1137   : > { %10647 = vxpose.xlu1.b32.end [16/16] (narrow) %v10469_v28, 8  ;;  %10671 = vxpose.xlu0.b32.cont [8/16] (narrow) %v10501_v62, 8  ;;  %v10546_v45 = vadd.f32 %v13256_v47, %v19022_v21 }
0x1138   : > { %v10537_v17 = vpop.f32.mrf.mxu0 }
0x1139   : > { %v10538_v9 = vadd.f32 %v19022_v21, %v10537_v17 }
0x113a   : > { %v13257_v56 = vpop.f32.mrf.mxu0 }
0x113b   : > { %10672 = vxpose.xlu0.b32.cont [9/16] (narrow) %v10506_v29, 8  ;;  %v10549_v58 = vadd.f32 %v13257_v56, %v19022_v21 }
0x113c   : > { %v10540_v36 = vpop.f32.mrf.mxu0 }
0x113d   : > { %v10541_v18 = vadd.f32 %v19022_v21, %v10540_v36 }
0x113e   : > { %v13260_v53 = vpop.f32.mrf.mxu0 }
0x113f   : > { %10673 = vxpose.xlu0.b32.cont [10/16] (narrow) %v10509_v27, 8  ;;  %v10562_v63 = vadd.f32 %v13260_v53, %v19022_v21 }
0x1140   : > { %v10553_v61 = vpop.f32.mrf.mxu0 }
0x1141   : > { %v10554_v25 = vadd.f32 %v19022_v21, %v10553_v61 }
0x1142   : > { %v13261_v1 = vpop.f32.mrf.mxu0 }
0x1143   : > { %10674 = vxpose.xlu0.b32.cont [11/16] (narrow) %v10514_v15, 8  ;;  %v10565_v49 = vadd.f32 %v13261_v1, %v19022_v21 }
0x1144   : > { %v10556_v55 = vpop.f32.mrf.mxu0 }
0x1145   : > { %v10557_v59 = vadd.f32 %v19022_v21, %v10556_v55 }
0x1146   : > { %v13264_v2 = vpop.f32.mrf.mxu0 }
0x1147   : > { %10675 = vxpose.xlu0.b32.cont [12/16] (narrow) %v10517_v46, 8  ;;  %v10578_v12 = vadd.f32 %v13264_v2, %v19022_v21 }
0x1148   : > { %v10569_v35 = vpop.f32.mrf.mxu0 }
0x1149   : > { %v10570_v11 = vadd.f32 %v19022_v21, %v10569_v35 }
0x114a   : > { %v13265_v54 = vpop.f32.mrf.mxu0 }
0x114b   : > { %10676 = vxpose.xlu0.b32.cont [13/16] (narrow) %v10522_v14, 8  ;;  %v10581_v51 = vadd.f32 %v13265_v54, %v19022_v21 }
0x114c   : > { %v10572_v16 = vpop.f32.mrf.mxu0 }
0x114d   : > { %v10573_v39 = vadd.f32 %v19022_v21, %v10572_v16 }
0x114e   : > { %v13268_v6 = vpop.f32.mrf.mxu0 }
0x114f   : > { %10677 = vxpose.xlu0.b32.cont [14/16] (narrow) %v10525_v32, 8  ;;  %v10594_v30 = vadd.f32 %v13268_v6, %v19022_v21 }
0x1150   : > { %v10585_v3 = vpop.f32.mrf.mxu0 }
0x1151   : > { %v10586_v34 = vadd.f32 %v19022_v21, %v10585_v3 }
0x1152   : > { %v13269_v60 = vpop.f32.mrf.mxu0 }
0x1153   : > { %10678 = vxpose.xlu0.b32.cont [15/16] (narrow) %v10530_v43, 8  ;;  %v10597_v7 = vadd.f32 %v13269_v60, %v19022_v21 }
0x1154   : > { %v10588_v8 = vpop.f32.mrf.mxu0 }
0x1155   : > { %v10589_v20 = vadd.f32 %v19022_v21, %v10588_v8 }
0x1157   : > { %10679 = vxpose.xlu0.b32.end [16/16] (narrow) %v10533_v37, 8  ;;  %v19072_v22 = vpop.trf.xlu0 }
0x1158   : > { %v10740_v10 = vsel %vm391_vm1, %v19072_v22, -inf  ;;  %v10728_v19 = vsel %vm391_vm1, %v19072_v22, inf }
0x115e   : > { %10741 = vmax.xlane.f32.xlu1 %v10740_v10 }
0x1177   : > { %v19076_v57 = vpop.trf.xlu1 }
0x1178   : > { %v10743_v24 = vsel %vm391_vm1, %v19076_v57, -inf  ;;  %v10731_v5 = vsel %vm391_vm1, %v19076_v57, inf }
0x1184   : > { %10729 = vmin.xlane.f32.xlu0 %v10728_v19 }
0x1188   : > { %10744 = vmax.xlane.f32.xlu0 %v10743_v24 }
0x1191   : > { %10696 = vxpose.xlu1.b32.start [1/16] (narrow) %v10538_v9, 8 }
0x1195   : > { %10697 = vxpose.xlu1.b32.cont [2/16] (narrow) %v10541_v18, 8 }
0x1197   : > { %v19085_v0 = vpop.trf.xlu0 }
0x1198   : > { %v10734_v40 = vsel %vm391_vm1, %v19085_v0, inf  ;;  %v10746_v38 = vsel %vm391_vm1, %v19085_v0, -inf }
0x1199   : > { %10698 = vxpose.xlu1.b32.cont [3/16] (narrow) %v10546_v45, 8  ;;  %10735 = vmin.xlane.f32.xlu0 %v10734_v40 }
0x119d   : > { %10699 = vxpose.xlu1.b32.cont [4/16] (narrow) %v10549_v58, 8 }
0x11a1   : > { %10700 = vxpose.xlu1.b32.cont [5/16] (narrow) %v10554_v25, 8 }
0x11a5   : > { %10701 = vxpose.xlu1.b32.cont [6/16] (narrow) %v10557_v59, 8 }
0x11a9   : > { %10702 = vxpose.xlu1.b32.cont [7/16] (narrow) %v10562_v63, 8 }
0x11ad   : > { %10703 = vxpose.xlu1.b32.cont [8/16] (narrow) %v10565_v49, 8 }
0x11b1   : > { %10704 = vxpose.xlu1.b32.cont [9/16] (narrow) %v10570_v11, 8 }
0x11b5   : > { %10705 = vxpose.xlu1.b32.cont [10/16] (narrow) %v10573_v39, 8 }
0x11b9   : > { %10706 = vxpose.xlu1.b32.cont [11/16] (narrow) %v10578_v12, 8 }
0x11bd   : > { %10707 = vxpose.xlu1.b32.cont [12/16] (narrow) %v10581_v51, 8 }
0x11c1   : > { %10708 = vxpose.xlu1.b32.cont [13/16] (narrow) %v10586_v34, 8 }
0x11c5   : > { %10709 = vxpose.xlu1.b32.cont [14/16] (narrow) %v10589_v20, 8 }
0x11c9   : > { %10710 = vxpose.xlu1.b32.cont [15/16] (narrow) %v10594_v30, 8 }
0x11cd   : > { %10711 = vxpose.xlu1.b32.end [16/16] (narrow) %v10597_v7, 8 }
0x11e7   : > { %v10742_v44 = vpop.xlane.xlu1 %10741 }
0x11f4   : > { %10732 = vmin.xlane.f32.xlu1 %v10731_v5 }
0x11f8   : > { %10747 = vmax.xlane.f32.xlu1 %v10746_v38 }
0x120d   : > { %v10730_v42 = vpop.xlane.xlu0 %10729  ;;  %v10712_v26 = vpop.trf.xlu1 }
0x120e   : > { %v10756_v48 = vsub.f32 %v10742_v44, %v10730_v42  ;;  %v10737_v13 = vsel %vm391_vm1, %v10712_v26, inf  ;;  %v10749_v21 = vsel %vm391_vm1, %v10712_v26, -inf  ;;  %v10752_v28 = vsub.f32 %v19072_v22, %v10730_v42 }
0x120f   : > { %10738 = vmin.xlane.f32.xlu0 %v10737_v13 }
0x1210   : > { %v10760_v33 = vmax.f32 %v10756_v48, 1e-06 }
0x1211   : > { %v10745_v29 = vpop.xlane.xlu0 %10744 }
0x1212   : > { %13915 = vrcp.f32 %v10760_v33 }
0x1213   : > { %10750 = vmax.xlane.f32.xlu0 %v10749_v21 }
0x121f   : > { %v13916_v62 = vpop.eup %13915 }
0x1220   : > { %v10765_v31 = vmul.f32 %v13916_v62, %v10752_v28 }
0x1222   : > { %10772 = vst [vmem:[%s19112_s30] sm:$0x3] %v10765_v31  ;;  %v10736_v15 = vpop.xlane.xlu0 %10735 }
0x1223   : > { %v10754_v43 = vsub.f32 %v19085_v0, %v10736_v15 }
0x127d   : > { %v10733_v23 = vpop.xlane.xlu1 %10732 }
0x127e   : > { %v10757_v27 = vsub.f32 %v10745_v29, %v10733_v23  ;;  %v10753_v14 = vsub.f32 %v19076_v57, %v10733_v23 }
0x1280   : > { %v10761_v50 = vmax.f32 %v10757_v27, 1e-06 }
0x1281   : > { %v10748_v4 = vpop.xlane.xlu1 %10747 }
0x1282   : > { %13917 = vrcp.f32 %v10761_v50  ;;  %v10758_v46 = vsub.f32 %v10748_v4, %v10736_v15 }
0x1284   : > { %v10762_v52 = vmax.f32 %v10758_v46, 1e-06 }
0x1286   : > { %13919 = vrcp.f32 %v10762_v52 }
0x128f   : > { %v13918_v41 = vpop.eup %13917 }
0x1290   : > { %v10767_v32 = vmul.f32 %v13918_v41, %v10753_v14 }
0x1292   : > { %10773 = vst [vmem:[%s19112_s30 + $0x2] sm:$0x3] %v10767_v32 }
0x1293   : > { %v13920_v37 = vpop.eup %13919 }
0x1294   : > { %v10769_v22 = vmul.f32 %v13920_v37, %v10754_v43 }
0x1296   : > { %10774 = vst [vmem:[%s19112_s30 + $0x4] sm:$0x3] %v10769_v22 }
0x1298   : > { %v10739_v10 = vpop.xlane.xlu0 %10738 }
0x1299   : > { %v10755_v17 = vsub.f32 %v10712_v26, %v10739_v10 }
0x129c   : > { %v10751_v19 = vpop.xlane.xlu0 %10750 }
0x129d   : > { %v10759_v47 = vsub.f32 %v10751_v19, %v10739_v10 }
0x129f   : > { %v10763_v24 = vmax.f32 %v10759_v47, 1e-06 }
0x12a1   : > { %13921 = vrcp.f32 %v10763_v24 }
0x12ae   : > { %v13922_v57 = vpop.eup %13921 }
0x12af   : > { %v10771_v56 = vmul.f32 %v13922_v57, %v10755_v17 }
0x12b1   : > { %10775 = vst [vmem:[%s19112_s30 + $0x6] sm:$0x3] %v10771_v56 }
0x12b2   : > { %13963 = shalt.err (!%p13960_p0)
}
0x12b3   : > { %s13964_s19 = scalar_lea.hbm %s19126_s8, 128  ;;  %s13968_s25 = scalar_lea.hbm %s19176_s3, 256 }
0x12b4   : > { %p13965_p1 = scmp.ne.s32.totalorder %s19126_s8, %s13964_s19  ;;  %p13969_p4 = scmp.lt.s32.totalorder %s19126_s8, %s19176_s3 }
0x12b5   : > { %p13970_p7 = scmp.lt.s32.totalorder %s13968_s25, %s13964_s19 }
0x12b6   : > { %p13966_p2 = pnand %p13965_p1, %p14086_p5 }
0x12b7   : > { %p13971_p6 = por %p13970_p7, %p13969_p4 }
0x12b8   : > { %p13967_p3 = pneg %p13966_p2 }
0x12ba   : > { %p13972_p8 = pnand %p13971_p6, %p13967_p3 }
0x12bc   : > { %13975 = shalt.err (!%p13972_p8)
}
0x12bd   : > { %s14027_s29 = smov 2  }
0x12be   : > { %13276 = dma.vmem_to_hbm [thread:$0]  (%p14086_p5), %s19121_s4, 128, %s19126_s8, %s19131_s9, %s14020_s27, %s14020_s27, %s14027_s29  }
0x12bf PF: > { %p13288_p9 = scmp.ge.s32.totalorder %s14014_s15, 2  ;;  %s10805_s30 = sand.u32 1, %s14002_s12  }
0x12c0   : > { %p20236_p10 = scmp.ne.s32.totalorder %s19591_s23, 0  ;;  %s10806_s5 = scalar_lea.sflag [#allocation4], %s10805_s30 }
0x12c2   : > { %p13283_p11 = pnand %p13288_p9, %p20236_p10 }
0x12c4   : > { %p13284_p12 = pneg %p13283_p11 }
0x12c6   : > { %13997 = dma.done.wait (%p13284_p12), %s10806_s5, 128  }
0x12c7   : > { %13999 = vsyncadd (%p13284_p12), %s10806_s5, 4294967168  ;;  %p14_p13 = scmp.ge.s32.totalorder %s14073_s18, 4   ;;  %s20237_s12 = smov %s14006_s13 }
0x12c8   : > { %s20238_s13 = smov %s14010_s14  ;;  %s20239_s14 = smov %s14084_s21 }
0x12c9   : > { %s20240_s15 = smov %s14073_s18  ;;  %16 = sbr.rel (!%p14_p13) target bundleno = 4 (0x4), region = 72 }
0x12ce   :  { %10811 = vsyncpa [#allocation3], 1 }
0x12cf   :  { %10813 = vsyncpa [#allocation3 + $0x1], 1 }
0x12d0   :  { %10814 = vsyncpa [#allocation4], 1 }
0x12d1   :  { %10816 = vsyncpa [#allocation4 + $0x1], 1 }

</bundles_post_ra>
